<compile_context>
chip_gen: v7x
topology: tpu7x:2x2x1
jax: 0.10.0
libtpu: 0.0.40
codegen_flags: <defaults>
</compile_context>

<pallas_src>
import functools

import jax
import jax.numpy as jnp
from jax.experimental import pallas as pl
from jax.experimental.pallas import tpu as pltpu

EPS = 1e-5       # nn.BatchNorm2d default
LANE = 128       # TPU lane width
GUARD = 8        # leading zero rows in the conv slab: keeps every tap-window
                 # start >= 0 and the bulk image store sublane-aligned


def _round_up(x, m):
    return ((x + m - 1) // m) * m


@functools.lru_cache(maxsize=None)
def _vmem_limit_bytes():
    """Generation-aware VMEM limit: ~3/4 of physical, clamped to [32, 96] MiB
    (=> ~48 MiB on v7x's 64 MiB, 96 MiB on v5e/v6e's 128 MiB)."""
    cap = 128 * 1024 * 1024
    try:
        cap = int(pltpu.get_tpu_info().vmem_capacity_bytes)
    except Exception:
        pass
    return max(32 * 1024 * 1024, min(96 * 1024 * 1024, (cap * 3) // 4))


# ----------------------------- conv kernels --------------------------------

def _conv_body(x_ref, scale_ref, shift_ref, w_ref, y_ref, psum_ref, pm2_ref,
               xpad_ref, acc_ref, *, H, W, S):
    """(optional fused BN-affine+ReLU) -> 3x3 SAME conv -> per-image BN partials.

    One grid step = one image in width-padded layout:
      x_ref    (1, H*S, Cin_p)   f32 (conv1) or bf16 (conv2)
      w_ref    (9*Cin_p, Cout_p) bf16, rows grouped by tap t = ky*3 + kx
      y_ref    (1, H*S, Cout_p)  bf16 conv output (width-padded layout)
      psum/pm2 (1, 1, Cout_p)    f32 per-image sum / centered sum-of-squares
      xpad_ref (GUARD+(H+2)*S+8, Cin_p) bf16 zero-padded flat conv slab
      acc_ref  (H*S, Cout_p)     f32 accumulator
    """
    cin = xpad_ref.shape[-1]
    L = H * S
    inv_hw = 1.0 / float(H * W)

    # column-validity mask of the width-padded row layout (flat % S < W)
    col = jax.lax.broadcasted_iota(jnp.int32, (L, 1), 0) % S
    valid = col < W

    x = x_ref[0]
    if scale_ref is None:
        # conv1: raw input; width/channel pad columns are already exact zeros
        xb = x.astype(jnp.bfloat16)
    else:
        # previous layer's folded BatchNorm + ReLU in f32, one bf16 cast,
        # re-zero the width-pad columns (they hold garbage in the bf16 y tensor)
        z = jnp.maximum(x.astype(jnp.float32) * scale_ref[...] + shift_ref[...], 0.0)
        xb = jnp.where(valid, z, 0.0).astype(jnp.bfloat16)

    # Zero-padded slab: top/bottom pad zeros + ONE aligned store of the image
    # (the left/right halo zeros ride along in the width-pad columns).  Nothing
    # persists across grid steps, so this is megacore-safe with no full-slab
    # zeroing pass.
    slab_rows = xpad_ref.shape[0]
    xpad_ref[0:GUARD + S, :] = jnp.zeros((GUARD + S, cin), jnp.bfloat16)
    xpad_ref[GUARD + S:GUARD + S + L, :] = xb
    xpad_ref[GUARD + (H + 1) * S:slab_rows, :] = jnp.zeros(
        (slab_rows - (GUARD + (H + 1) * S), cin), jnp.bfloat16)

    # 3x3 SAME conv = 9 contiguous shifted row-windows of the flat slab, each a
    # (H*S, Cin_p) x (Cin_p, Cout_p) bf16 MXU matmul with f32 accumulation.
    # Conv bias intentionally omitted (training-mode BN cancels it exactly).
    # TODO(synk): when MXU-bound (large Cin), group taps through a bf16 im2col
    # scratch so each dot has K >= 256 (v6e/v7x MXUs are 256 deep).
    for t in range(9):
        ky, kx = divmod(t, 3)
        base = GUARD + ky * S + (kx - 1)
        contrib = jnp.dot(xpad_ref[base:base + L, :],
                          w_ref[t * cin:(t + 1) * cin, :],
                          preferred_element_type=jnp.float32)
        if t == 0:
            acc_ref[...] = contrib
        else:
            acc_ref[...] += contrib

    acc = acc_ref[...]
    # width-padded layout out; pad columns hold garbage and are masked/dropped
    # by every consumer, so y is written to HBM exactly once (as bf16).
    y_ref[0] = acc.astype(y_ref.dtype)

    # per-image shifted BatchNorm partials from the f32 accumulator
    s = jnp.sum(jnp.where(valid, acc, 0.0), axis=0, keepdims=True)
    mu = s * inv_hw
    d = jnp.where(valid, acc - mu, 0.0)
    psum_ref[0] = s
    pm2_ref[0] = jnp.sum(d * d, axis=0, keepdims=True)


def _conv_kernel_first(x_ref, w_ref, y_ref, psum_ref, pm2_ref,
                       xpad_ref, acc_ref, *, H, W, S):
    _conv_body(x_ref, None, None, w_ref, y_ref, psum_ref, pm2_ref,
               xpad_ref, acc_ref, H=H, W=W, S=S)


def _conv_kernel_fused(x_ref, scale_ref, shift_ref, w_ref, y_ref, psum_ref,
                       pm2_ref, xpad_ref, acc_ref, *, H, W, S):
    _conv_body(x_ref, scale_ref, shift_ref, w_ref, y_ref, psum_ref, pm2_ref,
               xpad_ref, acc_ref, H=H, W=W, S=S)


def _conv_bn_stats(x_pw, scale, shift, w_mat, *, H, W):
    """x_pw: (N, H*S, Cin_p) width-padded activations; w_mat: (9*Cin_p, Cout_p) bf16.
    Returns (y bf16 (N, H*S, Cout_p), per-image sum, per-image centered SSQ)."""
    N, L, cin_p = x_pw.shape
    S = _round_up(W + 2, 8)
    K, cout_p = w_mat.shape
    assert L == H * S and K == 9 * cin_p
    slab_rows = GUARD + (H + 2) * S + 8

    fused = scale is not None
    kernel = functools.partial(
        _conv_kernel_fused if fused else _conv_kernel_first, H=H, W=W, S=S)

    in_specs = [pl.BlockSpec((1, L, cin_p), lambda n: (n, 0, 0))]
    operands = [x_pw]
    if fused:
        in_specs += [pl.BlockSpec((1, cin_p), lambda n: (0, 0)),
                     pl.BlockSpec((1, cin_p), lambda n: (0, 0))]
        operands += [scale, shift]
    in_specs += [pl.BlockSpec((K, cout_p), lambda n: (0, 0))]
    operands += [w_mat]

    # TODO(synk): for large H*W*C, tile H into row blocks with a 1-row halo
    # (manual halo DMA) so the per-step VMEM blocks stay bounded; full-image
    # blocks are well within budget at these shapes.
    return pl.pallas_call(
        kernel,
        out_shape=(
            jax.ShapeDtypeStruct((N, L, cout_p), jnp.bfloat16),
            jax.ShapeDtypeStruct((N, 1, cout_p), jnp.float32),
            jax.ShapeDtypeStruct((N, 1, cout_p), jnp.float32),
        ),
        grid=(N,),
        in_specs=in_specs,
        out_specs=(
            pl.BlockSpec((1, L, cout_p), lambda n: (n, 0, 0)),
            pl.BlockSpec((1, 1, cout_p), lambda n: (n, 0, 0)),
            pl.BlockSpec((1, 1, cout_p), lambda n: (n, 0, 0)),
        ),
        scratch_shapes=[pltpu.VMEM((slab_rows, cin_p), jnp.bfloat16),
                        pltpu.VMEM((L, cout_p), jnp.float32)],
        compiler_params=pltpu.CompilerParams(
            dimension_semantics=("parallel",),
            vmem_limit_bytes=_vmem_limit_bytes(),
        ),
    )(*operands)


# ------------------- final BN + ReLU + un-pad + transpose -------------------

def _bn_relu_nchw_kernel(y_ref, s_ref, t_ref, o_ref, *, H, W, S):
    cout_p = y_ref.shape[-1]
    n_out = o_ref.shape[1]
    z = jnp.maximum(y_ref[0].astype(jnp.float32) * s_ref[...] + t_ref[...], 0.0)
    # drop the width-pad columns (aligned static slices), then un-pad channels
    # and do the NHWC->NCHW transpose on-chip -> lane-dense (Cout, H*W) store.
    zv = jnp.concatenate([z[i * S:i * S + W, :] for i in range(H)], axis=0)
    o_ref[0] = zv.T[:n_out, :]


def _bn_relu_nchw(y, scale, shift, *, H, W, n_out):
    N, L, cout_p = y.shape
    S = _round_up(W + 2, 8)
    assert L == H * S
    kernel = functools.partial(_bn_relu_nchw_kernel, H=H, W=W, S=S)
    return pl.pallas_call(
        kernel,
        out_shape=jax.ShapeDtypeStruct((N, n_out, H * W), jnp.float32),
        grid=(N,),
        in_specs=[pl.BlockSpec((1, L, cout_p), lambda n: (n, 0, 0)),
                  pl.BlockSpec((1, cout_p), lambda n: (0, 0)),
                  pl.BlockSpec((1, cout_p), lambda n: (0, 0))],
        out_specs=pl.BlockSpec((1, n_out, H * W), lambda n: (n, 0, 0)),
        compiler_params=pltpu.CompilerParams(
            dimension_semantics=("parallel",),
            vmem_limit_bytes=_vmem_limit_bytes(),
        ),
    )(y, scale, shift)


# ----------------------------- glue (plain JAX) ------------------------------

def _weight_to_matrix(w_oihw, cin_p, cout_p):
    """torch (Cout,Cin,3,3) -> bf16 (9*cin_p, cout_p); rows grouped by tap (ky,kx)."""
    cout, cin = w_oihw.shape[0], w_oihw.shape[1]
    w = jnp.transpose(w_oihw, (2, 3, 1, 0))                 # (ky, kx, cin, cout)
    w = jnp.pad(w, ((0, 0), (0, 0), (0, cin_p - cin), (0, cout_p - cout)))
    return w.reshape(9 * cin_p, cout_p).astype(jnp.bfloat16)


def _pad_vec(v, cp):
    return jnp.pad(v.astype(jnp.float32), (0, cp - v.shape[0]))


def _finalize_bn(psum, pm2, gamma_p, beta_p, hw, n):
    """Combine per-image partials (parallel-variance / Chan) and fold the
    training-mode BatchNorm into a per-channel affine z = y*scale + shift."""
    count = float(n * hw)
    mu_img = psum / float(hw)                                # (N, 1, C)
    mean = jnp.sum(psum, axis=(0, 1)) / count                # (C,)
    var = (jnp.sum(pm2, axis=(0, 1))
           + float(hw) * jnp.sum((mu_img - mean) ** 2, axis=(0, 1))) / count
    var = jnp.maximum(var, 0.0)
    scale = gamma_p * jax.lax.rsqrt(var + EPS)
    shift = beta_p - mean * scale
    return scale.reshape(1, -1), shift.reshape(1, -1)


@jax.jit
def double_conv_forward(x_nchw, params):
    N, Cin, H, W = x_nchw.shape
    Cout = params["w1"].shape[0]
    cin_p = _round_up(Cin, LANE)
    cout_p = _round_up(Cout, LANE)
    S = _round_up(W + 2, 8)

    # NCHW -> NHWC, lane-pad channels, right-pad width to the padded row
    # stride S (the conv kernels work in this width-padded layout end to end).
    x = jnp.transpose(x_nchw, (0, 2, 3, 1)).astype(jnp.float32)
    x = jnp.pad(x, ((0, 0), (0, 0), (0, S - W), (0, cin_p - Cin)))
    x = x.reshape(N, H * S, cin_p)

    w1 = _weight_to_matrix(params["w1"], cin_p, cout_p)
    w2 = _weight_to_matrix(params["w2"], cout_p, cout_p)
    g1, be1 = _pad_vec(params["gamma1"], cout_p), _pad_vec(params["beta1"], cout_p)
    g2, be2 = _pad_vec(params["gamma2"], cout_p), _pad_vec(params["beta2"], cout_p)

    # conv1 + fused per-image BN partials (conv biases dropped: training-mode
    # BN mean-subtraction cancels them exactly)
    y1, s1, q1 = _conv_bn_stats(x, None, None, w1, H=H, W=W)
    scale1, shift1 = _finalize_bn(s1, q1, g1, be1, H * W, N)

    # conv2 with conv1's BN-affine + ReLU fused into its input read (+ partials)
    y2, s2, q2 = _conv_bn_stats(y1, scale1, shift1, w2, H=H, W=W)
    scale2, shift2 = _finalize_bn(s2, q2, g2, be2, H * W, N)

    # final BN-affine + ReLU fused with channel un-pad and NHWC->NCHW transpose
    z = _bn_relu_nchw(y2, scale2, shift2, H=H, W=W, n_out=Cout)  # (N, Cout, H*W)
    return z.reshape(N, Cout, H, W)


# ----------------------------- references -----------------------------------

def ref_forward(x, params):
    """Ground truth: Conv(+bias) -> BN(train) -> ReLU twice, f32 / HIGHEST."""
    def conv(h, w, b):
        y = jax.lax.conv_general_dilated(
            h, w, (1, 1), "SAME",
            dimension_numbers=("NCHW", "OIHW", "NCHW"),
            preferred_element_type=jnp.float32,
            precision=jax.lax.Precision.HIGHEST)
        return y + b[None, :, None, None]

    def bn_relu(y, gamma, beta):
        mean = jnp.mean(y, axis=(0, 2, 3), keepdims=True)
        var = jnp.mean((y - mean) ** 2, axis=(0, 2, 3), keepdims=True)
        z = (y - mean) * jax.lax.rsqrt(var + EPS)
        return jnp.maximum(
            z * gamma[None, :, None, None] + beta[None, :, None, None], 0.0)

    a1 = bn_relu(conv(x, params["w1"], params["b1"]),
                 params["gamma1"], params["beta1"])
    return bn_relu(conv(a1, params["w2"], params["b2"]),
                   params["gamma2"], params["beta2"])


def ref_forward_matched(x, params):
    """Numerics-matched reference: bias-free (training-mode BN cancels conv
    biases), bf16 MXU operands with f32 accumulation, bf16 storage of the conv
    outputs between layers -- mirrors the Pallas path up to accumulation order."""
    def conv(h, w):
        return jax.lax.conv_general_dilated(
            h.astype(jnp.bfloat16), w.astype(jnp.bfloat16), (1, 1), "SAME",
            dimension_numbers=("NCHW", "OIHW", "NCHW"),
            preferred_element_type=jnp.float32)

    def bn_affine(y_f32, gamma, beta):
        mean = jnp.mean(y_f32, axis=(0, 2, 3), keepdims=True)
        var = jnp.mean((y_f32 - mean) ** 2, axis=(0, 2, 3), keepdims=True)
        scale = gamma[None, :, None, None] * jax.lax.rsqrt(var + EPS)
        return scale, beta[None, :, None, None] - mean * scale

    y1 = conv(x, params["w1"])
    s1, t1 = bn_affine(y1, params["gamma1"], params["beta1"])
    a1 = jnp.maximum(y1.astype(jnp.bfloat16).astype(jnp.float32) * s1 + t1, 0.0)
    y2 = conv(a1, params["w2"])
    s2, t2 = bn_affine(y2, params["gamma2"], params["beta2"])
    return jnp.maximum(y2.astype(jnp.bfloat16).astype(jnp.float32) * s2 + t2, 0.0)


# ----------------------------- params + main --------------------------------

def init_params(key, in_channels, out_channels):
    k1, k2, k3, k4 = jax.random.split(key, 4)

    def conv_init(kw, kb, cin, cout):
        bound = 1.0 / jnp.sqrt(cin * 9.0)
        w = jax.random.uniform(kw, (cout, cin, 3, 3), jnp.float32, -bound, bound)
        b = jax.random.uniform(kb, (cout,), jnp.float32, -bound, bound)
        return w, b

    w1, b1 = conv_init(k1, k2, in_channels, out_channels)
    w2, b2 = conv_init(k3, k4, out_channels, out_channels)
    return {
        "w1": w1, "b1": b1,   # biases kept for the ground-truth reference; the
        "w2": w2, "b2": b2,   # Pallas path drops them (training-mode BN cancels them)
        "gamma1": jnp.ones((out_channels,), jnp.float32),
        "beta1": jnp.zeros((out_channels,), jnp.float32),
        "gamma2": jnp.ones((out_channels,), jnp.float32),
        "beta2": jnp.zeros((out_channels,), jnp.float32),
    }


if __name__ == "__main__":
    key = jax.random.PRNGKey(0)
    kx, kp = jax.random.split(key)

    N, Cin, Cout, H, W = 2, 4, 8, 16, 16
    x = jax.random.normal(kx, (N, Cin, H, W), jnp.float32)
    params = init_params(kp, Cin, Cout)

    out = jax.block_until_ready(double_conv_forward(x, params))
    assert out.shape == (N, Cout, H, W), out.shape

    # 1) tight check vs the numerics-matched reference (bf16 MXU operands,
    #    bf16 inter-layer activation storage, bias-free).
    ref_m = jax.block_until_ready(ref_forward_matched(x, params))
    err_m = float(jnp.max(jnp.abs(out - ref_m)))
    assert jnp.allclose(out, ref_m, rtol=1e-2, atol=1e-2), err_m

    # 2) loose bound vs the full-f32 (HIGHEST) ground truth with conv biases;
    #    slack accounts for bf16 weights + bf16 activation storage.
    ref_f = jax.block_until_ready(ref_forward(x, params))
    err_f = float(jnp.max(jnp.abs(out - ref_f)))
    assert jnp.allclose(out, ref_f, rtol=7.5e-2, atol=7.5e-2), err_f

    print("KERNEL_OK")
</pallas_src>

<mosaic_0001>
module attributes {stable_mosaic.version = 11 : i64} {
  func.func @_conv_kernel_first(%arg0: i32, %arg1: memref<1x384x128xf32, #tpu.memory_space<vmem>>, %arg2: memref<1152x128xbf16, #tpu.memory_space<vmem>>, %arg3: memref<1x384x128xbf16, #tpu.memory_space<vmem>>, %arg4: memref<1x1x128xf32, #tpu.memory_space<vmem>>, %arg5: memref<1x1x128xf32, #tpu.memory_space<vmem>>, %arg6: memref<448x128xbf16, #tpu.memory_space<vmem>>, %arg7: memref<384x128xf32, #tpu.memory_space<vmem>>) attributes {dimension_semantics = [#tpu.dimension_semantics<parallel>], iteration_bounds = array<i64: 2>, scalar_prefetch = 0 : i64, scratch_operands = 2 : i64, tpu.core_type = #tpu.core_type<tc>, window_params = [{transform_indices = @transform_0, window_bounds = array<i64: 1, 384, 128>}, {pipeline_mode = #tpu.pipeline_mode<synchronous>, transform_indices = @transform_1, window_bounds = array<i64: 1152, 128>}, {transform_indices = @transform_2, window_bounds = array<i64: 1, 384, 128>}, {transform_indices = @transform_3, window_bounds = array<i64: 1, 1, 128>}, {transform_indices = @transform_4, window_bounds = array<i64: 1, 1, 128>}]} {
    %0 = tpu.iota {dimensions = array<i32: 0>} : vector<384x1xi32>
    %c24_i32 = arith.constant 24 : i32
    %c0_i32 = arith.constant 0 : i32
    %1 = arith.cmpi eq, %c24_i32, %c0_i32 : i32
    %c1_i32 = arith.constant 1 : i32
    %2 = arith.select %1, %c1_i32, %c24_i32 : i32
    %3 = vector.broadcast %2 : i32 to vector<384x1xi32>
    %4 = arith.remsi %0, %3 : vector<384x1xi32>
    %c0_i32_0 = arith.constant 0 : i32
    %5 = vector.broadcast %c0_i32_0 : i32 to vector<384x1xi32>
    %6 = arith.cmpi ne, %4, %5 : vector<384x1xi32>
    %c0_i32_1 = arith.constant 0 : i32
    %7 = vector.broadcast %c0_i32_1 : i32 to vector<384x1xi32>
    %8 = arith.cmpi slt, %4, %7 : vector<384x1xi32>
    %c0_i32_2 = arith.constant 0 : i32
    %9 = arith.cmpi slt, %2, %c0_i32_2 : i32
    %10 = vector.broadcast %9 : i1 to vector<384x1xi1>
    %11 = vector.broadcast %10 : vector<384x1xi1> to vector<384x1xi1>
    %12 = arith.xori %8, %11 : vector<384x1xi1>
    %13 = arith.andi %12, %6 : vector<384x1xi1>
    %14 = vector.broadcast %2 : i32 to vector<384x1xi32>
    %15 = arith.addi %4, %14 : vector<384x1xi32>
    %16 = arith.select %13, %15, %4 : vector<384x1xi1>, vector<384x1xi32>
    %c16_i32 = arith.constant 16 : i32
    %17 = vector.broadcast %c16_i32 : i32 to vector<384x1xi32>
    %18 = arith.cmpi slt, %16, %17 : vector<384x1xi32>
    %c0 = arith.constant 0 : index
    %c0_3 = arith.constant 0 : index
    %c0_4 = arith.constant 0 : index
    %19 = vector.load %arg1[%c0, %c0_3, %c0_4] : memref<1x384x128xf32, #tpu.memory_space<vmem>>, vector<1x384x128xf32>
    %20 = vector.shape_cast %19 : vector<1x384x128xf32> to vector<384x128xf32>
    %21 = arith.truncf %20 : vector<384x128xf32> to vector<384x128xbf16>
    %cst = arith.constant 0.000000e+00 : bf16
    %22 = vector.broadcast %cst : bf16 to vector<32x128xbf16>
    %c0_5 = arith.constant 0 : index
    %c0_6 = arith.constant 0 : index
    %23 = vector.load %arg6[%c0_5, %c0_6] : memref<448x128xbf16, #tpu.memory_space<vmem>>, vector<32x128xbf16>
    tpu.vector_store %arg6[%c0_5, %c0_6], %22 {strides = array<i32>} : memref<448x128xbf16, #tpu.memory_space<vmem>>, vector<32x128xbf16>,
    %c32 = arith.constant 32 : index
    %c0_7 = arith.constant 0 : index
    %24 = vector.load %arg6[%c32, %c0_7] : memref<448x128xbf16, #tpu.memory_space<vmem>>, vector<384x128xbf16>
    tpu.vector_store %arg6[%c32, %c0_7], %21 {strides = array<i32>} : memref<448x128xbf16, #tpu.memory_space<vmem>>, vector<384x128xbf16>,
    %cst_8 = arith.constant 0.000000e+00 : bf16
    %25 = vector.broadcast %cst_8 : bf16 to vector<32x128xbf16>
    %c416 = arith.constant 416 : index
    %c0_9 = arith.constant 0 : index
    %26 = vector.load %arg6[%c416, %c0_9] : memref<448x128xbf16, #tpu.memory_space<vmem>>, vector<32x128xbf16>
    tpu.vector_store %arg6[%c416, %c0_9], %25 {strides = array<i32>} : memref<448x128xbf16, #tpu.memory_space<vmem>>, vector<32x128xbf16>,
    %c7 = arith.constant 7 : index
    %c0_10 = arith.constant 0 : index
    %27 = vector.load %arg6[%c7, %c0_10] : memref<448x128xbf16, #tpu.memory_space<vmem>>, vector<384x128xbf16>
    %c0_11 = arith.constant 0 : index
    %c0_12 = arith.constant 0 : index
    %28 = vector.load %arg2[%c0_11, %c0_12] : memref<1152x128xbf16, #tpu.memory_space<vmem>>, vector<128x128xbf16>
    %cst_13 = arith.constant dense<0.000000e+00> : vector<384x128xf32>
    %29 = tpu.matmul %27, %28, %cst_13 {dimension_numbers = #tpu.dot_dimension_numbers<[1], [0], [0], [1], [0, 0, 1, 1], [], []>} : vector<384x128xbf16>, vector<128x128xbf16>, vector<384x128xf32> -> vector<384x128xf32>
    %c0_14 = arith.constant 0 : index
    %c0_15 = arith.constant 0 : index
    %30 = vector.load %arg7[%c0_14, %c0_15] : memref<384x128xf32, #tpu.memory_space<vmem>>, vector<384x128xf32>
    tpu.vector_store %arg7[%c0_14, %c0_15], %29 {strides = array<i32>} : memref<384x128xf32, #tpu.memory_space<vmem>>, vector<384x128xf32>,
    %c8 = arith.constant 8 : index
    %c0_16 = arith.constant 0 : index
    %31 = vector.load %arg6[%c8, %c0_16] : memref<448x128xbf16, #tpu.memory_space<vmem>>, vector<384x128xbf16>
    %c128 = arith.constant 128 : index
    %c0_17 = arith.constant 0 : index
    %32 = vector.load %arg2[%c128, %c0_17] : memref<1152x128xbf16, #tpu.memory_space<vmem>>, vector<128x128xbf16>
    %cst_18 = arith.constant dense<0.000000e+00> : vector<384x128xf32>
    %33 = tpu.matmul %31, %32, %cst_18 {dimension_numbers = #tpu.dot_dimension_numbers<[1], [0], [0], [1], [0, 0, 1, 1], [], []>} : vector<384x128xbf16>, vector<128x128xbf16>, vector<384x128xf32> -> vector<384x128xf32>
    %c0_19 = arith.constant 0 : index
    %c0_20 = arith.constant 0 : index
    %34 = vector.load %arg7[%c0_19, %c0_20] : memref<384x128xf32, #tpu.memory_space<vmem>>, vector<384x128xf32>
    %35 = arith.addf %34, %33 : vector<384x128xf32>
    %c0_21 = arith.constant 0 : index
    %c0_22 = arith.constant 0 : index
    %36 = vector.load %arg7[%c0_21, %c0_22] : memref<384x128xf32, #tpu.memory_space<vmem>>, vector<384x128xf32>
    tpu.vector_store %arg7[%c0_21, %c0_22], %35 {strides = array<i32>} : memref<384x128xf32, #tpu.memory_space<vmem>>, vector<384x128xf32>,
    %c9 = arith.constant 9 : index
    %c0_23 = arith.constant 0 : index
    %37 = vector.load %arg6[%c9, %c0_23] : memref<448x128xbf16, #tpu.memory_space<vmem>>, vector<384x128xbf16>
    %c256 = arith.constant 256 : index
    %c0_24 = arith.constant 0 : index
    %38 = vector.load %arg2[%c256, %c0_24] : memref<1152x128xbf16, #tpu.memory_space<vmem>>, vector<128x128xbf16>
    %cst_25 = arith.constant dense<0.000000e+00> : vector<384x128xf32>
    %39 = tpu.matmul %37, %38, %cst_25 {dimension_numbers = #tpu.dot_dimension_numbers<[1], [0], [0], [1], [0, 0, 1, 1], [], []>} : vector<384x128xbf16>, vector<128x128xbf16>, vector<384x128xf32> -> vector<384x128xf32>
    %c0_26 = arith.constant 0 : index
    %c0_27 = arith.constant 0 : index
    %40 = vector.load %arg7[%c0_26, %c0_27] : memref<384x128xf32, #tpu.memory_space<vmem>>, vector<384x128xf32>
    %41 = arith.addf %40, %39 : vector<384x128xf32>
    %c0_28 = arith.constant 0 : index
    %c0_29 = arith.constant 0 : index
    %42 = vector.load %arg7[%c0_28, %c0_29] : memref<384x128xf32, #tpu.memory_space<vmem>>, vector<384x128xf32>
    tpu.vector_store %arg7[%c0_28, %c0_29], %41 {strides = array<i32>} : memref<384x128xf32, #tpu.memory_space<vmem>>, vector<384x128xf32>,
    %c31 = arith.constant 31 : index
    %c0_30 = arith.constant 0 : index
    %43 = vector.load %arg6[%c31, %c0_30] : memref<448x128xbf16, #tpu.memory_space<vmem>>, vector<384x128xbf16>
    %c384 = arith.constant 384 : index
    %c0_31 = arith.constant 0 : index
    %44 = vector.load %arg2[%c384, %c0_31] : memref<1152x128xbf16, #tpu.memory_space<vmem>>, vector<128x128xbf16>
    %cst_32 = arith.constant dense<0.000000e+00> : vector<384x128xf32>
    %45 = tpu.matmul %43, %44, %cst_32 {dimension_numbers = #tpu.dot_dimension_numbers<[1], [0], [0], [1], [0, 0, 1, 1], [], []>} : vector<384x128xbf16>, vector<128x128xbf16>, vector<384x128xf32> -> vector<384x128xf32>
    %c0_33 = arith.constant 0 : index
    %c0_34 = arith.constant 0 : index
    %46 = vector.load %arg7[%c0_33, %c0_34] : memref<384x128xf32, #tpu.memory_space<vmem>>, vector<384x128xf32>
    %47 = arith.addf %46, %45 : vector<384x128xf32>
    %c0_35 = arith.constant 0 : index
    %c0_36 = arith.constant 0 : index
    %48 = vector.load %arg7[%c0_35, %c0_36] : memref<384x128xf32, #tpu.memory_space<vmem>>, vector<384x128xf32>
    tpu.vector_store %arg7[%c0_35, %c0_36], %47 {strides = array<i32>} : memref<384x128xf32, #tpu.memory_space<vmem>>, vector<384x128xf32>,
    %c32_37 = arith.constant 32 : index
    %c0_38 = arith.constant 0 : index
    %49 = vector.load %arg6[%c32_37, %c0_38] : memref<448x128xbf16, #tpu.memory_space<vmem>>, vector<384x128xbf16>
    %c512 = arith.constant 512 : index
    %c0_39 = arith.constant 0 : index
    %50 = vector.load %arg2[%c512, %c0_39] : memref<1152x128xbf16, #tpu.memory_space<vmem>>, vector<128x128xbf16>
    %cst_40 = arith.constant dense<0.000000e+00> : vector<384x128xf32>
    %51 = tpu.matmul %49, %50, %cst_40 {dimension_numbers = #tpu.dot_dimension_numbers<[1], [0], [0], [1], [0, 0, 1, 1], [], []>} : vector<384x128xbf16>, vector<128x128xbf16>, vector<384x128xf32> -> vector<384x128xf32>
    %c0_41 = arith.constant 0 : index
    %c0_42 = arith.constant 0 : index
    %52 = vector.load %arg7[%c0_41, %c0_42] : memref<384x128xf32, #tpu.memory_space<vmem>>, vector<384x128xf32>
    %53 = arith.addf %52, %51 : vector<384x128xf32>
    %c0_43 = arith.constant 0 : index
    %c0_44 = arith.constant 0 : index
    %54 = vector.load %arg7[%c0_43, %c0_44] : memref<384x128xf32, #tpu.memory_space<vmem>>, vector<384x128xf32>
    tpu.vector_store %arg7[%c0_43, %c0_44], %53 {strides = array<i32>} : memref<384x128xf32, #tpu.memory_space<vmem>>, vector<384x128xf32>,
    %c33 = arith.constant 33 : index
    %c0_45 = arith.constant 0 : index
    %55 = vector.load %arg6[%c33, %c0_45] : memref<448x128xbf16, #tpu.memory_space<vmem>>, vector<384x128xbf16>
    %c640 = arith.constant 640 : index
    %c0_46 = arith.constant 0 : index
    %56 = vector.load %arg2[%c640, %c0_46] : memref<1152x128xbf16, #tpu.memory_space<vmem>>, vector<128x128xbf16>
    %cst_47 = arith.constant dense<0.000000e+00> : vector<384x128xf32>
    %57 = tpu.matmul %55, %56, %cst_47 {dimension_numbers = #tpu.dot_dimension_numbers<[1], [0], [0], [1], [0, 0, 1, 1], [], []>} : vector<384x128xbf16>, vector<128x128xbf16>, vector<384x128xf32> -> vector<384x128xf32>
    %c0_48 = arith.constant 0 : index
    %c0_49 = arith.constant 0 : index
    %58 = vector.load %arg7[%c0_48, %c0_49] : memref<384x128xf32, #tpu.memory_space<vmem>>, vector<384x128xf32>
    %59 = arith.addf %58, %57 : vector<384x128xf32>
    %c0_50 = arith.constant 0 : index
    %c0_51 = arith.constant 0 : index
    %60 = vector.load %arg7[%c0_50, %c0_51] : memref<384x128xf32, #tpu.memory_space<vmem>>, vector<384x128xf32>
    tpu.vector_store %arg7[%c0_50, %c0_51], %59 {strides = array<i32>} : memref<384x128xf32, #tpu.memory_space<vmem>>, vector<384x128xf32>,
    %c55 = arith.constant 55 : index
    %c0_52 = arith.constant 0 : index
    %61 = vector.load %arg6[%c55, %c0_52] : memref<448x128xbf16, #tpu.memory_space<vmem>>, vector<384x128xbf16>
    %c768 = arith.constant 768 : index
    %c0_53 = arith.constant 0 : index
    %62 = vector.load %arg2[%c768, %c0_53] : memref<1152x128xbf16, #tpu.memory_space<vmem>>, vector<128x128xbf16>
    %cst_54 = arith.constant dense<0.000000e+00> : vector<384x128xf32>
    %63 = tpu.matmul %61, %62, %cst_54 {dimension_numbers = #tpu.dot_dimension_numbers<[1], [0], [0], [1], [0, 0, 1, 1], [], []>} : vector<384x128xbf16>, vector<128x128xbf16>, vector<384x128xf32> -> vector<384x128xf32>
    %c0_55 = arith.constant 0 : index
    %c0_56 = arith.constant 0 : index
    %64 = vector.load %arg7[%c0_55, %c0_56] : memref<384x128xf32, #tpu.memory_space<vmem>>, vector<384x128xf32>
    %65 = arith.addf %64, %63 : vector<384x128xf32>
    %c0_57 = arith.constant 0 : index
    %c0_58 = arith.constant 0 : index
    %66 = vector.load %arg7[%c0_57, %c0_58] : memref<384x128xf32, #tpu.memory_space<vmem>>, vector<384x128xf32>
    tpu.vector_store %arg7[%c0_57, %c0_58], %65 {strides = array<i32>} : memref<384x128xf32, #tpu.memory_space<vmem>>, vector<384x128xf32>,
    %c56 = arith.constant 56 : index
    %c0_59 = arith.constant 0 : index
    %67 = vector.load %arg6[%c56, %c0_59] : memref<448x128xbf16, #tpu.memory_space<vmem>>, vector<384x128xbf16>
    %c896 = arith.constant 896 : index
    %c0_60 = arith.constant 0 : index
    %68 = vector.load %arg2[%c896, %c0_60] : memref<1152x128xbf16, #tpu.memory_space<vmem>>, vector<128x128xbf16>
    %cst_61 = arith.constant dense<0.000000e+00> : vector<384x128xf32>
    %69 = tpu.matmul %67, %68, %cst_61 {dimension_numbers = #tpu.dot_dimension_numbers<[1], [0], [0], [1], [0, 0, 1, 1], [], []>} : vector<384x128xbf16>, vector<128x128xbf16>, vector<384x128xf32> -> vector<384x128xf32>
    %c0_62 = arith.constant 0 : index
    %c0_63 = arith.constant 0 : index
    %70 = vector.load %arg7[%c0_62, %c0_63] : memref<384x128xf32, #tpu.memory_space<vmem>>, vector<384x128xf32>
    %71 = arith.addf %70, %69 : vector<384x128xf32>
    %c0_64 = arith.constant 0 : index
    %c0_65 = arith.constant 0 : index
    %72 = vector.load %arg7[%c0_64, %c0_65] : memref<384x128xf32, #tpu.memory_space<vmem>>, vector<384x128xf32>
    tpu.vector_store %arg7[%c0_64, %c0_65], %71 {strides = array<i32>} : memref<384x128xf32, #tpu.memory_space<vmem>>, vector<384x128xf32>,
    %c57 = arith.constant 57 : index
    %c0_66 = arith.constant 0 : index
    %73 = vector.load %arg6[%c57, %c0_66] : memref<448x128xbf16, #tpu.memory_space<vmem>>, vector<384x128xbf16>
    %c1024 = arith.constant 1024 : index
    %c0_67 = arith.constant 0 : index
    %74 = vector.load %arg2[%c1024, %c0_67] : memref<1152x128xbf16, #tpu.memory_space<vmem>>, vector<128x128xbf16>
    %cst_68 = arith.constant dense<0.000000e+00> : vector<384x128xf32>
    %75 = tpu.matmul %73, %74, %cst_68 {dimension_numbers = #tpu.dot_dimension_numbers<[1], [0], [0], [1], [0, 0, 1, 1], [], []>} : vector<384x128xbf16>, vector<128x128xbf16>, vector<384x128xf32> -> vector<384x128xf32>
    %c0_69 = arith.constant 0 : index
    %c0_70 = arith.constant 0 : index
    %76 = vector.load %arg7[%c0_69, %c0_70] : memref<384x128xf32, #tpu.memory_space<vmem>>, vector<384x128xf32>
    %77 = arith.addf %76, %75 : vector<384x128xf32>
    %c0_71 = arith.constant 0 : index
    %c0_72 = arith.constant 0 : index
    %78 = vector.load %arg7[%c0_71, %c0_72] : memref<384x128xf32, #tpu.memory_space<vmem>>, vector<384x128xf32>
    tpu.vector_store %arg7[%c0_71, %c0_72], %77 {strides = array<i32>} : memref<384x128xf32, #tpu.memory_space<vmem>>, vector<384x128xf32>,
    %c0_73 = arith.constant 0 : index
    %c0_74 = arith.constant 0 : index
    %79 = vector.load %arg7[%c0_73, %c0_74] : memref<384x128xf32, #tpu.memory_space<vmem>>, vector<384x128xf32>
    %80 = arith.truncf %79 : vector<384x128xf32> to vector<384x128xbf16>
    %c0_75 = arith.constant 0 : index
    %c0_76 = arith.constant 0 : index
    %c0_77 = arith.constant 0 : index
    %81 = vector.load %arg3[%c0_75, %c0_76, %c0_77] : memref<1x384x128xbf16, #tpu.memory_space<vmem>>, vector<1x384x128xbf16>
    %82 = vector.shape_cast %81 : vector<1x384x128xbf16> to vector<384x128xbf16>
    %83 = vector.shape_cast %80 : vector<384x128xbf16> to vector<1x384x128xbf16>
    tpu.vector_store %arg3[%c0_75, %c0_76, %c0_77], %83 {strides = array<i32>} : memref<1x384x128xbf16, #tpu.memory_space<vmem>>, vector<1x384x128xbf16>,
    %cst_78 = arith.constant 0.000000e+00 : f32
    %84 = vector.shape_cast %18 : vector<384x1xi1> to vector<384x1xi1>
    %85 = vector.broadcast %84 : vector<384x1xi1> to vector<384x128xi1>
    %86 = vector.broadcast %cst_78 : f32 to vector<384x128xf32>
    %87 = arith.select %85, %79, %86 : vector<384x128xi1>, vector<384x128xf32>
    %cst_79 = arith.constant dense<0.000000e+00> : vector<128xf32>
    %88 = vector.multi_reduction <add>, %87, %cst_79 [0] : vector<384x128xf32> to vector<128xf32>
    %89 = vector.shape_cast %88 : vector<128xf32> to vector<1x128xf32>
    %cst_80 = arith.constant 3.906250e-03 : f32
    %90 = vector.broadcast %cst_80 : f32 to vector<1x128xf32>
    %91 = arith.mulf %89, %90 : vector<1x128xf32>
    %92 = vector.broadcast %91 : vector<1x128xf32> to vector<384x128xf32>
    %93 = arith.subf %79, %92 : vector<384x128xf32>
    %cst_81 = arith.constant 0.000000e+00 : f32
    %94 = vector.shape_cast %18 : vector<384x1xi1> to vector<384x1xi1>
    %95 = vector.broadcast %94 : vector<384x1xi1> to vector<384x128xi1>
    %96 = vector.broadcast %cst_81 : f32 to vector<384x128xf32>
    %97 = arith.select %95, %93, %96 : vector<384x128xi1>, vector<384x128xf32>
    %c0_82 = arith.constant 0 : index
    %c0_83 = arith.constant 0 : index
    %c0_84 = arith.constant 0 : index
    %98 = vector.load %arg4[%c0_82, %c0_83, %c0_84] : memref<1x1x128xf32, #tpu.memory_space<vmem>>, vector<1x1x128xf32>
    %99 = vector.shape_cast %98 : vector<1x1x128xf32> to vector<1x128xf32>
    %100 = vector.shape_cast %89 : vector<1x128xf32> to vector<1x1x128xf32>
    tpu.vector_store %arg4[%c0_82, %c0_83, %c0_84], %100 {strides = array<i32>} : memref<1x1x128xf32, #tpu.memory_space<vmem>>, vector<1x1x128xf32>,
    %101 = arith.mulf %97, %97 : vector<384x128xf32>
    %cst_85 = arith.constant dense<0.000000e+00> : vector<128xf32>
    %102 = vector.multi_reduction <add>, %101, %cst_85 [0] : vector<384x128xf32> to vector<128xf32>
    %103 = vector.shape_cast %102 : vector<128xf32> to vector<1x128xf32>
    %c0_86 = arith.constant 0 : index
    %c0_87 = arith.constant 0 : index
    %c0_88 = arith.constant 0 : index
    %104 = vector.load %arg5[%c0_86, %c0_87, %c0_88] : memref<1x1x128xf32, #tpu.memory_space<vmem>>, vector<1x1x128xf32>
    %105 = vector.shape_cast %104 : vector<1x1x128xf32> to vector<1x128xf32>
    %106 = vector.shape_cast %103 : vector<1x128xf32> to vector<1x1x128xf32>
    tpu.vector_store %arg5[%c0_86, %c0_87, %c0_88], %106 {strides = array<i32>} : memref<1x1x128xf32, #tpu.memory_space<vmem>>, vector<1x1x128xf32>,
    return
  }
  func.func @transform_0(%arg0: i32) -> (i32, i32, i32) {
    %c0_i32 = arith.constant 0 : i32
    %c0_i32_0 = arith.constant 0 : i32
    %c0_i32_1 = arith.constant 0 : i32
    return %arg0, %c0_i32, %c0_i32_0 : i32, i32, i32
  }
  func.func @transform_1(%arg0: i32) -> (i32, i32) {
    %c0_i32 = arith.constant 0 : i32
    %c0_i32_0 = arith.constant 0 : i32
    %c0_i32_1 = arith.constant 0 : i32
    return %c0_i32, %c0_i32_0 : i32, i32
  }
  func.func @transform_2(%arg0: i32) -> (i32, i32, i32) {
    %c0_i32 = arith.constant 0 : i32
    %c0_i32_0 = arith.constant 0 : i32
    %c0_i32_1 = arith.constant 0 : i32
    return %arg0, %c0_i32, %c0_i32_0 : i32, i32, i32
  }
  func.func @transform_3(%arg0: i32) -> (i32, i32, i32) {
    %c0_i32 = arith.constant 0 : i32
    %c0_i32_0 = arith.constant 0 : i32
    %c0_i32_1 = arith.constant 0 : i32
    return %arg0, %c0_i32, %c0_i32_0 : i32, i32, i32
  }
  func.func @transform_4(%arg0: i32) -> (i32, i32, i32) {
    %c0_i32 = arith.constant 0 : i32
    %c0_i32_0 = arith.constant 0 : i32
    %c0_i32_1 = arith.constant 0 : i32
    return %arg0, %c0_i32, %c0_i32_0 : i32, i32, i32
  }
}

module attributes {stable_mosaic.version = 11 : i64} {
  func.func @_bn_relu_nchw_kernel(%arg0: i32, %arg1: memref<1x384x128xbf16, #tpu.memory_space<vmem>>, %arg2: memref<1x128xf32, #tpu.memory_space<vmem>>, %arg3: memref<1x128xf32, #tpu.memory_space<vmem>>, %arg4: memref<1x8x256xf32, #tpu.memory_space<vmem>>) attributes {dimension_semantics = [#tpu.dimension_semantics<parallel>], iteration_bounds = array<i64: 2>, scalar_prefetch = 0 : i64, scratch_operands = 0 : i64, tpu.core_type = #tpu.core_type<tc>, window_params = [{transform_indices = @transform_0, window_bounds = array<i64: 1, 384, 128>}, {pipeline_mode = #tpu.pipeline_mode<synchronous>, transform_indices = @transform_1, window_bounds = array<i64: 1, 128>}, {pipeline_mode = #tpu.pipeline_mode<synchronous>, transform_indices = @transform_2, window_bounds = array<i64: 1, 128>}, {transform_indices = @transform_3, window_bounds = array<i64: 1, 8, 256>}]} {
    %c0 = arith.constant 0 : index
    %c0_0 = arith.constant 0 : index
    %c0_1 = arith.constant 0 : index
    %0 = vector.load %arg1[%c0, %c0_0, %c0_1] : memref<1x384x128xbf16, #tpu.memory_space<vmem>>, vector<1x384x128xbf16>
    %1 = vector.shape_cast %0 : vector<1x384x128xbf16> to vector<384x128xbf16>
    %2 = arith.extf %1 : vector<384x128xbf16> to vector<384x128xf32>
    %c0_2 = arith.constant 0 : index
    %c0_3 = arith.constant 0 : index
    %3 = vector.load %arg2[%c0_2, %c0_3] : memref<1x128xf32, #tpu.memory_space<vmem>>, vector<1x128xf32>
    %4 = vector.broadcast %3 : vector<1x128xf32> to vector<384x128xf32>
    %5 = arith.mulf %2, %4 : vector<384x128xf32>
    %c0_4 = arith.constant 0 : index
    %c0_5 = arith.constant 0 : index
    %6 = vector.load %arg3[%c0_4, %c0_5] : memref<1x128xf32, #tpu.memory_space<vmem>>, vector<1x128xf32>
    %7 = vector.broadcast %6 : vector<1x128xf32> to vector<384x128xf32>
    %8 = arith.addf %5, %7 : vector<384x128xf32>
    %cst = arith.constant 0.000000e+00 : f32
    %9 = vector.broadcast %cst : f32 to vector<384x128xf32>
    %10 = arith.maximumf %8, %9 : vector<384x128xf32>
    %11 = vector.extract_strided_slice %10 {offsets = [0, 0], sizes = [16, 128], strides = [1, 1]} : vector<384x128xf32> to vector<16x128xf32>
    %12 = vector.extract_strided_slice %10 {offsets = [24, 0], sizes = [16, 128], strides = [1, 1]} : vector<384x128xf32> to vector<16x128xf32>
    %13 = vector.extract_strided_slice %10 {offsets = [48, 0], sizes = [16, 128], strides = [1, 1]} : vector<384x128xf32> to vector<16x128xf32>
    %14 = vector.extract_strided_slice %10 {offsets = [72, 0], sizes = [16, 128], strides = [1, 1]} : vector<384x128xf32> to vector<16x128xf32>
    %15 = vector.extract_strided_slice %10 {offsets = [96, 0], sizes = [16, 128], strides = [1, 1]} : vector<384x128xf32> to vector<16x128xf32>
    %16 = vector.extract_strided_slice %10 {offsets = [120, 0], sizes = [16, 128], strides = [1, 1]} : vector<384x128xf32> to vector<16x128xf32>
    %17 = vector.extract_strided_slice %10 {offsets = [144, 0], sizes = [16, 128], strides = [1, 1]} : vector<384x128xf32> to vector<16x128xf32>
    %18 = vector.extract_strided_slice %10 {offsets = [168, 0], sizes = [16, 128], strides = [1, 1]} : vector<384x128xf32> to vector<16x128xf32>
    %19 = vector.extract_strided_slice %10 {offsets = [192, 0], sizes = [16, 128], strides = [1, 1]} : vector<384x128xf32> to vector<16x128xf32>
    %20 = vector.extract_strided_slice %10 {offsets = [216, 0], sizes = [16, 128], strides = [1, 1]} : vector<384x128xf32> to vector<16x128xf32>
    %21 = vector.extract_strided_slice %10 {offsets = [240, 0], sizes = [16, 128], strides = [1, 1]} : vector<384x128xf32> to vector<16x128xf32>
    %22 = vector.extract_strided_slice %10 {offsets = [264, 0], sizes = [16, 128], strides = [1, 1]} : vector<384x128xf32> to vector<16x128xf32>
    %23 = vector.extract_strided_slice %10 {offsets = [288, 0], sizes = [16, 128], strides = [1, 1]} : vector<384x128xf32> to vector<16x128xf32>
    %24 = vector.extract_strided_slice %10 {offsets = [312, 0], sizes = [16, 128], strides = [1, 1]} : vector<384x128xf32> to vector<16x128xf32>
    %25 = vector.extract_strided_slice %10 {offsets = [336, 0], sizes = [16, 128], strides = [1, 1]} : vector<384x128xf32> to vector<16x128xf32>
    %26 = vector.extract_strided_slice %10 {offsets = [360, 0], sizes = [16, 128], strides = [1, 1]} : vector<384x128xf32> to vector<16x128xf32>
    %27 = tpu.concatenate %11, %12, %13, %14, %15, %16, %17, %18, %19, %20, %21, %22, %23, %24, %25, %26 in 0 : vector<16x128xf32>, vector<16x128xf32>, vector<16x128xf32>, vector<16x128xf32>, vector<16x128xf32>, vector<16x128xf32>, vector<16x128xf32>, vector<16x128xf32>, vector<16x128xf32>, vector<16x128xf32>, vector<16x128xf32>, vector<16x128xf32>, vector<16x128xf32>, vector<16x128xf32>, vector<16x128xf32>, vector<16x128xf32> -> vector<256x128xf32>
    %28 = tpu.transpose %27, [1, 0] : vector<256x128xf32> -> vector<128x256xf32>
    %29 = vector.extract_strided_slice %28 {offsets = [0, 0], sizes = [8, 256], strides = [1, 1]} : vector<128x256xf32> to vector<8x256xf32>
    %c0_6 = arith.constant 0 : index
    %c0_7 = arith.constant 0 : index
    %c0_8 = arith.constant 0 : index
    %30 = vector.load %arg4[%c0_6, %c0_7, %c0_8] : memref<1x8x256xf32, #tpu.memory_space<vmem>>, vector<1x8x256xf32>
    %31 = vector.shape_cast %30 : vector<1x8x256xf32> to vector<8x256xf32>
    %32 = vector.shape_cast %29 : vector<8x256xf32> to vector<1x8x256xf32>
    tpu.vector_store %arg4[%c0_6, %c0_7, %c0_8], %32 {strides = array<i32>} : memref<1x8x256xf32, #tpu.memory_space<vmem>>, vector<1x8x256xf32>,
    return
  }
  func.func @transform_0(%arg0: i32) -> (i32, i32, i32) {
    %c0_i32 = arith.constant 0 : i32
    %c0_i32_0 = arith.constant 0 : i32
    %c0_i32_1 = arith.constant 0 : i32
    return %arg0, %c0_i32, %c0_i32_0 : i32, i32, i32
  }
  func.func @transform_1(%arg0: i32) -> (i32, i32) {
    %c0_i32 = arith.constant 0 : i32
    %c0_i32_0 = arith.constant 0 : i32
    %c0_i32_1 = arith.constant 0 : i32
    return %c0_i32, %c0_i32_0 : i32, i32
  }
  func.func @transform_2(%arg0: i32) -> (i32, i32) {
    %c0_i32 = arith.constant 0 : i32
    %c0_i32_0 = arith.constant 0 : i32
    %c0_i32_1 = arith.constant 0 : i32
    return %c0_i32, %c0_i32_0 : i32, i32
  }
  func.func @transform_3(%arg0: i32) -> (i32, i32, i32) {
    %c0_i32 = arith.constant 0 : i32
    %c0_i32_0 = arith.constant 0 : i32
    %c0_i32_1 = arith.constant 0 : i32
    return %arg0, %c0_i32, %c0_i32_0 : i32, i32, i32
  }
}

module attributes {stable_mosaic.version = 11 : i64} {
  func.func @_conv_kernel_fused(%arg0: i32, %arg1: memref<1x384x128xbf16, #tpu.memory_space<vmem>>, %arg2: memref<1x128xf32, #tpu.memory_space<vmem>>, %arg3: memref<1x128xf32, #tpu.memory_space<vmem>>, %arg4: memref<1152x128xbf16, #tpu.memory_space<vmem>>, %arg5: memref<1x384x128xbf16, #tpu.memory_space<vmem>>, %arg6: memref<1x1x128xf32, #tpu.memory_space<vmem>>, %arg7: memref<1x1x128xf32, #tpu.memory_space<vmem>>, %arg8: memref<448x128xbf16, #tpu.memory_space<vmem>>, %arg9: memref<384x128xf32, #tpu.memory_space<vmem>>) attributes {dimension_semantics = [#tpu.dimension_semantics<parallel>], iteration_bounds = array<i64: 2>, scalar_prefetch = 0 : i64, scratch_operands = 2 : i64, tpu.core_type = #tpu.core_type<tc>, window_params = [{transform_indices = @transform_0, window_bounds = array<i64: 1, 384, 128>}, {pipeline_mode = #tpu.pipeline_mode<synchronous>, transform_indices = @transform_1, window_bounds = array<i64: 1, 128>}, {pipeline_mode = #tpu.pipeline_mode<synchronous>, transform_indices = @transform_2, window_bounds = array<i64: 1, 128>}, {pipeline_mode = #tpu.pipeline_mode<synchronous>, transform_indices = @transform_3, window_bounds = array<i64: 1152, 128>}, {transform_indices = @transform_4, window_bounds = array<i64: 1, 384, 128>}, {transform_indices = @transform_5, window_bounds = array<i64: 1, 1, 128>}, {transform_indices = @transform_6, window_bounds = array<i64: 1, 1, 128>}]} {
    %0 = tpu.iota {dimensions = array<i32: 0>} : vector<384x1xi32>
    %c24_i32 = arith.constant 24 : i32
    %c0_i32 = arith.constant 0 : i32
    %1 = arith.cmpi eq, %c24_i32, %c0_i32 : i32
    %c1_i32 = arith.constant 1 : i32
    %2 = arith.select %1, %c1_i32, %c24_i32 : i32
    %3 = vector.broadcast %2 : i32 to vector<384x1xi32>
    %4 = arith.remsi %0, %3 : vector<384x1xi32>
    %c0_i32_0 = arith.constant 0 : i32
    %5 = vector.broadcast %c0_i32_0 : i32 to vector<384x1xi32>
    %6 = arith.cmpi ne, %4, %5 : vector<384x1xi32>
    %c0_i32_1 = arith.constant 0 : i32
    %7 = vector.broadcast %c0_i32_1 : i32 to vector<384x1xi32>
    %8 = arith.cmpi slt, %4, %7 : vector<384x1xi32>
    %c0_i32_2 = arith.constant 0 : i32
    %9 = arith.cmpi slt, %2, %c0_i32_2 : i32
    %10 = vector.broadcast %9 : i1 to vector<384x1xi1>
    %11 = vector.broadcast %10 : vector<384x1xi1> to vector<384x1xi1>
    %12 = arith.xori %8, %11 : vector<384x1xi1>
    %13 = arith.andi %12, %6 : vector<384x1xi1>
    %14 = vector.broadcast %2 : i32 to vector<384x1xi32>
    %15 = arith.addi %4, %14 : vector<384x1xi32>
    %16 = arith.select %13, %15, %4 : vector<384x1xi1>, vector<384x1xi32>
    %c16_i32 = arith.constant 16 : i32
    %17 = vector.broadcast %c16_i32 : i32 to vector<384x1xi32>
    %18 = arith.cmpi slt, %16, %17 : vector<384x1xi32>
    %c0 = arith.constant 0 : index
    %c0_3 = arith.constant 0 : index
    %c0_4 = arith.constant 0 : index
    %19 = vector.load %arg1[%c0, %c0_3, %c0_4] : memref<1x384x128xbf16, #tpu.memory_space<vmem>>, vector<1x384x128xbf16>
    %20 = vector.shape_cast %19 : vector<1x384x128xbf16> to vector<384x128xbf16>
    %21 = arith.extf %20 : vector<384x128xbf16> to vector<384x128xf32>
    %c0_5 = arith.constant 0 : index
    %c0_6 = arith.constant 0 : index
    %22 = vector.load %arg2[%c0_5, %c0_6] : memref<1x128xf32, #tpu.memory_space<vmem>>, vector<1x128xf32>
    %23 = vector.broadcast %22 : vector<1x128xf32> to vector<384x128xf32>
    %24 = arith.mulf %21, %23 : vector<384x128xf32>
    %c0_7 = arith.constant 0 : index
    %c0_8 = arith.constant 0 : index
    %25 = vector.load %arg3[%c0_7, %c0_8] : memref<1x128xf32, #tpu.memory_space<vmem>>, vector<1x128xf32>
    %26 = vector.broadcast %25 : vector<1x128xf32> to vector<384x128xf32>
    %27 = arith.addf %24, %26 : vector<384x128xf32>
    %cst = arith.constant 0.000000e+00 : f32
    %28 = vector.broadcast %cst : f32 to vector<384x128xf32>
    %29 = arith.maximumf %27, %28 : vector<384x128xf32>
    %cst_9 = arith.constant 0.000000e+00 : f32
    %30 = vector.shape_cast %18 : vector<384x1xi1> to vector<384x1xi1>
    %31 = vector.broadcast %30 : vector<384x1xi1> to vector<384x128xi1>
    %32 = vector.broadcast %cst_9 : f32 to vector<384x128xf32>
    %33 = arith.select %31, %29, %32 : vector<384x128xi1>, vector<384x128xf32>
    %34 = arith.truncf %33 : vector<384x128xf32> to vector<384x128xbf16>
    %cst_10 = arith.constant 0.000000e+00 : bf16
    %35 = vector.broadcast %cst_10 : bf16 to vector<32x128xbf16>
    %c0_11 = arith.constant 0 : index
    %c0_12 = arith.constant 0 : index
    %36 = vector.load %arg8[%c0_11, %c0_12] : memref<448x128xbf16, #tpu.memory_space<vmem>>, vector<32x128xbf16>
    tpu.vector_store %arg8[%c0_11, %c0_12], %35 {strides = array<i32>} : memref<448x128xbf16, #tpu.memory_space<vmem>>, vector<32x128xbf16>,
    %c32 = arith.constant 32 : index
    %c0_13 = arith.constant 0 : index
    %37 = vector.load %arg8[%c32, %c0_13] : memref<448x128xbf16, #tpu.memory_space<vmem>>, vector<384x128xbf16>
    tpu.vector_store %arg8[%c32, %c0_13], %34 {strides = array<i32>} : memref<448x128xbf16, #tpu.memory_space<vmem>>, vector<384x128xbf16>,
    %cst_14 = arith.constant 0.000000e+00 : bf16
    %38 = vector.broadcast %cst_14 : bf16 to vector<32x128xbf16>
    %c416 = arith.constant 416 : index
    %c0_15 = arith.constant 0 : index
    %39 = vector.load %arg8[%c416, %c0_15] : memref<448x128xbf16, #tpu.memory_space<vmem>>, vector<32x128xbf16>
    tpu.vector_store %arg8[%c416, %c0_15], %38 {strides = array<i32>} : memref<448x128xbf16, #tpu.memory_space<vmem>>, vector<32x128xbf16>,
    %c7 = arith.constant 7 : index
    %c0_16 = arith.constant 0 : index
    %40 = vector.load %arg8[%c7, %c0_16] : memref<448x128xbf16, #tpu.memory_space<vmem>>, vector<384x128xbf16>
    %c0_17 = arith.constant 0 : index
    %c0_18 = arith.constant 0 : index
    %41 = vector.load %arg4[%c0_17, %c0_18] : memref<1152x128xbf16, #tpu.memory_space<vmem>>, vector<128x128xbf16>
    %cst_19 = arith.constant dense<0.000000e+00> : vector<384x128xf32>
    %42 = tpu.matmul %40, %41, %cst_19 {dimension_numbers = #tpu.dot_dimension_numbers<[1], [0], [0], [1], [0, 0, 1, 1], [], []>} : vector<384x128xbf16>, vector<128x128xbf16>, vector<384x128xf32> -> vector<384x128xf32>
    %c0_20 = arith.constant 0 : index
    %c0_21 = arith.constant 0 : index
    %43 = vector.load %arg9[%c0_20, %c0_21] : memref<384x128xf32, #tpu.memory_space<vmem>>, vector<384x128xf32>
    tpu.vector_store %arg9[%c0_20, %c0_21], %42 {strides = array<i32>} : memref<384x128xf32, #tpu.memory_space<vmem>>, vector<384x128xf32>,
    %c8 = arith.constant 8 : index
    %c0_22 = arith.constant 0 : index
    %44 = vector.load %arg8[%c8, %c0_22] : memref<448x128xbf16, #tpu.memory_space<vmem>>, vector<384x128xbf16>
    %c128 = arith.constant 128 : index
    %c0_23 = arith.constant 0 : index
    %45 = vector.load %arg4[%c128, %c0_23] : memref<1152x128xbf16, #tpu.memory_space<vmem>>, vector<128x128xbf16>
    %cst_24 = arith.constant dense<0.000000e+00> : vector<384x128xf32>
    %46 = tpu.matmul %44, %45, %cst_24 {dimension_numbers = #tpu.dot_dimension_numbers<[1], [0], [0], [1], [0, 0, 1, 1], [], []>} : vector<384x128xbf16>, vector<128x128xbf16>, vector<384x128xf32> -> vector<384x128xf32>
    %c0_25 = arith.constant 0 : index
    %c0_26 = arith.constant 0 : index
    %47 = vector.load %arg9[%c0_25, %c0_26] : memref<384x128xf32, #tpu.memory_space<vmem>>, vector<384x128xf32>
    %48 = arith.addf %47, %46 : vector<384x128xf32>
    %c0_27 = arith.constant 0 : index
    %c0_28 = arith.constant 0 : index
    %49 = vector.load %arg9[%c0_27, %c0_28] : memref<384x128xf32, #tpu.memory_space<vmem>>, vector<384x128xf32>
    tpu.vector_store %arg9[%c0_27, %c0_28], %48 {strides = array<i32>} : memref<384x128xf32, #tpu.memory_space<vmem>>, vector<384x128xf32>,
    %c9 = arith.constant 9 : index
    %c0_29 = arith.constant 0 : index
    %50 = vector.load %arg8[%c9, %c0_29] : memref<448x128xbf16, #tpu.memory_space<vmem>>, vector<384x128xbf16>
    %c256 = arith.constant 256 : index
    %c0_30 = arith.constant 0 : index
    %51 = vector.load %arg4[%c256, %c0_30] : memref<1152x128xbf16, #tpu.memory_space<vmem>>, vector<128x128xbf16>
    %cst_31 = arith.constant dense<0.000000e+00> : vector<384x128xf32>
    %52 = tpu.matmul %50, %51, %cst_31 {dimension_numbers = #tpu.dot_dimension_numbers<[1], [0], [0], [1], [0, 0, 1, 1], [], []>} : vector<384x128xbf16>, vector<128x128xbf16>, vector<384x128xf32> -> vector<384x128xf32>
    %c0_32 = arith.constant 0 : index
    %c0_33 = arith.constant 0 : index
    %53 = vector.load %arg9[%c0_32, %c0_33] : memref<384x128xf32, #tpu.memory_space<vmem>>, vector<384x128xf32>
    %54 = arith.addf %53, %52 : vector<384x128xf32>
    %c0_34 = arith.constant 0 : index
    %c0_35 = arith.constant 0 : index
    %55 = vector.load %arg9[%c0_34, %c0_35] : memref<384x128xf32, #tpu.memory_space<vmem>>, vector<384x128xf32>
    tpu.vector_store %arg9[%c0_34, %c0_35], %54 {strides = array<i32>} : memref<384x128xf32, #tpu.memory_space<vmem>>, vector<384x128xf32>,
    %c31 = arith.constant 31 : index
    %c0_36 = arith.constant 0 : index
    %56 = vector.load %arg8[%c31, %c0_36] : memref<448x128xbf16, #tpu.memory_space<vmem>>, vector<384x128xbf16>
    %c384 = arith.constant 384 : index
    %c0_37 = arith.constant 0 : index
    %57 = vector.load %arg4[%c384, %c0_37] : memref<1152x128xbf16, #tpu.memory_space<vmem>>, vector<128x128xbf16>
    %cst_38 = arith.constant dense<0.000000e+00> : vector<384x128xf32>
    %58 = tpu.matmul %56, %57, %cst_38 {dimension_numbers = #tpu.dot_dimension_numbers<[1], [0], [0], [1], [0, 0, 1, 1], [], []>} : vector<384x128xbf16>, vector<128x128xbf16>, vector<384x128xf32> -> vector<384x128xf32>
    %c0_39 = arith.constant 0 : index
    %c0_40 = arith.constant 0 : index
    %59 = vector.load %arg9[%c0_39, %c0_40] : memref<384x128xf32, #tpu.memory_space<vmem>>, vector<384x128xf32>
    %60 = arith.addf %59, %58 : vector<384x128xf32>
    %c0_41 = arith.constant 0 : index
    %c0_42 = arith.constant 0 : index
    %61 = vector.load %arg9[%c0_41, %c0_42] : memref<384x128xf32, #tpu.memory_space<vmem>>, vector<384x128xf32>
    tpu.vector_store %arg9[%c0_41, %c0_42], %60 {strides = array<i32>} : memref<384x128xf32, #tpu.memory_space<vmem>>, vector<384x128xf32>,
    %c32_43 = arith.constant 32 : index
    %c0_44 = arith.constant 0 : index
    %62 = vector.load %arg8[%c32_43, %c0_44] : memref<448x128xbf16, #tpu.memory_space<vmem>>, vector<384x128xbf16>
    %c512 = arith.constant 512 : index
    %c0_45 = arith.constant 0 : index
    %63 = vector.load %arg4[%c512, %c0_45] : memref<1152x128xbf16, #tpu.memory_space<vmem>>, vector<128x128xbf16>
    %cst_46 = arith.constant dense<0.000000e+00> : vector<384x128xf32>
    %64 = tpu.matmul %62, %63, %cst_46 {dimension_numbers = #tpu.dot_dimension_numbers<[1], [0], [0], [1], [0, 0, 1, 1], [], []>} : vector<384x128xbf16>, vector<128x128xbf16>, vector<384x128xf32> -> vector<384x128xf32>
    %c0_47 = arith.constant 0 : index
    %c0_48 = arith.constant 0 : index
    %65 = vector.load %arg9[%c0_47, %c0_48] : memref<384x128xf32, #tpu.memory_space<vmem>>, vector<384x128xf32>
    %66 = arith.addf %65, %64 : vector<384x128xf32>
    %c0_49 = arith.constant 0 : index
    %c0_50 = arith.constant 0 : index
    %67 = vector.load %arg9[%c0_49, %c0_50] : memref<384x128xf32, #tpu.memory_space<vmem>>, vector<384x128xf32>
    tpu.vector_store %arg9[%c0_49, %c0_50], %66 {strides = array<i32>} : memref<384x128xf32, #tpu.memory_space<vmem>>, vector<384x128xf32>,
    %c33 = arith.constant 33 : index
    %c0_51 = arith.constant 0 : index
    %68 = vector.load %arg8[%c33, %c0_51] : memref<448x128xbf16, #tpu.memory_space<vmem>>, vector<384x128xbf16>
    %c640 = arith.constant 640 : index
    %c0_52 = arith.constant 0 : index
    %69 = vector.load %arg4[%c640, %c0_52] : memref<1152x128xbf16, #tpu.memory_space<vmem>>, vector<128x128xbf16>
    %cst_53 = arith.constant dense<0.000000e+00> : vector<384x128xf32>
    %70 = tpu.matmul %68, %69, %cst_53 {dimension_numbers = #tpu.dot_dimension_numbers<[1], [0], [0], [1], [0, 0, 1, 1], [], []>} : vector<384x128xbf16>, vector<128x128xbf16>, vector<384x128xf32> -> vector<384x128xf32>
    %c0_54 = arith.constant 0 : index
    %c0_55 = arith.constant 0 : index
    %71 = vector.load %arg9[%c0_54, %c0_55] : memref<384x128xf32, #tpu.memory_space<vmem>>, vector<384x128xf32>
    %72 = arith.addf %71, %70 : vector<384x128xf32>
    %c0_56 = arith.constant 0 : index
    %c0_57 = arith.constant 0 : index
    %73 = vector.load %arg9[%c0_56, %c0_57] : memref<384x128xf32, #tpu.memory_space<vmem>>, vector<384x128xf32>
    tpu.vector_store %arg9[%c0_56, %c0_57], %72 {strides = array<i32>} : memref<384x128xf32, #tpu.memory_space<vmem>>, vector<384x128xf32>,
    %c55 = arith.constant 55 : index
    %c0_58 = arith.constant 0 : index
    %74 = vector.load %arg8[%c55, %c0_58] : memref<448x128xbf16, #tpu.memory_space<vmem>>, vector<384x128xbf16>
    %c768 = arith.constant 768 : index
    %c0_59 = arith.constant 0 : index
    %75 = vector.load %arg4[%c768, %c0_59] : memref<1152x128xbf16, #tpu.memory_space<vmem>>, vector<128x128xbf16>
    %cst_60 = arith.constant dense<0.000000e+00> : vector<384x128xf32>
    %76 = tpu.matmul %74, %75, %cst_60 {dimension_numbers = #tpu.dot_dimension_numbers<[1], [0], [0], [1], [0, 0, 1, 1], [], []>} : vector<384x128xbf16>, vector<128x128xbf16>, vector<384x128xf32> -> vector<384x128xf32>
    %c0_61 = arith.constant 0 : index
    %c0_62 = arith.constant 0 : index
    %77 = vector.load %arg9[%c0_61, %c0_62] : memref<384x128xf32, #tpu.memory_space<vmem>>, vector<384x128xf32>
    %78 = arith.addf %77, %76 : vector<384x128xf32>
    %c0_63 = arith.constant 0 : index
    %c0_64 = arith.constant 0 : index
    %79 = vector.load %arg9[%c0_63, %c0_64] : memref<384x128xf32, #tpu.memory_space<vmem>>, vector<384x128xf32>
    tpu.vector_store %arg9[%c0_63, %c0_64], %78 {strides = array<i32>} : memref<384x128xf32, #tpu.memory_space<vmem>>, vector<384x128xf32>,
    %c56 = arith.constant 56 : index
    %c0_65 = arith.constant 0 : index
    %80 = vector.load %arg8[%c56, %c0_65] : memref<448x128xbf16, #tpu.memory_space<vmem>>, vector<384x128xbf16>
    %c896 = arith.constant 896 : index
    %c0_66 = arith.constant 0 : index
    %81 = vector.load %arg4[%c896, %c0_66] : memref<1152x128xbf16, #tpu.memory_space<vmem>>, vector<128x128xbf16>
    %cst_67 = arith.constant dense<0.000000e+00> : vector<384x128xf32>
    %82 = tpu.matmul %80, %81, %cst_67 {dimension_numbers = #tpu.dot_dimension_numbers<[1], [0], [0], [1], [0, 0, 1, 1], [], []>} : vector<384x128xbf16>, vector<128x128xbf16>, vector<384x128xf32> -> vector<384x128xf32>
    %c0_68 = arith.constant 0 : index
    %c0_69 = arith.constant 0 : index
    %83 = vector.load %arg9[%c0_68, %c0_69] : memref<384x128xf32, #tpu.memory_space<vmem>>, vector<384x128xf32>
    %84 = arith.addf %83, %82 : vector<384x128xf32>
    %c0_70 = arith.constant 0 : index
    %c0_71 = arith.constant 0 : index
    %85 = vector.load %arg9[%c0_70, %c0_71] : memref<384x128xf32, #tpu.memory_space<vmem>>, vector<384x128xf32>
    tpu.vector_store %arg9[%c0_70, %c0_71], %84 {strides = array<i32>} : memref<384x128xf32, #tpu.memory_space<vmem>>, vector<384x128xf32>,
    %c57 = arith.constant 57 : index
    %c0_72 = arith.constant 0 : index
    %86 = vector.load %arg8[%c57, %c0_72] : memref<448x128xbf16, #tpu.memory_space<vmem>>, vector<384x128xbf16>
    %c1024 = arith.constant 1024 : index
    %c0_73 = arith.constant 0 : index
    %87 = vector.load %arg4[%c1024, %c0_73] : memref<1152x128xbf16, #tpu.memory_space<vmem>>, vector<128x128xbf16>
    %cst_74 = arith.constant dense<0.000000e+00> : vector<384x128xf32>
    %88 = tpu.matmul %86, %87, %cst_74 {dimension_numbers = #tpu.dot_dimension_numbers<[1], [0], [0], [1], [0, 0, 1, 1], [], []>} : vector<384x128xbf16>, vector<128x128xbf16>, vector<384x128xf32> -> vector<384x128xf32>
    %c0_75 = arith.constant 0 : index
    %c0_76 = arith.constant 0 : index
    %89 = vector.load %arg9[%c0_75, %c0_76] : memref<384x128xf32, #tpu.memory_space<vmem>>, vector<384x128xf32>
    %90 = arith.addf %89, %88 : vector<384x128xf32>
    %c0_77 = arith.constant 0 : index
    %c0_78 = arith.constant 0 : index
    %91 = vector.load %arg9[%c0_77, %c0_78] : memref<384x128xf32, #tpu.memory_space<vmem>>, vector<384x128xf32>
    tpu.vector_store %arg9[%c0_77, %c0_78], %90 {strides = array<i32>} : memref<384x128xf32, #tpu.memory_space<vmem>>, vector<384x128xf32>,
    %c0_79 = arith.constant 0 : index
    %c0_80 = arith.constant 0 : index
    %92 = vector.load %arg9[%c0_79, %c0_80] : memref<384x128xf32, #tpu.memory_space<vmem>>, vector<384x128xf32>
    %93 = arith.truncf %92 : vector<384x128xf32> to vector<384x128xbf16>
    %c0_81 = arith.constant 0 : index
    %c0_82 = arith.constant 0 : index
    %c0_83 = arith.constant 0 : index
    %94 = vector.load %arg5[%c0_81, %c0_82, %c0_83] : memref<1x384x128xbf16, #tpu.memory_space<vmem>>, vector<1x384x128xbf16>
    %95 = vector.shape_cast %94 : vector<1x384x128xbf16> to vector<384x128xbf16>
    %96 = vector.shape_cast %93 : vector<384x128xbf16> to vector<1x384x128xbf16>
    tpu.vector_store %arg5[%c0_81, %c0_82, %c0_83], %96 {strides = array<i32>} : memref<1x384x128xbf16, #tpu.memory_space<vmem>>, vector<1x384x128xbf16>,
    %cst_84 = arith.constant 0.000000e+00 : f32
    %97 = vector.shape_cast %18 : vector<384x1xi1> to vector<384x1xi1>
    %98 = vector.broadcast %97 : vector<384x1xi1> to vector<384x128xi1>
    %99 = vector.broadcast %cst_84 : f32 to vector<384x128xf32>
    %100 = arith.select %98, %92, %99 : vector<384x128xi1>, vector<384x128xf32>
    %cst_85 = arith.constant dense<0.000000e+00> : vector<128xf32>
    %101 = vector.multi_reduction <add>, %100, %cst_85 [0] : vector<384x128xf32> to vector<128xf32>
    %102 = vector.shape_cast %101 : vector<128xf32> to vector<1x128xf32>
    %cst_86 = arith.constant 3.906250e-03 : f32
    %103 = vector.broadcast %cst_86 : f32 to vector<1x128xf32>
    %104 = arith.mulf %102, %103 : vector<1x128xf32>
    %105 = vector.broadcast %104 : vector<1x128xf32> to vector<384x128xf32>
    %106 = arith.subf %92, %105 : vector<384x128xf32>
    %cst_87 = arith.constant 0.000000e+00 : f32
    %107 = vector.shape_cast %18 : vector<384x1xi1> to vector<384x1xi1>
    %108 = vector.broadcast %107 : vector<384x1xi1> to vector<384x128xi1>
    %109 = vector.broadcast %cst_87 : f32 to vector<384x128xf32>
    %110 = arith.select %108, %106, %109 : vector<384x128xi1>, vector<384x128xf32>
    %c0_88 = arith.constant 0 : index
    %c0_89 = arith.constant 0 : index
    %c0_90 = arith.constant 0 : index
    %111 = vector.load %arg6[%c0_88, %c0_89, %c0_90] : memref<1x1x128xf32, #tpu.memory_space<vmem>>, vector<1x1x128xf32>
    %112 = vector.shape_cast %111 : vector<1x1x128xf32> to vector<1x128xf32>
    %113 = vector.shape_cast %102 : vector<1x128xf32> to vector<1x1x128xf32>
    tpu.vector_store %arg6[%c0_88, %c0_89, %c0_90], %113 {strides = array<i32>} : memref<1x1x128xf32, #tpu.memory_space<vmem>>, vector<1x1x128xf32>,
    %114 = arith.mulf %110, %110 : vector<384x128xf32>
    %cst_91 = arith.constant dense<0.000000e+00> : vector<128xf32>
    %115 = vector.multi_reduction <add>, %114, %cst_91 [0] : vector<384x128xf32> to vector<128xf32>
    %116 = vector.shape_cast %115 : vector<128xf32> to vector<1x128xf32>
    %c0_92 = arith.constant 0 : index
    %c0_93 = arith.constant 0 : index
    %c0_94 = arith.constant 0 : index
    %117 = vector.load %arg7[%c0_92, %c0_93, %c0_94] : memref<1x1x128xf32, #tpu.memory_space<vmem>>, vector<1x1x128xf32>
    %118 = vector.shape_cast %117 : vector<1x1x128xf32> to vector<1x128xf32>
    %119 = vector.shape_cast %116 : vector<1x128xf32> to vector<1x1x128xf32>
    tpu.vector_store %arg7[%c0_92, %c0_93, %c0_94], %119 {strides = array<i32>} : memref<1x1x128xf32, #tpu.memory_space<vmem>>, vector<1x1x128xf32>,
    return
  }
  func.func @transform_0(%arg0: i32) -> (i32, i32, i32) {
    %c0_i32 = arith.constant 0 : i32
    %c0_i32_0 = arith.constant 0 : i32
    %c0_i32_1 = arith.constant 0 : i32
    return %arg0, %c0_i32, %c0_i32_0 : i32, i32, i32
  }
  func.func @transform_1(%arg0: i32) -> (i32, i32) {
    %c0_i32 = arith.constant 0 : i32
    %c0_i32_0 = arith.constant 0 : i32
    %c0_i32_1 = arith.constant 0 : i32
    return %c0_i32, %c0_i32_0 : i32, i32
  }
  func.func @transform_2(%arg0: i32) -> (i32, i32) {
    %c0_i32 = arith.constant 0 : i32
    %c0_i32_0 = arith.constant 0 : i32
    %c0_i32_1 = arith.constant 0 : i32
    return %c0_i32, %c0_i32_0 : i32, i32
  }
  func.func @transform_3(%arg0: i32) -> (i32, i32) {
    %c0_i32 = arith.constant 0 : i32
    %c0_i32_0 = arith.constant 0 : i32
    %c0_i32_1 = arith.constant 0 : i32
    return %c0_i32, %c0_i32_0 : i32, i32
  }
  func.func @transform_4(%arg0: i32) -> (i32, i32, i32) {
    %c0_i32 = arith.constant 0 : i32
    %c0_i32_0 = arith.constant 0 : i32
    %c0_i32_1 = arith.constant 0 : i32
    return %arg0, %c0_i32, %c0_i32_0 : i32, i32, i32
  }
  func.func @transform_5(%arg0: i32) -> (i32, i32, i32) {
    %c0_i32 = arith.constant 0 : i32
    %c0_i32_0 = arith.constant 0 : i32
    %c0_i32_1 = arith.constant 0 : i32
    return %arg0, %c0_i32, %c0_i32_0 : i32, i32, i32
  }
  func.func @transform_6(%arg0: i32) -> (i32, i32, i32) {
    %c0_i32 = arith.constant 0 : i32
    %c0_i32_0 = arith.constant 0 : i32
    %c0_i32_1 = arith.constant 0 : i32
    return %arg0, %c0_i32, %c0_i32_0 : i32, i32, i32
  }
}

</mosaic_0001>

<bundles_post_ra>
// kernel: double_conv_forward.5
= control target key start
LH: loop header
LB: loop body
LE: loop exit
PB: predicated region body
PF: predicated region fallthrough
CT: control target
= control target key end

     0   :  { %8 = vsyncpa [#allocation3], 0  ;;  %s1188_s0 = inlined_call_operand.hbm [shape: bf16[2,384,128], index: 0, kind: input, shape index: {}]   ;;  %s1189_s1 = inlined_call_operand.hbm [shape: f32[1,128], index: 1, kind: input, shape index: {}]   ;;  %s1190_s2 = inlined_call_operand.hbm [shape: f32[1,128], index: 2, kind: input, shape index: {}]   ;;  %s1191_s3 = inlined_call_operand.hbm [shape: f32[2,8,256], index: 3, kind: output, shape index: {}]  }
   0x1   :  { %10 = vsyncpa [#allocation3 + $0x1], 0 }
   0x2   :  { %11 = vsyncpa [#allocation6], 0 }
   0x3   :  { %12 = vsyncpa [#allocation4], 0 }
   0x4   :  { %14 = vsyncpa [#allocation4 + $0x1], 0  ;;  %s871_s12 = smov 0   ;;  %s873_s13 = smov 0  }
   0x5   :  { %s875_s14 = smov 0   ;;  %s877_s15 = smov 0  }
   0x6 LB: > { %s892_s16 = sadd.s32 4294967295, %s843_s15   ;;  %s558_s17 = sadd.s32 4294967294, %s843_s15   ;;  %s843_s15 = sphi %s877_s15, %s1216_s15   ;;  %s839_s14 = sphi %s875_s14, %s1215_s14   ;;  %s835_s13 = sphi %s873_s13, %s1214_s13   ;;  %s831_s12 = sphi %s871_s12, %s1213_s12  }
   0x7   : > { %s896_s18 = sadd.s32 1, %s843_s15   ;;  %s27_s19 = sadd.s32 1, %s839_s14 }
   0x8   : > { %s24_s20 = ssub.s32 %s843_s15, %s896_s18  ;;  %p34_p0 = scmp.ne.s32.totalorder %s839_s14, %s835_s13 }
   0x9   : > { %p25_p1 = scmp.eq.s32.totalorder %s24_s20, 0  ;;  %p35_p2 = scmp.eq.s32.totalorder %s843_s15, 0 }
   0xa   : > { %p40_p3 = scmp.ne.s32.totalorder %s835_s13, %s831_s12  ;;  %p1192_p4 = scmp.eq.s32.totalorder %s892_s16, 0 }
   0xb   : > { %s908_s21 = scalar_select %p25_p1, %s839_s14, %s27_s19  }
   0xc   : > { %p910_p5 = por %p35_p2, %p34_p0  ;;  %p916_p6 = por %p1192_p4, %p40_p3 }
   0xd   : > { %p106_p7 = scmp.eq.s32.totalorder %s892_s16, 1  ;;  %p112_p8 = scmp.eq.s32.totalorder %s558_s17, 1 }
   0xe   : > { %s1198_s23 = scalar_select %p916_p6, 1, 0 }
   0xf   : > { %p559_p9 = scmp.ge.s32.totalorder %s843_s15, 1  ;;  %p119_p10 = scmp.lt.s32.totalorder %s843_s15, 3 }
  0x10   : > { %p923_p11 = por %p106_p7, %p34_p0  ;;  %p927_p12 = por %p112_p8, %p40_p3 }
  0x11   : > { %p931_p13 = pnand %p559_p9, %p119_p10  ;;  %s845_s27 = smov [#allocation5]  }
  0x12   : > { %s1199_s24 = scalar_select %p923_p11, 1, 0 }
  0x13   : > { %s1200_s25 = scalar_select %p927_p12, 1, 0 }
  0x14   : > { %s1201_s26 = scalar_select %p931_p13, 1, 0 }
  0x15   : > { %p630_p2 = pneg %p931_p13  ;;  %s132_s28 = sshll.u32 %s845_s27, 4  ;;  %s133_s28 = int_to_ptr.vmem [resolvable:$true] %s132_s28 }
  0x16   : > { %p647_p4 = scmp.lt.s32.totalorder %s843_s15, 2  ;;  %p1202_p0 = scmp.eq.s32.totalorder %s892_s16, 0 }
  0x17   : > { %s846_s4 = smov [#allocation7]   ;;  %s687_s8 = scalar_lea.hbm %s1189_s1, 16 }
  0x18   : > { %p941_p7 = pnand %p630_p2, %p1202_p0  ;;  %p947_p3 = pnand %p647_p4, %p910_p5 }
  0x19   : > { %s143_s5 = sshll.u32 %s846_s4, 4  ;;  %p688_p8 = scmp.ne.s32.totalorder %s1189_s1, %s687_s8  ;;  %s951_s5 = int_to_ptr.vmem [resolvable:$true] %s143_s5 }
  0x1a   : > { %s1204_s30 = scalar_select %p947_p3, 1, 0 }
  0x1b   : > { %p689_p9 = pneg %p941_p7  ;;  %p694_p10 = scmp.lt.u32.totalorder %s687_s8, %s1189_s1 }
  0x1d   : > { %p690_p4 = pnand %p689_p9, %p688_p8 }
  0x1f   : > { %p691_p5 = pneg %p690_p4 }
  0x21   : > { %p696_p2 = pnand %p694_p10, %p691_p5 }
  0x23   : > { %699 = shalt.err (!%p696_p2)
}
  0x24   : > { %s700_s19 = scalar_lea.vmem %s133_s28, 16  ;;  %s707_s20 = scalar_lea.vmem %s133_s28, 32 }
  0x25   : > { %p701_p0 = scmp.ne.s32.totalorder %s133_s28, %s700_s19  ;;  %p708_p11 = scmp.lt.s32.totalorder %s133_s28, %s133_s28 }
  0x26   : > { %p709_p6 = scmp.lt.s32.totalorder %s707_s20, %s700_s19 }
  0x27   : > { %p703_p1 = pnand %p701_p0, %p689_p9 }
  0x28   : > { %p710_p13 = por %p709_p6, %p708_p11 }
  0x29   : > { %p704_p12 = pneg %p703_p1 }
  0x2b   : > { %p711_p3 = pnand %p710_p13, %p704_p12 }
  0x2d   : > { %714 = shalt.err (!%p711_p3)
}
  0x2e   : > { %633 = dma.hbm_to_vmem [thread:$0]  (!%p941_p7), %s1189_s1, 16, %s133_s28, [#allocation6]  }
  0x2f   : > { %s154_s4 = sand.u32 1, %s839_s14   ;;  %s715_s8 = scalar_lea.hbm %s1190_s2, 16 }
  0x30   : > { %p716_p1 = scmp.ne.s32.totalorder %s1190_s2, %s715_s8  ;;  %p722_p12 = scmp.lt.u32.totalorder %s715_s8, %s1190_s2 }
  0x32   : > { %p718_p6 = pnand %p716_p1, %p689_p9 }
  0x34   : > { %p719_p11 = pneg %p718_p6 }
  0x36   : > { %p724_p13 = pnand %p722_p12, %p719_p11 }
  0x38   : > { %727 = shalt.err (!%p724_p13)
}
  0x39   : > { %s728_s28 = scalar_lea.vmem %s951_s5, 16  ;;  %s735_s19 = scalar_lea.vmem %s951_s5, 32 }
  0x3a   : > { %p729_p3 = scmp.ne.s32.totalorder %s951_s5, %s728_s28  ;;  %p736_p5 = scmp.lt.s32.totalorder %s951_s5, %s951_s5 }
  0x3b   : > { %p737_p10 = scmp.lt.s32.totalorder %s735_s19, %s728_s28 }
  0x3c   : > { %p731_p8 = pnand %p729_p3, %p689_p9 }
  0x3d   : > { %p738_p2 = por %p737_p10, %p736_p5 }
  0x3e   : > { %p732_p4 = pneg %p731_p8 }
  0x40   : > { %p739_p0 = pnand %p738_p2, %p732_p4 }
  0x42   : > { %742 = shalt.err (!%p739_p0)
}
  0x43   : > { %636 = dma.hbm_to_vmem [thread:$0]  (!%p941_p7), %s1190_s2, 16, %s951_s5, [#allocation6]  }
  0x44   : > { %s615_s27 = smul.u32 192, %s154_s4  ;;  %s1010_s11 = scalar_lea.sflag [#allocation3], %s154_s4 }
  0x45   : > { %s616_s6 = smul.u32 3072, %s843_s15  ;;  %p1205_p7 = scmp.ne.s32.totalorder %s1204_s30, 0 }
  0x46   : > { %s158_s29 = scalar_lea.vmem [#allocation2], %s615_s27  ;;  %s748_s19 = scalar_lea.hbm %s1188_s0, 6144 }
  0x47   : > { %s1006_s9 = scalar_lea.hbm %s1188_s0, %s616_s6  ;;  %s165_s10 = sshll.u32 %s158_s29, 4  ;;  %s1008_s10 = int_to_ptr.vmem [resolvable:$true] %s165_s10 }
  0x48   : > { %s743_s17 = scalar_lea.hbm %s1006_s9, 3072  ;;  %p745_p1 = pneg %p1205_p7 }
  0x49   : > { %p744_p9 = scmp.ne.s32.totalorder %s1006_s9, %s743_s17  ;;  %p749_p12 = scmp.lt.u32.totalorder %s1006_s9, %s1188_s0 }
  0x4a   : > { %p750_p13 = scmp.lt.u32.totalorder %s748_s19, %s743_s17  ;;  %p752_p8 = scmp.lt.u32.totalorder %s743_s17, %s1006_s9 }
  0x4b   : > { %p746_p6 = pnand %p745_p1, %p744_p9 }
  0x4c   : > { %p751_p3 = por %p750_p13, %p749_p12 }
  0x4d   : > { %p747_p11 = pneg %p746_p6 }
  0x4e   : > { %p753_p4 = por %p752_p8, %p751_p3 }
  0x50   : > { %p754_p5 = pnand %p753_p4, %p747_p11 }
  0x52   : > { %757 = shalt.err (!%p754_p5)
}
  0x53   : > { %s758_s4 = scalar_lea.vmem %s1008_s10, 3072  ;;  %s847_s27 = smov [#allocation2]  }
  0x54   : > { %p759_p10 = scmp.ne.s32.totalorder %s1008_s10, %s758_s4  ;;  %s763_s6 = sshll.u32 %s847_s27, 4  ;;  %s764_s6 = int_to_ptr.vmem [resolvable:$false] %s763_s6 }
  0x55   : > { %s765_s7 = scalar_lea.vmem %s764_s6, 6144  ;;  %p766_p9 = scmp.lt.s32.totalorder %s1008_s10, %s764_s6 }
  0x56   : > { %p761_p2 = pnand %p759_p10, %p745_p1  ;;  %p767_p6 = scmp.lt.s32.totalorder %s765_s7, %s758_s4 }
  0x58   : > { %p762_p0 = pneg %p761_p2  ;;  %p768_p12 = por %p767_p6, %p766_p9 }
  0x5a   : > { %p769_p13 = pnand %p768_p12, %p762_p0 }
  0x5c   : > { %772 = shalt.err (!%p769_p13)
}
  0x5d   : > { %s848_s8 = smov 64   ;;  %s849_s29 = smov 4  }
  0x5e   : > { %640 = dma.hbm_to_vmem [thread:$0]  (!%p1205_p7), %s1006_s9, 3072, %s1008_s10, %s1010_s11, %s848_s8, %s848_s8, %s849_s29  }
  0x5f   : > { %p1206_p1 = scmp.ne.s32.totalorder %s1201_s26, 0 }
  0x60   : > { %s1041_s17 = sand.u32 (!%p1206_p1), 1, %s835_s13   ;;  %p1207_p11 = scmp.ne.s32.totalorder (!%p1206_p1), %s1198_s23, 0 }
  0x61   : > { %177 = sbr.rel (%p1206_p1) target bundleno = 262 (0x106), region = 32  ;;  %s180_s28 = scalar_lea.sflag (!%p1206_p1), [#allocation3], %s1041_s17 }
  0x62   : > { %s617_s5 = smul.u32 (!%p1206_p1), 192, %s1041_s17 }
  0x64   : > { %s1045_s19 = scalar_lea.vmem (!%p1206_p1), [#allocation2], %s617_s5 }
  0x68   : > { %818 = dma.done.wait (%p1207_p11), %s180_s28, 3072  }
  0x69   : > { %820 = vsyncadd (%p1207_p11), %s180_s28, 4294964224  ;;  %p1208_p7 = scmp.eq.s32.totalorder %s892_s16, 0 }
  0x6b   : > { %822 = dma.done.wait (%p1208_p7), [#allocation6], 32   ;;  %p1209_p3 = pmov %p1208_p7 }
  0x6c   : > { %v611_v0 = vld [vmem:[%s1045_s19 + $0x60] sm:$0xff]   ;;  %v232_v5 = vld [vmem:[%s1045_s19 + $0x6c] sm:$0xff]   ;;  %v612_v24 = vld [vmem:[%s1045_s19 + $0x78] sm:$0xff]   ;;  %s567_s23 = sshll.u32 %s1041_s17, 4  ;;  %s575_s9 = sshll.u32 %s892_s16, 8 }
  0x6d   : > { %824 = vsyncadd (%p1209_p3), [#allocation6], 4294967264  ;;  %v1056_v1 = vld [vmem:[#allocation5] ss:$0 sm:$0xff]  ;;  %v594_v2 = vunpack.c.l.bf16 %v611_v0  ;;  %v595_v4 = vunpack.c.h.bf16 %v611_v0  ;;  %v216_v6 = vld [vmem:[%s1045_s19 + $0xc] sm:$0xff]   ;;  %v264_v10 = vunpack.c.l.bf16 %v232_v5  ;;  %v265_v19 = vunpack.c.h.bf16 %v232_v5  ;;  %s213_s26 = scalar_lea.vmem [#allocation8], %s567_s23  ;;  %s1146_s20 = scalar_lea.hbm %s1191_s3, %s575_s9 }
  0x6e   : > { %v577_v3 = vld [vmem:[%s1045_s19] sm:$0xff]   ;;  %v248_v11 = vunpack.c.l.bf16 %v216_v6  ;;  %v249_v23 = vunpack.c.h.bf16 %v216_v6  ;;  %v608_v26 = vld [vmem:[%s1045_s19 + $0x18] sm:$0xff]   ;;  %v598_v31 = vunpack.c.l.bf16 %v612_v24  ;;  %v599_v39 = vunpack.c.h.bf16 %v612_v24  ;;  %v613_v62 = vld [vmem:[%s1045_s19 + $0x90] sm:$0xff]   ;;  %s469_s30 = sshll.u32 %s213_s26, 4  ;;  %s455_s22 = scalar_lea.sflag [#allocation4], %s1041_s17  ;;  %s1141_s30 = int_to_ptr.vmem [resolvable:$true] %s469_s30 }
  0x6f   : > { %v1061_v7 = vld [vmem:[#allocation7] ss:$0 sm:$0xff]  ;;  %v578_v8 = vunpack.c.l.bf16 %v577_v3  ;;  %v579_v9 = vunpack.c.h.bf16 %v577_v3  ;;  %v301_v12 = vmul.f32 %v594_v2, %v1056_v1  ;;  %v302_v13 = vmul.f32 %v595_v4, %v1056_v1  ;;  %v236_v44 = vld [vmem:[%s1045_s19 + $0x84] sm:$0xff]   ;;  %v609_v63 = vld [vmem:[%s1045_s19 + $0x30] sm:$0xff]   ;;  %s773_s4 = scalar_lea.vmem %s1141_s30, 256  ;;  %p1210_p4 = scmp.ne.s32.totalorder %s1199_s24, 0 }
  0x70   : > { %v303_v18 = vmul.f32 %v1056_v1, %v264_v10  ;;  %v287_v22 = vmul.f32 %v1056_v1, %v248_v11  ;;  %v304_v30 = vmul.f32 %v1056_v1, %v265_v19  ;;  %v288_v34 = vmul.f32 %v1056_v1, %v249_v23  ;;  %v220_v45 = vld [vmem:[%s1045_s19 + $0x24] sm:$0xff]   ;;  %v224_v19 = vld [vmem:[%s1045_s19 + $0x3c] sm:$0xff]   ;;  %p774_p8 = scmp.ne.s32.totalorder %s1141_s30, %s773_s4  ;;  %s850_s16 = smov [#allocation8]  }
  0x71   : > { %v285_v14 = vmul.f32 %v578_v8, %v1056_v1  ;;  %v286_v15 = vmul.f32 %v579_v9, %v1056_v1  ;;  %v340_v16 = vadd.f32 %v1061_v7, %v301_v12  ;;  %v341_v17 = vadd.f32 %v1061_v7, %v302_v13  ;;  %s777_s27 = sshll.u32 %s850_s16, 4  ;;  %s778_s27 = int_to_ptr.vmem [resolvable:$false] %s777_s27 }
  0x72   : > { %v342_v29 = vadd.f32 %v1061_v7, %v303_v18  ;;  %v326_v33 = vadd.f32 %v1061_v7, %v287_v22  ;;  %v582_v35 = vunpack.c.l.bf16 %v608_v26  ;;  %v343_v37 = vadd.f32 %v1061_v7, %v304_v30  ;;  %v240_v18 = vld [vmem:[%s1045_s19 + $0x9c] sm:$0xff]   ;;  %p775_p5 = pnand %p774_p8, %p1210_p4  ;;  %s779_s6 = scalar_lea.vmem %s778_s27, 512 }
  0x73   : > { %v324_v20 = vadd.f32 %v1061_v7, %v285_v14  ;;  %v325_v21 = vadd.f32 %v1061_v7, %v286_v15  ;;  %v372_v25 = vmax.f32 %v340_v16, 0.0  ;;  %v373_v28 = vmax.f32 %v341_v17, 0.0  ;;  %p780_p2 = scmp.lt.s32.totalorder %s1141_s30, %s778_s27  ;;  %p781_p0 = scmp.lt.s32.totalorder %s779_s6, %s773_s4 }
  0x74   : > { %v374_v36 = vmax.f32 %v342_v29, 0.0  ;;  %v305_v38 = vmul.f32 %v598_v31, %v1056_v1  ;;  %v358_v40 = vmax.f32 %v326_v33, 0.0  ;;  %v327_v41 = vadd.f32 %v1061_v7, %v288_v34  ;;  %p776_p10 = pneg %p775_p5 }
  0x75   : > { %v356_v27 = vmax.f32 %v324_v20, 0.0  ;;  %420 = vxpose.xlu1.b32.start [1/16] (narrow) %v372_v25, 8  ;;  %v357_v32 = vmax.f32 %v325_v21, 0.0  ;;  %v289_v42 = vmul.f32 %v582_v35, %v1056_v1  ;;  %v583_v43 = vunpack.c.h.bf16 %v608_v26  ;;  %p782_p9 = por %p781_p0, %p780_p2 }
  0x76   : > { %v375_v46 = vmax.f32 %v343_v37, 0.0  ;;  %v344_v47 = vadd.f32 %v1061_v7, %v305_v38  ;;  %v306_v48 = vmul.f32 %v599_v39, %v1056_v1  ;;  %v268_v49 = vunpack.c.l.bf16 %v236_v44  ;;  %v610_v37 = vld [vmem:[%s1045_s19 + $0x48] sm:$0xff]  }
  0x77   : > { %388 = vxpose.xlu0.b32.start [1/16] (narrow) %v356_v27, 8  ;;  %v359_v50 = vmax.f32 %v327_v41, 0.0  ;;  %v328_v51 = vadd.f32 %v1061_v7, %v289_v42  ;;  %v290_v52 = vmul.f32 %v583_v43, %v1056_v1  ;;  %v252_v53 = vunpack.c.l.bf16 %v220_v45  ;;  %p783_p6 = pnand %p782_p9, %p776_p10 }
  0x78   : > { %v376_v54 = vmax.f32 %v344_v47, 0.0  ;;  %v345_v55 = vadd.f32 %v1061_v7, %v306_v48  ;;  %v307_v56 = vmul.f32 %v1056_v1, %v268_v49  ;;  %v269_v57 = vunpack.c.h.bf16 %v236_v44 }
  0x79   : > { %421 = vxpose.xlu1.b32.cont [2/16] (narrow) %v373_v28, 8  ;;  %v360_v58 = vmax.f32 %v328_v51, 0.0  ;;  %v329_v59 = vadd.f32 %v1061_v7, %v290_v52  ;;  %v291_v60 = vmul.f32 %v1056_v1, %v252_v53  ;;  %v253_v61 = vunpack.c.h.bf16 %v220_v45 }
  0x7a   : > { %v377_v0 = vmax.f32 %v345_v55, 0.0  ;;  %v346_v2 = vadd.f32 %v1061_v7, %v307_v56  ;;  %v308_v3 = vmul.f32 %v1056_v1, %v269_v57  ;;  %v602_v4 = vunpack.c.l.bf16 %v613_v62  ;;  %v228_v55 = vld [vmem:[%s1045_s19 + $0x54] sm:$0xff]  }
  0x7b   : > { %389 = vxpose.xlu0.b32.cont [2/16] (narrow) %v357_v32, 8  ;;  %v361_v5 = vmax.f32 %v329_v59, 0.0  ;;  %v330_v6 = vadd.f32 %v1061_v7, %v291_v60  ;;  %v292_v8 = vmul.f32 %v1056_v1, %v253_v61  ;;  %v586_v9 = vunpack.c.l.bf16 %v609_v63 }
  0x7c   : > { %v378_v10 = vmax.f32 %v346_v2, 0.0  ;;  %v347_v11 = vadd.f32 %v1061_v7, %v308_v3  ;;  %v309_v12 = vmul.f32 %v602_v4, %v1056_v1  ;;  %v603_v13 = vunpack.c.h.bf16 %v613_v62 }
  0x7d   : > { %422 = vxpose.xlu1.b32.cont [3/16] (narrow) %v374_v36, 8  ;;  %v362_v14 = vmax.f32 %v330_v6, 0.0  ;;  %v331_v15 = vadd.f32 %v1061_v7, %v292_v8  ;;  %v293_v16 = vmul.f32 %v586_v9, %v1056_v1  ;;  %v587_v17 = vunpack.c.h.bf16 %v609_v63  ;;  %v614_v36 = vld [vmem:[%s1045_s19 + $0xa8] sm:$0xff]  }
  0x7e   : > { %v379_v20 = vmax.f32 %v347_v11, 0.0  ;;  %v348_v21 = vadd.f32 %v1061_v7, %v309_v12  ;;  %v310_v22 = vmul.f32 %v603_v13, %v1056_v1  ;;  %v272_v23 = vunpack.c.l.bf16 %v240_v18 }
  0x7f   : > { %390 = vxpose.xlu0.b32.cont [3/16] (narrow) %v358_v40, 8  ;;  %v363_v24 = vmax.f32 %v331_v15, 0.0  ;;  %v332_v25 = vadd.f32 %v1061_v7, %v293_v16  ;;  %v294_v26 = vmul.f32 %v587_v17, %v1056_v1  ;;  %v256_v27 = vunpack.c.l.bf16 %v224_v19 }
  0x80   : > { %v380_v28 = vmax.f32 %v348_v21, 0.0  ;;  %v349_v29 = vadd.f32 %v1061_v7, %v310_v22  ;;  %v311_v30 = vmul.f32 %v1056_v1, %v272_v23  ;;  %v273_v31 = vunpack.c.h.bf16 %v240_v18 }
  0x81   : > { %423 = vxpose.xlu1.b32.cont [4/16] (narrow) %v375_v46, 8  ;;  %v364_v32 = vmax.f32 %v332_v25, 0.0  ;;  %v333_v33 = vadd.f32 %v1061_v7, %v294_v26  ;;  %v295_v34 = vmul.f32 %v1056_v1, %v256_v27  ;;  %v257_v35 = vunpack.c.h.bf16 %v224_v19 }
  0x82   : > { %v381_v38 = vmax.f32 %v349_v29, 0.0  ;;  %v350_v39 = vadd.f32 %v1061_v7, %v311_v30  ;;  %v312_v40 = vmul.f32 %v1056_v1, %v273_v31  ;;  %v606_v41 = vunpack.c.l.bf16 %v614_v36 }
  0x83   : > { %391 = vxpose.xlu0.b32.cont [4/16] (narrow) %v359_v50, 8  ;;  %v365_v42 = vmax.f32 %v333_v33, 0.0  ;;  %v334_v43 = vadd.f32 %v1061_v7, %v295_v34  ;;  %v296_v44 = vmul.f32 %v1056_v1, %v257_v35  ;;  %v590_v45 = vunpack.c.l.bf16 %v610_v37 }
  0x84   : > { %v382_v46 = vmax.f32 %v350_v39, 0.0  ;;  %v351_v47 = vadd.f32 %v1061_v7, %v312_v40  ;;  %v313_v48 = vmul.f32 %v606_v41, %v1056_v1  ;;  %v607_v49 = vunpack.c.h.bf16 %v614_v36 }
  0x85   : > { %424 = vxpose.xlu1.b32.cont [5/16] (narrow) %v376_v54, 8  ;;  %v366_v50 = vmax.f32 %v334_v43, 0.0  ;;  %v335_v51 = vadd.f32 %v1061_v7, %v296_v44  ;;  %v297_v52 = vmul.f32 %v590_v45, %v1056_v1  ;;  %v591_v53 = vunpack.c.h.bf16 %v610_v37  ;;  %v244_v54 = vld [vmem:[%s1045_s19 + $0xb4] sm:$0xff]  }
  0x86   : > { %v383_v56 = vmax.f32 %v351_v47, 0.0  ;;  %v352_v57 = vadd.f32 %v1061_v7, %v313_v48  ;;  %v276_v59 = vunpack.c.l.bf16 %v244_v54  ;;  %v260_v63 = vunpack.c.l.bf16 %v228_v55 }
  0x87   : > { %392 = vxpose.xlu0.b32.cont [5/16] (narrow) %v360_v58, 8  ;;  %v314_v58 = vmul.f32 %v607_v49, %v1056_v1  ;;  %v367_v60 = vmax.f32 %v335_v51, 0.0  ;;  %v336_v61 = vadd.f32 %v1061_v7, %v297_v52  ;;  %v298_v62 = vmul.f32 %v591_v53, %v1056_v1 }
  0x88   : > { %v315_v3 = vmul.f32 %v1056_v1, %v276_v59  ;;  %v277_v4 = vunpack.c.h.bf16 %v244_v54  ;;  %v299_v8 = vmul.f32 %v1056_v1, %v260_v63  ;;  %v261_v9 = vunpack.c.h.bf16 %v228_v55 }
  0x89   : > { %425 = vxpose.xlu1.b32.cont [6/16] (narrow) %v377_v0, 8  ;;  %v384_v0 = vmax.f32 %v352_v57, 0.0  ;;  %v353_v2 = vadd.f32 %v1061_v7, %v314_v58  ;;  %v337_v6 = vadd.f32 %v1061_v7, %v298_v62 }
  0x8a   : > { %v354_v11 = vadd.f32 %v1061_v7, %v315_v3  ;;  %v316_v12 = vmul.f32 %v1056_v1, %v277_v4  ;;  %v300_v15 = vmul.f32 %v1056_v1, %v261_v9 }
  0x8b   : > { %393 = vxpose.xlu0.b32.cont [6/16] (narrow) %v361_v5, 8  ;;  %v368_v5 = vmax.f32 %v336_v61, 0.0  ;;  %v369_v13 = vmax.f32 %v337_v6, 0.0 }
  0x8c   : > { %v386_v16 = vmax.f32 %v354_v11, 0.0  ;;  %v355_v17 = vadd.f32 %v1061_v7, %v316_v12  ;;  %v339_v19 = vadd.f32 %v1061_v7, %v300_v15 }
  0x8d   : > { %426 = vxpose.xlu1.b32.cont [7/16] (narrow) %v378_v10, 8  ;;  %v385_v10 = vmax.f32 %v353_v2, 0.0 }
  0x8e   : > { %v371_v21 = vmax.f32 %v339_v19, 0.0 }
  0x8f   : > { %394 = vxpose.xlu0.b32.cont [7/16] (narrow) %v362_v14, 8  ;;  %v338_v14 = vadd.f32 %v1061_v7, %v299_v8 }
  0x91   : > { %427 = vxpose.xlu1.b32.cont [8/16] (narrow) %v379_v20, 8  ;;  %v370_v18 = vmax.f32 %v338_v14, 0.0  ;;  %v387_v20 = vmax.f32 %v355_v17, 0.0 }
  0x93   : > { %395 = vxpose.xlu0.b32.cont [8/16] (narrow) %v363_v24, 8 }
  0x95   : > { %428 = vxpose.xlu1.b32.cont [9/16] (narrow) %v380_v28, 8 }
  0x97   : > { %396 = vxpose.xlu0.b32.cont [9/16] (narrow) %v364_v32, 8 }
  0x99   : > { %429 = vxpose.xlu1.b32.cont [10/16] (narrow) %v381_v38, 8 }
  0x9b   : > { %397 = vxpose.xlu0.b32.cont [10/16] (narrow) %v365_v42, 8 }
  0x9d   : > { %430 = vxpose.xlu1.b32.cont [11/16] (narrow) %v382_v46, 8 }
  0x9f   : > { %398 = vxpose.xlu0.b32.cont [11/16] (narrow) %v366_v50, 8 }
  0xa1   : > { %431 = vxpose.xlu1.b32.cont [12/16] (narrow) %v383_v56, 8 }
  0xa3   : > { %399 = vxpose.xlu0.b32.cont [12/16] (narrow) %v367_v60, 8 }
  0xa5   : > { %432 = vxpose.xlu1.b32.cont [13/16] (narrow) %v384_v0, 8 }
  0xa7   : > { %400 = vxpose.xlu0.b32.cont [13/16] (narrow) %v368_v5, 8 }
  0xa9   : > { %433 = vxpose.xlu1.b32.cont [14/16] (narrow) %v385_v10, 8 }
  0xab   : > { %401 = vxpose.xlu0.b32.cont [14/16] (narrow) %v369_v13, 8 }
  0xad   : > { %434 = vxpose.xlu1.b32.cont [15/16] (narrow) %v386_v16, 8 }
  0xaf   : > { %402 = vxpose.xlu0.b32.cont [15/16] (narrow) %v370_v18, 8 }
  0xb1   : > { %435 = vxpose.xlu1.b32.end [16/16] (narrow) %v387_v20, 8 }
  0xb3   : > { %403 = vxpose.xlu0.b32.end [16/16] (narrow) %v371_v21, 8 }
  0xf5   : > { %v436_v1 = vpop.trf.xlu1 }
  0xf6   : > { %453 = vst [vmem:[%s213_s26 + $0x8] sm:$0xff] %v436_v1 }
  0xf7   : > { %v404_v7 = vpop.trf.xlu0 }
  0xf8   : > { %452 = vst [vmem:[%s213_s26] sm:$0xff] %v404_v7 }
  0xf9   : > { %786 = shalt.err (!%p783_p6)
}
  0xfa   : > { %s787_s7 = scalar_lea.hbm %s1146_s20, 256  ;;  %s791_s17 = scalar_lea.hbm %s1191_s3, 512 }
  0xfb   : > { %p788_p12 = scmp.ne.s32.totalorder %s1146_s20, %s787_s7  ;;  %p792_p11 = scmp.lt.u32.totalorder %s1146_s20, %s1191_s3 }
  0xfc   : > { %p793_p7 = scmp.lt.u32.totalorder %s791_s17, %s787_s7  ;;  %p795_p8 = scmp.lt.u32.totalorder %s787_s7, %s1146_s20 }
  0xfd   : > { %p789_p13 = pnand %p788_p12, %p1210_p4 }
  0xfe   : > { %p794_p3 = por %p793_p7, %p792_p11 }
  0xff   : > { %p790_p1 = pneg %p789_p13 }
 0x100   : > { %p796_p5 = por %p795_p8, %p794_p3 }
 0x102   : > { %p797_p10 = pnand %p796_p5, %p790_p1 }
 0x104   : > { %800 = shalt.err (!%p797_p10)
}
 0x105   : > { %628 = dma.vmem_to_hbm [thread:$0]  (%p1210_p4), %s1141_s30, 256, %s1146_s20, %s455_s22  }
 0x106 PF: > { %s481_s19 = sand.u32 1, %s831_s12   ;;  %p1211_p2 = scmp.ne.s32.totalorder %s1200_s25, 0 }
 0x107   : > { %p1212_p0 = scmp.ge.s32.totalorder %s843_s15, 2  ;;  %s482_s23 = scalar_lea.sflag [#allocation4], %s481_s19 }
 0x109   : > { %p642_p9 = pnand %p1212_p0, %p1211_p2 }
 0x10b   : > { %826 = dma.done.wait (!%p642_p9), %s482_s23, 256  }
 0x10c   : > { %828 = vsyncadd (!%p642_p9), %s482_s23, 4294967040  ;;  %p17_p6 = scmp.ge.s32.totalorder %s896_s18, 4   ;;  %s1213_s12 = smov %s835_s13 }
 0x10d   : > { %s1214_s13 = smov %s839_s14  ;;  %s1215_s14 = smov %s908_s21 }
 0x10e   : > { %s1216_s15 = smov %s896_s18  ;;  %19 = sbr.rel (!%p17_p6) target bundleno = 6 (0x6), region = 85 }
 0x115   :  { %487 = vsyncpa [#allocation3], 1 }
 0x116   :  { %489 = vsyncpa [#allocation3 + $0x1], 1 }
 0x117   :  { %490 = vsyncpa [#allocation6], 1 }
 0x118   :  { %491 = vsyncpa [#allocation4], 1 }
 0x119   :  { %493 = vsyncpa [#allocation4 + $0x1], 1 }

// kernel: double_conv_forward.3
= control target key start
LH: loop header
LB: loop body
LE: loop exit
PB: predicated region body
PF: predicated region fallthrough
CT: control target
= control target key end

     0   :  { %10 = vsyncpa [#allocation5], 0  ;;  %s13713_s0 = inlined_call_operand.hbm [shape: f32[2,384,128], index: 0, kind: input, shape index: {}]   ;;  %s13714_s1 = inlined_call_operand.hbm [shape: bf16[1152,128], index: 1, kind: input, shape index: {}]   ;;  %s13715_s2 = inlined_call_operand.hbm [shape: bf16[2,384,128], index: 2, kind: output, shape index: {0}]   ;;  %s13716_s3 = inlined_call_operand.hbm [shape: f32[2,1,128], index: 3, kind: output, shape index: {1}]   ;;  %s13717_s4 = inlined_call_operand.hbm [shape: f32[2,1,128], index: 4, kind: output, shape index: {2}]  }
   0x1   :  { %12 = vsyncpa [#allocation5 + $0x1], 0 }
   0x2   :  { %13 = vsyncpa [#allocation8], 0 }
   0x3   :  { %14 = vsyncpa [#allocation6], 0 }
   0x4   :  { %16 = vsyncpa [#allocation6 + $0x1], 0 }
   0x5   :  { %17 = vsyncpa [#allocation11], 0 }
   0x6   :  { %19 = vsyncpa [#allocation11 + $0x1], 0  ;;  %s9811_s15 = smov 0   ;;  %s9813_s16 = smov 0  }
   0x7   :  { %s9815_s17 = smov 0   ;;  %s9817_s18 = smov 0  }
   0x8 LB: > { %s9832_s19 = sadd.s32 4294967295, %s9772_s18   ;;  %s7740_s20 = sadd.s32 4294967294, %s9772_s18   ;;  %s9772_s18 = sphi %s9817_s18, %s14564_s18   ;;  %s9768_s17 = sphi %s9815_s17, %s14563_s17   ;;  %s9764_s16 = sphi %s9813_s16, %s14562_s16   ;;  %s9760_s15 = sphi %s9811_s15, %s14561_s15  }
   0x9   : > { %p45_p0 = scmp.ne.s32.totalorder %s9764_s16, %s9760_s15  ;;  %p13718_p1 = scmp.eq.s32.totalorder %s9832_s19, 0 }
   0xa   : > { %p96_p3 = scmp.eq.s32.totalorder %s7740_s20, 1  ;;  %p7741_p5 = scmp.ge.s32.totalorder %s9772_s18, 1 }
   0xb   : > { %p9843_p4 = por %p13718_p1, %p45_p0  ;;  %p155_p7 = scmp.lt.s32.totalorder %s9772_s18, 3 }
   0xc   : > { %p9848_p6 = por %p96_p3, %p45_p0  ;;  %s9774_s24 = smov [#allocation7]  }
   0xd   : > { %s13924_s21 = scalar_select %p9843_p4, 1, 0 }
   0xe   : > { %s13925_s22 = scalar_select %p9848_p6, 1, 0 }
   0xf   : > { %p9853_p8 = pnand %p7741_p5, %p155_p7  ;;  %s167_s25 = sshll.u32 %s9774_s24, 4  ;;  %s9857_s25 = int_to_ptr.vmem [resolvable:$true] %s167_s25 }
  0x10   : > { %s9869_s27 = sadd.s32 1, %s9772_s18   ;;  %s32_s28 = sadd.s32 1, %s9768_s17 }
  0x11   : > { %s13926_s23 = scalar_select %p9853_p8, 1, 0 }
  0x12   : > { %p9440_p9 = pneg %p9853_p8  ;;  %s29_s29 = ssub.s32 %s9772_s18, %s9869_s27 }
  0x13   : > { %s9584_s6 = scalar_lea.hbm %s13714_s1, 9216 }
  0x14   : > { %p9864_p11 = pnand %p9440_p9, %p13718_p1  ;;  %p9585_p12 = scmp.ne.s32.totalorder %s13714_s1, %s9584_s6 }
  0x15   : > { %p9591_p5 = scmp.lt.u32.totalorder %s9584_s6, %s13714_s1 }
  0x16   : > { %p9586_p13 = pneg %p9864_p11 }
  0x18   : > { %p9587_p0 = pnand %p9586_p13, %p9585_p12 }
  0x1a   : > { %p9588_p3 = pneg %p9587_p0 }
  0x1c   : > { %p9593_p7 = pnand %p9591_p5, %p9588_p3 }
  0x1e   : > { %9596 = shalt.err (!%p9593_p7)
}
  0x1f   : > { %s9597_s11 = scalar_lea.vmem %s9857_s25, 9216  ;;  %p9605_p2 = scmp.lt.s32.totalorder %s9857_s25, %s9857_s25 }
  0x20   : > { %p9598_p9 = scmp.ne.s32.totalorder %s9857_s25, %s9597_s11  ;;  %p9606_p6 = scmp.lt.s32.totalorder %s9597_s11, %s9597_s11 }
  0x22   : > { %p9600_p10 = pnand %p9598_p9, %p9586_p13  ;;  %p9607_p4 = por %p9606_p6, %p9605_p2 }
  0x24   : > { %p9601_p1 = pneg %p9600_p10 }
  0x26   : > { %p9608_p8 = pnand %p9607_p4, %p9601_p1 }
  0x28   : > { %9611 = shalt.err (!%p9608_p8)
}
  0x29   : > { %s9775_s12 = smov 64   ;;  %s9776_s13 = smov 4  }
  0x2a   : > { %9443 = dma.hbm_to_vmem [thread:$0]  (!%p9864_p11), %s13714_s1, 9216, %s9857_s25, [#allocation8], %s9775_s12, %s9775_s12, %s9776_s13  }
  0x2b   : > { %p30_p2 = scmp.eq.s32.totalorder %s29_s29, 0  ;;  %p39_p1 = scmp.ne.s32.totalorder %s9768_s17, %s9764_s16 }
  0x2c   : > { %p40_p4 = scmp.eq.s32.totalorder %s9772_s18, 0  ;;  %p9459_p6 = scmp.lt.s32.totalorder %s9772_s18, 2 }
  0x2d   : > { %s9900_s30 = scalar_select %p30_p2, %s9768_s17, %s32_s28  }
  0x2e   : > { %p41_p8 = por %p40_p4, %p39_p1  ;;  %p13928_p10 = scmp.eq.s32.totalorder %s9832_s19, 1 }
  0x2f   : > { %s181_s6 = sand.u32 1, %s9768_s17   ;;  %s9328_s7 = smul.u32 6144, %s9772_s18 }
  0x30   : > { %p9904_p12 = por %p13928_p10, %p39_p1  ;;  %s9327_s8 = smul.u32 384, %s181_s6 }
  0x31   : > { %s9913_s10 = scalar_lea.hbm %s13713_s0, %s9328_s7  ;;  %p9915_p11 = pnand %p9459_p6, %p41_p8 }
  0x32   : > { %s185_s28 = scalar_lea.vmem [#allocation4], %s9327_s8  ;;  %s9921_s11 = scalar_lea.sflag [#allocation5], %s181_s6 }
  0x33   : > { %s192_s29 = sshll.u32 %s185_s28, 4  ;;  %s9612_s12 = scalar_lea.hbm %s9913_s10, 6144  ;;  %s9919_s29 = int_to_ptr.vmem [resolvable:$true] %s192_s29 }
  0x34   : > { %p9613_p13 = scmp.ne.s32.totalorder %s9913_s10, %s9612_s12  ;;  %p9614_p0 = pneg %p9915_p11 }
  0x35   : > { %s9617_s24 = scalar_lea.hbm %s13713_s0, 12288  ;;  %p9618_p7 = scmp.lt.u32.totalorder %s9913_s10, %s13713_s0 }
  0x36   : > { %p9615_p3 = pnand %p9614_p0, %p9613_p13  ;;  %p9619_p9 = scmp.lt.u32.totalorder %s9617_s24, %s9612_s12 }
  0x37   : > { %p9621_p1 = scmp.lt.u32.totalorder %s9612_s12, %s9913_s10 }
  0x38   : > { %p9616_p5 = pneg %p9615_p3  ;;  %p9620_p2 = por %p9619_p9, %p9618_p7 }
  0x3a   : > { %p9622_p4 = por %p9621_p1, %p9620_p2 }
  0x3c   : > { %p9623_p6 = pnand %p9622_p4, %p9616_p5 }
  0x3e   : > { %9626 = shalt.err (!%p9623_p6)
}
  0x3f   : > { %s9627_s6 = scalar_lea.vmem %s9919_s29, 6144  ;;  %s9777_s8 = smov [#allocation4]  }
  0x40   : > { %p9628_p8 = scmp.ne.s32.totalorder %s9919_s29, %s9627_s6  ;;  %s9632_s9 = sshll.u32 %s9777_s8, 4  ;;  %s9633_s9 = int_to_ptr.vmem [resolvable:$false] %s9632_s9 }
  0x41   : > { %s9634_s28 = scalar_lea.vmem %s9633_s9, 12288  ;;  %p9635_p3 = scmp.lt.s32.totalorder %s9919_s29, %s9633_s9 }
  0x42   : > { %p9630_p10 = pnand %p9628_p8, %p9614_p0  ;;  %p9636_p7 = scmp.lt.s32.totalorder %s9634_s28, %s9627_s6 }
  0x44   : > { %p9631_p13 = pneg %p9630_p10  ;;  %p9637_p9 = por %p9636_p7, %p9635_p3 }
  0x46   : > { %p9638_p2 = pnand %p9637_p9, %p9631_p13 }
  0x48   : > { %9641 = shalt.err (!%p9638_p2)
}
  0x49   : > { %s9778_s12 = smov 128   ;;  %s9779_s13 = smov 8  }
  0x4a   : > { %9447 = dma.hbm_to_vmem [thread:$0]  (!%p9915_p11), %s9913_s10, 6144, %s9919_s29, %s9921_s11, %s9778_s12, %s9778_s12, %s9779_s13  }
  0x4b   : > { %p13931_p0 = scmp.ne.s32.totalorder %s13926_s23, 0 }
  0x4d   : > { %204 = sbr.rel (%p13931_p0) target bundleno = 991 (0x3df), region = 28 }
  0x54   : > { %s9952_s14 = sand.u32 1, %s9764_s16   ;;  %p13932_p5 = scmp.ne.s32.totalorder %s13924_s21, 0 }
  0x55   : > { %s9329_s24 = smul.u32 384, %s9952_s14  ;;  %s207_s7 = scalar_lea.sflag [#allocation5], %s9952_s14 }
  0x57   : > { %s9956_s26 = scalar_lea.vmem [#allocation4], %s9329_s24 }
  0x58   : > { %9743 = dma.done.wait (%p13932_p5), %s207_s7, 6144  }
  0x59   : > { %9745 = vsyncadd (%p13932_p5), %s207_s7, 4294961152  ;;  %p13933_p11 = scmp.eq.s32.totalorder %s9832_s19, 0 }
  0x5b   : > { %9747 = dma.done.wait (%p13933_p11), [#allocation8], 9216   ;;  %p13934_p1 = pmov %p13933_p11 }
  0x5c   : > { %v9780_v0 = vmov 0   ;;  %v9502_v1 = vld [vmem:[#allocation7] sm:$0xff]   ;;  %v9504_v3 = vld [vmem:[#allocation7 + $0x8] sm:$0xff]   ;;  %v9506_v5 = vld [vmem:[#allocation7 + $0x10] sm:$0xff]   ;;  %vm1254_vm0 = vsmask.f32 4352 }
  0x5d   : > { %9749 = vsyncadd (%p13934_p1), [#allocation8], 4294958080  ;;  %1185 = vst [vmem:[#allocation2] sm:$0xff] %v9780_v0  ;;  %v9503_v2 = vld [vmem:[#allocation7 + $0x100] sm:$0xff]   ;;  %8351 = vmatprep.subr.bf16.mxu1 %v9502_v1  ;;  %v9505_v4 = vld [vmem:[#allocation7 + $0x108] sm:$0xff]   ;;  %v1266_v11 = vrot.slane %v9780_v0, 3 }
  0x5e   : > { %1186 = vst [vmem:[#allocation2 + $0x8] sm:$0xff] %v9780_v0  ;;  %1211 = vst [vmem:[#allocation2 + $0xd0] sm:$0xff] %v9780_v0  ;;  %8607 = vmatprep.subr.bf16.mxu0 %v9503_v2  ;;  %8352 = vmatpush3.bf16.msra.mxu1 %v9502_v1  ;;  %v9507_v6 = vld [vmem:[#allocation7 + $0x110] sm:$0xff]   ;;  %v9508_v7 = vld [vmem:[#allocation7 + $0x18] sm:$0xff]   ;;  %v1269_v13 = vrot.slane %v9780_v0, 4  ;;  %vm1890_vm2 = vcmask 1043456  }
  0x5f   : > { %1212 = vst [vmem:[#allocation2 + $0xd8] sm:$0xff] %v9780_v0  ;;  %8608 = vmatpush3.bf16.msra.mxu0 %v9503_v2  ;;  %8353 = vmatprep.subr.bf16.mxu1 %v9504_v3  ;;  %v9509_v8 = vld [vmem:[#allocation7 + $0x118] sm:$0xff]   ;;  %v9510_v9 = vld [vmem:[#allocation7 + $0x20] sm:$0xff]   ;;  %v9512_v12 = vld [vmem:[#allocation7 + $0x28] sm:$0xff]   ;;  %vm4265_vm1 = vsmask.f32 7424 }
  0x60   : > { %8609 = vmatprep.subr.bf16.mxu0 %v9505_v4  ;;  %v9511_v10 = vld [vmem:[#allocation7 + $0x120] sm:$0xff]   ;;  %v9513_v14 = vld [vmem:[#allocation7 + $0x128] sm:$0xff]   ;;  %v9970_v21 = vor.u32 %v1269_v13, %v1266_v11  ;;  %v1115_v22 = vld [vmem:[%s9956_s26 + $0x10] sm:$0xff]  ;;  %vm2422_vm3 = vsmask.f32 3328  ;;  %s9330_s21 = smul.u32 192, %s9952_s14 }
  0x61   : > { %v1113_v16 = vld [vmem:[%s9956_s26] sm:$0xff]  ;;  %v1114_v17 = vld [vmem:[%s9956_s26 + $0x8] sm:$0xff]  ;;  %v1116_v23 = vld [vmem:[%s9956_s26 + $0x18] sm:$0xff]  ;;  %vm3129_vm4 = vsmask.f32 256  ;;  %s240_s10 = scalar_lea.vmem [#allocation10], %s9952_s14 }
  0x62   : > { %8354 = vmatpush3.bf16.msra.mxu1 %v9504_v3  ;;  %v9968_v20 = vpack.c.bf16 %v1114_v17, %v1113_v16  ;;  %v9514_v28 = vld [vmem:[#allocation7 + $0x30] sm:$0xff]   ;;  %v9978_v29 = vpack.c.bf16 %v1116_v23, %v1115_v22  ;;  %v1117_v32 = vld [vmem:[%s9956_s26 + $0x20] sm:$0xff]  ;;  %v1118_v36 = vld [vmem:[%s9956_s26 + $0x28] sm:$0xff]  ;;  %s12191_s23 = scalar_lea.vmem [#allocation9], %s9330_s21  ;;  %s7561_s25 = sand.u32 1, %s9832_s19  }
  0x63   : > { %8610 = vmatpush3.bf16.msra.mxu0 %v9505_v4  ;;  %8355 = vmatprep.subr.bf16.mxu1 %v9506_v5  ;;  %v9515_v30 = vld [vmem:[#allocation7 + $0x130] sm:$0xff]   ;;  %v1120_v38 = vld [vmem:[%s9956_s26 + $0x38] sm:$0xff]  ;;  %v9993_v41 = vpack.c.bf16 %v1118_v36, %v1117_v32  ;;  %v1121_v47 = vld [vmem:[%s9956_s26 + $0x40] sm:$0xff]  ;;  %s7868_s29 = sshll.u32 %s9832_s19, 4  ;;  %s7594_s9 = sshll.u32 %s240_s10, 4  ;;  %s13352_s9 = int_to_ptr.vmem [resolvable:$true] %s7594_s9 }
  0x64   : > { %8611 = vmatprep.subr.bf16.mxu0 %v9507_v6  ;;  %v1213_v15 = vld [vmem:[#allocation2] sm:$0xf8]  ;;  %1187 = vst [vmem:[#allocation2 + $0x10] sm:$0xff] %v9968_v20  ;;  %8623 = vmatprep.mubr.bf16.mxu0 %v9968_v20  ;;  %v1273_v26 = vshrl.u32 %v9968_v20, 16  ;;  %v1276_v27 = vshll.u32 %v9968_v20, 16  ;;  %1188 = vst [vmem:[#allocation2 + $0x18] sm:$0xff] %v9978_v29  ;;  %s13342_s8 = scalar_lea.hbm %s13716_s3, %s7868_s29 }
  0x65   : > { %v1256_v18 = vshrl.u32 %v1213_v15, 16  ;;  %v1259_v19 = vshll.u32 %v1213_v15, 16  ;;  %v1282_v34 = vshrl.u32 %v9978_v29, 16  ;;  %v1285_v35 = vshll.u32 %v9978_v29, 16  ;;  %v1119_v37 = vld [vmem:[%s9956_s26 + $0x30] sm:$0xff]  ;;  %v9516_v43 = vld [vmem:[#allocation7 + $0x38] sm:$0xff]  }
  0x66   : > { %8356 = vmatpush3.bf16.msra.mxu1 %v9506_v5  ;;  %v1275_v33 = vrot.slane %v1273_v26, 3  ;;  %v1278_v40 = vrot.slane %v1276_v27, 4  ;;  %v9995_v42 = vpack.c.bf16 %v1120_v38, %v1119_v37  ;;  %v9517_v44 = vld [vmem:[#allocation7 + $0x138] sm:$0xff]   ;;  %1189 = vst [vmem:[#allocation2 + $0x20] sm:$0xff] %v9993_v41  ;;  %v1122_v48 = vld [vmem:[%s9956_s26 + $0x48] sm:$0xff]  ;;  %v1123_v50 = vld [vmem:[%s9956_s26 + $0x50] sm:$0xff] }
  0x67   : > { %8612 = vmatpush3.bf16.msra.mxu0 %v9507_v6  ;;  %8357 = vmatprep.subr.bf16.mxu1 %v9508_v7  ;;  %v1258_v24 = vrot.slane %v1256_v18, 3  ;;  %v1261_v25 = vrot.slane %v1259_v19, 4  ;;  %v1284_v45 = vrot.slane %v1282_v34, 3  ;;  %v1287_v46 = vrot.slane %v1285_v35, 4  ;;  %v1124_v51 = vld [vmem:[%s9956_s26 + $0x58] sm:$0xff]  ;;  %v9518_v56 = vld [vmem:[#allocation7 + $0x40] sm:$0xff]  }
  0x68   : > { %8613 = vmatprep.subr.bf16.mxu0 %v9509_v8  ;;  %1190 = vst [vmem:[#allocation2 + $0x28] sm:$0xff] %v9995_v42  ;;  %v10005_v49 = vpack.c.bf16 %v1122_v48, %v1121_v47  ;;  %v1279_v52 = vor.u32 %v1278_v40, %v1275_v33  ;;  %v1291_v53 = vshrl.u32 %v9993_v41, 16  ;;  %v1294_v54 = vshll.u32 %v9993_v41, 16  ;;  %v1125_v59 = vld [vmem:[%s9956_s26 + $0x60] sm:$0xff]  ;;  %v1126_v60 = vld [vmem:[%s9956_s26 + $0x68] sm:$0xff]  ;;  %v1127_v0 = vld [vmem:[%s9956_s26 + $0x70] sm:$0xff] }
  0x69   : > { %v1262_v31 = vor.u32 %v1261_v25, %v1258_v24  ;;  %v10011_v55 = vpack.c.bf16 %v1124_v51, %v1123_v50  ;;  %v1300_v57 = vshrl.u32 %v9995_v42, 16  ;;  %v1303_v58 = vshll.u32 %v9995_v42, 16  ;;  %v9519_v61 = vld [vmem:[#allocation7 + $0x140] sm:$0xff]   ;;  %v1128_v1 = vld [vmem:[%s9956_s26 + $0x78] sm:$0xff]  ;;  %v9520_v3 = vld [vmem:[#allocation7 + $0x148] sm:$0xff]   ;;  %s13362_s28 = scalar_lea.sflag [#allocation11], %s7561_s25 }
  0x6a   : > { %8358 = vmatpush3.bf16.msra.mxu1 %v9508_v7  ;;  %1191 = vst [vmem:[#allocation2 + $0x30] sm:$0xff] %v10005_v49  ;;  %v1288_v62 = vor.u32 %v1287_v46, %v1284_v45  ;;  %v10019_v63 = vpack.c.bf16 %v1126_v60, %v1125_v59  ;;  %v1280_v2 = vsel %vm1254_vm0, %v9970_v21, %v1279_v52  ;;  %v1293_v4 = vrot.slane %v1291_v53, 3  ;;  %v1130_v11 = vld [vmem:[%s9956_s26 + $0x88] sm:$0xff]  ;;  %v1132_v15 = vld [vmem:[%s9956_s26 + $0x98] sm:$0xff]  ;;  %v9524_v24 = vld [vmem:[#allocation7 + $0x50] sm:$0xff]   ;;  %s9642_s12 = scalar_lea.vmem %s13352_s9, 16 }
  0x6b   : > { %8614 = vmatpush3.bf16.msra.mxu0 %v9509_v8  ;;  %8359 = vmatprep.subr.bf16.mxu1 %v9510_v9  ;;  %v1271_v39 = vsel %vm1254_vm0, %v1262_v31, %v9970_v21  ;;  %1192 = vst [vmem:[#allocation2 + $0x38] sm:$0xff] %v10011_v55  ;;  %v1296_v5 = vrot.slane %v1294_v54, 4  ;;  %v1302_v6 = vrot.slane %v1300_v57, 3  ;;  %v1305_v7 = vrot.slane %v1303_v58, 4  ;;  %v9521_v13 = vld [vmem:[#allocation7 + $0x48] sm:$0xff]   ;;  %v1133_v25 = vld [vmem:[%s9956_s26 + $0xa0] sm:$0xff]  ;;  %p9643_p4 = scmp.ne.s32.totalorder %s13352_s9, %s9642_s12 }
  0x6c   : > { %8615 = vmatprep.subr.bf16.mxu0 %v9511_v10  ;;  %8367 = vmatprep.mubr.bf16.mxu1 %v1271_v39  ;;  %1193 = vst [vmem:[#allocation2 + $0x40] sm:$0xff] %v10019_v63  ;;  %v10034_v8 = vpack.c.bf16 %v1128_v1, %v1127_v0  ;;  %v1312_v17 = vshll.u32 %v10005_v49, 16  ;;  %v1318_v22 = vshrl.u32 %v10011_v55, 16  ;;  %v1321_v23 = vshll.u32 %v10011_v55, 16  ;;  %v1135_v31 = vld [vmem:[%s9956_s26 + $0xb0] sm:$0xff]  ;;  %v1136_v33 = vld [vmem:[%s9956_s26 + $0xb8] sm:$0xff] }
  0x6d   : > { %v1297_v16 = vor.u32 %v1296_v5, %v1293_v4  ;;  %v1306_v21 = vor.u32 %v1305_v7, %v1302_v6  ;;  %v1137_v39 = vld [vmem:[%s9956_s26 + $0xc0] sm:$0xff]  ;;  %v10072_v46 = vpack.c.bf16 %v1136_v33, %v1135_v31  ;;  %v1138_v47 = vld [vmem:[%s9956_s26 + $0xc8] sm:$0xff]  ;;  %v9527_v50 = vld [vmem:[#allocation7 + $0x58] sm:$0xff]   ;;  %v1330_v59 = vshll.u32 %v10019_v63, 16  ;;  %p9644_p6 = pnand %p9643_p4, %p9904_p12  ;;  %s9781_s13 = smov [#allocation10]  }
  0x6e   : > { %8360 = vmatpush3.bf16.msra.mxu1 %v9510_v9  ;;  %v1289_v9 = vsel %vm1254_vm0, %v1279_v52, %v1288_v62  ;;  %1194 = vst [vmem:[#allocation2 + $0x48] sm:$0xff] %v10034_v8  ;;  %v1314_v38 = vrot.slane %v1312_v17, 4  ;;  %v1323_v45 = vrot.slane %v1321_v23, 4  ;;  %v10075_v48 = vpack.c.bf16 %v1138_v47, %v1137_v39  ;;  %v1139_v51 = vld [vmem:[%s9956_s26 + $0xd0] sm:$0xff]  ;;  %v1140_v60 = vld [vmem:[%s9956_s26 + $0xd8] sm:$0xff]  ;;  %v9525_v4 = vld [vmem:[#allocation7 + $0x160] sm:$0xff]  }
  0x6f   : > { %8616 = vmatpush3.bf16.msra.mxu0 %v9511_v10  ;;  %8361 = vmatprep.subr.bf16.mxu1 %v9512_v12  ;;  %v1129_v10 = vld [vmem:[%s9956_s26 + $0x80] sm:$0xff]  ;;  %v1298_v36 = vsel %vm1254_vm0, %v1288_v62, %v1297_v16  ;;  %v1307_v40 = vsel %vm1254_vm0, %v1297_v16, %v1306_v21  ;;  %1198 = vst [vmem:[#allocation2 + $0x68] sm:$0xff] %v10072_v46  ;;  %v1142_v62 = vld [vmem:[%s9956_s26 + $0xe8] sm:$0xff]  ;;  %v1336_v1 = vshrl.u32 %v10034_v8, 16  ;;  %v1143_v7 = vld [vmem:[%s9956_s26 + $0xf0] sm:$0xff]  ;;  %p9645_p8 = pneg %p9644_p6  ;;  %s9646_s24 = sshll.u32 %s9781_s13, 4  ;;  %s9647_s24 = int_to_ptr.vmem [resolvable:$false] %s9646_s24 }
  0x70   : > { %8617 = vmatprep.subr.bf16.mxu0 %v9513_v14  ;;  %v10045_v18 = vpack.c.bf16 %v1130_v11, %v1129_v10  ;;  %1199 = vst [vmem:[#allocation2 + $0x70] sm:$0xff] %v10075_v48  ;;  %v9530_v5 = vld [vmem:[#allocation7 + $0x60] sm:$0xff]   ;;  %v1148_v31 = vld [vmem:[%s9956_s26 + $0x118] sm:$0xff]  ;;  %v9532_v33 = vld [vmem:[#allocation7 + $0x68] sm:$0xff]   ;;  %s9648_s7 = scalar_lea.vmem %s9647_s24, 32  ;;  %p9649_p10 = scmp.lt.s32.totalorder %s13352_s9, %s9647_s24 }
  0x71   : > { %v1338_v16 = vrot.slane %v1336_v1, 3  ;;  %p9650_p13 = scmp.lt.s32.totalorder %s9648_s7, %s9642_s12 }
  0x72   : > { %8362 = vmatpush3.bf16.msra.mxu1 %v9512_v12  ;;  %v1131_v12 = vld [vmem:[%s9956_s26 + $0x90] sm:$0xff]  ;;  %1195 = vst [vmem:[#allocation2 + $0x50] sm:$0xff] %v10045_v18 }
  0x73   : > { %8618 = vmatpush3.bf16.msra.mxu0 %v9513_v14  ;;  %8363 = vmatprep.subr.bf16.mxu1 %v9514_v28  ;;  %v1309_v14 = vshrl.u32 %v10005_v49, 16  ;;  %v10047_v19 = vpack.c.bf16 %v1132_v15, %v1131_v12  ;;  %v1332_v12 = vrot.slane %v1330_v59, 4  ;;  %p9651_p3 = por %p9650_p13, %p9649_p10 }
  0x74   : > { %8619 = vmatprep.subr.bf16.mxu0 %v9515_v30 }
  0x75   : > { %1196 = vst [vmem:[#allocation2 + $0x58] sm:$0xff] %v10047_v19  ;;  %v1311_v37 = vrot.slane %v1309_v14, 3  ;;  %p9652_p7 = pnand %p9651_p3, %p9645_p8 }
  0x76   : > { %8364 = vmatpush3.bf16.msra.mxu1 %v9514_v28  ;;  %v9522_v28 = vld [vmem:[#allocation7 + $0x150] sm:$0xff]  }
  0x77   : > { %8620 = vmatpush3.bf16.msra.mxu0 %v9515_v30  ;;  %8365 = vmatprep.subr.bf16.mxu1 %v9516_v43  ;;  %v1134_v30 = vld [vmem:[%s9956_s26 + $0xa8] sm:$0xff]  ;;  %v1315_v52 = vor.u32 %v1314_v38, %v1311_v37  ;;  %v13736_v37 = vshrl.u32 %v10045_v18, 16  ;;  %v13739_v38 = vshll.u32 %v10045_v18, 16 }
  0x78   : > { %8621 = vmatprep.subr.bf16.mxu0 %v9517_v44  ;;  %v10057_v32 = vpack.c.bf16 %v1134_v30, %v1133_v25  ;;  %v1147_v30 = vld [vmem:[%s9956_s26 + $0x110] sm:$0xff] }
  0x79   : > { %v1316_v10 = vsel %vm1254_vm0, %v1306_v21, %v1315_v52  ;;  %v1145_v21 = vld [vmem:[%s9956_s26 + $0x100] sm:$0xff]  ;;  %v10122_v47 = vpack.c.bf16 %v1148_v31, %v1147_v30  ;;  %v13725_v31 = vshll.u32 %v10072_v46, 16 }
  0x7a   : > { %8366 = vmatpush3.bf16.msra.mxu1 %v9516_v43  ;;  %v9523_v43 = vld [vmem:[#allocation7 + $0x158] sm:$0xff]   ;;  %1197 = vst [vmem:[#allocation2 + $0x60] sm:$0xff] %v10057_v32 }
  0x7b   : > { %8622 = vmatpush3.bf16.msra.mxu0 %v9517_v44  ;;  %8415 = vmatprep.subr.bf16.mxu1 %v9518_v56  ;;  %v1320_v44 = vrot.slane %v1318_v22, 3  ;;  %1204 = vst [vmem:[#allocation2 + $0x98] sm:$0xff] %v10122_v47 }
  0x7c   : > { %8671 = vmatprep.subr.bf16.mxu0 %v9519_v61 }
  0x7d   : > { %8368 = vmatmul.mubr.bf16.vlgmr.msra.gmra.mrb[0].mxu1 %v1280_v2  ;;  %v1324_v0 = vor.u32 %v1323_v45, %v1320_v44  ;;  %v1339_v2 = vshll.u32 %v10034_v8, 16  ;;  %v13727_v44 = vshrl.u32 %v10047_v19, 16  ;;  %v13738_v45 = vshll.u32 %v10047_v19, 16 }
  0x7e   : > { %8624 = vmatmul.mubr.bf16.vlgmr.msra.gmra.mrb[0].mxu0 %v9978_v29  ;;  %8416 = vmatpush3.bf16.msra.mxu1 %v9518_v56  ;;  %v1327_v56 = vshrl.u32 %v10019_v63, 16 }
  0x7f   : > { %8672 = vmatpush3.bf16.msra.mxu0 %v9519_v61  ;;  %8371 = vmatprep.mubr.bf16.mxu1 %v1289_v9  ;;  %v1141_v61 = vld [vmem:[%s9956_s26 + $0xe0] sm:$0xff]  ;;  %v1144_v9 = vld [vmem:[%s9956_s26 + $0xf8] sm:$0xff]  ;;  %v1325_v15 = vsel %vm1254_vm0, %v1315_v52, %v1324_v0  ;;  %v9534_v52 = vld [vmem:[#allocation7 + $0x70] sm:$0xff]  }
  0x80   : > { %8673 = vmatprep.subr.bf16.mxu0 %v9520_v3  ;;  %8627 = vmatprep.mubr.bf16.mxu0 %v9993_v41  ;;  %v10091_v6 = vpack.c.bf16 %v1142_v62, %v1141_v61  ;;  %v1329_v11 = vrot.slane %v1327_v56, 3  ;;  %v10107_v25 = vpack.c.bf16 %v1144_v9, %v1143_v7  ;;  %v1347_v61 = vrot.slane %v13736_v37, 3 }
  0x81   : > { %8417 = vmatprep.subr.bf16.mxu1 %v9521_v13  ;;  %v1350_v62 = vrot.slane %v13739_v38, 4  ;;  %v1356_v9 = vrot.slane %v13727_v44, 3 }
  0x82   : > { %8418 = vmatpush3.bf16.msra.mxu1 %v9521_v13  ;;  %v9526_v13 = vld [vmem:[#allocation7 + $0x168] sm:$0xff]   ;;  %1201 = vst [vmem:[#allocation2 + $0x80] sm:$0xff] %v10091_v6  ;;  %1202 = vst [vmem:[#allocation2 + $0x88] sm:$0xff] %v10107_v25 }
  0x83   : > { %8674 = vmatpush3.bf16.msra.mxu0 %v9520_v3  ;;  %8419 = vmatprep.subr.bf16.mxu1 %v9524_v24  ;;  %v10089_v3 = vpack.c.bf16 %v1140_v60, %v1139_v51  ;;  %v1150_v51 = vld [vmem:[%s9956_s26 + $0x128] sm:$0xff]  ;;  %v1351_v30 = vor.u32 %v1350_v62, %v1347_v61 }
  0x84   : > { %8675 = vmatprep.subr.bf16.mxu0 %v9522_v28 }
  0x85   : > { %8372 = vmatmul.mubr.bf16.gmra.mrb[4].mxu1 %v1298_v36  ;;  %1200 = vst [vmem:[#allocation2 + $0x78] sm:$0xff] %v10089_v3  ;;  %v1333_v36 = vor.u32 %v1332_v12, %v1329_v11  ;;  %v9529_v11 = vld [vmem:[#allocation7 + $0x178] sm:$0xff]   ;;  %v1153_v12 = vld [vmem:[%s9956_s26 + $0x140] sm:$0xff] }
  0x86   : > { %8628 = vmatmul.mubr.bf16.gmra.mrb[4].mxu0 %v9995_v42  ;;  %8375 = vmatprep.mubr.bf16.mxu1 %v1307_v40 }
  0x87   : > { %8676 = vmatpush3.bf16.msra.mxu0 %v9522_v28  ;;  %8631 = vmatprep.mubr.bf16.mxu0 %v10005_v49  ;;  %v1146_v28 = vld [vmem:[%s9956_s26 + $0x108] sm:$0xff]  ;;  %v1334_v60 = vsel %vm1254_vm0, %v1324_v0, %v1333_v36  ;;  %v13722_v0 = vshrl.u32 %v10057_v32, 16 }
  0x88   : > { %8677 = vmatprep.subr.bf16.mxu0 %v9523_v43  ;;  %8420 = vmatpush3.bf16.msra.mxu1 %v9524_v24  ;;  %v1341_v24 = vrot.slane %v1339_v2, 4  ;;  %v10117_v39 = vpack.c.bf16 %v1146_v28, %v1145_v21  ;;  %v9536_v28 = vld [vmem:[#allocation7 + $0x78] sm:$0xff]  }
  0x89   : > { %8421 = vmatprep.subr.bf16.mxu1 %v9527_v50 }
  0x8a   : > { %v1342_v40 = vor.u32 %v1341_v24, %v1338_v16  ;;  %1203 = vst [vmem:[#allocation2 + $0x90] sm:$0xff] %v10117_v39  ;;  %v1154_v24 = vld [vmem:[%s9956_s26 + $0x148] sm:$0xff] }
  0x8b   : > { %8678 = vmatpush3.bf16.msra.mxu0 %v9523_v43  ;;  %v9528_v43 = vld [vmem:[#allocation7 + $0x170] sm:$0xff]   ;;  %v10160_v61 = vpack.c.bf16 %v1154_v24, %v1153_v12  ;;  %v13723_v24 = vshrl.u32 %v10075_v48, 16 }
  0x8c   : > { %8679 = vmatprep.subr.bf16.mxu0 %v9525_v4  ;;  %8422 = vmatpush3.bf16.msra.mxu1 %v9527_v50  ;;  %v1149_v50 = vld [vmem:[%s9956_s26 + $0x120] sm:$0xff]  ;;  %v1343_v7 = vsel %vm1254_vm0, %v1333_v36, %v1342_v40 }
  0x8d   : > { %8376 = vmatmul.mubr.bf16.gmra.mrb[8].mxu1 %v1316_v10  ;;  %8423 = vmatprep.subr.bf16.mxu1 %v9530_v5  ;;  %v1359_v10 = vrot.slane %v13738_v45, 4  ;;  %v10143_v16 = vpack.c.bf16 %v1150_v51, %v1149_v50  ;;  %v1156_v50 = vld [vmem:[%s9956_s26 + $0x158] sm:$0xff]  ;;  %v1365_v51 = vrot.slane %v13722_v0, 3  ;;  %1207 = vst [vmem:[#allocation2 + $0xb0] sm:$0xff] %v10160_v61  ;;  %v4276_v0 = vrot.slane %v1285_v35, 1 }
  0x8e   : > { %8632 = vmatmul.mubr.bf16.gmra.mrb[8].mxu0 %v10011_v55  ;;  %8379 = vmatprep.mubr.bf16.mxu1 %v1325_v15  ;;  %v13730_v15 = vshll.u32 %v10057_v32, 16  ;;  %v13726_v35 = vshrl.u32 %v10089_v3, 16  ;;  %v1914_v45 = vrot.slane %v10057_v32, 4 }
  0x8f   : > { %8635 = vmatprep.mubr.bf16.mxu0 %v10019_v63  ;;  %8680 = vmatpush3.bf16.msra.mxu0 %v9525_v4  ;;  %v1151_v4 = vld [vmem:[%s9956_s26 + $0x130] sm:$0xff]  ;;  %1205 = vst [vmem:[#allocation2 + $0xa0] sm:$0xff] %v10143_v16  ;;  %v1360_v36 = vor.u32 %v1359_v10, %v1356_v9  ;;  %v1377_v9 = vrot.slane %v13725_v31, 4  ;;  %v1158_v10 = vld [vmem:[%s9956_s26 + $0x168] sm:$0xff] }
  0x90   : > { %8681 = vmatprep.subr.bf16.mxu0 %v9526_v13  ;;  %8424 = vmatpush3.bf16.msra.mxu1 %v9530_v5  ;;  %v1152_v5 = vld [vmem:[%s9956_s26 + $0x138] sm:$0xff]  ;;  %v1368_v62 = vrot.slane %v13730_v15, 4  ;;  %v1902_v15 = vrot.slane %v10005_v49, 4 }
  0x91   : > { %8425 = vmatprep.subr.bf16.mxu1 %v9532_v33  ;;  %v10147_v21 = vpack.c.bf16 %v1152_v5, %v1151_v4  ;;  %v1157_v4 = vld [vmem:[%s9956_s26 + $0x160] sm:$0xff]  ;;  %v1361_v12 = vsel %vm1254_vm0, %v1351_v30, %v1360_v36 }
  0x92   : > { %v10167_v5 = vld [vmem:[#allocation7 + $0x80] sm:$0xff]  }
  0x93   : > { %8682 = vmatpush3.bf16.msra.mxu0 %v9526_v13  ;;  %v13721_v13 = vshrl.u32 %v10072_v46, 16  ;;  %1206 = vst [vmem:[#allocation2 + $0xa8] sm:$0xff] %v10147_v21 }
  0x94   : > { %8683 = vmatprep.subr.bf16.mxu0 %v9528_v43  ;;  %8426 = vmatpush3.bf16.msra.mxu1 %v9532_v33  ;;  %v1155_v33 = vld [vmem:[%s9956_s26 + $0x150] sm:$0xff] }
  0x95   : > { %8380 = vmatmul.mubr.bf16.gmra.mrb[12].mxu1 %v1334_v60  ;;  %8427 = vmatprep.subr.bf16.mxu1 %v9534_v52  ;;  %v10158_v60 = vld [vmem:[#allocation7 + $0x180] sm:$0xff]  }
  0x96   : > { %8636 = vmatmul.mubr.bf16.gmra.mrb[12].mxu0 %v10034_v8  ;;  %8383 = vmatprep.mubr.bf16.mxu1 %v1343_v7  ;;  %v1352_v7 = vsel %vm1254_vm0, %v1342_v40, %v1351_v30  ;;  %v13724_v40 = vshll.u32 %v10075_v48, 16  ;;  %v10185_v30 = vpack.c.bf16 %v1158_v10, %v1157_v4  ;;  %v4280_v4 = vor.u32 %v4276_v0, %v1282_v34 }
  0x97   : > { %8639 = vmatprep.mubr.bf16.mxu0 %v10045_v18  ;;  %8684 = vmatpush3.bf16.msra.mxu0 %v9528_v43  ;;  %v1374_v43 = vrot.slane %v13721_v13, 3  ;;  %v4271_v13 = vrot.slane %v1276_v27, 1 }
  0x98   : > { %8685 = vmatprep.subr.bf16.mxu0 %v9529_v11  ;;  %8428 = vmatpush3.bf16.msra.mxu1 %v9534_v52  ;;  %v10173_v52 = vpack.c.bf16 %v1156_v50, %v1155_v33  ;;  %v1369_v33 = vor.u32 %v1368_v62, %v1365_v51  ;;  %v4284_v50 = vrot.slane %v1294_v54, 1  ;;  %v13729_v51 = vshll.u32 %v10089_v3, 16  ;;  %1209 = vst [vmem:[#allocation2 + $0xc0] sm:$0xff] %v10185_v30 }
  0x99   : > { %8429 = vmatprep.subr.bf16.mxu1 %v9536_v28  ;;  %v1378_v27 = vor.u32 %v1377_v9, %v1374_v43  ;;  %v4292_v62 = vrot.slane %v1303_v58, 1  ;;  %v4272_v43 = vor.u32 %v4271_v13, %v1273_v26  ;;  %v1896_v9 = vrot.slane %v9978_v29, 4 }
  0x9a   : > { %1208 = vst [vmem:[#allocation2 + $0xb8] sm:$0xff] %v10173_v52  ;;  %v1370_v54 = vsel %vm1254_vm0, %v1360_v36, %v1369_v33  ;;  %v4288_v10 = vor.u32 %v4284_v50, %v1291_v53  ;;  %v13733_v58 = vshrl.u32 %v10091_v6, 16  ;;  %v1392_v26 = vrot.slane %v13726_v35, 3 }
  0x9b   : > { %8686 = vmatpush3.bf16.msra.mxu0 %v9529_v11  ;;  %v13728_v11 = vrot.slane %v9968_v20, 4  ;;  %v1898_v29 = vrot.slane %v9993_v41, 4  ;;  %v1395_v13 = vrot.slane %v13729_v51, 4  ;;  %v13731_v53 = vshrl.u32 %v10107_v25, 16 }
  0x9c   : > { %8735 = vmatprep.subr.bf16.mxu0 %v10158_v60  ;;  %8430 = vmatpush3.bf16.msra.mxu1 %v9536_v28  ;;  %v1383_v28 = vrot.slane %v13723_v24, 3  ;;  %v1379_v24 = vsel %vm1254_vm0, %v1369_v33, %v1378_v27  ;;  %v13732_v36 = vshll.u32 %v10107_v25, 16  ;;  %v4277_v33 = vsel %vm4265_vm1, %v4272_v43, %v4276_v0 }
  0x9d   : > { %8384 = vmatmul.mubr.bf16.gmra.mrb[16].mxu1 %v1352_v7  ;;  %8479 = vmatprep.subr.bf16.mxu1 %v10167_v5  ;;  %v1386_v7 = vrot.slane %v13724_v40, 4  ;;  %v10218_v34 = vsel %vm1890_vm2, %v13728_v11, %v1896_v9  ;;  %v1900_v40 = vrot.slane %v9995_v42, 4  ;;  %v4285_v35 = vsel %vm4265_vm1, %v4280_v4, %v4284_v50 }
  0x9e   : > { %8640 = vmatmul.mubr.bf16.gmra.mrb[16].mxu0 %v10047_v19  ;;  %8387 = vmatprep.mubr.bf16.mxu1 %v1361_v12  ;;  %v13734_v12 = vshll.u32 %v10091_v6, 16  ;;  %v10229_v44 = vsel %vm1890_vm2, %v1896_v9, %v1898_v29  ;;  %v4296_v41 = vor.u32 %v4292_v62, %v1300_v57  ;;  %v4300_v11 = vrot.slane %v1312_v17, 1 }
  0x9f   : > { %8643 = vmatprep.mubr.bf16.mxu0 %v10057_v32  ;;  %v1387_v31 = vor.u32 %v1386_v7, %v1383_v28  ;;  %v10236_v51 = vsel %vm1890_vm2, %v1898_v29, %v1900_v40  ;;  %v4293_v0 = vsel %vm4265_vm1, %v4288_v10, %v4292_v62  ;;  %v1401_v28 = vrot.slane %v13733_v58, 3  ;;  %v1159_v29 = vld [vmem:[%s9956_s26 + $0x170] sm:$0xff] }
  0xa0   : > { %v1404_v42 = vrot.slane %v13734_v12, 4  ;;  %v1904_v57 = vrot.slane %v10011_v55, 4  ;;  %v1396_v17 = vor.u32 %v1395_v13, %v1392_v26  ;;  %v1410_v50 = vrot.slane %v13731_v53, 3  ;;  %v1160_v13 = vld [vmem:[%s9956_s26 + $0x178] sm:$0xff] }
  0xa1   : > { %v10251_v62 = vsel %vm1890_vm2, %v1900_v40, %v1902_v15  ;;  %v1388_v43 = vsel %vm1254_vm0, %v1378_v27, %v1387_v31  ;;  %v13735_v4 = vshll.u32 %v10173_v52, 16  ;;  %v1906_v9 = vrot.slane %v10019_v63, 4 }
  0xa2   : > { %v10256_v7 = vsel %vm1890_vm2, %v1902_v15, %v1904_v57  ;;  %v4304_v10 = vor.u32 %v4300_v11, %v1309_v14  ;;  %v13741_v26 = vshrl.u32 %v10117_v39, 16  ;;  %v13737_v40 = vshrl.u32 %v10173_v52, 16 }
  0xa3   : > { %v1405_v27 = vor.u32 %v1404_v42, %v1401_v28  ;;  %v10269_v53 = vsel %vm1890_vm2, %v1904_v57, %v1906_v9  ;;  %v1908_v15 = vrot.slane %v10034_v8, 4  ;;  %v1397_v49 = vsel %vm1254_vm0, %v1387_v31, %v1396_v17 }
  0xa4   : > { %v1910_v58 = vrot.slane %v10045_v18, 4  ;;  %v4442_v57 = vshll.u32 %v10185_v30, 16  ;;  %v1912_v12 = vrot.slane %v10047_v19, 4  ;;  %v13742_v31 = vshrl.u32 %v10122_v47, 16 }
  0xa5   : > { %8388 = vmatmul.mubr.bf16.gmra.mrb[20].mxu1 %v1370_v54  ;;  %v10260_v54 = vsel %vm4265_vm1, %v4296_v41, %v4300_v11  ;;  %v10274_v41 = vrot.slane %v13735_v4, 1  ;;  %v13751_v11 = vshll.u32 %v10117_v39, 16  ;;  %v10282_v28 = vsel %vm1890_vm2, %v1906_v9, %v1908_v15 }
  0xa6   : > { %8644 = vmatmul.mubr.bf16.gmra.mrb[20].mxu0 %v10072_v46  ;;  %8391 = vmatprep.mubr.bf16.mxu1 %v1379_v24  ;;  %v1413_v24 = vrot.slane %v13732_v36, 4  ;;  %v4248_v36 = vld [vmem:[#allocation2 + $0xd0] sm:$0x1]  ;;  %v10294_v4 = vpack.c.bf16 %v1160_v13, %v1159_v29  ;;  %v4444_v9 = vrot.slane %v4442_v57, 1  ;;  %v10297_v37 = vsel %vm1890_vm2, %v1910_v58, %v1912_v12 }
  0xa7   : > { %8687 = vmatprep.mubr.bf16.mxu0 %v4277_v33  ;;  %v9533_v33 = vld [vmem:[#allocation7 + $0x188] sm:$0xff]   ;;  %v4440_v42 = vor.u32 %v10274_v41, %v13737_v40  ;;  %v4446_v40 = vshrl.u32 %v10185_v30, 16  ;;  %v4458_v13 = vshll.u32 %v4248_v36, 16  ;;  %v4324_v55 = vrot.slane %v1339_v2, 1 }
  0xa8   : > { %v10277_v14 = vor.u32 %v1413_v24, %v1410_v50  ;;  %v13743_v50 = vshll.u32 %v10122_v47, 16  ;;  %v10292_v24 = vsel %vm1890_vm2, %v1908_v15, %v1910_v58  ;;  %1210 = vst [vmem:[#allocation2 + $0xc8] sm:$0xff] %v10294_v4  ;;  %v13744_v29 = vshrl.u32 %v10294_v4, 16  ;;  %v9535_v15 = vld [vmem:[#allocation7 + $0x190] sm:$0xff]  }
  0xa9   : > { %v4308_v58 = vrot.slane %v1321_v23, 1  ;;  %v10309_v30 = vsel %vm4265_vm1, %v4440_v42, %v4444_v9  ;;  %v4460_v36 = vrot.slane %v4458_v13, 1  ;;  %v1419_v42 = vrot.slane %v13741_v26, 3 }
  0xaa   : > { %v1415_v23 = vsel %vm1254_vm0, %v1405_v27, %v10277_v14 }
  0xab   : > { %v4309_v13 = vsel %vm4265_vm1, %v4304_v10, %v4308_v58 }
  0xad   : > { %8392 = vmatmul.mubr.bf16.gmra.mrb[24].mxu1 %v1388_v43  ;;  %v13740_v43 = vshll.u32 %v10294_v4, 16 }
  0xae   : > { %8688 = vmatmul.mubr.bf16.vlgmr.msra.gmra.mrb[0].mxu0 %v4285_v35  ;;  %8395 = vmatprep.mubr.bf16.mxu1 %v1397_v49  ;;  %v1916_v35 = vrot.slane %v10072_v46, 4  ;;  %v4448_v49 = vor.u32 %v4446_v40, %v4444_v9  ;;  %v1422_v40 = vrot.slane %v13751_v11, 4  ;;  %v1431_v9 = vrot.slane %v13743_v50, 4 }
  0xaf   : > { %8736 = vmatpush3.bf16.msra.mxu0 %v10158_v60  ;;  %8691 = vmatprep.mubr.bf16.mxu0 %v4293_v0  ;;  %v10312_v60 = vsel %vm1890_vm2, %v1912_v12, %v1914_v45  ;;  %v1406_v0 = vsel %vm1254_vm0, %v1396_v17, %v1405_v27  ;;  %v4452_v57 = vrot.slane %v13740_v43, 1  ;;  %v1918_v12 = vrot.slane %v10075_v48, 4  ;;  %v9537_v43 = vld [vmem:[#allocation7 + $0x198] sm:$0xff]  }
  0xb0   : > { %8737 = vmatprep.subr.bf16.mxu0 %v9533_v33  ;;  %v10318_v38 = vsel %vm1890_vm2, %v1914_v45, %v1916_v35  ;;  %v1428_v17 = vrot.slane %v13742_v31, 3  ;;  %v13747_v31 = vshrl.u32 %v10143_v16, 16  ;;  %v1423_v10 = vor.u32 %v1422_v40, %v1419_v42 }
  0xb1   : > { %v10332_v45 = vsel %vm4265_vm1, %v4448_v49, %v4452_v57  ;;  %v4456_v27 = vor.u32 %v13744_v29, %v4452_v57  ;;  %v10338_v26 = vsel %vm1890_vm2, %v1916_v35, %v1918_v12  ;;  %v1920_v49 = vrot.slane %v10089_v3, 4 }
  0xb2   : > { %v4312_v57 = vor.u32 %v4308_v58, %v1318_v22  ;;  %v13748_v35 = vshll.u32 %v10143_v16, 16  ;;  %v13746_v29 = vshll.u32 %v10147_v21, 16  ;;  %v9539_v22 = vld [vmem:[#allocation7 + $0x1a0] sm:$0xff]   ;;  %v1437_v58 = vrot.slane %v13747_v31, 3 }
  0xb3   : > { %8738 = vmatpush3.bf16.msra.mxu0 %v9533_v33  ;;  %v4316_v33 = vrot.slane %v1330_v59, 1  ;;  %v10344_v50 = vsel %vm4265_vm1, %v4456_v27, %v4460_v36  ;;  %v1432_v59 = vor.u32 %v1431_v9, %v1428_v17  ;;  %v10354_v36 = vsel %vm1890_vm2, %v1918_v12, %v1920_v49 }
  0xb4   : > { %8739 = vmatprep.subr.bf16.mxu0 %v9535_v15  ;;  %v1922_v27 = vrot.slane %v10091_v6, 4  ;;  %v1424_v42 = vsel %vm1254_vm0, %v10277_v14, %v1423_v10  ;;  %v1440_v63 = vrot.slane %v13748_v35, 4  ;;  %v1449_v12 = vrot.slane %v13746_v29, 4 }
  0xb5   : > { %8396 = vmatmul.mubr.bf16.gmra.mrb[28].mxu1 %v1406_v0  ;;  %v13745_v0 = vshrl.u32 %v10147_v21, 16  ;;  %v4317_v40 = vsel %vm4265_vm1, %v4312_v57, %v4316_v33  ;;  %v1433_v2 = vsel %vm1254_vm0, %v1423_v10, %v1432_v59  ;;  %v1926_v9 = vrot.slane %v10117_v39, 4 }
  0xb6   : > { %8692 = vmatmul.mubr.bf16.gmra.mrb[4].mxu0 %v10260_v54  ;;  %8399 = vmatprep.mubr.bf16.mxu1 %v1415_v23  ;;  %v4320_v54 = vor.u32 %v4316_v33, %v1327_v56  ;;  %v1924_v23 = vrot.slane %v10107_v25, 4  ;;  %v9541_v33 = vld [vmem:[#allocation7 + $0x1a8] sm:$0xff]   ;;  %v1928_v57 = vrot.slane %v10122_v47, 4  ;;  %v1930_v35 = vrot.slane %v10143_v16, 4 }
  0xb7   : > { %8695 = vmatprep.mubr.bf16.mxu0 %v4309_v13  ;;  %8740 = vmatpush3.bf16.msra.mxu0 %v9535_v15  ;;  %v10364_v15 = vsel %vm1890_vm2, %v1920_v49, %v1922_v27  ;;  %v1446_v56 = vrot.slane %v13745_v0, 3  ;;  %v13749_v13 = vshrl.u32 %v10160_v61, 16  ;;  %v13750_v49 = vshll.u32 %v10160_v61, 16 }
  0xb8   : > { %8741 = vmatprep.subr.bf16.mxu0 %v9537_v43  ;;  %v10378_v17 = vsel %vm1890_vm2, %v1922_v27, %v1924_v23  ;;  %v4325_v14 = vsel %vm4265_vm1, %v4320_v54, %v4324_v55  ;;  %v10385_v10 = vsel %vm1890_vm2, %v1924_v23, %v1926_v9  ;;  %v4328_v27 = vor.u32 %v4324_v55, %v1336_v1  ;;  %v9543_v1 = vld [vmem:[#allocation7 + $0x1b0] sm:$0xff]  }
  0xb9   : > { %v13935_v54 = vshll.u32 %v10045_v18, 16  ;;  %v1450_v29 = vor.u32 %v1449_v12, %v1446_v56  ;;  %v10395_v23 = vsel %vm1890_vm2, %v1926_v9, %v1928_v57  ;;  %v1455_v8 = vrot.slane %v13749_v13, 3  ;;  %v1237_v9 = vld [vmem:[#allocation2 + $0xc0] sm:$0xf]  ;;  %v9545_v13 = vld [vmem:[#allocation7 + $0x1b8] sm:$0xff]  }
  0xba   : > { %v1458_v55 = vrot.slane %v13750_v49, 4  ;;  %v13941_v49 = vshrl.u32 %v10047_v19, 16 }
  0xbb   : > { %8742 = vmatpush3.bf16.msra.mxu0 %v9537_v43  ;;  %v1441_v43 = vor.u32 %v1440_v63, %v1437_v58  ;;  %v4332_v0 = vrot.slane %v13935_v54, 1  ;;  %v13938_v63 = vshrl.u32 %v10173_v52, 16  ;;  %v13939_v54 = vshll.u32 %v10173_v52, 16 }
  0xbc   : > { %8743 = vmatprep.subr.bf16.mxu0 %v9539_v22 }
  0xbd   : > { %8400 = vmatmul.mubr.bf16.gmra.mrb[32].mxu1 %v1424_v42  ;;  %v13936_v42 = vshll.u32 %v10047_v19, 16  ;;  %v1464_v56 = vrot.slane %v13938_v63, 3  ;;  %v1442_v12 = vsel %vm1254_vm0, %v1432_v59, %v1441_v43  ;;  %v1934_v63 = vrot.slane %v10160_v61, 4 }
  0xbe   : > { %8696 = vmatmul.mubr.bf16.gmra.mrb[8].mxu0 %v4317_v40  ;;  %8403 = vmatprep.mubr.bf16.mxu1 %v1433_v2  ;;  %v13937_v40 = vshrl.u32 %v10045_v18, 16  ;;  %v1932_v2 = vrot.slane %v10147_v21, 4  ;;  %v4333_v18 = vsel %vm4265_vm1, %v4328_v27, %v4332_v0 }
  0xbf   : > { %8699 = vmatprep.mubr.bf16.mxu0 %v4325_v14  ;;  %v4340_v31 = vrot.slane %v13936_v42, 1  ;;  %8744 = vmatpush3.bf16.msra.mxu0 %v9539_v22  ;;  %v10407_v22 = vsel %vm1890_vm2, %v1928_v57, %v1930_v35  ;;  %v1451_v14 = vsel %vm1254_vm0, %v1441_v43, %v1450_v29  ;;  %v1467_v42 = vrot.slane %v13939_v54, 4 }
  0xc0   : > { %v4336_v58 = vor.u32 %v4332_v0, %v13937_v40  ;;  %8745 = vmatprep.subr.bf16.mxu0 %v9541_v33  ;;  %v10416_v40 = vsel %vm1890_vm2, %v1930_v35, %v1932_v2  ;;  %v10421_v59 = vsel %vm1890_vm2, %v1932_v2, %v1934_v63  ;;  %v1936_v0 = vrot.slane %v10173_v52, 4 }
  0xc1   : > { %v1459_v43 = vor.u32 %v1458_v55, %v1455_v8  ;;  %v1471_v35 = vshrl.u32 %v1237_v9, 16  ;;  %v1474_v54 = vshll.u32 %v1237_v9, 16  ;;  %v1468_v11 = vor.u32 %v1467_v42, %v1464_v56  ;;  %v1824_v42 = vld [vmem:[#allocation2] sm:$0xf0] }
  0xc2   : > { %v4341_v57 = vsel %vm4265_vm1, %v4336_v58, %v4340_v31  ;;  %v4344_v58 = vor.u32 %v4340_v31, %v13941_v49  ;;  %v10431_v2 = vsel %vm1890_vm2, %v1934_v63, %v1936_v0  ;;  %v13943_v8 = vshll.u32 %v10072_v46, 16 }
  0xc3   : > { %8746 = vmatpush3.bf16.msra.mxu0 %v9541_v33  ;;  %v13940_v33 = vshll.u32 %v10057_v32, 16  ;;  %v1460_v9 = vsel %vm1254_vm0, %v1450_v29, %v1459_v43  ;;  %v1473_v19 = vrot.slane %v1471_v35, 3  ;;  %v1476_v31 = vrot.slane %v1474_v54, 4  ;;  %v10448_v35 = vld [vmem:[#allocation2] sm:$0xff] }
  0xc4   : > { %8747 = vmatprep.subr.bf16.mxu0 %v9543_v1  ;;  %v4356_v55 = vrot.slane %v13943_v8, 1  ;;  %v13944_v63 = vshll.u32 %v10075_v48, 16  ;;  %v13945_v29 = vshrl.u32 %v10072_v46, 16 }
  0xc5   : > { %8404 = vmatmul.mubr.bf16.gmra.mrb[36].mxu1 %v1442_v12  ;;  %v4348_v27 = vrot.slane %v13940_v33, 1  ;;  %v13942_v12 = vshrl.u32 %v10057_v32, 16  ;;  %v1477_v32 = vor.u32 %v1476_v31, %v1473_v19 }
  0xc6   : > { %8700 = vmatmul.mubr.bf16.gmra.mrb[12].mxu0 %v4333_v18  ;;  %8407 = vmatprep.mubr.bf16.mxu1 %v1451_v14  ;;  %v10437_v14 = vld [vmem:[#allocation7 + $0x1c0] sm:$0xff]   ;;  %v4360_v33 = vor.u32 %v4356_v55, %v13945_v29  ;;  %v9540_v29 = vld [vmem:[#allocation7 + $0x88] sm:$0xff]  }
  0xc7   : > { %8703 = vmatprep.mubr.bf16.mxu0 %v4341_v57  ;;  %8748 = vmatpush3.bf16.msra.mxu0 %v9543_v1  ;;  %v4352_v18 = vor.u32 %v4348_v27, %v13942_v12  ;;  %v4349_v49 = vsel %vm4265_vm1, %v4344_v58, %v4348_v27  ;;  %v1469_v1 = vsel %vm1254_vm0, %v1459_v43, %v1468_v11  ;;  %v4364_v57 = vrot.slane %v13944_v63, 1 }
  0xc8   : > { %8749 = vmatprep.subr.bf16.mxu0 %v9545_v13  ;;  %v1891_v27 = vrot.slane %v1824_v42, 4  ;;  %v13946_v43 = vshrl.u32 %v10075_v48, 16  ;;  %v13947_v58 = vshll.u32 %v10089_v3, 16  ;;  %v13949_v48 = vshrl.u32 %v10089_v3, 16 }
  0xc9   : > { %v4357_v56 = vsel %vm4265_vm1, %v4352_v18, %v4356_v55  ;;  %v1478_v18 = vsel %vm1254_vm0, %v1468_v11, %v1477_v32  ;;  %v4365_v8 = vsel %vm4265_vm1, %v4360_v33, %v4364_v57  ;;  %v13948_v55 = vshll.u32 %v10091_v6, 16 }
  0xca   : > { %v4368_v54 = vor.u32 %v4364_v57, %v13946_v43  ;;  %v4372_v12 = vrot.slane %v13947_v58, 1  ;;  %v13951_v11 = vshll.u32 %v10107_v25, 16  ;;  %v13952_v42 = vrot.slane %v9968_v20, 4 }
  0xcb   : > { %8750 = vmatpush3.bf16.msra.mxu0 %v9545_v13  ;;  %v1892_v13 = vrot.slane %v10448_v35, 4  ;;  %v4380_v19 = vrot.slane %v13948_v55, 1  ;;  %v13953_v3 = vshll.u32 %v10117_v39, 16  ;;  %v13954_v33 = vshrl.u32 %v10107_v25, 16 }
  0xcc   : > { %8799 = vmatprep.subr.bf16.mxu0 %v10437_v14  ;;  %v4373_v46 = vsel %vm4265_vm1, %v4368_v54, %v4372_v12  ;;  %v4376_v31 = vor.u32 %v4372_v12, %v13949_v48  ;;  %v13956_v54 = vshll.u32 %v10122_v47, 16  ;;  %v13957_v12 = vshrl.u32 %v10294_v4, 16 }
  0xcd   : > { %8408 = vmatmul.mubr.bf16.gmra.mrb[40].mxu1 %v1460_v9  ;;  %v1893_v9 = vsel %vm1890_vm2, %v1891_v27, %v1892_v13  ;;  %v1895_v32 = vsel %vm1890_vm2, %v1892_v13, %v13952_v42  ;;  %v9542_v27 = vld [vmem:[#allocation7 + $0x90] sm:$0xff]   ;;  %v13955_v13 = vshrl.u32 %v10117_v39, 16  ;;  %v13958_v25 = vshll.u32 %v10294_v4, 16 }
  0xce   : > { %8704 = vmatmul.mubr.bf16.gmra.mrb[16].mxu0 %v4349_v49  ;;  %8411 = vmatprep.mubr.bf16.mxu1 %v1469_v1  ;;  %v13950_v49 = vshrl.u32 %v10091_v6, 16  ;;  %v4381_v63 = vsel %vm4265_vm1, %v4376_v31, %v4380_v19  ;;  %v4396_v6 = vrot.slane %v13953_v3, 1  ;;  %v4404_v58 = vrot.slane %v13956_v54, 1 }
  0xcf   : > { %8707 = vmatprep.mubr.bf16.mxu0 %v4357_v56  ;;  %v4388_v56 = vrot.slane %v13951_v11, 1  ;;  %v13959_v39 = vshll.u32 %v10143_v16, 16  ;;  %v13961_v31 = vshrl.u32 %v10143_v16, 16  ;;  %v13962_v4 = vshll.u32 %v10147_v21, 16  ;;  %v10500_v11 = vld [vmem:[#allocation2 + $0x20] sm:$0xff] }
  0xd0   : > { %v4384_v1 = vor.u32 %v4380_v19, %v13950_v49  ;;  %v4400_v43 = vor.u32 %v4396_v6, %v13955_v13  ;;  %v13960_v19 = vshrl.u32 %v10122_v47, 16  ;;  %v13753_v42 = vrot.slane %v10500_v11, 4 }
  0xd1   : > { %v4392_v20 = vor.u32 %v4388_v56, %v13954_v33 }
  0xd2   : > { %v4389_v57 = vsel %vm4265_vm1, %v4384_v1, %v4388_v56  ;;  %v4408_v48 = vor.u32 %v4404_v58, %v13960_v19  ;;  %v4420_v1 = vrot.slane %v13962_v4, 1  ;;  %v10503_v56 = vld [vmem:[#allocation2 + $0x28] sm:$0xff]  ;;  %v10557_v4 = vld [vmem:[#allocation2 + $0x50] sm:$0xff] }
  0xd3   : > { %v5678_v16 = vrot.slane %v10503_v56, 4 }
  0xd5   : > { %8412 = vmatmul.mubr.bf16.gmra.mrb[44].mxu1 %v1478_v18  ;;  %v5144_v18 = vrot.slane %v13957_v12, 3  ;;  %v10517_v3 = vsel %vm1890_vm2, %v13753_v42, %v5678_v16  ;;  %v9552_v12 = vld [vmem:[#allocation7 + $0xb8] sm:$0xff]  }
  0xd6   : > { %8708 = vmatmul.mubr.bf16.gmra.mrb[20].mxu0 %v4365_v8  ;;  %8431 = vmatprep.mubr.bf16.mxu1 %v1893_v9  ;;  %v9544_v8 = vld [vmem:[#allocation7 + $0x98] sm:$0xff]   ;;  %v5147_v9 = vrot.slane %v13958_v25, 4 }
  0xd7   : > { %8711 = vmatprep.mubr.bf16.mxu0 %v4373_v46  ;;  %v4412_v46 = vrot.slane %v13959_v39, 1 }
  0xd8   : > { %v10492_v55 = vor.u32 %v5147_v9, %v5144_v18  ;;  %v4956_v9 = vshll.u32 %v10500_v11, 16 }
  0xd9   : > { %v4416_v49 = vor.u32 %v4412_v46, %v13961_v31 }
  0xdb   : > { %v4421_v47 = vsel %vm4265_vm1, %v4416_v49, %v4420_v1  ;;  %v4958_v49 = vrot.slane %v4956_v9, 4 }
  0xdd   : > { %8432 = vmatmul.mubr.bf16.vlgmr.msra.gmra.mrb[0].mxu1 %v1895_v32  ;;  %v9548_v32 = vld [vmem:[#allocation7 + $0xa8] sm:$0xff]  }
  0xde   : > { %8712 = vmatmul.mubr.bf16.gmra.mrb[24].mxu0 %v4381_v63  ;;  %8480 = vmatpush3.bf16.msra.mxu1 %v10167_v5  ;;  %v4397_v5 = vsel %vm4265_vm1, %v4392_v20, %v4396_v6  ;;  %v13963_v63 = vshll.u32 %v10160_v61, 16  ;;  %v13964_v6 = vshrl.u32 %v10147_v21, 16  ;;  %v13965_v20 = vshrl.u32 %v10160_v61, 16  ;;  %v10534_v61 = vld [vmem:[#allocation2 + $0x40] sm:$0xff] }
  0xdf   : > { %8435 = vmatprep.mubr.bf16.mxu1 %v10218_v34  ;;  %8715 = vmatprep.mubr.bf16.mxu0 %v4389_v57  ;;  %v4405_v34 = vsel %vm4265_vm1, %v4400_v43, %v4404_v58  ;;  %v10527_v43 = vld [vmem:[#allocation2 + $0x38] sm:$0xff] }
  0xe0   : > { %8481 = vmatprep.subr.bf16.mxu1 %v9540_v29  ;;  %v4428_v57 = vrot.slane %v13963_v63, 1  ;;  %v4424_v33 = vor.u32 %v4420_v1, %v13964_v6  ;;  %v5682_v58 = vrot.slane %v10527_v43, 4 }
  0xe2   : > { %8482 = vmatpush3.bf16.msra.mxu1 %v9540_v29  ;;  %v10512_v29 = vld [vmem:[#allocation2 + $0x30] sm:$0xff]  ;;  %v4429_v54 = vsel %vm4265_vm1, %v4424_v33, %v4428_v57 }
  0xe3   : > { %8483 = vmatprep.subr.bf16.mxu1 %v9542_v27  ;;  %v4974_v63 = vshll.u32 %v10512_v29, 16 }
  0xe5   : > { %8436 = vmatmul.mubr.bf16.gmra.mrb[4].mxu1 %v10229_v44  ;;  %v9546_v44 = vld [vmem:[#allocation7 + $0xa0] sm:$0xff]   ;;  %v4976_v33 = vrot.slane %v4974_v63, 4 }
  0xe6   : > { %8716 = vmatmul.mubr.bf16.gmra.mrb[28].mxu0 %v4397_v5  ;;  %8439 = vmatprep.mubr.bf16.mxu1 %v10236_v51  ;;  %v4413_v51 = vsel %vm4265_vm1, %v4408_v48, %v4412_v46  ;;  %v4903_v5 = vld [vmem:[#allocation2 + $0x18] sm:$0xf8]  ;;  %v10548_v46 = vld [vmem:[#allocation2 + $0x48] sm:$0xff] }
  0xe7   : > { %8719 = vmatprep.mubr.bf16.mxu0 %v4405_v34  ;;  %8484 = vmatpush3.bf16.msra.mxu1 %v9542_v27  ;;  %v9550_v27 = vld [vmem:[#allocation7 + $0xb0] sm:$0xff]   ;;  %v5684_v34 = vrot.slane %v10534_v61, 4  ;;  %v4948_v25 = vshll.u32 %v4903_v5, 16  ;;  %v5686_v48 = vrot.slane %v10548_v46, 4 }
  0xe8   : > { %8485 = vmatprep.subr.bf16.mxu1 %v9544_v8 }
  0xe9   : > { %v10546_v39 = vsel %vm1890_vm2, %v5682_v58, %v5684_v34  ;;  %v10560_v1 = vsel %vm1890_vm2, %v5684_v34, %v5686_v48 }
  0xeb   : > { %8486 = vmatpush3.bf16.msra.mxu1 %v9544_v8  ;;  %v4945_v8 = vshrl.u32 %v4903_v5, 16  ;;  %v9549_v5 = vld [vmem:[#allocation7 + $0x1c8] sm:$0xff]  }
  0xec   : > { %8487 = vmatprep.subr.bf16.mxu1 %v9546_v44 }
  0xed   : > { %8440 = vmatmul.mubr.bf16.gmra.mrb[8].mxu1 %v10251_v62  ;;  %v5680_v62 = vrot.slane %v10512_v29, 4  ;;  %v4947_v19 = vrot.slane %v4945_v8, 3 }
  0xee   : > { %8720 = vmatmul.mubr.bf16.gmra.mrb[32].mxu0 %v4413_v51  ;;  %8443 = vmatprep.mubr.bf16.mxu1 %v10256_v7  ;;  %v4432_v7 = vor.u32 %v4428_v57, %v13965_v20  ;;  %v4980_v20 = vshrl.u32 %v10527_v43, 16 }
  0xef   : > { %8723 = vmatprep.mubr.bf16.mxu0 %v4421_v47  ;;  %8488 = vmatpush3.bf16.msra.mxu1 %v9546_v44  ;;  %v10525_v13 = vsel %vm1890_vm2, %v5678_v16, %v5680_v62  ;;  %v10537_v18 = vsel %vm1890_vm2, %v5680_v62, %v5682_v58  ;;  %v13752_v44 = vrot.slane %v10557_v4, 4  ;;  %v4962_v47 = vshrl.u32 %v10503_v56, 16 }
  0xf0   : > { %8489 = vmatprep.subr.bf16.mxu1 %v9548_v32  ;;  %v4437_v21 = vsel %vm4265_vm1, %v4432_v7, %v10274_v41  ;;  %v4953_v41 = vshrl.u32 %v10500_v11, 16  ;;  %v4983_v7 = vshll.u32 %v10527_v43, 16  ;;  %v4992_v58 = vshll.u32 %v10534_v61, 16  ;;  %v10786_v43 = vld [vmem:[#allocation2 + $0xc0] sm:$0xff] }
  0xf2   : > { %v4955_v31 = vrot.slane %v4953_v41, 3  ;;  %v4994_v34 = vrot.slane %v4992_v58, 4 }
  0xf3   : > { %8490 = vmatpush3.bf16.msra.mxu1 %v9548_v32  ;;  %v4965_v32 = vshll.u32 %v10503_v56, 16 }
  0xf4   : > { %8491 = vmatprep.subr.bf16.mxu1 %v9550_v27  ;;  %v4959_v16 = vor.u32 %v4958_v49, %v4955_v31  ;;  %v13768_v31 = vshll.u32 %v10557_v4, 16  ;;  %v9551_v49 = vld [vmem:[#allocation7 + $0x1d0] sm:$0xff]  }
  0xf5   : > { %8444 = vmatmul.mubr.bf16.gmra.mrb[12].mxu1 %v10269_v53  ;;  %v10543_v53 = vld [vmem:[#allocation7 + $0xc0] sm:$0xff]  }
  0xf6   : > { %8724 = vmatmul.mubr.bf16.gmra.mrb[36].mxu0 %v4429_v54  ;;  %8447 = vmatprep.mubr.bf16.mxu1 %v10282_v28  ;;  %v4950_v28 = vrot.slane %v4948_v25, 4  ;;  %v4989_v54 = vshrl.u32 %v10534_v61, 16  ;;  %v13771_v25 = vshrl.u32 %v10548_v46, 16  ;;  %v9564_v61 = vld [vmem:[#allocation7 + $0xe8] sm:$0xff]  }
  0xf7   : > { %8727 = vmatprep.mubr.bf16.mxu0 %v4437_v21  ;;  %8492 = vmatpush3.bf16.msra.mxu1 %v9550_v27 }
  0xf8   : > { %8493 = vmatprep.subr.bf16.mxu1 %v9552_v12  ;;  %v4951_v51 = vor.u32 %v4950_v28, %v4947_v19  ;;  %v13770_v19 = vshll.u32 %v10548_v46, 16 }
  0xfa   : > { %v4960_v57 = vsel %vm1254_vm0, %v4951_v51, %v4959_v16 }
  0xfb   : > { %8494 = vmatpush3.bf16.msra.mxu1 %v9552_v12  ;;  %v4991_v12 = vrot.slane %v4989_v54, 3 }
  0xfc   : > { %8543 = vmatprep.subr.bf16.mxu1 %v10543_v53 }
  0xfd   : > { %8448 = vmatmul.mubr.bf16.gmra.mrb[16].mxu1 %v10292_v24  ;;  %v4971_v24 = vshrl.u32 %v10512_v29, 16  ;;  %v4995_v28 = vor.u32 %v4994_v34, %v4991_v12  ;;  %v10633_v12 = vld [vmem:[#allocation2 + $0x68] sm:$0xff] }
  0xfe   : > { %8728 = vmatmul.mubr.bf16.gmra.mrb[40].mxu0 %v10309_v30  ;;  %8451 = vmatprep.mubr.bf16.mxu1 %v10297_v37  ;;  %v10573_v30 = vsel %vm1890_vm2, %v5686_v48, %v13752_v44  ;;  %v4964_v37 = vrot.slane %v4962_v47, 3  ;;  %v13769_v48 = vshrl.u32 %v10557_v4, 16  ;;  %v10653_v44 = vld [vmem:[#allocation2 + $0x78] sm:$0xff] }
  0xff   : > { %8731 = vmatprep.mubr.bf16.mxu0 %v10332_v45  ;;  %v4967_v45 = vrot.slane %v4965_v32, 4  ;;  %v4973_v6 = vrot.slane %v4971_v24, 3 }
 0x101   : > { %v4968_v62 = vor.u32 %v4967_v45, %v4964_v37  ;;  %v4977_v27 = vor.u32 %v4976_v33, %v4973_v6  ;;  %v5012_v37 = vrot.slane %v13768_v31, 4  ;;  %v10618_v45 = vld [vmem:[#allocation2 + $0x58] sm:$0xff]  ;;  %v10621_v6 = vld [vmem:[#allocation2 + $0x60] sm:$0xff] }
 0x103   : > { %v4969_v21 = vsel %vm1254_vm0, %v4959_v16, %v4968_v62  ;;  %v5009_v16 = vrot.slane %v13769_v48, 3 }
 0x105   : > { %8452 = vmatmul.mubr.bf16.gmra.mrb[20].mxu1 %v10312_v60  ;;  %v4982_v60 = vrot.slane %v4980_v20, 3 }
 0x106   : > { %8732 = vmatmul.mubr.bf16.gmra.mrb[44].mxu0 %v10344_v50  ;;  %8455 = vmatprep.mubr.bf16.mxu1 %v10318_v38  ;;  %v4985_v50 = vrot.slane %v4983_v7, 4  ;;  %v4978_v38 = vsel %vm1254_vm0, %v4968_v62, %v4977_v27  ;;  %v13767_v62 = vshrl.u32 %v10618_v45, 16 }
 0x107   : > { %8751 = vmatprep.mubr.bf16.mxu0 %v4960_v57  ;;  %v9553_v57 = vld [vmem:[#allocation7 + $0x1d8] sm:$0xff]  }
 0x108   : > { %v4986_v8 = vor.u32 %v4985_v50, %v4982_v60  ;;  %v13759_v60 = vshrl.u32 %v10621_v6, 16  ;;  %v13758_v50 = vshll.u32 %v10621_v6, 16 }
 0x10a   : > { %v4996_v51 = vsel %vm1254_vm0, %v4986_v8, %v4995_v28 }
 0x10d   : > { %8456 = vmatmul.mubr.bf16.gmra.mrb[24].mxu1 %v10338_v26  ;;  %v4987_v26 = vsel %vm1254_vm0, %v4977_v27, %v4986_v8  ;;  %v13760_v27 = vshll.u32 %v10618_v45, 16  ;;  %v5027_v8 = vrot.slane %v13759_v60, 3 }
 0x10e   : > { %8752 = vmatmul.mubr.bf16.vlgmr.msra.gmra.mrb[0].mxu0 %v4969_v21  ;;  %8459 = vmatprep.mubr.bf16.mxu1 %v10354_v36  ;;  %v5000_v36 = vrot.slane %v13771_v25, 3  ;;  %v5013_v21 = vor.u32 %v5012_v37, %v5009_v16 }
 0x10f   : > { %8800 = vmatpush3.bf16.msra.mxu0 %v10437_v14  ;;  %8755 = vmatprep.mubr.bf16.mxu0 %v4978_v38  ;;  %v5003_v14 = vrot.slane %v13770_v19, 4  ;;  %v9555_v38 = vld [vmem:[#allocation7 + $0x1e0] sm:$0xff]  }
 0x110   : > { %8801 = vmatprep.subr.bf16.mxu0 %v9549_v5 }
 0x111   : > { %v5004_v33 = vor.u32 %v5003_v14, %v5000_v36  ;;  %v13757_v36 = vshrl.u32 %v10633_v12, 16  ;;  %v13756_v14 = vshll.u32 %v10633_v12, 16 }
 0x113   : > { %8802 = vmatpush3.bf16.msra.mxu0 %v9549_v5  ;;  %v5018_v5 = vrot.slane %v13767_v62, 3  ;;  %v5014_v34 = vsel %vm1254_vm0, %v5004_v33, %v5013_v21 }
 0x114   : > { %8803 = vmatprep.subr.bf16.mxu0 %v9551_v49 }
 0x115   : > { %8460 = vmatmul.mubr.bf16.gmra.mrb[28].mxu1 %v10364_v15  ;;  %v5005_v15 = vsel %vm1254_vm0, %v4995_v28, %v5004_v33  ;;  %v10641_v28 = vld [vmem:[#allocation2 + $0x70] sm:$0xff] }
 0x116   : > { %8756 = vmatmul.mubr.bf16.gmra.mrb[4].mxu0 %v4987_v26  ;;  %8463 = vmatprep.mubr.bf16.mxu1 %v10378_v17  ;;  %v5021_v17 = vrot.slane %v13760_v27, 4  ;;  %v9557_v26 = vld [vmem:[#allocation7 + $0x1e8] sm:$0xff]   ;;  %v13754_v37 = vshrl.u32 %v10641_v28, 16  ;;  %v9559_v33 = vld [vmem:[#allocation7 + $0x1f0] sm:$0xff]  }
 0x117   : > { %8759 = vmatprep.mubr.bf16.mxu0 %v4996_v51  ;;  %8804 = vmatpush3.bf16.msra.mxu0 %v9551_v49  ;;  %v5030_v49 = vrot.slane %v13758_v50, 4  ;;  %v10683_v27 = vld [vmem:[#allocation2 + $0x88] sm:$0xff] }
 0x118   : > { %8805 = vmatprep.subr.bf16.mxu0 %v9553_v57  ;;  %v5022_v51 = vor.u32 %v5021_v17, %v5018_v5  ;;  %v5045_v5 = vrot.slane %v13754_v37, 3 }
 0x119   : > { %v5031_v16 = vor.u32 %v5030_v49, %v5027_v8  ;;  %v9561_v8 = vld [vmem:[#allocation7 + $0x1f8] sm:$0xff]   ;;  %v10661_v49 = vld [vmem:[#allocation2 + $0x80] sm:$0xff] }
 0x11b   : > { %8806 = vmatpush3.bf16.msra.mxu0 %v9553_v57  ;;  %v13755_v57 = vshll.u32 %v10641_v28, 16 }
 0x11c   : > { %8807 = vmatprep.subr.bf16.mxu0 %v9555_v38 }
 0x11d   : > { %8464 = vmatmul.mubr.bf16.gmra.mrb[32].mxu1 %v10385_v10  ;;  %v5036_v10 = vrot.slane %v13757_v36, 3  ;;  %v5048_v17 = vrot.slane %v13755_v57, 4  ;;  %v13766_v57 = vshrl.u32 %v10448_v35, 16 }
 0x11e   : > { %8760 = vmatmul.mubr.bf16.gmra.mrb[8].mxu0 %v5005_v15  ;;  %8467 = vmatprep.mubr.bf16.mxu1 %v10395_v23  ;;  %v5039_v23 = vrot.slane %v13756_v14, 4  ;;  %v5023_v15 = vsel %vm1254_vm0, %v5013_v21, %v5022_v51  ;;  %v13763_v14 = vshll.u32 %v10448_v35, 16 }
 0x11f   : > { %8763 = vmatprep.mubr.bf16.mxu0 %v5014_v34  ;;  %8808 = vmatpush3.bf16.msra.mxu0 %v9555_v38  ;;  %v5032_v38 = vsel %vm1254_vm0, %v5022_v51, %v5031_v16  ;;  %v2381_v34 = vld [vmem:[#allocation2] sm:$0xf0]  ;;  %v13762_v51 = vshll.u32 %v10653_v44, 16  ;;  %v5049_v36 = vor.u32 %v5048_v17, %v5045_v5  ;;  %v10681_v17 = vld [vmem:[#allocation2 + $0x10] sm:$0xff] }
 0x120   : > { %8809 = vmatprep.subr.bf16.mxu0 %v9557_v26  ;;  %v5040_v21 = vor.u32 %v5039_v23, %v5036_v10  ;;  %v2424_v42 = vshrl.u32 %v2381_v34, 16  ;;  %v2427_v37 = vshll.u32 %v2381_v34, 16  ;;  %v1848_v23 = vld [vmem:[#allocation2 + $0xc0] sm:$0xf]  ;;  %v2437_v5 = vrot.slane %v13763_v14, 5  ;;  %v10694_v14 = vld [vmem:[#allocation2 + $0x90] sm:$0xff] }
 0x121   : > { %v5057_v34 = vrot.slane %v13762_v51, 4  ;;  %v1938_v51 = vrot.slane %v1848_v23, 4 }
 0x122   : > { %v5041_v10 = vsel %vm1254_vm0, %v5031_v16, %v5040_v21  ;;  %v2426_v50 = vrot.slane %v2424_v42, 4  ;;  %v2429_v60 = vrot.slane %v2427_v37, 5  ;;  %v5050_v16 = vsel %vm1254_vm0, %v5040_v21, %v5049_v36  ;;  %v10690_v37 = vld [vmem:[#allocation2 + $0x18] sm:$0xff] }
 0x123   : > { %8810 = vmatpush3.bf16.msra.mxu0 %v9557_v26  ;;  %v13761_v26 = vshrl.u32 %v10653_v44, 16  ;;  %v13774_v21 = vshll.u32 %v10681_v17, 16  ;;  %v13772_v48 = vshll.u32 %v10690_v37, 16  ;;  %v1939_v19 = vsel %vm1890_vm2, %v1936_v0, %v1938_v51 }
 0x124   : > { %8811 = vmatprep.subr.bf16.mxu0 %v9559_v33  ;;  %v2430_v62 = vor.u32 %v2429_v60, %v2426_v50 }
 0x125   : > { %8468 = vmatmul.mubr.bf16.gmra.mrb[36].mxu1 %v10407_v22  ;;  %v13764_v22 = vshrl.u32 %v10661_v49, 16  ;;  %v2446_v60 = vrot.slane %v13774_v21, 5  ;;  %v2455_v51 = vrot.slane %v13772_v48, 5 }
 0x126   : > { %8764 = vmatmul.mubr.bf16.gmra.mrb[12].mxu0 %v5023_v15  ;;  %8471 = vmatprep.mubr.bf16.mxu1 %v10416_v40  ;;  %v13765_v15 = vshll.u32 %v10661_v49, 16  ;;  %v10670_v40 = vld [vmem:[#allocation7 + $0x200] sm:$0xff]  }
 0x127   : > { %8767 = vmatprep.mubr.bf16.mxu0 %v5032_v38  ;;  %8812 = vmatpush3.bf16.msra.mxu0 %v9559_v33  ;;  %v5054_v38 = vrot.slane %v13761_v26, 3  ;;  %v2434_v33 = vrot.slane %v13766_v57, 4  ;;  %v5063_v26 = vrot.slane %v13764_v22, 3  ;;  %v5070_v22 = vshrl.u32 %v10683_v27, 16 }
 0x128   : > { %8813 = vmatprep.subr.bf16.mxu0 %v9561_v8  ;;  %v5066_v42 = vrot.slane %v13765_v15, 4  ;;  %v5073_v15 = vshll.u32 %v10683_v27, 16 }
 0x129   : > { %v5058_v57 = vor.u32 %v5057_v34, %v5054_v38  ;;  %v2438_v31 = vor.u32 %v2437_v5, %v2434_v33  ;;  %v5072_v50 = vrot.slane %v5070_v22, 3 }
 0x12a   : > { %v5067_v23 = vor.u32 %v5066_v42, %v5063_v26  ;;  %v5075_v26 = vrot.slane %v5073_v15, 4 }
 0x12b   : > { %8814 = vmatpush3.bf16.msra.mxu0 %v9561_v8  ;;  %v13775_v8 = vshrl.u32 %v10681_v17, 16  ;;  %v5059_v38 = vsel %vm1254_vm0, %v5049_v36, %v5058_v57  ;;  %v2439_v34 = vsel %vm2422_vm3, %v2430_v62, %v2438_v31  ;;  %v10729_v36 = vld [vmem:[#allocation2 + $0xa0] sm:$0xff] }
 0x12c   : > { %8863 = vmatprep.subr.bf16.mxu0 %v10670_v40  ;;  %v5068_v0 = vsel %vm1254_vm0, %v5058_v57, %v5067_v23  ;;  %v5076_v42 = vor.u32 %v5075_v26, %v5072_v50 }
 0x12d   : > { %8472 = vmatmul.mubr.bf16.gmra.mrb[40].mxu1 %v10421_v59  ;;  %v13773_v59 = vshrl.u32 %v10690_v37, 16  ;;  %v2443_v25 = vrot.slane %v13775_v8, 4  ;;  %v13777_v8 = vshrl.u32 %v10729_v36, 16 }
 0x12e   : > { %8768 = vmatmul.mubr.bf16.gmra.mrb[16].mxu0 %v5041_v10  ;;  %8475 = vmatprep.mubr.bf16.mxu1 %v10431_v2  ;;  %v5079_v10 = vshrl.u32 %v10694_v14, 16  ;;  %v13776_v2 = vshll.u32 %v10694_v14, 16 }
 0x12f   : > { %8771 = vmatprep.mubr.bf16.mxu0 %v5050_v16  ;;  %v2452_v52 = vrot.slane %v13773_v59, 4  ;;  %v10727_v16 = vld [vmem:[#allocation2 + $0x98] sm:$0xff]  ;;  %v2447_v62 = vor.u32 %v2446_v60, %v2443_v25  ;;  %v5077_v60 = vsel %vm1254_vm0, %v5067_v23, %v5076_v42  ;;  %v5099_v23 = vrot.slane %v13777_v8, 3 }
 0x130   : > { %v5081_v33 = vrot.slane %v5079_v10, 3  ;;  %v5084_v5 = vrot.slane %v13776_v2, 4  ;;  %v5088_v57 = vshrl.u32 %v10727_v16, 16  ;;  %v5091_v48 = vshll.u32 %v10727_v16, 16 }
 0x131   : > { %v2456_v59 = vor.u32 %v2455_v51, %v2452_v52  ;;  %v13778_v2 = vshll.u32 %v10729_v36, 16  ;;  %v2448_v25 = vsel %vm2422_vm3, %v2438_v31, %v2447_v62  ;;  %v2473_v52 = vrot.slane %v4965_v32, 5 }
 0x132   : > { %v5085_v21 = vor.u32 %v5084_v5, %v5081_v33  ;;  %v5090_v50 = vrot.slane %v5088_v57, 3  ;;  %v5093_v26 = vrot.slane %v5091_v48, 4  ;;  %v10757_v5 = vld [vmem:[#allocation2 + $0xb0] sm:$0xff] }
 0x133   : > { %v5102_v51 = vrot.slane %v13778_v2, 4  ;;  %v5115_v2 = vshrl.u32 %v10757_v5, 16 }
 0x134   : > { %v5086_v31 = vsel %vm1254_vm0, %v5076_v42, %v5085_v21  ;;  %v5094_v32 = vor.u32 %v5093_v26, %v5090_v50  ;;  %v9558_v42 = vld [vmem:[#allocation7 + $0xd0] sm:$0xff]   ;;  %v2488_v26 = vrot.slane %v4980_v20, 4 }
 0x135   : > { %8476 = vmatmul.mubr.bf16.gmra.mrb[44].mxu1 %v1939_v19  ;;  %v2461_v19 = vrot.slane %v4953_v41, 4  ;;  %v10749_v41 = vld [vmem:[#allocation2 + $0xa8] sm:$0xff]  ;;  %v5103_v8 = vor.u32 %v5102_v51, %v5099_v23 }
 0x136   : > { %8772 = vmatmul.mubr.bf16.gmra.mrb[20].mxu0 %v5059_v38  ;;  %8495 = vmatprep.mubr.bf16.mxu1 %v2439_v34  ;;  %v2464_v38 = vrot.slane %v4956_v9, 5  ;;  %v2470_v34 = vrot.slane %v4962_v47, 4  ;;  %v2457_v9 = vsel %vm2422_vm3, %v2447_v62, %v2456_v59  ;;  %v5106_v56 = vshrl.u32 %v10749_v41, 16 }
 0x137   : > { %8775 = vmatprep.mubr.bf16.mxu0 %v5068_v0  ;;  %v9556_v0 = vld [vmem:[#allocation7 + $0xc8] sm:$0xff]   ;;  %v5109_v47 = vshll.u32 %v10749_v41, 16  ;;  %v5104_v29 = vsel %vm1254_vm0, %v5094_v32, %v5103_v8 }
 0x138   : > { %v2465_v33 = vor.u32 %v2464_v38, %v2461_v19  ;;  %v2474_v62 = vor.u32 %v2473_v52, %v2470_v34  ;;  %v5118_v19 = vshll.u32 %v10757_v5, 16  ;;  %v2491_v34 = vrot.slane %v4983_v7, 5 }
 0x139   : > { %v5111_v50 = vrot.slane %v5109_v47, 4 }
 0x13a   : > { %v2466_v38 = vsel %vm2422_vm3, %v2456_v59, %v2465_v33  ;;  %v5095_v59 = vsel %vm1254_vm0, %v5085_v21, %v5094_v32  ;;  %v5120_v52 = vrot.slane %v5118_v19, 4  ;;  %v2492_v21 = vor.u32 %v2491_v34, %v2488_v26 }
 0x13b   : > { %v5136_v32 = vshll.u32 %v10786_v43, 16  ;;  %v2500_v26 = vrot.slane %v4992_v58, 5 }
 0x13d   : > { %8496 = vmatmul.mubr.bf16.vlgmr.msra.gmra.mrb[0].mxu1 %v2448_v25  ;;  %v2482_v25 = vrot.slane %v4974_v63, 5  ;;  %v5117_v63 = vrot.slane %v5115_v2, 3 }
 0x13e   : > { %8776 = vmatmul.mubr.bf16.gmra.mrb[24].mxu0 %v5077_v60  ;;  %8544 = vmatpush3.bf16.msra.mxu1 %v10543_v53  ;;  %v2479_v53 = vrot.slane %v4971_v24, 4  ;;  %v5108_v60 = vrot.slane %v5106_v56, 3  ;;  %v2475_v24 = vsel %vm2422_vm3, %v2465_v33, %v2474_v62  ;;  %v5133_v33 = vshrl.u32 %v10786_v43, 16 }
 0x13f   : > { %8499 = vmatprep.mubr.bf16.mxu1 %v2457_v9  ;;  %8779 = vmatprep.mubr.bf16.mxu0 %v5086_v31  ;;  %v10784_v9 = vld [vmem:[#allocation2 + $0xb8] sm:$0xff]  ;;  %v5121_v51 = vor.u32 %v5120_v52, %v5117_v63 }
 0x140   : > { %8545 = vmatprep.subr.bf16.mxu1 %v9556_v0  ;;  %v9560_v31 = vld [vmem:[#allocation7 + $0xd8] sm:$0xff]   ;;  %v2483_v20 = vor.u32 %v2482_v25, %v2479_v53  ;;  %v5112_v7 = vor.u32 %v5111_v50, %v5108_v60  ;;  %v13779_v23 = vshll.u32 %v10784_v9, 16  ;;  %v2497_v50 = vrot.slane %v4989_v54, 4 }
 0x141   : > { %v5135_v63 = vrot.slane %v5133_v33, 3  ;;  %v5138_v54 = vrot.slane %v5136_v32, 4 }
 0x142   : > { %8546 = vmatpush3.bf16.msra.mxu1 %v9556_v0  ;;  %v5124_v0 = vshrl.u32 %v10784_v9, 16  ;;  %v2484_v53 = vsel %vm2422_vm3, %v2474_v62, %v2483_v20  ;;  %v5113_v25 = vsel %vm1254_vm0, %v5103_v8, %v5112_v7  ;;  %v2493_v60 = vsel %vm2422_vm3, %v2483_v20, %v2492_v21 }
 0x143   : > { %8547 = vmatprep.subr.bf16.mxu1 %v9558_v42  ;;  %v5129_v34 = vrot.slane %v13779_v23, 4  ;;  %v13967_v62 = vshll.u32 %v10548_v46, 16  ;;  %v2501_v58 = vor.u32 %v2500_v26, %v2497_v50  ;;  %v5139_v23 = vor.u32 %v5138_v54, %v5135_v63 }
 0x145   : > { %8500 = vmatmul.mubr.bf16.gmra.mrb[4].mxu1 %v2466_v38  ;;  %v9562_v38 = vld [vmem:[#allocation7 + $0xe0] sm:$0xff]   ;;  %v2509_v8 = vrot.slane %v13967_v62, 5  ;;  %v2502_v32 = vsel %vm2422_vm3, %v2492_v21, %v2501_v58  ;;  %v13973_v62 = vshll.u32 %v10448_v35, 16  ;;  %v4927_v21 = vld [vmem:[#allocation2 + $0xd8] sm:$0xf] }
 0x146   : > { %8780 = vmatmul.mubr.bf16.gmra.mrb[28].mxu0 %v5095_v59  ;;  %8503 = vmatprep.mubr.bf16.mxu1 %v2475_v24  ;;  %v13966_v59 = vshrl.u32 %v10548_v46, 16  ;;  %v13968_v46 = vshrl.u32 %v10557_v4, 16 }
 0x147   : > { %8783 = vmatprep.mubr.bf16.mxu0 %v5104_v29  ;;  %8548 = vmatpush3.bf16.msra.mxu1 %v9558_v42  ;;  %v5126_v42 = vrot.slane %v5124_v0, 3  ;;  %v5122_v29 = vsel %vm1254_vm0, %v5112_v7, %v5121_v51  ;;  %v13969_v7 = vshll.u32 %v10557_v4, 16 }
 0x148   : > { %8549 = vmatprep.subr.bf16.mxu1 %v9560_v31  ;;  %v2506_v24 = vrot.slane %v13966_v59, 4  ;;  %v9566_v59 = vld [vmem:[#allocation7 + $0xf0] sm:$0xff]  }
 0x149   : > { %v5130_v52 = vor.u32 %v5129_v34, %v5126_v42  ;;  %v2518_v33 = vrot.slane %v13969_v7, 5  ;;  %v13972_v34 = vshrl.u32 %v10448_v35, 16  ;;  %v5149_v35 = vsel %vm1254_vm0, %v5139_v23, %v10492_v55 }
 0x14a   : > { %v2510_v20 = vor.u32 %v2509_v8, %v2506_v24  ;;  %v5156_v8 = vrot.slane %v13973_v62, 4  ;;  %v13974_v7 = vshrl.u32 %v10621_v6, 16 }
 0x14b   : > { %8550 = vmatpush3.bf16.msra.mxu1 %v9560_v31  ;;  %v2515_v31 = vrot.slane %v13968_v46, 4  ;;  %v5131_v26 = vsel %vm1254_vm0, %v5121_v51, %v5130_v52  ;;  %v5140_v42 = vsel %vm1254_vm0, %v5130_v52, %v5139_v23  ;;  %v5153_v24 = vrot.slane %v13972_v34, 3 }
 0x14c   : > { %8551 = vmatprep.subr.bf16.mxu1 %v9562_v38  ;;  %v5160_v51 = vshrl.u32 %v4927_v21, 16 }
 0x14d   : > { %8504 = vmatmul.mubr.bf16.gmra.mrb[8].mxu1 %v2484_v53  ;;  %v13970_v53 = vshrl.u32 %v10618_v45, 16  ;;  %v2519_v63 = vor.u32 %v2518_v33, %v2515_v31  ;;  %v13975_v31 = vshll.u32 %v10621_v6, 16 }
 0x14e   : > { %8784 = vmatmul.mubr.bf16.gmra.mrb[32].mxu0 %v5113_v25  ;;  %8507 = vmatprep.mubr.bf16.mxu1 %v2493_v60  ;;  %v13971_v60 = vshll.u32 %v10618_v45, 16 }
 0x14f   : > { %8787 = vmatprep.mubr.bf16.mxu0 %v5122_v29  ;;  %8552 = vmatpush3.bf16.msra.mxu1 %v9562_v38  ;;  %v2524_v25 = vrot.slane %v13970_v53, 4  ;;  %v2511_v38 = vsel %vm2422_vm3, %v2501_v58, %v2510_v20  ;;  %v9568_v29 = vld [vmem:[#allocation7 + $0xf8] sm:$0xff]   ;;  %v5163_v58 = vshll.u32 %v4927_v21, 16  ;;  %v2520_v52 = vsel %vm2422_vm3, %v2510_v20, %v2519_v63  ;;  %v10838_v20 = vld [vmem:[#allocation7 + $0x100] sm:$0xff]  }
 0x150   : > { %8553 = vmatprep.subr.bf16.mxu1 %v9564_v61  ;;  %v2527_v50 = vrot.slane %v13971_v60, 5  ;;  %v2536_v33 = vrot.slane %v13975_v31, 5  ;;  %v5162_v53 = vrot.slane %v5160_v51, 3  ;;  %v13976_v60 = vshrl.u32 %v10633_v12, 16 }
 0x151   : > { %v13978_v21 = vshrl.u32 %v10641_v28, 16 }
 0x152   : > { %v2528_v54 = vor.u32 %v2527_v50, %v2524_v25  ;;  %v5165_v25 = vrot.slane %v5163_v58, 4  ;;  %v13977_v50 = vshll.u32 %v10633_v12, 16 }
 0x153   : > { %8554 = vmatpush3.bf16.msra.mxu1 %v9564_v61  ;;  %v5157_v61 = vor.u32 %v5156_v8, %v5153_v24 }
 0x154   : > { %8555 = vmatprep.subr.bf16.mxu1 %v9566_v59  ;;  %v2529_v46 = vsel %vm2422_vm3, %v2519_v63, %v2528_v54  ;;  %v5166_v34 = vor.u32 %v5165_v25, %v5162_v53  ;;  %v13983_v53 = vshrl.u32 %v10661_v49, 16 }
 0x155   : > { %8508 = vmatmul.mubr.bf16.gmra.mrb[12].mxu1 %v2502_v32  ;;  %v2533_v32 = vrot.slane %v13974_v7, 4  ;;  %v5158_v23 = vsel %vm1254_vm0, %v10492_v55, %v5157_v61  ;;  %v13979_v55 = vshll.u32 %v10641_v28, 16 }
 0x156   : > { %8788 = vmatmul.mubr.bf16.gmra.mrb[36].mxu0 %v5131_v26  ;;  %8511 = vmatprep.mubr.bf16.mxu1 %v2511_v38  ;;  %v2545_v26 = vrot.slane %v13977_v50, 5  ;;  %v5609_v38 = vld [vmem:[#allocation2 + $0x18] sm:$0xf0]  ;;  %v5167_v51 = vsel %vm1254_vm0, %v5157_v61, %v5166_v34  ;;  %v2569_v25 = vrot.slane %v13983_v53, 4  ;;  %v9567_v34 = vld [vmem:[#allocation7 + $0x210] sm:$0xff]  }
 0x157   : > { %8791 = vmatprep.mubr.bf16.mxu0 %v5140_v42  ;;  %8556 = vmatpush3.bf16.msra.mxu1 %v9566_v59  ;;  %v2542_v59 = vrot.slane %v13976_v60, 4  ;;  %v2537_v42 = vor.u32 %v2536_v33, %v2533_v32  ;;  %v5675_v62 = vrot.slane %v5609_v38, 4  ;;  %v2554_v63 = vrot.slane %v13979_v55, 5  ;;  %v2405_v53 = vld [vmem:[#allocation2 + $0xc0] sm:$0x1f] }
 0x158   : > { %8557 = vmatprep.subr.bf16.mxu1 %v9568_v29  ;;  %v13982_v32 = vrot.slane %v10500_v11, 4  ;;  %v13984_v60 = vshll.u32 %v10661_v49, 16  ;;  %v2578_v11 = vrot.slane %v5070_v22, 4  ;;  %v2587_v22 = vrot.slane %v5079_v10, 4 }
 0x159   : > { %v2546_v24 = vor.u32 %v2545_v26, %v2542_v59  ;;  %v2538_v8 = vsel %vm2422_vm3, %v2528_v54, %v2537_v42  ;;  %v2581_v26 = vrot.slane %v5073_v15, 5  ;;  %v13985_v15 = vshll.u32 %v10694_v14, 16 }
 0x15a   : > { %v5677_v54 = vsel %vm1890_vm2, %v5675_v62, %v13982_v32  ;;  %v2572_v59 = vrot.slane %v13984_v60, 5  ;;  %v5692_v32 = vrot.slane %v10621_v6, 4  ;;  %v13989_v6 = vshll.u32 %v10784_v9, 16 }
 0x15b   : > { %8558 = vmatpush3.bf16.msra.mxu1 %v9568_v29  ;;  %v2551_v29 = vrot.slane %v13978_v21, 4  ;;  %v2547_v58 = vsel %vm2422_vm3, %v2537_v42, %v2546_v24  ;;  %v2582_v42 = vor.u32 %v2581_v26, %v2578_v11  ;;  %v2590_v62 = vrot.slane %v13985_v15, 5  ;;  %v3088_v11 = vld [vmem:[#allocation2 + $0x8] sm:$0x80] }
 0x15c   : > { %8927 = vmatprep.subr.bf16.mxu1 %v10838_v20  ;;  %v2573_v38 = vor.u32 %v2572_v59, %v2569_v25  ;;  %v2642_v60 = vshll.u32 %v2405_v53, 16  ;;  %v5694_v59 = vrot.slane %v10633_v12, 4 }
 0x15d   : > { %8512 = vmatmul.mubr.bf16.gmra.mrb[16].mxu1 %v2520_v52  ;;  %v13980_v52 = vshrl.u32 %v10653_v44, 16  ;;  %v2555_v31 = vor.u32 %v2554_v63, %v2551_v29  ;;  %v2591_v21 = vor.u32 %v2590_v62, %v2587_v22  ;;  %v9570_v29 = vld [vmem:[#allocation7 + $0x220] sm:$0xff]   ;;  %v13990_v22 = vshrl.u32 %v10681_v17, 16 }
 0x15e   : > { %8792 = vmatmul.mubr.bf16.gmra.mrb[40].mxu0 %v5149_v35  ;;  %8515 = vmatprep.mubr.bf16.mxu1 %v2529_v46  ;;  %v13981_v46 = vshll.u32 %v10653_v44, 16  ;;  %v10916_v62 = vld [vmem:[#allocation2 + $0x20] sm:$0xff] }
 0x15f   : > { %8795 = vmatprep.mubr.bf16.mxu0 %v5158_v23  ;;  %v2560_v35 = vrot.slane %v13980_v52, 4  ;;  %v2556_v61 = vsel %vm2422_vm3, %v2546_v24, %v2555_v31  ;;  %v9565_v23 = vld [vmem:[#allocation7 + $0x208] sm:$0xff]   ;;  %v2592_v55 = vsel %vm2422_vm3, %v2582_v42, %v2591_v21  ;;  %v3137_v15 = vrot.slane %v13990_v22, 7 }
 0x160   : > { %v2563_v7 = vrot.slane %v13981_v46, 5  ;;  %v9571_v52 = vld [vmem:[#allocation7 + $0x228] sm:$0xff]   ;;  %v5690_v46 = vrot.slane %v10618_v45, 4 }
 0x162   : > { %v2564_v33 = vor.u32 %v2563_v7, %v2560_v35  ;;  %v5693_v25 = vsel %vm1890_vm2, %v5690_v46, %v5692_v32 }
 0x164   : > { %v2565_v50 = vsel %vm2422_vm3, %v2555_v31, %v2564_v33  ;;  %v2574_v24 = vsel %vm2422_vm3, %v2564_v33, %v2573_v38  ;;  %v13988_v31 = vrot.slane %v10557_v4, 4  ;;  %v2632_v33 = vrot.slane %v5124_v0, 4 }
 0x165   : > { %8516 = vmatmul.mubr.bf16.gmra.mrb[20].mxu1 %v2538_v8  ;;  %v2596_v8 = vrot.slane %v5088_v57, 4  ;;  %v13986_v57 = vshrl.u32 %v10729_v36, 16  ;;  %v5696_v0 = vrot.slane %v10641_v28, 4 }
 0x166   : > { %8796 = vmatmul.mubr.bf16.gmra.mrb[44].mxu0 %v5167_v51  ;;  %8519 = vmatprep.mubr.bf16.mxu1 %v2547_v58 }
 0x167   : > { %8815 = vmatprep.mubr.bf16.mxu0 %v5677_v54  ;;  %v2605_v63 = vrot.slane %v13986_v57, 4  ;;  %v2623_v54 = vrot.slane %v5115_v2, 4  ;;  %v9573_v2 = vld [vmem:[#allocation7 + $0x238] sm:$0xff]   ;;  %v5697_v12 = vsel %vm1890_vm2, %v5694_v59, %v5696_v0 }
 0x16d   : > { %8520 = vmatmul.mubr.bf16.gmra.mrb[24].mxu1 %v2556_v61  ;;  %v2635_v61 = vrot.slane %v13989_v6, 5 }
 0x16e   : > { %8816 = vmatmul.mubr.bf16.vlgmr.msra.gmra.mrb[0].mxu0 %v10517_v3  ;;  %8523 = vmatprep.mubr.bf16.mxu1 %v2565_v50  ;;  %v2583_v3 = vsel %vm2422_vm3, %v2573_v38, %v2582_v42  ;;  %v2644_v38 = vrot.slane %v2642_v60, 5  ;;  %v5695_v42 = vsel %vm1890_vm2, %v5692_v32, %v5694_v59  ;;  %v5704_v32 = vrot.slane %v10694_v14, 4 }
 0x16f   : > { %8864 = vmatpush3.bf16.msra.mxu0 %v10670_v40  ;;  %8819 = vmatprep.mubr.bf16.mxu0 %v10525_v13  ;;  %v2599_v13 = vrot.slane %v5091_v48, 5  ;;  %v9569_v40 = vld [vmem:[#allocation7 + $0x218] sm:$0xff]   ;;  %v13987_v48 = vshll.u32 %v10729_v36, 16  ;;  %v2636_v50 = vor.u32 %v2635_v61, %v2632_v33  ;;  %v5706_v61 = vrot.slane %v10727_v16, 4 }
 0x170   : > { %8865 = vmatprep.subr.bf16.mxu0 %v9565_v23 }
 0x171   : > { %v2600_v10 = vor.u32 %v2599_v13, %v2596_v8  ;;  %v2608_v51 = vrot.slane %v13987_v48, 5  ;;  %v13991_v13 = vshll.u32 %v10681_v17, 16  ;;  %v5707_v59 = vsel %vm1890_vm2, %v5704_v32, %v5706_v61 }
 0x173   : > { %8866 = vmatpush3.bf16.msra.mxu0 %v9565_v23  ;;  %v2601_v58 = vsel %vm2422_vm3, %v2591_v21, %v2600_v10  ;;  %v2609_v35 = vor.u32 %v2608_v51, %v2605_v63  ;;  %v5700_v21 = vrot.slane %v10661_v49, 4  ;;  %v10928_v51 = vld [vmem:[#allocation2 + $0x28] sm:$0xff]  ;;  %v3154_v49 = vshll.u32 %v10916_v62, 16 }
 0x174   : > { %8867 = vmatprep.subr.bf16.mxu0 %v9567_v34 }
 0x175   : > { %8524 = vmatmul.mubr.bf16.gmra.mrb[28].mxu1 %v2574_v24  ;;  %v3131_v24 = vshrl.u32 %v3088_v11, 16  ;;  %v10976_v11 = vld [vmem:[#allocation2 + $0x48] sm:$0xff] }
 0x176   : > { %8820 = vmatmul.mubr.bf16.gmra.mrb[4].mxu0 %v10537_v18  ;;  %8527 = vmatprep.mubr.bf16.mxu1 %v2583_v3  ;;  %v2614_v18 = vrot.slane %v5106_v56, 4  ;;  %v9572_v56 = vld [vmem:[#allocation7 + $0x230] sm:$0xff]   ;;  %v5698_v3 = vrot.slane %v10653_v44, 4 }
 0x177   : > { %8823 = vmatprep.mubr.bf16.mxu0 %v10546_v39  ;;  %8868 = vmatpush3.bf16.msra.mxu0 %v9567_v34  ;;  %v2617_v39 = vrot.slane %v5109_v47, 5  ;;  %v2610_v47 = vsel %vm2422_vm3, %v2600_v10, %v2609_v35  ;;  %v3133_v8 = vrot.slane %v3131_v24, 7  ;;  %v3151_v10 = vshrl.u32 %v10916_v62, 16 }
 0x178   : > { %8869 = vmatprep.subr.bf16.mxu0 %v9569_v40  ;;  %v5699_v63 = vsel %vm1890_vm2, %v5696_v0, %v5698_v3  ;;  %v5701_v44 = vsel %vm1890_vm2, %v5698_v3, %v5700_v21 }
 0x179   : > { %v2618_v7 = vor.u32 %v2617_v39, %v2614_v18  ;;  %v3153_v17 = vrot.slane %v3151_v10, 7  ;;  %v13993_v18 = vshll.u32 %v10690_v37, 16 }
 0x17b   : > { %8870 = vmatpush3.bf16.msra.mxu0 %v9569_v40  ;;  %v2619_v45 = vsel %vm2422_vm3, %v2609_v35, %v2618_v7  ;;  %v3140_v40 = vor.u32 %v3137_v15, %v13991_v13  ;;  %v5702_v35 = vrot.slane %v10683_v27, 4 }
 0x17c   : > { %8871 = vmatprep.subr.bf16.mxu0 %v9570_v29 }
 0x17d   : > { %8528 = vmatmul.mubr.bf16.gmra.mrb[32].mxu1 %v2592_v55  ;;  %v13992_v55 = vshrl.u32 %v10690_v37, 16  ;;  %v3141_v48 = vsel %vm3129_vm4, %v3133_v8, %v3140_v40  ;;  %v3162_v37 = vshll.u32 %v10928_v51, 16  ;;  %v5705_v14 = vsel %vm1890_vm2, %v5702_v35, %v5704_v32 }
 0x17e   : > { %8824 = vmatmul.mubr.bf16.gmra.mrb[8].mxu0 %v10560_v1  ;;  %8531 = vmatprep.mubr.bf16.mxu1 %v2601_v58  ;;  %v2626_v1 = vrot.slane %v5118_v19, 5  ;;  %v2639_v19 = vshrl.u32 %v2405_v53, 16  ;;  %v10934_v58 = vld [vmem:[#allocation2 + $0x30] sm:$0xff]  ;;  %v3194_v8 = vshll.u32 %v10976_v11, 16 }
 0x17f   : > { %8827 = vmatprep.mubr.bf16.mxu0 %v10573_v30  ;;  %8872 = vmatpush3.bf16.msra.mxu0 %v9570_v29  ;;  %v5691_v30 = vsel %vm1890_vm2, %v13988_v31, %v5690_v46  ;;  %v3145_v57 = vrot.slane %v13992_v55, 7  ;;  %v3167_v46 = vshrl.u32 %v10934_v58, 16  ;;  %v3170_v27 = vshll.u32 %v10934_v58, 16  ;;  %v10952_v31 = vld [vmem:[#allocation2 + $0x38] sm:$0xff]  ;;  %v11001_v55 = vld [vmem:[#allocation2 + $0x60] sm:$0xff] }
 0x180   : > { %8873 = vmatprep.subr.bf16.mxu0 %v9571_v52  ;;  %v2627_v4 = vor.u32 %v2626_v1, %v2623_v54  ;;  %v2641_v23 = vrot.slane %v2639_v19, 4  ;;  %v5703_v54 = vsel %vm1890_vm2, %v5700_v21, %v5702_v35  ;;  %v3175_v6 = vshrl.u32 %v10952_v31, 16  ;;  %v9580_v35 = vld [vmem:[#allocation7 + $0x128] sm:$0xff]  }
 0x181   : > { %v3148_v39 = vor.u32 %v3145_v57, %v13993_v18  ;;  %v3169_v1 = vrot.slane %v3167_v46, 7  ;;  %v3178_v60 = vshll.u32 %v10952_v31, 16  ;;  %v3215_v18 = vshrl.u32 %v11001_v55, 16 }
 0x182   : > { %v2628_v26 = vsel %vm2422_vm3, %v2618_v7, %v2627_v4  ;;  %v2637_v34 = vsel %vm2422_vm3, %v2627_v4, %v2636_v50  ;;  %v2645_v28 = vor.u32 %v2644_v38, %v2641_v23  ;;  %v3156_v7 = vor.u32 %v3154_v49, %v3153_v17  ;;  %v10979_v23 = vld [vmem:[#allocation2 + $0x50] sm:$0xff] }
 0x183   : > { %8874 = vmatpush3.bf16.msra.mxu0 %v9571_v52  ;;  %v3159_v52 = vshrl.u32 %v10928_v51, 16  ;;  %v3172_v53 = vor.u32 %v3170_v27, %v3169_v1  ;;  %v5708_v4 = vrot.slane %v10729_v36, 4  ;;  %v3177_v19 = vrot.slane %v3175_v6, 7  ;;  %v9577_v36 = vld [vmem:[#allocation7 + $0x110] sm:$0xff]  }
 0x184   : > { %8875 = vmatprep.subr.bf16.mxu0 %v9572_v56  ;;  %v2646_v29 = vsel %vm2422_vm3, %v2636_v50, %v2645_v28  ;;  %v3199_v22 = vshrl.u32 %v10979_v23, 16  ;;  %v3202_v21 = vshll.u32 %v10979_v23, 16 }
 0x185   : > { %8532 = vmatmul.mubr.bf16.gmra.mrb[36].mxu1 %v2610_v47  ;;  %v3161_v47 = vrot.slane %v3159_v52, 7  ;;  %v3180_v38 = vor.u32 %v3178_v60, %v3177_v19 }
 0x186   : > { %8828 = vmatmul.mubr.bf16.gmra.mrb[12].mxu0 %v5691_v30  ;;  %8535 = vmatprep.mubr.bf16.mxu1 %v2619_v45  ;;  %v3157_v30 = vsel %vm3129_vm4, %v3145_v57, %v3156_v7  ;;  %v10956_v45 = vld [vmem:[#allocation2 + $0x40] sm:$0xff]  ;;  %v3201_v40 = vrot.slane %v3199_v22, 7 }
 0x187   : > { %8831 = vmatprep.mubr.bf16.mxu0 %v5693_v25  ;;  %8876 = vmatpush3.bf16.msra.mxu0 %v9572_v56  ;;  %v3149_v56 = vsel %vm3129_vm4, %v3137_v15, %v3148_v39  ;;  %v3164_v33 = vor.u32 %v3162_v37, %v3161_v47  ;;  %v3183_v25 = vshrl.u32 %v10956_v45, 16  ;;  %v3173_v16 = vsel %vm3129_vm4, %v3161_v47, %v3172_v53  ;;  %v9579_v57 = vld [vmem:[#allocation7 + $0x120] sm:$0xff]   ;;  %v11015_v47 = vld [vmem:[#allocation2 + $0x68] sm:$0xff] }
 0x188   : > { %8877 = vmatprep.subr.bf16.mxu0 %v9573_v2  ;;  %v3186_v0 = vshll.u32 %v10956_v45, 16  ;;  %v5712_v15 = vrot.slane %v10757_v5, 4  ;;  %v3181_v28 = vsel %vm3129_vm4, %v3169_v1, %v3180_v38  ;;  %v5716_v39 = vrot.slane %v10786_v43, 4  ;;  %v11019_v1 = vld [vmem:[#allocation2 + $0xc8] sm:$0xff]  ;;  %v9583_v38 = vld [vmem:[#allocation7 + $0x138] sm:$0xff]  }
 0x189   : > { %v3185_v50 = vrot.slane %v3183_v25, 7  ;;  %v3217_v43 = vrot.slane %v3215_v18, 7  ;;  %v3223_v53 = vshrl.u32 %v11015_v47, 16 }
 0x18a   : > { %v6256_v31 = vrot.slane %v3186_v0, 5 }
 0x18b   : > { %8878 = vmatpush3.bf16.msra.mxu0 %v9573_v2  ;;  %v9576_v2 = vld [vmem:[#allocation7 + $0x108] sm:$0xff]   ;;  %v3188_v24 = vor.u32 %v3186_v0, %v3185_v50 }
 0x18d   : > { %8536 = vmatmul.mubr.bf16.gmra.mrb[40].mxu1 %v2628_v26  ;;  %v5709_v26 = vsel %vm1890_vm2, %v5706_v61, %v5708_v4  ;;  %v9581_v61 = vld [vmem:[#allocation7 + $0x130] sm:$0xff]  }
 0x18e   : > { %8832 = vmatmul.mubr.bf16.gmra.mrb[16].mxu0 %v5695_v42  ;;  %8539 = vmatprep.mubr.bf16.mxu1 %v2637_v34  ;;  %v3191_v42 = vshrl.u32 %v10976_v11, 16  ;;  %v5710_v34 = vrot.slane %v10749_v41, 4  ;;  %v3189_v41 = vsel %vm3129_vm4, %v3177_v19, %v3188_v24  ;;  %v3226_v24 = vshll.u32 %v11015_v47, 16 }
 0x18f   : > { %8835 = vmatprep.mubr.bf16.mxu0 %v5697_v12  ;;  %v9578_v12 = vld [vmem:[#allocation7 + $0x118] sm:$0xff]  }
 0x190   : > { %v3193_v3 = vrot.slane %v3191_v42, 7  ;;  %v5711_v13 = vsel %vm1890_vm2, %v5708_v4, %v5710_v34  ;;  %v5713_v5 = vsel %vm1890_vm2, %v5710_v34, %v5712_v15  ;;  %v3225_v34 = vrot.slane %v3223_v53, 7 }
 0x195   : > { %8540 = vmatmul.mubr.bf16.gmra.mrb[44].mxu1 %v2646_v29  ;;  %v10998_v29 = vld [vmem:[#allocation2 + $0x58] sm:$0xff] }
 0x196   : > { %8836 = vmatmul.mubr.bf16.gmra.mrb[20].mxu0 %v5699_v63  ;;  %8559 = vmatprep.mubr.bf16.mxu1 %v3141_v48  ;;  %v3196_v63 = vor.u32 %v3194_v8, %v3193_v3  ;;  %v3207_v48 = vshrl.u32 %v10998_v29, 16 }
 0x197   : > { %8839 = vmatprep.mubr.bf16.mxu0 %v5701_v44  ;;  %v5714_v44 = vrot.slane %v10784_v9, 4 }
 0x198   : > { %v3197_v7 = vsel %vm3129_vm4, %v3185_v50, %v3196_v63  ;;  %v3209_v32 = vrot.slane %v3207_v48, 7 }
 0x199   : > { %v5715_v9 = vsel %vm1890_vm2, %v5712_v15, %v5714_v44 }
 0x19d   : > { %8560 = vmatmul.mubr.bf16.vlgmr.msra.gmra.mrb[0].mxu1 %v3149_v56  ;;  %v3210_v56 = vshll.u32 %v10998_v29, 16 }
 0x19e   : > { %8840 = vmatmul.mubr.bf16.gmra.mrb[24].mxu0 %v5703_v54  ;;  %8935 = vmatpush3.bf16.msra.mxu1 %v10838_v20  ;;  %v3165_v20 = vsel %vm3129_vm4, %v3153_v17, %v3164_v33  ;;  %v3204_v17 = vor.u32 %v3202_v21, %v3201_v40  ;;  %v11025_v33 = vld [vmem:[#allocation2 + $0x70] sm:$0xff] }
 0x19f   : > { %8563 = vmatprep.mubr.bf16.mxu1 %v3157_v30  ;;  %8843 = vmatprep.mubr.bf16.mxu0 %v5705_v14  ;;  %v3218_v30 = vshll.u32 %v11001_v55, 16  ;;  %v5717_v14 = vsel %vm1890_vm2, %v5714_v44, %v5716_v39  ;;  %v3212_v4 = vor.u32 %v3210_v56, %v3209_v32  ;;  %v3231_v50 = vshrl.u32 %v11025_v33, 16 }
 0x1a0   : > { %8928 = vmatprep.subr.bf16.mxu1 %v9576_v2  ;;  %v3205_v54 = vsel %vm3129_vm4, %v3193_v3, %v3204_v17  ;;  %v6220_v17 = vrot.slane %v3154_v49, 5 }
 0x1a1   : > { %v3220_v19 = vor.u32 %v3218_v30, %v3217_v43  ;;  %v3213_v15 = vsel %vm3129_vm4, %v3201_v40, %v3212_v4  ;;  %v6217_v40 = vrot.slane %v3151_v10, 4  ;;  %v6226_v4 = vrot.slane %v3159_v52, 4 }
 0x1a2   : > { %8936 = vmatpush3.bf16.msra.mxu1 %v9576_v2  ;;  %v6165_v2 = vld [vmem:[#allocation2 + $0x18] sm:$0xf0]  ;;  %v6238_v52 = vrot.slane %v3170_v27, 5  ;;  %v6292_v29 = vrot.slane %v3218_v30, 5 }
 0x1a3   : > { %8929 = vmatprep.subr.bf16.mxu1 %v9577_v36  ;;  %v6221_v62 = vor.u32 %v6220_v17, %v6217_v40 }
 0x1a5   : > { %8564 = vmatmul.mubr.bf16.gmra.mrb[4].mxu1 %v3165_v20  ;;  %v5718_v20 = vrot.slane %v11019_v1, 4 }
 0x1a6   : > { %8844 = vmatmul.mubr.bf16.gmra.mrb[28].mxu0 %v5707_v59  ;;  %8567 = vmatprep.mubr.bf16.mxu1 %v3173_v16  ;;  %v11033_v59 = vld [vmem:[#allocation2] sm:$0xff] }
 0x1a7   : > { %8847 = vmatprep.mubr.bf16.mxu0 %v5709_v26  ;;  %8937 = vmatpush3.bf16.msra.mxu1 %v9577_v36  ;;  %v5720_v16 = vrot.slane %v11033_v59, 4  ;;  %v6207_v36 = vshrl.u32 %v6165_v2, 16  ;;  %v6210_v26 = vshll.u32 %v6165_v2, 16 }
 0x1a8   : > { %8930 = vmatprep.subr.bf16.mxu1 %v9578_v12 }
 0x1a9   : > { %v5721_v3 = vsel %vm1890_vm2, %v5718_v20, %v5720_v16  ;;  %v6209_v63 = vrot.slane %v6207_v36, 4  ;;  %v6212_v44 = vrot.slane %v6210_v26, 5  ;;  %v6229_v36 = vrot.slane %v3162_v37, 5 }
 0x1ab   : > { %8938 = vmatpush3.bf16.msra.mxu1 %v9578_v12  ;;  %v5719_v12 = vsel %vm1890_vm2, %v5716_v39, %v5718_v20  ;;  %v11053_v39 = vld [vmem:[#allocation2 + $0x80] sm:$0xff]  ;;  %v11068_v20 = vld [vmem:[#allocation2 + $0x88] sm:$0xff]  ;;  %v6230_v37 = vor.u32 %v6229_v36, %v6226_v4 }
 0x1ac   : > { %8931 = vmatprep.subr.bf16.mxu1 %v9579_v57  ;;  %v3247_v10 = vshrl.u32 %v11053_v39, 16  ;;  %v3258_v27 = vshll.u32 %v11068_v20, 16  ;;  %v11124_v36 = vld [vmem:[#allocation2 + $0xa8] sm:$0xff] }
 0x1ad   : > { %8568 = vmatmul.mubr.bf16.gmra.mrb[8].mxu1 %v3181_v28  ;;  %v3221_v28 = vsel %vm3129_vm4, %v3209_v32, %v3220_v19 }
 0x1ae   : > { %8848 = vmatmul.mubr.bf16.gmra.mrb[32].mxu0 %v5711_v13  ;;  %8571 = vmatprep.mubr.bf16.mxu1 %v3189_v41  ;;  %v5633_v13 = vld [vmem:[#allocation2 + $0xd8] sm:$0xf]  ;;  %v3233_v41 = vrot.slane %v3231_v50, 7 }
 0x1af   : > { %8851 = vmatprep.mubr.bf16.mxu0 %v5713_v5  ;;  %8939 = vmatpush3.bf16.msra.mxu1 %v9579_v57  ;;  %v3234_v5 = vshll.u32 %v11025_v33, 16  ;;  %v11047_v57 = vld [vmem:[#allocation2 + $0x78] sm:$0xff] }
 0x1b0   : > { %8932 = vmatprep.subr.bf16.mxu1 %v9580_v35  ;;  %v3239_v32 = vshrl.u32 %v11047_v57, 16  ;;  %v3242_v2 = vshll.u32 %v11047_v57, 16 }
 0x1b3   : > { %8940 = vmatpush3.bf16.msra.mxu1 %v9580_v35  ;;  %v3228_v35 = vor.u32 %v3226_v24, %v3225_v34 }
 0x1b4   : > { %8933 = vmatprep.subr.bf16.mxu1 %v9581_v61 }
 0x1b5   : > { %8572 = vmatmul.mubr.bf16.gmra.mrb[12].mxu1 %v3197_v7  ;;  %v5722_v7 = vrot.slane %v5633_v13, 4  ;;  %v3229_v49 = vsel %vm3129_vm4, %v3217_v43, %v3228_v35  ;;  %v3249_v43 = vrot.slane %v3247_v10, 7  ;;  %v6244_v13 = vrot.slane %v3175_v6, 4  ;;  %v11109_v6 = vld [vmem:[#allocation2 + $0xa0] sm:$0xff] }
 0x1b6   : > { %8852 = vmatmul.mubr.bf16.gmra.mrb[36].mxu0 %v5715_v9  ;;  %8575 = vmatprep.mubr.bf16.mxu1 %v3205_v54  ;;  %v3236_v9 = vor.u32 %v3234_v5, %v3233_v41  ;;  %v6213_v54 = vor.u32 %v6212_v44, %v6209_v63  ;;  %v6247_v63 = vrot.slane %v3178_v60, 5  ;;  %v6231_v44 = vsel %vm2422_vm3, %v6221_v62, %v6230_v37 }
 0x1b7   : > { %8855 = vmatprep.mubr.bf16.mxu0 %v5717_v14  ;;  %8941 = vmatpush3.bf16.msra.mxu1 %v9581_v61  ;;  %v5723_v14 = vsel %vm1890_vm2, %v5720_v16, %v5722_v7  ;;  %v3241_v61 = vrot.slane %v3239_v32, 7  ;;  %v3250_v16 = vshll.u32 %v11053_v39, 16  ;;  %v11102_v7 = vld [vmem:[#allocation2 + $0x98] sm:$0xff] }
 0x1b8   : > { %8934 = vmatprep.subr.bf16.mxu1 %v9583_v38  ;;  %v3237_v19 = vsel %vm3129_vm4, %v3225_v34, %v3236_v9  ;;  %v6222_v26 = vsel %vm2422_vm3, %v6213_v54, %v6221_v62  ;;  %v3255_v34 = vshrl.u32 %v11068_v20, 16  ;;  %v6248_v54 = vor.u32 %v6247_v63, %v6244_v13 }
 0x1b9   : > { %v3244_v51 = vor.u32 %v3242_v2, %v3241_v61  ;;  %v3271_v62 = vshrl.u32 %v11102_v7, 16  ;;  %v3274_v4 = vshll.u32 %v11102_v7, 16  ;;  %v6280_v63 = vrot.slane %v3207_v48, 4  ;;  %v11165_v48 = vld [vmem:[#allocation2 + $0xc0] sm:$0xff] }
 0x1ba   : > { %v3257_v58 = vrot.slane %v3255_v34, 7 }
 0x1bb   : > { %8942 = vmatpush3.bf16.msra.mxu1 %v9583_v38  ;;  %v6235_v38 = vrot.slane %v3167_v46, 4 }
 0x1bc   : > { %v3260_v60 = vor.u32 %v3258_v27, %v3257_v58 }
 0x1bd   : > { %8576 = vmatmul.mubr.bf16.gmra.mrb[16].mxu1 %v3213_v15  ;;  %v11081_v15 = vld [vmem:[#allocation2 + $0x90] sm:$0xff] }
 0x1be   : > { %8856 = vmatmul.mubr.bf16.gmra.mrb[40].mxu0 %v5719_v12  ;;  %8579 = vmatprep.mubr.bf16.mxu1 %v3221_v28  ;;  %v3252_v12 = vor.u32 %v3250_v16, %v3249_v43  ;;  %v3263_v46 = vshrl.u32 %v11081_v15, 16  ;;  %v6239_v28 = vor.u32 %v6238_v52, %v6235_v38  ;;  %v3266_v35 = vshll.u32 %v11081_v15, 16 }
 0x1bf   : > { %8859 = vmatprep.mubr.bf16.mxu0 %v5721_v3  ;;  %v3245_v3 = vsel %vm3129_vm4, %v3233_v41, %v3244_v51  ;;  %v6253_v41 = vrot.slane %v3183_v25, 4  ;;  %v3279_v25 = vshrl.u32 %v11109_v6, 16  ;;  %v3261_v45 = vsel %vm3129_vm4, %v3249_v43, %v3260_v60  ;;  %v11158_v60 = vld [vmem:[#allocation2 + $0xb8] sm:$0xff] }
 0x1c0   : > { %v3253_v40 = vsel %vm3129_vm4, %v3241_v61, %v3252_v12  ;;  %v3265_v17 = vrot.slane %v3263_v46, 7  ;;  %v6240_v9 = vsel %vm2422_vm3, %v6230_v37, %v6239_v28  ;;  %v6249_v0 = vsel %vm2422_vm3, %v6239_v28, %v6248_v54  ;;  %v11137_v12 = vld [vmem:[#allocation2 + $0xb0] sm:$0xff] }
 0x1c1   : > { %v3273_v61 = vrot.slane %v3271_v62, 7  ;;  %v6265_v38 = vrot.slane %v3194_v8, 5  ;;  %v3281_v43 = vrot.slane %v3279_v25, 7  ;;  %v3282_v52 = vshll.u32 %v11109_v6, 16 }
 0x1c2   : > { %v6271_v37 = vrot.slane %v3199_v22, 4  ;;  %v3287_v28 = vshrl.u32 %v11124_v36, 16  ;;  %v3295_v22 = vshrl.u32 %v11137_v12, 16 }
 0x1c3   : > { %v3276_v11 = vor.u32 %v3274_v4, %v3273_v61 }
 0x1c4   : > { %v3289_v23 = vrot.slane %v3287_v28, 7 }
 0x1c5   : > { %8580 = vmatmul.mubr.bf16.gmra.mrb[20].mxu1 %v3229_v49  ;;  %v3268_v49 = vor.u32 %v3266_v35, %v3265_v17  ;;  %v3277_v13 = vsel %vm3129_vm4, %v3265_v17, %v3276_v11  ;;  %v6289_v17 = vrot.slane %v3215_v18, 4  ;;  %v3311_v18 = vshrl.u32 %v11165_v48, 16 }
 0x1c6   : > { %8860 = vmatmul.mubr.bf16.gmra.mrb[44].mxu0 %v5723_v14  ;;  %8583 = vmatprep.mubr.bf16.mxu1 %v3237_v19  ;;  %v6257_v14 = vor.u32 %v6256_v31, %v6253_v41  ;;  %v6262_v19 = vrot.slane %v3191_v42, 4  ;;  %v6274_v42 = vrot.slane %v3202_v21, 5  ;;  %v3290_v21 = vshll.u32 %v11124_v36, 16 }
 0x1c7   : > { %8879 = vmatprep.mubr.bf16.mxu0 %v6222_v26  ;;  %v3269_v26 = vsel %vm3129_vm4, %v3257_v58, %v3268_v49  ;;  %v3284_v58 = vor.u32 %v3282_v52, %v3281_v43  ;;  %v3297_v41 = vrot.slane %v3295_v22, 7  ;;  %v3298_v31 = vshll.u32 %v11137_v12, 16 }
 0x1c8   : > { %v6258_v51 = vsel %vm2422_vm3, %v6248_v54, %v6257_v14  ;;  %v6266_v8 = vor.u32 %v6265_v38, %v6262_v19  ;;  %v3306_v19 = vshll.u32 %v11158_v60, 16  ;;  %v6307_v11 = vrot.slane %v3231_v50, 4 }
 0x1cd   : > { %8584 = vmatmul.mubr.bf16.gmra.mrb[24].mxu1 %v3245_v3  ;;  %v6275_v3 = vor.u32 %v6274_v42, %v6271_v37  ;;  %v3313_v37 = vrot.slane %v3311_v18, 7 }
 0x1ce   : > { %8880 = vmatmul.mubr.bf16.vlgmr.msra.gmra.mrb[0].mxu0 %v6231_v44  ;;  %8587 = vmatprep.mubr.bf16.mxu1 %v3253_v40  ;;  %v6283_v44 = vrot.slane %v3210_v56, 5  ;;  %v6267_v40 = vsel %vm2422_vm3, %v6257_v14, %v6266_v8  ;;  %v3292_v56 = vor.u32 %v3290_v21, %v3289_v23  ;;  %v3303_v14 = vshrl.u32 %v11158_v60, 16 }
 0x1cf   : > { %8883 = vmatprep.mubr.bf16.mxu0 %v6240_v9  ;;  %v3285_v9 = vsel %vm3129_vm4, %v3273_v61, %v3284_v58  ;;  %v6276_v54 = vsel %vm2422_vm3, %v6266_v8, %v6275_v3  ;;  %v6310_v8 = vrot.slane %v3234_v5, 5  ;;  %v3322_v5 = vshll.u32 %v11019_v1, 16 }
 0x1d0   : > { %v6284_v49 = vor.u32 %v6283_v44, %v6280_v63  ;;  %v3293_v55 = vsel %vm3129_vm4, %v3281_v43, %v3292_v56  ;;  %v3305_v61 = vrot.slane %v3303_v14, 7  ;;  %v3314_v43 = vshll.u32 %v11165_v48, 16 }
 0x1d1   : > { %v6316_v44 = vrot.slane %v3239_v32, 4 }
 0x1d2   : > { %v6285_v30 = vsel %vm2422_vm3, %v6275_v3, %v6284_v49  ;;  %v3308_v47 = vor.u32 %v3306_v19, %v3305_v61  ;;  %v3316_v58 = vor.u32 %v3314_v43, %v3313_v37  ;;  %v6311_v3 = vor.u32 %v6310_v8, %v6307_v11 }
 0x1d4   : > { %v3317_v63 = vsel %vm3129_vm4, %v3305_v61, %v3316_v58  ;;  %v6355_v61 = vrot.slane %v3274_v4, 5  ;;  %v6370_v4 = vrot.slane %v3287_v28, 4 }
 0x1d5   : > { %8588 = vmatmul.mubr.bf16.gmra.mrb[28].mxu1 %v3261_v45  ;;  %v3300_v45 = vor.u32 %v3298_v31, %v3297_v41 }
 0x1d6   : > { %8884 = vmatmul.mubr.bf16.gmra.mrb[4].mxu0 %v6249_v0  ;;  %8591 = vmatprep.mubr.bf16.mxu1 %v3269_v26  ;;  %v6293_v0 = vor.u32 %v6292_v29, %v6289_v17  ;;  %v6298_v26 = vrot.slane %v3223_v53, 4  ;;  %v3319_v53 = vshrl.u32 %v11019_v1, 16 }
 0x1d7   : > { %8887 = vmatprep.mubr.bf16.mxu0 %v6258_v51  ;;  %v3301_v38 = vsel %vm3129_vm4, %v3289_v23, %v3300_v45  ;;  %v6301_v51 = vrot.slane %v3226_v24, 5  ;;  %v3309_v23 = vsel %vm3129_vm4, %v3297_v41, %v3308_v47  ;;  %v6325_v41 = vrot.slane %v3247_v10, 4 }
 0x1d8   : > { %v6294_v42 = vsel %vm2422_vm3, %v6284_v49, %v6293_v0  ;;  %v3321_v50 = vrot.slane %v3319_v53, 7  ;;  %v6334_v49 = vrot.slane %v3255_v34, 4  ;;  %v6337_v10 = vrot.slane %v3258_v27, 5 }
 0x1d9   : > { %v6302_v24 = vor.u32 %v6301_v51, %v6298_v26  ;;  %v6343_v45 = vrot.slane %v3263_v46, 4  ;;  %v6352_v27 = vrot.slane %v3271_v62, 4  ;;  %v6364_v26 = vrot.slane %v3282_v52, 5 }
 0x1da   : > { %v3324_v17 = vor.u32 %v3322_v5, %v3321_v50  ;;  %v6373_v51 = vrot.slane %v3290_v21, 5  ;;  %v6379_v52 = vrot.slane %v3295_v22, 4  ;;  %v6388_v21 = vrot.slane %v3303_v14, 4 }
 0x1db   : > { %v6413_v14 = vshrl.u32 %v11033_v59, 16 }
 0x1dc   : > { %v3325_v56 = vsel %vm3129_vm4, %v3313_v37, %v3324_v17 }
 0x1dd   : > { %8592 = vmatmul.mubr.bf16.gmra.mrb[32].mxu1 %v3277_v13  ;;  %v6303_v13 = vsel %vm2422_vm3, %v6293_v0, %v6302_v24  ;;  %v6346_v0 = vrot.slane %v3266_v35, 5  ;;  %v6361_v35 = vrot.slane %v3279_v25, 4  ;;  %v6415_v47 = vrot.slane %v6413_v14, 4 }
 0x1de   : > { %8888 = vmatmul.mubr.bf16.gmra.mrb[8].mxu0 %v6267_v40  ;;  %8595 = vmatprep.mubr.bf16.mxu1 %v3285_v9  ;;  %v6319_v40 = vrot.slane %v3242_v2, 5  ;;  %v6312_v9 = vsel %vm2422_vm3, %v6302_v24, %v6311_v3 }
 0x1df   : > { %8891 = vmatprep.mubr.bf16.mxu0 %v6276_v54  ;;  %v6328_v54 = vrot.slane %v3250_v16, 5 }
 0x1e0   : > { %v6320_v29 = vor.u32 %v6319_v40, %v6316_v44 }
 0x1e1   : > { %v6329_v32 = vor.u32 %v6328_v54, %v6325_v41 }
 0x1e2   : > { %v6321_v2 = vsel %vm2422_vm3, %v6311_v3, %v6320_v29 }
 0x1e3   : > { %v6330_v16 = vsel %vm2422_vm3, %v6320_v29, %v6329_v32 }
 0x1e5   : > { %8596 = vmatmul.mubr.bf16.gmra.mrb[36].mxu1 %v3293_v55  ;;  %v6338_v55 = vor.u32 %v6337_v10, %v6334_v49 }
 0x1e6   : > { %8892 = vmatmul.mubr.bf16.gmra.mrb[12].mxu0 %v6285_v30  ;;  %8599 = vmatprep.mubr.bf16.mxu1 %v3301_v38  ;;  %v6347_v30 = vor.u32 %v6346_v0, %v6343_v45  ;;  %v6365_v38 = vor.u32 %v6364_v26, %v6361_v35 }
 0x1e7   : > { %8895 = vmatprep.mubr.bf16.mxu0 %v6294_v42  ;;  %v6339_v34 = vsel %vm2422_vm3, %v6329_v32, %v6338_v55  ;;  %v6391_v42 = vrot.slane %v3306_v19, 5  ;;  %v6416_v19 = vshll.u32 %v11033_v59, 16 }
 0x1e8   : > { %v6348_v46 = vsel %vm2422_vm3, %v6338_v55, %v6347_v30 }
 0x1e9   : > { %v6418_v24 = vrot.slane %v6416_v19, 5 }
 0x1ed   : > { %8600 = vmatmul.mubr.bf16.gmra.mrb[40].mxu1 %v3309_v23  ;;  %v6419_v23 = vor.u32 %v6418_v24, %v6415_v47 }
 0x1ee   : > { %8896 = vmatmul.mubr.bf16.gmra.mrb[16].mxu0 %v6303_v13  ;;  %8603 = vmatprep.mubr.bf16.mxu1 %v3317_v63  ;;  %v248_v63 = vlaneseq }
 0x1ef   : > { %8899 = vmatprep.mubr.bf16.mxu0 %v6312_v9 }
 0x1f0   : > { %v11277_v44 = vshrl.u32 %v248_v63, 7 }
 0x1f2   : > { %v251_v40 = vadd.s32 16, %v11277_v44  ;;  %v250_v17 = vadd.s32 8, %v11277_v44  ;;  %v253_v49 = vadd.s32 32, %v11277_v44  ;;  %v11303_v55 = vadd.s32 40, %v11277_v44 }
 0x1f4   : > { %v11280_v9 = vmul.u32.u64.low 2863311531, %v251_v40  ;;  %v11281_v41 = vmul.u32.u64.high 2863311531, %v251_v40, %v11280_v9 }
 0x1f5   : > { %8604 = vmatmul.mubr.bf16.gmra.mrb[44].mxu1 %v3325_v56 }
 0x1f6   : > { %8900 = vmatmul.mubr.bf16.gmra.mrb[20].mxu0 %v6321_v2  ;;  %8647 = vmatprep.mubr.bf16.mxu1 %v11025_v33  ;;  %v6356_v33 = vor.u32 %v6355_v61, %v6352_v27  ;;  %v11293_v56 = vmul.u32.u64.low 2863311531, %v250_v17  ;;  %v11294_v2 = vmul.u32.u64.high 2863311531, %v250_v17, %v11293_v56  ;;  %v325_v10 = vshrl.u32 %v11281_v41, 4 }
 0x1f7   : > { %8903 = vmatprep.mubr.bf16.mxu0 %v6330_v16  ;;  %v256_v16 = vadd.s32 56, %v11277_v44  ;;  %v11309_v27 = vmul.u32.u64.low 2863311531, %v253_v49  ;;  %v11310_v61 = vmul.u32.u64.high 2863311531, %v253_v49, %v11309_v27  ;;  %v11387_v41 = vadd.s32 96, %v11277_v44 }
 0x1f8   : > { %v6357_v62 = vsel %vm2422_vm3, %v6347_v30, %v6356_v33  ;;  %v6366_v25 = vsel %vm2422_vm3, %v6356_v33, %v6365_v38  ;;  %v11306_v30 = vadd.s32 80, %v11277_v44 }
 0x1f9   : > { %v11313_v26 = vmul.u32.u64.low 2863311531, %v256_v16  ;;  %v11314_v33 = vmul.u32.u64.high 2863311531, %v256_v16, %v11313_v26 }
 0x1fd   : > { %8648 = vmatmul.mubr.bf16.vlgmr.msra.gmra.mrb[24].mxu1 %v11047_v57  ;;  %v6382_v57 = vrot.slane %v3298_v31, 5  ;;  %v6397_v31 = vrot.slane %v3311_v18, 4  ;;  %v6406_v18 = vrot.slane %v3319_v53, 4 }
 0x1fe   : > { %8904 = vmatmul.mubr.bf16.gmra.mrb[24].mxu0 %v6339_v34  ;;  %8651 = vmatprep.mubr.bf16.mxu1 %v11053_v39  ;;  %v6374_v39 = vor.u32 %v6373_v51, %v6370_v4  ;;  %v11321_v4 = vmul.u32.u64.low 2863311531, %v11306_v30  ;;  %v11322_v51 = vmul.u32.u64.high 2863311531, %v11306_v30, %v11321_v4 }
 0x1ff   : > { %8907 = vmatprep.mubr.bf16.mxu0 %v6348_v46  ;;  %v6383_v37 = vor.u32 %v6382_v57, %v6379_v52  ;;  %v326_v46 = vmul.u32 24, %v325_v10  ;;  %v314_v52 = vshrl.u32 %v11294_v2, 4  ;;  %v14119_v10 = vmov 0 }
 0x200   : > { %v6375_v28 = vsel %vm2422_vm3, %v6365_v38, %v6374_v39 }
 0x201   : > { %v6384_v22 = vsel %vm2422_vm3, %v6374_v39, %v6383_v37  ;;  %v11325_v57 = vsub.s32 %v251_v40, %v326_v46 }
 0x203   : > { %vm827_vm5 = vcmp.ne.s32.totalorder %v11325_v57, 0  ;;  %vm875_vm6 = vcmp.lt.s32.totalorder %v11325_v57, 0  ;;  %v11357_v24 = vadd.s32 24, %v11325_v57 }
 0x204   : > { %vm11406_vm15 = vmand %vm875_vm6, %vm827_vm5 }
 0x205   : > { %8652 = vmatmul.mubr.bf16.gmra.mrb[28].mxu1 %v11068_v20  ;;  %v6400_v20 = vrot.slane %v3314_v43, 5  ;;  %v6409_v43 = vrot.slane %v3322_v5, 5 }
 0x206   : > { %8908 = vmatmul.mubr.bf16.gmra.mrb[28].mxu0 %v6357_v62  ;;  %8655 = vmatprep.mubr.bf16.mxu1 %v11081_v15  ;;  %v6392_v15 = vor.u32 %v6391_v42, %v6388_v21  ;;  %v11317_v38 = vmul.u32.u64.low 2863311531, %v11303_v55  ;;  %v11318_v62 = vmul.u32.u64.high 2863311531, %v11303_v55, %v11317_v38  ;;  %v11332_v21 = vadd.s32 88, %v11277_v44 }
 0x207   : > { %8911 = vmatprep.mubr.bf16.mxu0 %v6366_v25  ;;  %v6401_v11 = vor.u32 %v6400_v20, %v6397_v31  ;;  %v6410_v59 = vor.u32 %v6409_v43, %v6406_v18  ;;  %v347_v31 = vshrl.u32 %v11310_v61, 4  ;;  %v413_v43 = vshrl.u32 %v11322_v51, 4 }
 0x208   : > { %v6393_v8 = vsel %vm2422_vm3, %v6383_v37, %v6392_v15  ;;  %v358_v18 = vshrl.u32 %v11318_v62, 4  ;;  %v14008_v62 = vmov 0 }
 0x209   : > { %v6411_v53 = vsel %vm2422_vm3, %v6401_v11, %v6410_v59  ;;  %v6420_v5 = vsel %vm2422_vm3, %v6410_v59, %v6419_v23  ;;  %v11361_v59 = vadd.s32 112, %v11277_v44 }
 0x20b   : > { %v11383_v40 = vmul.u32.u64.low 2863311531, %v11361_v59  ;;  %v11384_v9 = vmul.u32.u64.high 2863311531, %v11361_v59, %v11383_v40 }
 0x20d   : > { %8656 = vmatmul.mubr.bf16.gmra.mrb[32].mxu1 %v11102_v7  ;;  %v6402_v7 = vsel %vm2422_vm3, %v6392_v15, %v6401_v11  ;;  %v380_v15 = vshrl.u32 %v11314_v33, 4  ;;  %v11467_v33 = vadd.s32 144, %v11277_v44 }
 0x20e   : > { %8912 = vmatmul.mubr.bf16.gmra.mrb[32].mxu0 %v6375_v28  ;;  %8659 = vmatprep.mubr.bf16.mxu1 %v11109_v6  ;;  %v6189_v6 = vld [vmem:[#allocation2 + $0xd8] sm:$0x1f]  ;;  %v11329_v28 = vadd.s32 64, %v11277_v44 }
 0x20f   : > { %8915 = vmatprep.mubr.bf16.mxu0 %v6384_v22  ;;  %v6422_v58 = vshrl.u32 %v6189_v6, 16  ;;  %v6425_v3 = vshll.u32 %v6189_v6, 16  ;;  %v315_v22 = vmul.u32 24, %v314_v52  ;;  %v348_v6 = vmul.u32 24, %v347_v31 }
 0x210   : > { %v11344_v14 = vmul.u32.u64.low 2863311531, %v11329_v28  ;;  %v11345_v19 = vmul.u32.u64.high 2863311531, %v11329_v28, %v11344_v14 }
 0x211   : > { %v6424_v50 = vrot.slane %v6422_v58, 4  ;;  %v6427_v13 = vrot.slane %v6425_v3, 5  ;;  %v11367_v3 = vsub.s32 %v250_v17, %v315_v22  ;;  %v11380_v63 = vsub.s32 %v253_v49, %v348_v6 }
 0x212   : > { %v391_v17 = vshrl.u32 %v11345_v19, 4  ;;  %v14013_v22 = vmov 0  ;;  %v14019_v14 = vmov 0 }
 0x213   : > { %vm826_vm11 = vcmp.ne.s32.totalorder %v11367_v3, 0  ;;  %vm874_vm12 = vcmp.lt.s32.totalorder %v11367_v3, 0  ;;  %vm829_vm1 = vcmp.ne.s32.totalorder %v11380_v63, 0 }
 0x214   : > { %vm11460_vm5 = vmand %vm874_vm12, %vm826_vm11 }
 0x215   : > { %8660 = vmatmul.mubr.bf16.gmra.mrb[36].mxu1 %v11124_v36  ;;  %v6428_v36 = vor.u32 %v6427_v13, %v6424_v50 }
 0x216   : > { %8916 = vmatmul.mubr.bf16.gmra.mrb[36].mxu0 %v6393_v8  ;;  %8663 = vmatprep.mubr.bf16.mxu1 %v11137_v12  ;;  %v11348_v8 = vadd.s32 72, %v11277_v44 }
 0x217   : > { %8919 = vmatprep.mubr.bf16.mxu0 %v6402_v7  ;;  %v6429_v12 = vsel %vm2422_vm3, %v6419_v23, %v6428_v36  ;;  %v11353_v7 = vmul.u32.u64.low 2863311531, %v11332_v21  ;;  %v11354_v47 = vmul.u32.u64.high 2863311531, %v11332_v21, %v11353_v7  ;;  %v381_v23 = vmul.u32 24, %v380_v15 }
 0x218   : > { %v11373_v50 = vmul.u32.u64.low 2863311531, %v11348_v8  ;;  %v11374_v13 = vmul.u32.u64.high 2863311531, %v11348_v8, %v11373_v50  ;;  %v359_v36 = vmul.u32 24, %v358_v18  ;;  %vm877_vm3 = vcmp.lt.s32.totalorder %v11380_v63, 0 }
 0x219   : > { %v424_v2 = vshrl.u32 %v11354_v47, 4  ;;  %vm11486_vm11 = vmand %vm877_vm3, %vm829_vm1 }
 0x21a   : > { %v402_v26 = vshrl.u32 %v11374_v13, 4 }
 0x21b   : > { %v425_v4 = vmul.u32 24, %v424_v2 }
 0x21c   : > { %v403_v18 = vmul.u32 24, %v402_v26 }
 0x21d   : > { %8664 = vmatmul.mubr.bf16.gmra.mrb[40].mxu1 %v11158_v60  ;;  %v252_v60 = vadd.s32 24, %v11277_v44  ;;  %v11550_v50 = vsub.s32 %v11332_v21, %v425_v4 }
 0x21e   : > { %8920 = vmatmul.mubr.bf16.gmra.mrb[40].mxu0 %v6411_v53  ;;  %8667 = vmatprep.mubr.bf16.mxu1 %v11165_v48  ;;  %v11285_v54 = vmul.u32.u64.low 2863311531, %v11277_v44  ;;  %v11286_v48 = vmul.u32.u64.high 2863311531, %v11277_v44, %v11285_v54  ;;  %v11589_v4 = vsub.s32 %v11348_v8, %v403_v18 }
 0x21f   : > { %8923 = vmatprep.mubr.bf16.mxu0 %v6420_v5  ;;  %v11289_v29 = vmul.u32.u64.low 2863311531, %v252_v60  ;;  %v11290_v32 = vmul.u32.u64.high 2863311531, %v252_v60, %v11289_v29  ;;  %v11394_v54 = vadd.s32 120, %v11277_v44  ;;  %14024 = vst [vmem:[#allocation29_spill] sm:$0xff] %v11550_v50  ;;  %v11614_v21 = vadd.s32 24, %v11550_v50 }
 0x220   : > { %v303_v34 = vshrl.u32 %v11286_v48, 4  ;;  %v11397_v48 = vadd.s32 24, %v11367_v3 }
 0x221   : > { %v336_v35 = vshrl.u32 %v11290_v32, 4  ;;  %14030 = vst [vmem:[#allocation35_spill] sm:$0xff] %v11614_v21  ;;  %v11803_v21 = vadd.s32 216, %v11277_v44 }
 0x222   : > { %v304_v25 = vmul.u32 24, %v303_v34  ;;  %v11451_v34 = vmul.u32.u64.low 2863311531, %v11394_v54  ;;  %v11452_v27 = vmul.u32.u64.high 2863311531, %v11394_v54, %v11451_v34 }
 0x223   : > { %v337_v39 = vmul.u32 24, %v336_v35  ;;  %v392_v35 = vmul.u32 24, %v391_v17  ;;  %v11575_v34 = vadd.s32 128, %v11277_v44 }
 0x224   : > { %v11335_v42 = vsub.s32 %v11277_v44, %v304_v25  ;;  %v457_v25 = vshrl.u32 %v11384_v9, 4 }
 0x225   : > { %8668 = vmatmul.mubr.bf16.gmra.mrb[44].mxu1 %v11019_v1  ;;  %v255_v1 = vadd.s32 48, %v11277_v44  ;;  %v11340_v20 = vsub.s32 %v252_v60, %v337_v39  ;;  %v11391_v60 = vsub.s32 %v256_v16, %v381_v23  ;;  %v11523_v19 = vsub.s32 %v11329_v28, %v392_v35 }
 0x226   : > { %8924 = vmatmul.mubr.bf16.gmra.mrb[44].mxu0 %v6429_v12  ;;  %vm825_vm7 = vcmp.ne.s32.totalorder %v11335_v42, 0  ;;  %vm873_vm8 = vcmp.lt.s32.totalorder %v11335_v42, 0  ;;  %v11365_v58 = vadd.s32 24, %v11335_v42  ;;  %v414_v12 = vmul.u32 24, %v413_v43 }
 0x227   : > { %v11299_v45 = vmul.u32.u64.low 2863311531, %v255_v1  ;;  %v11300_v0 = vmul.u32.u64.high 2863311531, %v255_v1, %v11299_v45  ;;  %vm828_vm9 = vcmp.ne.s32.totalorder %v11340_v20, 0  ;;  %vm876_vm10 = vcmp.lt.s32.totalorder %v11340_v20, 0  ;;  %13995 = vst [vmem:[#allocation18_spill] sm:$0xff] %v11391_v60  ;;  %vm11426_vm0 = vmand %vm873_vm8, %vm825_vm7 }
 0x228   : > { %v11378_v5 = vadd.s32 24, %v11340_v20  ;;  %v11417_v56 = vsub.s32 %v11306_v30, %v414_v12  ;;  %v11432_v16 = vmul.u32.u64.low 2863311531, %v11387_v41  ;;  %v11433_v45 = vmul.u32.u64.high 2863311531, %v11387_v41, %v11432_v16  ;;  %vm11444_vm2 = vmand %vm876_vm10, %vm828_vm9 }
 0x229   : > { %v369_v37 = vshrl.u32 %v11300_v0, 4  ;;  %v11436_v0 = vadd.s32 104, %v11277_v44  ;;  %vm832_vm4 = vcmp.ne.s32.totalorder %v11391_v60, 0  ;;  %vm880_vm6 = vcmp.lt.s32.totalorder %v11391_v60, 0 }
 0x22a   : > { %14000 = vst [vmem:[#allocation21_spill] sm:$0xff] %v11417_v56  ;;  %vm835_vm10 = vcmp.ne.s32.totalorder %v11417_v56, 0  ;;  %vm883_vm12 = vcmp.lt.s32.totalorder %v11417_v56, 0  ;;  %v11508_v31 = vadd.s32 24, %v11391_v60  ;;  %v14021_v23 = vmov 0 }
 0x22b   : > { %v370_v11 = vmul.u32 24, %v369_v37  ;;  %v11493_v52 = vmul.u32.u64.low 2863311531, %v11436_v0  ;;  %v11494_v39 = vmul.u32.u64.high 2863311531, %v11436_v0, %v11493_v52  ;;  %v11497_v37 = vadd.s32 24, %v11380_v63  ;;  %vm11545_vm1 = vmand %vm883_vm12, %vm835_vm10 }
 0x22c   : > { %14016 = vst [vmem:[#allocation25_spill] sm:$0xff] %v11508_v31  ;;  %v11526_v43 = vmul.u32.u64.low 2863311531, %v11467_v33  ;;  %v11527_v7 = vmul.u32.u64.high 2863311531, %v11467_v33, %v11526_v43  ;;  %v14022_v23 = vsel %vm11545_vm1, 4294967295, %v14021_v23  ;;  %v458_v40 = vmul.u32 24, %v457_v25 }
 0x22d   : > { %v11370_v53 = vsub.s32 %v255_v1, %v370_v11  ;;  %v11414_v1 = vsub.s32 %v11303_v55, %v359_v36  ;;  %v11514_v11 = vadd.s32 24, %v11417_v56  ;;  %14023 = vst [vmem:[#allocation28_spill] sm:$0xff] %v14022_v23  ;;  %v435_v9 = vshrl.u32 %v11433_v45, 4 }
 0x22e   : > { %v468_v16 = vshrl.u32 %v11452_v27, 4  ;;  %vm833_vm3 = vcmp.ne.s32.totalorder %v11523_v19, 0  ;;  %v11595_v25 = vadd.s32 24, %v11523_v19  ;;  %v11599_v52 = vadd.s32 152, %v11277_v44 }
 0x22f   : > { %13994 = vst [vmem:[#allocation17_spill] sm:$0xff] %v11370_v53  ;;  %vm831_vm13 = vcmp.ne.s32.totalorder %v11370_v53, 0  ;;  %vm879_vm14 = vcmp.lt.s32.totalorder %v11370_v53, 0  ;;  %v11411_v32 = vadd.s32 24, %v11370_v53  ;;  %13999 = vst [vmem:[#allocation20_spill] sm:$0xff] %v11414_v1  ;;  %vm830_vm8 = vcmp.ne.s32.totalorder %v11414_v1, 0 }
 0x230   : > { %vm11475_vm7 = vmand %vm879_vm14, %vm831_vm13  ;;  %vm878_vm9 = vcmp.lt.s32.totalorder %v11414_v1, 0  ;;  %v11511_v15 = vadd.s32 24, %v11414_v1  ;;  %14018 = vst [vmem:[#allocation27_spill] sm:$0xff] %v11514_v11  ;;  %v11603_v43 = vsub.s32 %v11361_v59, %v458_v40  ;;  %v436_v26 = vmul.u32 24, %v435_v9 }
 0x231   : > { %13998 = vst [vmem:[#allocation19_spill] sm:$0xff] %v11411_v32  ;;  %v14009_v62 = vsel %vm11475_vm7, 4294967295, %v14008_v62  ;;  %vm11503_vm13 = vmand %vm880_vm6, %vm832_vm4  ;;  %vm881_vm4 = vcmp.lt.s32.totalorder %v11523_v19, 0  ;;  %vm836_vm6 = vcmp.ne.s32.totalorder %v11550_v50, 0  ;;  %v446_v8 = vshrl.u32 %v11494_v39, 4 }
 0x232   : > { %14010 = vst [vmem:[#allocation23_spill] sm:$0xff] %v14009_v62  ;;  %v14014_v22 = vsel %vm11503_vm13, 4294967295, %v14013_v22  ;;  %14017 = vst [vmem:[#allocation26_spill] sm:$0xff] %v11511_v15  ;;  %v469_v18 = vmul.u32 24, %v468_v16  ;;  %v11607_v2 = vmul.u32.u64.low 2863311531, %v11575_v34  ;;  %v11608_v12 = vmul.u32.u64.high 2863311531, %v11575_v34, %v11607_v2 }
 0x233   : > { %14015 = vst [vmem:[#allocation24_spill] sm:$0xff] %v14014_v22  ;;  %vm11518_vm14 = vmand %vm878_vm9, %vm830_vm8  ;;  %vm884_vm8 = vcmp.lt.s32.totalorder %v11550_v50, 0  ;;  %v11611_v45 = vadd.s32 136, %v11277_v44  ;;  %v501_v28 = vshrl.u32 %v11527_v7, 4  ;;  %v11619_v59 = vadd.s32 176, %v11277_v44 }
 0x234   : > { %v14020_v14 = vsel %vm11518_vm14, 4294967295, %v14019_v14  ;;  %14029 = vst [vmem:[#allocation34_spill] sm:$0xff] %v11603_v43  ;;  %v11623_v39 = vmul.u32.u64.low 2863311531, %v11599_v52  ;;  %v11624_v40 = vmul.u32.u64.high 2863311531, %v11599_v52, %v11623_v39  ;;  %v11627_v9 = vadd.s32 160, %v11277_v44  ;;  %vm11683_vm12 = vmand %vm881_vm4, %vm833_vm3 }
 0x235   : > { %v11632_v16 = vadd.s32 24, %v11589_v4  ;;  %v11636_v7 = vsub.s32 %v11387_v41, %v436_v26  ;;  %v447_v47 = vmul.u32 24, %v446_v8  ;;  %v11641_v6 = vsub.s32 %v11394_v54, %v469_v18  ;;  %vm11697_vm10 = vmand %vm884_vm8, %vm836_vm6 }
 0x236   : > { %v11644_v39 = vmul.u32.u64.low 2863311531, %v11611_v45  ;;  %v11645_v56 = vmul.u32.u64.high 2863311531, %v11611_v45, %v11644_v39  ;;  %v502_v23 = vmul.u32 24, %v501_v28  ;;  %v11657_v26 = vadd.s32 168, %v11277_v44 }
 0x237   : > { %14032 = vst [vmem:[#allocation37_spill] sm:$0xff] %v11636_v7  ;;  %14034 = vst [vmem:[#allocation39_spill] sm:$0xff] %v11641_v6  ;;  %v11663_v54 = vmul.u32.u64.low 2863311531, %v11627_v9  ;;  %v11664_v18 = vmul.u32.u64.high 2863311531, %v11627_v9, %v11663_v54  ;;  %v11667_v39 = vadd.s32 208, %v11277_v44  ;;  %v11670_v28 = vadd.s32 24, %v11603_v43 }
 0x238   : > { %v14039_v54 = vmov 0  ;;  %vm14045_vm4 = vcmp.ne.s32.totalorder %v11589_v4, 0  ;;  %vm14046_vm9 = vcmp.lt.s32.totalorder %v11589_v4, 0  ;;  %vm14050_vm8 = vcmp.ne.s32.totalorder %v11603_v43, 0 }
 0x239   : > { %14037 = vst [vmem:[#allocation42_spill] sm:$0xff] %v11670_v28  ;;  %v14040_v54 = vsel %vm11683_vm12, 4294967295, %v14039_v54  ;;  %vm11713_vm1 = vmand %vm14046_vm9, %vm14045_vm4  ;;  %vm14051_vm3 = vcmp.lt.s32.totalorder %v11603_v43, 0  ;;  %vm14056_vm6 = vcmp.ne.s32.totalorder %v11636_v7, 0  ;;  %vm14057_vm7 = vcmp.lt.s32.totalorder %v11636_v7, 0 }
 0x23a   : > { %vm11729_vm13 = vmand %vm14051_vm3, %vm14050_vm8  ;;  %v11753_v53 = vadd.s32 24, %v11641_v6  ;;  %v490_v62 = vshrl.u32 %v11645_v56, 4  ;;  %vm14064_vm3 = vcmp.ne.s32.totalorder %v11641_v6, 0  ;;  %vm14065_vm8 = vcmp.lt.s32.totalorder %v11641_v6, 0 }
 0x23b   : > { %vm11745_vm14 = vmand %vm14057_vm7, %vm14056_vm6  ;;  %v14072_v15 = vmov 0 }
 0x23c   : > { %14062 = vst [vmem:[#allocation51_spill] sm:$0xff] %v11753_v53  ;;  %vm11762_vm4 = vmand %vm14065_vm8, %vm14064_vm3  ;;  %v14110_v53 = vmov 0 }
 0x270   : > { %v11420_v49 = vpop.f32.mrb[0].mxu1 }
 0x271   : > { %v11438_v55 = vpop.f32.mrb[1].mxu1 }
 0x272   : > { %v11454_v61 = vpop.f32.mrb[2].mxu1 }
 0x273   : > { %v11469_v38 = vpop.f32.mrb[3].mxu1 }
 0x274   : > { %14007 = vst [vmem:[#allocation22_spill] sm:$0xff] %v11469_v38 }
 0x278   : > { %v11552_v13 = vpop.f32.mrb[4].mxu1 }
 0x279   : > { %14025 = vst [vmem:[#allocation30_spill] sm:$0xff] %v11552_v13  ;;  %v11563_v17 = vpop.f32.mrb[5].mxu1  ;;  %v512_v13 = vshrl.u32 %v11624_v40, 4 }
 0x27a   : > { %14026 = vst [vmem:[#allocation31_spill] sm:$0xff] %v11563_v17  ;;  %v11577_v35 = vpop.f32.mrb[6].mxu1 }
 0x27b   : > { %14027 = vst [vmem:[#allocation32_spill] sm:$0xff] %v11577_v35  ;;  %v11591_v27 = vpop.f32.mrb[7].mxu1 }
 0x27c   : > { %14028 = vst [vmem:[#allocation33_spill] sm:$0xff] %v11591_v27  ;;  %v11653_v27 = vmul.u32.u64.low 2863311531, %v11619_v59  ;;  %v11654_v41 = vmul.u32.u64.high 2863311531, %v11619_v59, %v11653_v27 }
 0x27d   : > { %v11674_v27 = vsub.s32 %v11436_v0, %v447_v47  ;;  %v14041_v0 = vmov 0  ;;  %v11703_v47 = vsub.s32 %v11467_v33, %v502_v23 }
 0x27e   : > { %v14042_v0 = vsel %vm11697_vm10, 4294967295, %v14041_v0  ;;  %v11720_v60 = vmul.u32.u64.low 2863311531, %v11667_v39  ;;  %v11721_v33 = vmul.u32.u64.high 2863311531, %v11667_v39, %v11720_v60 }
 0x27f   : > { %14038 = vst [vmem:[#allocation43_spill] sm:$0xff] %v11674_v27  ;;  %14043 = vst [vmem:[#allocation44_spill] sm:$0xff] %v14042_v0  ;;  %vm838_vm9 = vcmp.ne.s32.totalorder %v11674_v27, 0  ;;  %v14058_v60 = vmov 0  ;;  %v11767_v38 = vadd.s32 24, %v11674_v27  ;;  %vm843_vm7 = vcmp.ne.s32.totalorder %v11703_v47, 0 }
 0x280   : > { %v11629_v2 = vpop.f32.mrb[8].mxu1  ;;  %14044 = vst [vmem:[#allocation45_spill] sm:$0xff] %v11703_v47  ;;  %v14059_v60 = vsel %vm11745_vm14, 4294967295, %v14058_v60  ;;  %vm891_vm6 = vcmp.lt.s32.totalorder %v11703_v47, 0  ;;  %vm14071_vm3 = vcmp.lt.s32.totalorder %v11674_v27, 0  ;;  %v11800_v50 = vadd.s32 24, %v11703_v47 }
 0x281   : > { %14031 = vst [vmem:[#allocation36_spill] sm:$0xff] %v11629_v2  ;;  %v11638_v36 = vpop.f32.mrb[9].mxu1  ;;  %v11648_v2 = vadd.s32 184, %v11277_v44  ;;  %14060 = vst [vmem:[#allocation49_spill] sm:$0xff] %v14059_v60  ;;  %v14114_v27 = vmov 0  ;;  %v14136_v60 = vmov 0 }
 0x282   : > { %14033 = vst [vmem:[#allocation38_spill] sm:$0xff] %v11638_v36  ;;  %v11650_v11 = vpop.f32.mrb[10].mxu1  ;;  %14069 = vst [vmem:[#allocation54_spill] sm:$0xff] %v11767_v38  ;;  %v14132_v38 = vmov 0  ;;  %v12069_v0 = vadd.s32 272, %v11277_v44 }
 0x283   : > { %14035 = vst [vmem:[#allocation40_spill] sm:$0xff] %v11650_v11  ;;  %v11659_v8 = vpop.f32.mrb[11].mxu1  ;;  %v11677_v11 = vadd.s32 192, %v11277_v44  ;;  %v11690_v36 = vmul.u32.u64.low 2863311531, %v11648_v2  ;;  %v11691_v35 = vmul.u32.u64.high 2863311531, %v11648_v2, %v11690_v36  ;;  %vm11786_vm8 = vmand %vm14071_vm3, %vm838_vm9 }
 0x284   : > { %14036 = vst [vmem:[#allocation41_spill] sm:$0xff] %v11659_v8  ;;  %v479_v8 = vshrl.u32 %v11608_v12, 4  ;;  %v11706_v17 = vmul.u32.u64.low 2863311531, %v11657_v26  ;;  %v11707_v12 = vmul.u32.u64.high 2863311531, %v11657_v26, %v11706_v17  ;;  %v14047_v36 = vmov 0  ;;  %14075 = vst [vmem:[#allocation57_spill] sm:$0xff] %v11800_v50 }
 0x285   : > { %v14048_v36 = vsel %vm11713_vm1, 4294967295, %v14047_v36  ;;  %v14052_v17 = vmov 0  ;;  %v11736_v40 = vmul.u32.u64.low 2863311531, %v11677_v11  ;;  %v11737_v31 = vmul.u32.u64.high 2863311531, %v11677_v11, %v11736_v40  ;;  %vm11813_vm9 = vmand %vm891_vm6, %vm843_vm7 }
 0x286   : > { %v14053_v17 = vsel %vm11729_vm13, 4294967295, %v14052_v17  ;;  %v480_v32 = vmul.u32 24, %v479_v8  ;;  %v545_v8 = vshrl.u32 %v11654_v41, 4  ;;  %v14073_v15 = vsel %vm11786_vm8, 4294967295, %v14072_v15 }
 0x287   : > { %14054 = vst [vmem:[#allocation47_spill] sm:$0xff] %v14053_v17  ;;  %14074 = vst [vmem:[#allocation56_spill] sm:$0xff] %v14073_v15  ;;  %v513_v41 = vmul.u32 24, %v512_v13  ;;  %v556_v43 = vshrl.u32 %v11691_v35, 4 }
 0x288   : > { %v11723_v23 = vpop.f32.mrb[12].mxu1  ;;  %v11818_v1 = vsub.s32 %v11575_v34, %v480_v32  ;;  %v546_v17 = vmul.u32 24, %v545_v8  ;;  %v11835_v34 = vadd.s32 200, %v11277_v44  ;;  %v567_v8 = vshrl.u32 %v11737_v31, 4 }
 0x289   : > { %14049 = vst [vmem:[#allocation46_spill] sm:$0xff] %v11723_v23  ;;  %v11739_v22 = vpop.f32.mrb[13].mxu1  ;;  %v11750_v23 = vadd.s32 24, %v11636_v7  ;;  %v534_v7 = vshrl.u32 %v11707_v12, 4  ;;  %v11845_v12 = vmul.u32.u64.low 2863311531, %v11803_v21  ;;  %v11846_v13 = vmul.u32.u64.high 2863311531, %v11803_v21, %v11845_v12 }
 0x28a   : > { %14055 = vst [vmem:[#allocation48_spill] sm:$0xff] %v11739_v22  ;;  %v11756_v40 = vpop.f32.mrb[14].mxu1  ;;  %v14066_v22 = vmov 0  ;;  %v11858_v28 = vadd.s32 24, %v11818_v1  ;;  %v11861_v31 = vsub.s32 %v11619_v59, %v546_v17  ;;  %v11864_v12 = vadd.s32 240, %v11277_v44 }
 0x28b   : > { %14061 = vst [vmem:[#allocation50_spill] sm:$0xff] %v11750_v23  ;;  %14063 = vst [vmem:[#allocation52_spill] sm:$0xff] %v11756_v40  ;;  %v14067_v22 = vsel %vm11762_vm4, 4294967295, %v14066_v22  ;;  %v11772_v56 = vpop.f32.mrb[15].mxu1  ;;  %v491_v40 = vmul.u32 24, %v490_v62  ;;  %v11831_v23 = vsub.s32 %v11599_v52, %v513_v41  ;;  %v589_v62 = vshrl.u32 %v11721_v33, 4 }
 0x28c   : > { %14068 = vst [vmem:[#allocation53_spill] sm:$0xff] %v14067_v22  ;;  %14070 = vst [vmem:[#allocation55_spill] sm:$0xff] %v11772_v56  ;;  %v523_v56 = vshrl.u32 %v11664_v18, 4  ;;  %v14076_v18 = vmov 0  ;;  %v568_v59 = vmul.u32 24, %v567_v8  ;;  %vm14084_vm6 = vcmp.ne.s32.totalorder %v11818_v1, 0 }
 0x28d   : > { %v14077_v18 = vsel %vm11813_vm9, 4294967295, %v14076_v18  ;;  %14079 = vst [vmem:[#allocation59_spill] sm:$0xff] %v11831_v23  ;;  %v11853_v33 = vsub.s32 %v11611_v45, %v491_v40  ;;  %v590_v45 = vmul.u32 24, %v589_v62  ;;  %v11881_v17 = vadd.s32 24, %v11831_v23 }
 0x28e   : > { %14078 = vst [vmem:[#allocation58_spill] sm:$0xff] %v14077_v18  ;;  %v524_v32 = vmul.u32 24, %v523_v56  ;;  %v557_v56 = vmul.u32 24, %v556_v43  ;;  %vm14085_vm3 = vcmp.lt.s32.totalorder %v11818_v1, 0  ;;  %vm895_vm9 = vcmp.lt.s32.totalorder %v11861_v31, 0 }
 0x28f   : > { %v11872_v43 = vmul.u32.u64.low 2863311531, %v11835_v34  ;;  %v11873_v40 = vmul.u32.u64.high 2863311531, %v11835_v34, %v11872_v43  ;;  %v11893_v62 = vmul.u32.u64.low 2863311531, %v11864_v12  ;;  %v11894_v8 = vmul.u32.u64.high 2863311531, %v11864_v12, %v11893_v62  ;;  %vm11900_vm13 = vmand %vm14085_vm3, %vm14084_vm6 }
 0x290   : > { %v11837_v35 = vpop.f32.mrb[16].mxu1  ;;  %v11869_v47 = vsub.s32 %v11627_v9, %v524_v32  ;;  %v11886_v9 = vsub.s32 %v11648_v2, %v557_v56  ;;  %v11908_v2 = vsub.s32 %v11667_v39, %v590_v45  ;;  %vm14090_vm8 = vcmp.ne.s32.totalorder %v11831_v23, 0 }
 0x291   : > { %14080 = vst [vmem:[#allocation60_spill] sm:$0xff] %v11837_v35  ;;  %v11848_v52 = vpop.f32.mrb[17].mxu1  ;;  %v535_v35 = vmul.u32 24, %v534_v7  ;;  %v11878_v7 = vadd.s32 224, %v11277_v44  ;;  %vm14091_vm14 = vcmp.lt.s32.totalorder %v11831_v23, 0  ;;  %v11921_v56 = vsub.s32 %v11677_v11, %v568_v59 }
 0x292   : > { %14081 = vst [vmem:[#allocation61_spill] sm:$0xff] %v11848_v52  ;;  %v11855_v41 = vpop.f32.mrb[18].mxu1  ;;  %14088 = vst [vmem:[#allocation64_spill] sm:$0xff] %v11908_v2  ;;  %v600_v62 = vshrl.u32 %v11846_v13, 4  ;;  %vm14096_vm6 = vcmp.ne.s32.totalorder %v11853_v33, 0  ;;  %vm14097_vm3 = vcmp.lt.s32.totalorder %v11853_v33, 0  ;;  %v14113_v22 = vsel %vm11460_vm5, %v11397_v48, %v11367_v3 }
 0x293   : > { %14082 = vst [vmem:[#allocation62_spill] sm:$0xff] %v11855_v41  ;;  %v11866_v52 = vpop.f32.mrb[19].mxu1  ;;  %v11890_v32 = vsub.s32 %v11657_v26, %v535_v35  ;;  %vm11916_vm10 = vmand %vm14091_vm14, %vm14090_vm8  ;;  %v11944_v11 = vadd.s32 248, %v11277_v44  ;;  %vm14101_vm7 = vcmp.ne.s32.totalorder %v11861_v31, 0  ;;  %v11957_v59 = vadd.s32 24, %v11861_v31 }
 0x294   : > { %14083 = vst [vmem:[#allocation63_spill] sm:$0xff] %v11866_v52  ;;  %14094 = vst [vmem:[#allocation66_spill] sm:$0xff] %v11921_v56  ;;  %v11925_v52 = vmul.u32.u64.low 2863311531, %v11878_v7  ;;  %v11926_v41 = vmul.u32.u64.high 2863311531, %v11878_v7, %v11925_v52  ;;  %vm14105_vm14 = vcmp.ne.s32.totalorder %v11869_v47, 0  ;;  %vm14106_vm1 = vcmp.lt.s32.totalorder %v11869_v47, 0 }
 0x295   : > { %vm11934_vm4 = vmand %vm14097_vm3, %vm14096_vm6  ;;  %v14102_v52 = vmov 0  ;;  %v11975_v18 = vadd.s32 24, %v11869_v47  ;;  %v578_v6 = vshrl.u32 %v11873_v40, 4  ;;  %vm14118_vm8 = vcmp.lt.s32.totalorder %v11886_v9, 0 }
 0x296   : > { %vm11952_vm6 = vmand %vm895_vm9, %vm14101_vm7  ;;  %vm897_vm12 = vcmp.lt.s32.totalorder %v11921_v56, 0  ;;  %vm14121_vm5 = vcmp.ne.s32.totalorder %v11890_v32, 0  ;;  %v14123_v3 = vmov 0  ;;  %v12020_v48 = vadd.s32 24, %v11890_v32 }
 0x297   : > { %v14103_v52 = vsel %vm11952_vm6, 4294967295, %v14102_v52  ;;  %vm11970_vm9 = vmand %vm14106_vm1, %vm14105_vm14  ;;  %vm11994_vm1 = vcmp.lt.s32.totalorder %v14113_v22, 16  ;;  %vm14117_vm14 = vcmp.ne.s32.totalorder %v11886_v9, 0  ;;  %v12023_v46 = vadd.s32 24, %v11908_v2 }
 0x298   : > { %v11910_v26 = vpop.f32.mrb[20].mxu1  ;;  %v14115_v27 = vsel %vm11994_vm1, 4294967295, %v14114_v27  ;;  %vm12002_vm7 = vmand %vm14118_vm8, %vm14117_vm14  ;;  %vm14122_vm1 = vcmp.lt.s32.totalorder %v11890_v32, 0  ;;  %v14126_v40 = vsel %vm11406_vm15, %v11357_v24, %v11325_v57  ;;  %vm14131_vm14 = vcmp.lt.s32.totalorder %v11908_v2, 0 }
 0x299   : > { %14089 = vst [vmem:[#allocation65_spill] sm:$0xff] %v11910_v26  ;;  %v11928_v39 = vpop.f32.mrb[21].mxu1  ;;  %v11939_v26 = vadd.s32 24, %v11853_v33  ;;  %14116 = vst [vmem:[#allocation71_spill] sm:$0xff] %v14115_v27  ;;  %v14120_v10 = vsel %vm12002_vm7, 4294967295, %v14119_v10  ;;  %vm12034_vm8 = vcmp.lt.s32.totalorder %v14126_v40, 16  ;;  %vm14199_vm6 = vnez %v14048_v36 }
 0x29a   : > { %14095 = vst [vmem:[#allocation67_spill] sm:$0xff] %v11928_v39  ;;  %v11946_v13 = vpop.f32.mrb[22].mxu1  ;;  %v11962_v39 = vadd.s32 232, %v11277_v44  ;;  %14125 = vst [vmem:[#allocation72_spill] sm:$0xff] %v12023_v46  ;;  %v633_v29 = vshrl.u32 %v11894_v8, 4  ;;  %v579_v8 = vmul.u32 24, %v578_v6 }
 0x29b   : > { %14100 = vst [vmem:[#allocation68_spill] sm:$0xff] %v11946_v13  ;;  %v11964_v50 = vpop.f32.mrb[23].mxu1  ;;  %v14107_v13 = vmov 0  ;;  %v14140_v40 = vmov 0  ;;  %v611_v30 = vshrl.u32 %v11926_v41, 4  ;;  %v12126_v41 = vadd.s32 256, %v11277_v44 }
 0x29c   : > { %14104 = vst [vmem:[#allocation69_spill] sm:$0xff] %v11964_v50  ;;  %v14108_v13 = vsel %vm11970_vm9, 4294967295, %v14107_v13  ;;  %v14109_v50 = vsel %vm11426_vm0, %v11365_v58, %v11335_v42  ;;  %v12007_v42 = vadd.s32 24, %v11886_v9  ;;  %vm849_vm0 = vcmp.ne.s32.totalorder %v11921_v56, 0 }
 0x29d   : > { %vm11985_vm3 = vcmp.lt.s32.totalorder %v14109_v50, 16  ;;  %v601_v58 = vmul.u32 24, %v600_v62  ;;  %v12026_v22 = vmul.u32.u64.low 2863311531, %v11944_v11  ;;  %v12027_v50 = vmul.u32.u64.high 2863311531, %v11944_v11, %v12026_v22  ;;  %vm12064_vm15 = vmand %vm897_vm12, %vm849_vm0 }
 0x29e   : > { %v14111_v53 = vsel %vm11985_vm3, 4294967295, %v14110_v53  ;;  %vm12015_vm3 = vmand %vm14122_vm1, %vm14121_vm5  ;;  %v14127_v62 = vmov 0  ;;  %vm14130_vm1 = vcmp.ne.s32.totalorder %v11908_v2, 0  ;;  %v12047_v22 = vadd.s32 24, %v11921_v56 }
 0x29f   : > { %14112 = vst [vmem:[#allocation70_spill] sm:$0xff] %v14111_v53  ;;  %v14124_v3 = vsel %vm12015_vm3, 4294967295, %v14123_v3  ;;  %v14128_v62 = vsel %vm12034_vm8, 4294967295, %v14127_v62  ;;  %vm12042_vm5 = vmand %vm14131_vm14, %vm14130_vm1  ;;  %v12051_v57 = vmul.u32.u64.low 2863311531, %v11962_v39  ;;  %v12052_v24 = vmul.u32.u64.high 2863311531, %v11962_v39, %v12051_v57 }
 0x2a0   : > { %14129 = vst [vmem:[#allocation73_spill] sm:$0xff] %v14128_v62  ;;  %v14133_v38 = vsel %vm12042_vm5, 4294967295, %v14132_v38  ;;  %14135 = vst [vmem:[#allocation75_spill] sm:$0xff] %v12047_v22  ;;  %v14137_v60 = vsel %vm12064_vm15, 4294967295, %v14136_v60  ;;  %v14139_v57 = vsel %vm11444_vm2, %v11378_v5, %v11340_v20  ;;  %v12089_v23 = vsub.s32 %v11803_v21, %v601_v58  ;;  %v14153_v21 = vld [vmem:[#allocation20_spill] sm:$0xff] }
 0x2a1   : > { %14134 = vst [vmem:[#allocation74_spill] sm:$0xff] %v14133_v38  ;;  %14138 = vst [vmem:[#allocation76_spill] sm:$0xff] %v14137_v60  ;;  %vm12076_vm1 = vcmp.lt.s32.totalorder %v14139_v57, 16  ;;  %v8881_v20 = vpop.f32.mrb[0].mxu0  ;;  %v14145_v5 = vsel %vm11486_vm11, %v11497_v37, %v11380_v63  ;;  %v14146_v57 = vmov 0  ;;  %v634_v15 = vmul.u32 24, %v633_v29 }
 0x2a2   : > { %v14141_v40 = vsel %vm12076_vm1, 4294967295, %v14140_v40  ;;  %14143 = vst [vmem:[#allocation78_spill] sm:$0xff] %v12089_v23  ;;  %v12110_v58 = vadd.f32 %v8881_v20, %v11420_v49  ;;  %v6536_v6 = vpop.f32.mrb[1].mxu0  ;;  %vm12117_vm2 = vcmp.lt.s32.totalorder %v14145_v5, 16  ;;  %v12132_v20 = vsub.s32 %v11835_v34, %v579_v8  ;;  %v14152_v29 = vld [vmem:[#allocation26_spill] sm:$0xff] }
 0x2a3   : > { %14142 = vst [vmem:[#allocation77_spill] sm:$0xff] %v14141_v40  ;;  %v14147_v57 = vsel %vm12117_vm2, 4294967295, %v14146_v57  ;;  %v12129_v49 = vadd.f32 %v6536_v6, %v11438_v55  ;;  %v8882_v51 = vpop.f32.mrb[2].mxu0  ;;  %v12135_v63 = vmul.u32.u64.low 2863311531, %v12069_v0  ;;  %v12136_v37 = vmul.u32.u64.high 2863311531, %v12069_v0, %v12135_v63  ;;  %v14158_v6 = vld [vmem:[#allocation22_spill] sm:$0xff] }
 0x2a4   : > { %14144 = vst [vmem:[#allocation79_spill] sm:$0xff] %v12110_v58  ;;  %14148 = vst [vmem:[#allocation80_spill] sm:$0xff] %v14147_v57  ;;  %v12139_v5 = vadd.f32 %v8882_v51, %v11454_v61  ;;  %v6539_v2 = vpop.f32.mrb[3].mxu0  ;;  %vm14151_vm11 = vnez %v14020_v14  ;;  %v14155_v55 = vmov 0  ;;  %v612_v34 = vmul.u32 24, %v611_v30  ;;  %v14160_v51 = vld [vmem:[#allocation23_spill] sm:$0xff] }
 0x2a5   : > { %14149 = vst [vmem:[#allocation81_spill] sm:$0xff] %v12129_v49  ;;  %v14154_v46 = vsel %vm14151_vm11, %v14152_v29, %v14153_v21  ;;  %v12152_v8 = vadd.s32 280, %v11277_v44  ;;  %v12155_v61 = vadd.f32 %v6539_v2, %v14158_v6  ;;  %v12159_v14 = vadd.s32 24, %v12089_v23  ;;  %v14162_v63 = vld [vmem:[#allocation19_spill] sm:$0xff]  ;;  %v14163_v30 = vld [vmem:[#allocation17_spill] sm:$0xff] }
 0x2a6   : > { %14150 = vst [vmem:[#allocation82_spill] sm:$0xff] %v12139_v5  ;;  %vm12146_vm12 = vcmp.lt.s32.totalorder %v14154_v46, 16  ;;  %v644_v46 = vshrl.u32 %v12027_v50, 4  ;;  %v7928_v21 = vpack.c.bf16 %v12139_v5, %v12110_v58  ;;  %vm14161_vm11 = vnez %v14160_v51 }
 0x2a7   : > { %v14156_v55 = vsel %vm12146_vm12, 4294967295, %v14155_v55  ;;  %14159 = vst [vmem:[#allocation20_spill] sm:$0xff] %v12155_v61  ;;  %v14164_v29 = vsel %vm14161_vm11, %v14162_v63, %v14163_v30  ;;  %v14165_v38 = vmov 0  ;;  %v12174_v2 = vsub.s32 %v11864_v12, %v634_v15  ;;  %v14171_v12 = vld [vmem:[#allocation24_spill] sm:$0xff]  ;;  %v14174_v30 = vld [vmem:[#allocation18_spill] sm:$0xff] }
 0x2a8   : > { %14157 = vst [vmem:[#allocation26_spill] sm:$0xff] %v14156_v55  ;;  %vm12169_vm0 = vcmp.lt.s32.totalorder %v14164_v29, 16  ;;  %v622_v6 = vshrl.u32 %v12052_v24, 4  ;;  %v12178_v56 = vadd.s32 264, %v11277_v44  ;;  %vm14169_vm14 = vnez %v14111_v53  ;;  %8040 = vst [vmem:[%s12191_s23 + $0x8] sm:$0xff] %v7928_v21   ;;  %v14173_v24 = vld [vmem:[#allocation25_spill] sm:$0xff] }
 0x2a9   : > { %v14166_v38 = vsel %vm12169_vm0, 4294967295, %v14165_v38  ;;  %14168 = vst [vmem:[#allocation23_spill] sm:$0xff] %v12174_v2  ;;  %v7255_v50 = vsel %vm14169_vm14, %v12129_v49, 0.0  ;;  %v7923_v51 = vpack.c.bf16 %v12155_v61, %v12129_v49  ;;  %vm14170_vm11 = vnez %v14115_v27  ;;  %v14184_v49 = vld [vmem:[#allocation30_spill] sm:$0xff]  ;;  %v14232_v55 = vld [vmem:[#allocation37_spill] sm:$0xff] }
 0x2aa   : > { %14167 = vst [vmem:[#allocation22_spill] sm:$0xff] %v14166_v38  ;;  %v7256_v63 = vsel %vm14170_vm11, %v12155_v61, 0.0  ;;  %vm14172_vm15 = vnez %v14171_v12  ;;  %v14176_v53 = vmov 0  ;;  %vm14179_vm11 = vcmp.ne.s32.totalorder %v12089_v23, 0  ;;  %v8885_v12 = vpop.f32.mrb[4].mxu0 }
 0x2ab   : > { %v7303_v15 = vadd.f32 %v7256_v63, %v7255_v50  ;;  %v14175_v29 = vsel %vm14172_vm15, %v14173_v24, %v14174_v30  ;;  %vm14180_vm5 = vcmp.lt.s32.totalorder %v12089_v23, 0  ;;  %v14181_v27 = vmov 0  ;;  %7924 = vst [vmem:[%s12191_s23] sm:$0xff] %v7923_v51   ;;  %v6552_v60 = vpop.f32.mrb[5].mxu0 }
 0x2ac   : > { %vm12199_vm14 = vcmp.lt.s32.totalorder %v14175_v29, 16  ;;  %vm12207_vm7 = vmand %vm14180_vm5, %vm14179_vm11  ;;  %v12213_v21 = vadd.s32 24, %v12132_v20  ;;  %v12216_v50 = vsub.s32 %v11878_v7, %v612_v34  ;;  %v7257_v63 = vsel %vm12034_vm8, %v12110_v58, 0.0  ;;  %v14244_v58 = vld [vmem:[#allocation43_spill] sm:$0xff] }
 0x2ad   : > { %v14177_v53 = vsel %vm12199_vm14, 4294967295, %v14176_v53  ;;  %v14182_v27 = vsel %vm12207_vm7, 4294967295, %v14181_v27  ;;  %v645_v24 = vmul.u32 24, %v644_v46  ;;  %v7304_v61 = vadd.f32 %v7303_v15, %v7257_v63  ;;  %v8886_v15 = vpop.f32.mrb[6].mxu0 }
 0x2ae   : > { %14178 = vst [vmem:[#allocation19_spill] sm:$0xff] %v14177_v53  ;;  %14183 = vst [vmem:[#allocation17_spill] sm:$0xff] %v12216_v50  ;;  %v12223_v30 = vmul.u32.u64.low 2863311531, %v12126_v41  ;;  %v12224_v29 = vmul.u32.u64.high 2863311531, %v12126_v41, %v12223_v30  ;;  %v12227_v22 = vadd.f32 %v8885_v12, %v14184_v49  ;;  %vm14186_vm5 = vnez %v14040_v54  ;;  %v14191_v49 = vld [vmem:[#allocation31_spill] sm:$0xff]  ;;  %v14197_v12 = vld [vmem:[#allocation32_spill] sm:$0xff] }
 0x2af   : > { %v14187_v7 = vsel %vm14186_vm5, %v11595_v25, %v11523_v19  ;;  %v14188_v34 = vmov 0  ;;  %v7258_v46 = vsel %vm12076_vm1, %v12139_v5, 0.0  ;;  %v12244_v51 = vadd.f32 %v6552_v60, %v14191_v49  ;;  %v6555_v60 = vpop.f32.mrb[7].mxu0  ;;  %v14241_v5 = vld [vmem:[#allocation56_spill] sm:$0xff] }
 0x2b0   : > { %14185 = vst [vmem:[#allocation24_spill] sm:$0xff] %v12227_v22  ;;  %vm12234_vm15 = vcmp.lt.s32.totalorder %v14187_v7, 16  ;;  %vm14193_vm5 = vcmp.ne.s32.totalorder %v12132_v20, 0  ;;  %vm14194_vm8 = vcmp.lt.s32.totalorder %v12132_v20, 0  ;;  %v14195_v25 = vmov 0 }
 0x2b1   : > { %v14189_v34 = vsel %vm12234_vm15, 4294967295, %v14188_v34  ;;  %14192 = vst [vmem:[#allocation18_spill] sm:$0xff] %v12244_v51  ;;  %vm12254_vm11 = vmand %vm14194_vm8, %vm14193_vm5  ;;  %v623_v54 = vmul.u32 24, %v622_v6  ;;  %v7305_v63 = vadd.f32 %v7304_v61, %v7258_v46  ;;  %v12259_v30 = vadd.f32 %v8886_v15, %v14197_v12  ;;  %v14205_v46 = vld [vmem:[#allocation33_spill] sm:$0xff] }
 0x2b2   : > { %14190 = vst [vmem:[#allocation25_spill] sm:$0xff] %v14189_v34  ;;  %v14196_v25 = vsel %vm12254_vm11, 4294967295, %v14195_v25  ;;  %v14200_v7 = vsel %vm14199_vm6, %v11632_v16, %v11589_v4  ;;  %v14201_v49 = vmov 0  ;;  %v12271_v19 = vadd.s32 24, %v12174_v2 }
 0x2b3   : > { %14198 = vst [vmem:[#allocation30_spill] sm:$0xff] %v12259_v30  ;;  %vm12266_vm1 = vcmp.lt.s32.totalorder %v14200_v7, 16  ;;  %v677_v6 = vshrl.u32 %v12136_v37, 4  ;;  %v7259_v61 = vsel %vm12117_vm2, %v12244_v51, 0.0  ;;  %v12278_v15 = vadd.f32 %v6555_v60, %v14205_v46  ;;  %v14212_v60 = vld [vmem:[#allocation28_spill] sm:$0xff]  ;;  %v14214_v7 = vld [vmem:[#allocation27_spill] sm:$0xff] }
 0x2b4   : > { %v14202_v49 = vsel %vm12266_vm1, 4294967295, %v14201_v49  ;;  %14204 = vst [vmem:[#allocation32_spill] sm:$0xff] %v12271_v19  ;;  %vm14207_vm8 = vcmp.ne.s32.totalorder %v12174_v2, 0  ;;  %vm14208_vm6 = vcmp.lt.s32.totalorder %v12174_v2, 0  ;;  %v14209_v4 = vmov 0  ;;  %v14215_v46 = vld [vmem:[#allocation21_spill] sm:$0xff] }
 0x2b5   : > { %14203 = vst [vmem:[#allocation31_spill] sm:$0xff] %v14202_v49  ;;  %14206 = vst [vmem:[#allocation33_spill] sm:$0xff] %v12278_v15  ;;  %v12289_v16 = vsub.s32 %v11944_v11, %v645_v24  ;;  %v12292_v36 = vadd.s32 304, %v11277_v44  ;;  %v7306_v37 = vadd.f32 %v7305_v63, %v7259_v61  ;;  %v7938_v12 = vpack.c.bf16 %v12259_v30, %v12227_v22  ;;  %v14274_v19 = vld [vmem:[#allocation39_spill] sm:$0xff] }
 0x2b6   : > { %vm12284_vm5 = vmand %vm14208_vm6, %vm14207_vm8  ;;  %vm14213_vm2 = vnez %v14212_v60  ;;  %v14217_v40 = vmov 0  ;;  %v7933_v24 = vpack.c.bf16 %v12278_v15, %v12244_v51  ;;  %v7260_v63 = vsel %vm12146_vm12, %v12278_v15, 0.0  ;;  %v14220_v60 = vld [vmem:[#allocation44_spill] sm:$0xff] }
 0x2b7   : > { %v14210_v4 = vsel %vm12284_vm5, 4294967295, %v14209_v4  ;;  %v14216_v57 = vsel %vm14213_vm2, %v14214_v7, %v14215_v46  ;;  %8042 = vst [vmem:[%s12191_s23 + $0x18] sm:$0xff] %v7938_v12   ;;  %v7307_v61 = vadd.f32 %v7306_v37, %v7260_v63  ;;  %vm14221_vm7 = vnez %v14220_v60  ;;  %v14222_v7 = vld [vmem:[#allocation35_spill] sm:$0xff]  ;;  %v14223_v46 = vld [vmem:[#allocation29_spill] sm:$0xff]  ;;  %v8889_v37 = vpop.f32.mrb[8].mxu0  ;;  %v14228_v63 = vld [vmem:[#allocation36_spill] sm:$0xff] }
 0x2b8   : > { %14211 = vst [vmem:[#allocation83_spill] sm:$0xff] %v14210_v4  ;;  %vm12301_vm8 = vcmp.lt.s32.totalorder %v14216_v57, 16  ;;  %v12317_v57 = vsub.s32 %v11962_v39, %v623_v54  ;;  %v14224_v11 = vsel %vm14221_vm7, %v14222_v7, %v14223_v46  ;;  %v14225_v62 = vmov 0  ;;  %8041 = vst [vmem:[%s12191_s23 + $0x10] sm:$0xff] %v7933_v24   ;;  %v6568_v7 = vpop.f32.mrb[9].mxu0  ;;  %v14229_v46 = vld [vmem:[#allocation49_spill] sm:$0xff] }
 0x2b9   : > { %v14218_v40 = vsel %vm12301_vm8, 4294967295, %v14217_v40  ;;  %vm12325_vm6 = vcmp.lt.s32.totalorder %v14224_v11, 16  ;;  %v12334_v15 = vadd.s32 24, %v12216_v50  ;;  %v678_v39 = vmul.u32 24, %v677_v6  ;;  %v14231_v6 = vld [vmem:[#allocation50_spill] sm:$0xff] }
 0x2ba   : > { %14219 = vst [vmem:[#allocation28_spill] sm:$0xff] %v14218_v40  ;;  %v14226_v62 = vsel %vm12325_vm6, 4294967295, %v14225_v62  ;;  %v7261_v54 = vsel %vm12169_vm0, %v12227_v22, 0.0  ;;  %v655_v12 = vshrl.u32 %v12224_v29, 4  ;;  %v12344_v60 = vadd.f32 %v8889_v37, %v14228_v63  ;;  %v8890_v37 = vpop.f32.mrb[10].mxu0 }
 0x2bb   : > { %14227 = vst [vmem:[#allocation27_spill] sm:$0xff] %v14226_v62  ;;  %v7308_v11 = vadd.f32 %v7307_v61, %v7261_v54  ;;  %vm14230_vm12 = vnez %v14229_v46  ;;  %v14234_v38 = vmov 0  ;;  %v7262_v29 = vsel %vm12199_vm14, %v12259_v30, 0.0  ;;  %v14237_v61 = vld [vmem:[#allocation38_spill] sm:$0xff] }
 0x2bc   : > { %v14233_v51 = vsel %vm14230_vm12, %v14231_v6, %v14232_v55  ;;  %v12356_v24 = vmul.u32.u64.low 2863311531, %v12152_v8  ;;  %v12357_v22 = vmul.u32.u64.high 2863311531, %v12152_v8, %v12356_v24  ;;  %v12363_v54 = vadd.f32 %v6568_v7, %v14237_v61  ;;  %v6571_v6 = vpop.f32.mrb[11].mxu0 }
 0x2bd   : > { %vm12351_vm5 = vcmp.lt.s32.totalorder %v14233_v51, 16  ;;  %v12366_v63 = vadd.s32 24, %v12289_v16  ;;  %v7309_v55 = vadd.f32 %v7308_v11, %v7262_v29  ;;  %v14239_v51 = vld [vmem:[#allocation40_spill] sm:$0xff]  ;;  %vm14242_vm2 = vnez %v14241_v5  ;;  %v14243_v24 = vld [vmem:[#allocation54_spill] sm:$0xff]  ;;  %v14249_v29 = vld [vmem:[#allocation41_spill] sm:$0xff] }
 0x2be   : > { %v14235_v38 = vsel %vm12351_vm5, 4294967295, %v14234_v38  ;;  %14238 = vst [vmem:[#allocation44_spill] sm:$0xff] %v12363_v54  ;;  %v12370_v46 = vadd.f32 %v8890_v37, %v14239_v51  ;;  %v14245_v53 = vsel %vm14242_vm2, %v14243_v24, %v14244_v58  ;;  %v14246_v30 = vmov 0  ;;  %v14255_v24 = vld [vmem:[#allocation47_spill] sm:$0xff] }
 0x2bf   : > { %14236 = vst [vmem:[#allocation21_spill] sm:$0xff] %v14235_v38  ;;  %vm12377_vm7 = vcmp.lt.s32.totalorder %v14245_v53, 16  ;;  %v12383_v7 = vadd.s32 24, %v12317_v57  ;;  %v7263_v11 = vsel %vm12234_vm15, %v12363_v54, 0.0  ;;  %v12389_v61 = vadd.f32 %v6571_v6, %v14249_v29  ;;  %v14257_v6 = vld [vmem:[#allocation42_spill] sm:$0xff] }
 0x2c0   : > { %14240 = vst [vmem:[#allocation35_spill] sm:$0xff] %v12370_v46  ;;  %v14247_v30 = vsel %vm12377_vm7, 4294967295, %v14246_v30  ;;  %vm14251_vm12 = vcmp.ne.s32.totalorder %v12216_v50, 0  ;;  %vm14252_vm2 = vcmp.lt.s32.totalorder %v12216_v50, 0  ;;  %v12400_v58 = vsub.s32 %v12069_v0, %v678_v39  ;;  %v14258_v29 = vld [vmem:[#allocation34_spill] sm:$0xff] }
 0x2c1   : > { %14248 = vst [vmem:[#allocation29_spill] sm:$0xff] %v14247_v30  ;;  %14250 = vst [vmem:[#allocation36_spill] sm:$0xff] %v12389_v61  ;;  %v656_v5 = vmul.u32 24, %v655_v12  ;;  %v7310_v37 = vadd.f32 %v7309_v55, %v7263_v11  ;;  %v7948_v51 = vpack.c.bf16 %v12370_v46, %v12344_v60  ;;  %vm14256_vm14 = vnez %v14255_v24  ;;  %v14309_v30 = vld [vmem:[#allocation60_spill] sm:$0xff] }
 0x2c2   : > { %vm12395_vm0 = vmand %vm14252_vm2, %vm14251_vm12  ;;  %v14259_v34 = vsel %vm14256_vm14, %v14257_v6, %v14258_v29  ;;  %v14260_v2 = vmov 0  ;;  %vm14263_vm12 = vcmp.ne.s32.totalorder %v12289_v16, 0  ;;  %vm14264_vm2 = vcmp.lt.s32.totalorder %v12289_v16, 0 }
 0x2c3   : > { %vm12409_vm15 = vcmp.lt.s32.totalorder %v14259_v34, 16  ;;  %vm12417_vm11 = vmand %vm14264_vm2, %vm14263_vm12  ;;  %v12422_v39 = vmul.u32.u64.low 2863311531, %v12178_v56  ;;  %v12423_v12 = vmul.u32.u64.high 2863311531, %v12178_v56, %v12422_v39  ;;  %v7943_v55 = vpack.c.bf16 %v12389_v61, %v12363_v54  ;;  %8044 = vst [vmem:[%s12191_s23 + $0x28] sm:$0xff] %v7948_v51   ;;  %v14273_v54 = vld [vmem:[#allocation51_spill] sm:$0xff] }
 0x2c4   : > { %v14261_v2 = vsel %vm12409_vm15, 4294967295, %v14260_v2  ;;  %v7264_v34 = vsel %vm12266_vm1, %v12389_v61, 0.0  ;;  %vm14267_vm14 = vcmp.ne.s32.totalorder %v12317_v57, 0  ;;  %vm14268_vm3 = vcmp.lt.s32.totalorder %v12317_v57, 0  ;;  %v14271_v39 = vld [vmem:[#allocation53_spill] sm:$0xff] }
 0x2c5   : > { %14262 = vst [vmem:[#allocation49_spill] sm:$0xff] %v14261_v2  ;;  %vm12434_vm9 = vmand %vm14268_vm3, %vm14267_vm14  ;;  %v12439_v24 = vmul.u32.u64.low 2863311531, %v12292_v36  ;;  %v12440_v6 = vmul.u32.u64.high 2863311531, %v12292_v36, %v12439_v24  ;;  %v7311_v29 = vadd.f32 %v7310_v37, %v7264_v34  ;;  %vm14272_vm12 = vnez %v14271_v39  ;;  %v14278_v39 = vld [vmem:[#allocation46_spill] sm:$0xff] }
 0x2c6   : > { %v14275_v49 = vsel %vm14272_vm12, %v14273_v54, %v14274_v19  ;;  %v14276_v61 = vmov 0  ;;  %v12457_v23 = vadd.s32 288, %v11277_v44  ;;  %v12460_v51 = vadd.s32 312, %v11277_v44  ;;  %8043 = vst [vmem:[%s12191_s23 + $0x20] sm:$0xff] %v7943_v55   ;;  %v8893_v19 = vpop.f32.mrb[12].mxu0 }
 0x2c7   : > { %vm12448_vm2 = vcmp.lt.s32.totalorder %v14275_v49, 16  ;;  %v7265_v37 = vsel %vm12301_vm8, %v12344_v60, 0.0  ;;  %v12471_v54 = vsub.s32 %v12126_v41, %v656_v5  ;;  %v12474_v34 = vadd.s32 296, %v11277_v44  ;;  %v6584_v50 = vpop.f32.mrb[13].mxu0 }
 0x2c8   : > { %v14277_v61 = vsel %vm12448_vm2, 4294967295, %v14276_v61  ;;  %v7312_v24 = vadd.f32 %v7311_v29, %v7265_v37  ;;  %v12477_v4 = vadd.f32 %v8893_v19, %v14278_v39  ;;  %v14280_v55 = vsel %vm11900_vm13, %v11858_v28, %v11818_v1  ;;  %v14283_v37 = vld [vmem:[#allocation48_spill] sm:$0xff]  ;;  %v8894_v19 = vpop.f32.mrb[14].mxu0 }
 0x2c9   : > { %vm12484_vm3 = vcmp.lt.s32.totalorder %v14280_v55, 16  ;;  %v14281_v40 = vmov 0  ;;  %v688_v5 = vshrl.u32 %v12357_v22, 4  ;;  %v7266_v29 = vsel %vm12325_vm6, %v12370_v46, 0.0  ;;  %v14285_v28 = vld [vmem:[#allocation52_spill] sm:$0xff]  ;;  %v6587_v55 = vpop.f32.mrb[15].mxu0 }
 0x2ca   : > { %14279 = vst [vmem:[#allocation50_spill] sm:$0xff] %v12477_v4  ;;  %v14282_v40 = vsel %vm12484_vm3, 4294967295, %v14281_v40  ;;  %v12497_v43 = vadd.f32 %v6584_v50, %v14283_v37  ;;  %v7313_v1 = vadd.f32 %v7312_v24, %v7266_v29  ;;  %v12502_v39 = vadd.f32 %v8894_v19, %v14285_v28  ;;  %v14290_v29 = vld [vmem:[#allocation55_spill] sm:$0xff]  ;;  %v14292_v28 = vld [vmem:[#allocation58_spill] sm:$0xff] }
 0x2cb   : > { %v14286_v22 = vsel %vm11934_vm4, %v11939_v26, %v11853_v33  ;;  %v14287_v49 = vmov 0  ;;  %v12514_v50 = vmul.u32.u64.low 2863311531, %v12457_v23  ;;  %v12515_v37 = vmul.u32.u64.high 2863311531, %v12457_v23, %v12514_v50 }
 0x2cc   : > { %14284 = vst [vmem:[#allocation37_spill] sm:$0xff] %v12497_v43  ;;  %vm12509_vm12 = vcmp.lt.s32.totalorder %v14286_v22, 16  ;;  %v7267_v24 = vsel %vm12351_vm5, %v12497_v43, 0.0  ;;  %v12521_v19 = vadd.f32 %v6587_v55, %v14290_v29  ;;  %v12524_v45 = vadd.s32 24, %v12400_v58  ;;  %v14294_v22 = vld [vmem:[#allocation57_spill] sm:$0xff] }
 0x2cd   : > { %v14288_v49 = vsel %vm12509_vm12, 4294967295, %v14287_v49  ;;  %v7314_v33 = vadd.f32 %v7313_v1, %v7267_v24  ;;  %v7958_v26 = vpack.c.bf16 %v12502_v39, %v12477_v4  ;;  %vm14293_vm14 = vnez %v14292_v28  ;;  %v14295_v50 = vld [vmem:[#allocation45_spill] sm:$0xff] }
 0x2ce   : > { %14289 = vst [vmem:[#allocation38_spill] sm:$0xff] %v14288_v49  ;;  %14291 = vst [vmem:[#allocation40_spill] sm:$0xff] %v12521_v19  ;;  %v14296_v41 = vsel %vm14293_vm14, %v14294_v22, %v14295_v50  ;;  %v14297_v38 = vmov 0  ;;  %v689_v55 = vmul.u32 24, %v688_v5  ;;  %v666_v29 = vshrl.u32 %v12423_v12, 4 }
 0x2cf   : > { %vm12534_vm13 = vcmp.lt.s32.totalorder %v14296_v41, 16  ;;  %v7953_v62 = vpack.c.bf16 %v12521_v19, %v12497_v43  ;;  %v7268_v1 = vsel %vm12377_vm7, %v12521_v19, 0.0  ;;  %vm905_vm4 = vcmp.lt.s32.totalorder %v12471_v54, 0  ;;  %8046 = vst [vmem:[%s12191_s23 + $0x38] sm:$0xff] %v7958_v26   ;;  %v14300_v41 = vld [vmem:[#allocation59_spill] sm:$0xff]  ;;  %v8897_v26 = vpop.f32.mrb[16].mxu0 }
 0x2d0   : > { %v14298_v38 = vsel %vm12534_vm13, 4294967295, %v14297_v38  ;;  %v721_v24 = vshrl.u32 %v12440_v6, 4  ;;  %v7315_v28 = vadd.f32 %v7314_v33, %v7268_v1  ;;  %v14301_v5 = vsel %vm11916_vm10, %v11881_v17, %v14300_v41  ;;  %v14319_v43 = vld [vmem:[#allocation62_spill] sm:$0xff]  ;;  %v8649_v49 = vpop.f32.mrb[24].mxu1 }
 0x2d1   : > { %14299 = vst [vmem:[#allocation56_spill] sm:$0xff] %v14298_v38  ;;  %vm12552_vm14 = vcmp.lt.s32.totalorder %v14301_v5, 16  ;;  %v14302_v12 = vmov 0  ;;  %vm14305_vm5 = vcmp.ne.s32.totalorder %v12400_v58, 0  ;;  %vm14306_vm6 = vcmp.lt.s32.totalorder %v12400_v58, 0  ;;  %8045 = vst [vmem:[%s12191_s23 + $0x30] sm:$0xff] %v7953_v62  }
 0x2d2   : > { %v14303_v12 = vsel %vm12552_vm14, 4294967295, %v14302_v12  ;;  %vm12560_vm7 = vmand %vm14306_vm6, %vm14305_vm5  ;;  %v14307_v22 = vmov 0  ;;  %v12565_v6 = vmul.u32.u64.low 2863311531, %v12460_v51  ;;  %v12566_v33 = vmul.u32.u64.high 2863311531, %v12460_v51, %v12565_v6 }
 0x2d3   : > { %14304 = vst [vmem:[#allocation54_spill] sm:$0xff] %v14303_v12  ;;  %v14308_v22 = vsel %vm12560_vm7, 4294967295, %v14307_v22  ;;  %v12569_v35 = vadd.s32 336, %v11277_v44  ;;  %v7269_v17 = vsel %vm12409_vm15, %v12477_v4, 0.0  ;;  %v12576_v50 = vadd.s32 24, %v12471_v54  ;;  %v6600_v6 = vpop.f32.mrb[17].mxu0 }
 0x2d4   : > { %v12579_v1 = vmul.u32.u64.low 2863311531, %v12474_v34  ;;  %v12580_v41 = vmul.u32.u64.high 2863311531, %v12474_v34, %v12579_v1  ;;  %v7316_v5 = vadd.f32 %v7315_v28, %v7269_v17  ;;  %v12583_v19 = vadd.f32 %v8897_v26, %v14309_v30 }
 0x2d5   : > { %vm14310_vm10 = vnez %v14108_v13  ;;  %v14312_v62 = vmov 0  ;;  %vm14315_vm6 = vcmp.ne.s32.totalorder %v12471_v54, 0  ;;  %v12603_v30 = vsub.s32 %v12152_v8, %v689_v55 }
 0x2d6   : > { %v14311_v2 = vsel %vm14310_vm10, %v11975_v18, %v11869_v47  ;;  %vm12598_vm15 = vmand %vm905_vm4, %vm14315_vm6  ;;  %v667_v28 = vmul.u32 24, %v666_v29  ;;  %v7270_v47 = vsel %vm12448_vm2, %v12502_v39, 0.0  ;;  %v14318_v18 = vld [vmem:[#allocation61_spill] sm:$0xff]  ;;  %v722_v26 = vmul.u32 24, %v721_v24  ;;  %v14326_v24 = vld [vmem:[#allocation63_spill] sm:$0xff] }
 0x2d7   : > { %vm12590_vm5 = vcmp.lt.s32.totalorder %v14311_v2, 16  ;;  %v12609_v13 = vadd.f32 %v6600_v6, %v14318_v18  ;;  %v8898_v2 = vpop.f32.mrb[18].mxu0  ;;  %v7317_v4 = vadd.f32 %v7316_v5, %v7270_v47  ;;  %vm14321_vm4 = vnez %v14124_v3 }
 0x2d8   : > { %v14313_v62 = vsel %vm12590_vm5, 4294967295, %v14312_v62  ;;  %v12616_v46 = vadd.f32 %v8898_v2, %v14319_v43  ;;  %v6603_v8 = vpop.f32.mrb[19].mxu0  ;;  %v14322_v55 = vsel %vm14321_vm4, %v12020_v48, %v11890_v32  ;;  %v14323_v29 = vmov 0 }
 0x2d9   : > { %14314 = vst [vmem:[#allocation43_spill] sm:$0xff] %v14313_v62  ;;  %vm12623_vm10 = vcmp.lt.s32.totalorder %v14322_v55, 16  ;;  %v699_v6 = vshrl.u32 %v12515_v37, 4  ;;  %v12629_v18 = vadd.s32 320, %v11277_v44  ;;  %v7271_v43 = vsel %vm12484_vm3, %v12609_v13, 0.0  ;;  %v14367_v62 = vld [vmem:[#allocation64_spill] sm:$0xff] }
 0x2da   : > { %14320 = vst [vmem:[#allocation41_spill] sm:$0xff] %v12616_v46  ;;  %v14324_v29 = vsel %vm12623_vm10, 4294967295, %v14323_v29  ;;  %v12635_v5 = vadd.f32 %v6603_v8, %v14326_v24  ;;  %v12642_v3 = vadd.s32 344, %v11277_v44  ;;  %v7318_v48 = vadd.f32 %v7317_v4, %v7271_v43 }
 0x2db   : > { %14325 = vst [vmem:[#allocation47_spill] sm:$0xff] %v14324_v29  ;;  %v7968_v37 = vpack.c.bf16 %v12616_v46, %v12583_v19  ;;  %vm14327_vm6 = vnez %v14103_v52  ;;  %v14329_v2 = vmov 0  ;;  %v12657_v8 = vsub.s32 %v12178_v56, %v667_v28 }
 0x2dc   : > { %v14328_v47 = vsel %vm14327_vm6, %v11957_v59, %v11861_v31  ;;  %v7963_v4 = vpack.c.bf16 %v12635_v5, %v12609_v13  ;;  %v7272_v55 = vsel %vm12509_vm12, %v12635_v5, 0.0  ;;  %v12666_v31 = vsub.s32 %v12292_v36, %v722_v26  ;;  %v8901_v26 = vpop.f32.mrb[20].mxu0 }
 0x2dd   : > { %vm12651_vm4 = vcmp.lt.s32.totalorder %v14328_v47, 16  ;;  %8048 = vst [vmem:[%s12191_s23 + $0x48] sm:$0xff] %v7968_v37   ;;  %v7319_v52 = vadd.f32 %v7318_v48, %v7272_v55  ;;  %vm14332_vm6 = vnez %v14120_v10  ;;  %v14334_v59 = vmov 0  ;;  %v14336_v37 = vld [vmem:[#allocation65_spill] sm:$0xff]  ;;  %v6616_v55 = vpop.f32.mrb[21].mxu0 }
 0x2de   : > { %v14330_v2 = vsel %vm12651_vm4, 4294967295, %v14329_v2  ;;  %v14333_v56 = vsel %vm14332_vm6, %v12007_v42, %v11886_v9  ;;  %v12679_v28 = vadd.s32 24, %v12603_v30  ;;  %v700_v43 = vmul.u32 24, %v699_v6  ;;  %8047 = vst [vmem:[%s12191_s23 + $0x40] sm:$0xff] %v7963_v4   ;;  %v14338_v6 = vld [vmem:[#allocation76_spill] sm:$0xff]  ;;  %v14346_v4 = vld [vmem:[#allocation67_spill] sm:$0xff] }
 0x2df   : > { %14331 = vst [vmem:[#allocation42_spill] sm:$0xff] %v14330_v2  ;;  %vm12674_vm3 = vcmp.lt.s32.totalorder %v14333_v56, 16  ;;  %v732_v24 = vshrl.u32 %v12566_v33, 4  ;;  %v7273_v36 = vsel %vm12534_vm13, %v12583_v19, 0.0  ;;  %v710_v10 = vshrl.u32 %v12580_v41, 4  ;;  %v14340_v33 = vld [vmem:[#allocation75_spill] sm:$0xff] }
 0x2e0   : > { %v14335_v59 = vsel %vm12674_vm3, 4294967295, %v14334_v59  ;;  %v12688_v9 = vmul.u32.u64.low 2863311531, %v12569_v35  ;;  %v12689_v42 = vmul.u32.u64.high 2863311531, %v12569_v35, %v12688_v9  ;;  %v7320_v48 = vadd.f32 %v7319_v52, %v7273_v36  ;;  %v14341_v56 = vld [vmem:[#allocation66_spill] sm:$0xff]  ;;  %v8902_v36 = vpop.f32.mrb[22].mxu0 }
 0x2e1   : > { %v12692_v47 = vadd.f32 %v8901_v26, %v14336_v37  ;;  %vm14339_vm6 = vnez %v14338_v6  ;;  %v14343_v32 = vmov 0  ;;  %v7274_v41 = vsel %vm12552_vm14, %v12616_v46, 0.0  ;;  %v14348_v26 = vld [vmem:[#allocation68_spill] sm:$0xff]  ;;  %v6619_v37 = vpop.f32.mrb[23].mxu0  ;;  %v14377_v46 = vld [vmem:[#allocation78_spill] sm:$0xff] }
 0x2e2   : > { %v14342_v17 = vsel %vm14339_vm6, %v14340_v33, %v14341_v56  ;;  %v12709_v52 = vadd.f32 %v6616_v55, %v14346_v4  ;;  %v12714_v9 = vadd.f32 %v8902_v36, %v14348_v26  ;;  %vm14349_vm13 = vnez %v14196_v25 }
 0x2e3   : > { %14337 = vst [vmem:[#allocation34_spill] sm:$0xff] %v12692_v47  ;;  %vm12699_vm2 = vcmp.lt.s32.totalorder %v14342_v17, 16  ;;  %v7321_v17 = vadd.f32 %v7320_v48, %v7274_v41  ;;  %v14350_v6 = vsel %vm14349_vm13, %v12213_v21, %v12132_v20  ;;  %v14351_v33 = vmov 0  ;;  %v14358_v21 = vld [vmem:[#allocation69_spill] sm:$0xff] }
 0x2e4   : > { %v14344_v32 = vsel %vm12699_vm2, 4294967295, %v14343_v32  ;;  %14347 = vst [vmem:[#allocation51_spill] sm:$0xff] %v12709_v52  ;;  %vm12721_vm12 = vcmp.lt.s32.totalorder %v14350_v6, 16  ;;  %vm14354_vm14 = vcmp.ne.s32.totalorder %v12603_v30, 0  ;;  %vm14355_vm8 = vcmp.lt.s32.totalorder %v12603_v30, 0 }
 0x2e5   : > { %14345 = vst [vmem:[#allocation53_spill] sm:$0xff] %v14344_v32  ;;  %v14352_v33 = vsel %vm12721_vm12, 4294967295, %v14351_v33  ;;  %vm12729_vm1 = vmand %vm14355_vm8, %vm14354_vm14  ;;  %v12734_v48 = vadd.s32 24, %v12657_v8  ;;  %v12737_v25 = vadd.s32 328, %v11277_v44  ;;  %v7275_v20 = vsel %vm12590_vm5, %v12709_v52, 0.0 }
 0x2e6   : > { %14353 = vst [vmem:[#allocation39_spill] sm:$0xff] %v14352_v33  ;;  %v12743_v56 = vadd.f32 %v6619_v37, %v14358_v21  ;;  %vm14360_vm13 = vcmp.ne.s32.totalorder %v12657_v8, 0  ;;  %vm14361_vm8 = vcmp.lt.s32.totalorder %v12657_v8, 0  ;;  %v12754_v4 = vadd.s32 24, %v12666_v31  ;;  %v14364_v37 = vld [vmem:[#allocation74_spill] sm:$0xff]  ;;  %v14366_v21 = vld [vmem:[#allocation72_spill] sm:$0xff] }
 0x2e7   : > { %vm12749_vm14 = vmand %vm14361_vm8, %vm14360_vm13  ;;  %v12757_v36 = vsub.s32 %v12457_v23, %v700_v43  ;;  %v7322_v26 = vadd.f32 %v7321_v17, %v7275_v20  ;;  %v7978_v6 = vpack.c.bf16 %v12714_v9, %v12692_v47  ;;  %vm14365_vm6 = vnez %v14364_v37 }
 0x2e8   : > { %14359 = vst [vmem:[#allocation46_spill] sm:$0xff] %v12743_v56  ;;  %v14368_v12 = vsel %vm14365_vm6, %v14366_v21, %v14367_v62  ;;  %v14369_v38 = vmov 0  ;;  %vm14372_vm8 = vcmp.ne.s32.totalorder %v12666_v31, 0  ;;  %vm14373_vm5 = vcmp.lt.s32.totalorder %v12666_v31, 0 }
 0x2e9   : > { %vm12766_vm13 = vcmp.lt.s32.totalorder %v14368_v12, 16  ;;  %vm12774_vm7 = vmand %vm14373_vm5, %vm14372_vm8  ;;  %v733_v43 = vmul.u32 24, %v732_v24  ;;  %v711_v17 = vmul.u32 24, %v710_v10  ;;  %v7973_v20 = vpack.c.bf16 %v12743_v56, %v12709_v52  ;;  %8050 = vst [vmem:[%s12191_s23 + $0x58] sm:$0xff] %v7978_v6  }
 0x2ea   : > { %v14370_v38 = vsel %vm12766_vm13, 4294967295, %v14369_v38  ;;  %v7276_v12 = vsel %vm12623_vm10, %v12743_v56, 0.0  ;;  %v12784_v62 = vmul.u32.u64.low 2863311531, %v12629_v18  ;;  %v12785_v37 = vmul.u32.u64.high 2863311531, %v12629_v18, %v12784_v62 }
 0x2eb   : > { %14371 = vst [vmem:[#allocation48_spill] sm:$0xff] %v14370_v38  ;;  %v7323_v21 = vadd.f32 %v7322_v26, %v7276_v12  ;;  %vm14376_vm5 = vnez %v14182_v27  ;;  %v14379_v10 = vmov 0  ;;  %v12806_v6 = vadd.s32 368, %v11277_v44  ;;  %8049 = vst [vmem:[%s12191_s23 + $0x50] sm:$0xff] %v7973_v20   ;;  %v14382_v20 = vld [vmem:[#allocation17_spill] sm:$0xff] }
 0x2ec   : > { %v14378_v24 = vsel %vm14376_vm5, %v12159_v14, %v14377_v46  ;;  %v7277_v27 = vsel %vm12651_vm4, %v12692_v47, 0.0  ;;  %v8905_v14 = vpop.f32.mrb[24].mxu0  ;;  %v3985_v46 = vpop.f32.mrb[25].mxu1  ;;  %vm861_vm8 = vcmp.ne.s32.totalorder %v12757_v36, 0  ;;  %vm909_vm5 = vcmp.lt.s32.totalorder %v12757_v36, 0 }
 0x2ed   : > { %vm12793_vm6 = vcmp.lt.s32.totalorder %v14378_v24, 16  ;;  %v7324_v62 = vadd.f32 %v7323_v21, %v7277_v27  ;;  %v12818_v24 = vadd.f32 %v8905_v14, %v8649_v49  ;;  %v6632_v29 = vpop.f32.mrb[25].mxu0  ;;  %v8650_v26 = vpop.f32.mrb[26].mxu1  ;;  %v14383_v2 = vsel %vm12395_vm0, %v12334_v15, %v14382_v20 }
 0x2ee   : > { %v14380_v10 = vsel %vm12793_vm6, 4294967295, %v14379_v10  ;;  %vm12825_vm4 = vcmp.lt.s32.totalorder %v14383_v2, 16  ;;  %v14384_v47 = vmov 0  ;;  %v12830_v12 = vadd.s32 24, %v12757_v36  ;;  %v8906_v27 = vpop.f32.mrb[26].mxu0  ;;  %v3988_v53 = vpop.f32.mrb[27].mxu1 }
 0x2ef   : > { %14381 = vst [vmem:[#allocation52_spill] sm:$0xff] %v14380_v10  ;;  %v14385_v47 = vsel %vm12825_vm4, 4294967295, %v14384_v47  ;;  %v765_v56 = vshrl.u32 %v12689_v42, 4  ;;  %v7278_v49 = vsel %vm12674_vm3, %v12714_v9, 0.0  ;;  %v12836_v21 = vadd.f32 %v6632_v29, %v3985_v46  ;;  %v6635_v52 = vpop.f32.mrb[27].mxu0  ;;  %vm12859_vm3 = vmand %vm909_vm5, %vm861_vm8 }
 0x2f0   : > { %14386 = vst [vmem:[#allocation55_spill] sm:$0xff] %v14385_v47  ;;  %v12839_v14 = vsub.s32 %v12460_v51, %v733_v43  ;;  %v12842_v15 = vsub.s32 %v12474_v34, %v711_v17  ;;  %v7325_v2 = vadd.f32 %v7324_v62, %v7278_v49  ;;  %v12844_v20 = vadd.f32 %v8906_v27, %v8650_v26  ;;  %v14393_v62 = vld [vmem:[#allocation83_spill] sm:$0xff]  ;;  %v14395_v49 = vld [vmem:[#allocation32_spill] sm:$0xff]  ;;  %v8909_v0 = vpop.f32.mrb[28].mxu0 }
 0x2f1   : > { %v14387_v42 = vsel %vm12434_vm9, %v12383_v7, %v12317_v57  ;;  %v14388_v29 = vmov 0  ;;  %v12864_v34 = vmul.u32.u64.low 2863311531, %v12642_v3  ;;  %v12865_v43 = vmul.u32.u64.high 2863311531, %v12642_v3, %v12864_v34  ;;  %v14396_v27 = vld [vmem:[#allocation23_spill] sm:$0xff] }
 0x2f2   : > { %vm12851_vm0 = vcmp.lt.s32.totalorder %v14387_v42, 16  ;;  %v7279_v57 = vsel %vm12699_vm2, %v12836_v21, 0.0  ;;  %v12870_v7 = vadd.f32 %v6635_v52, %v3988_v53  ;;  %v7988_v46 = vpack.c.bf16 %v12844_v20, %v12818_v24 }
 0x2f3   : > { %v14389_v29 = vsel %vm12851_vm0, 4294967295, %v14388_v29  ;;  %v12873_v11 = vmul.u32.u64.low 2863311531, %v12737_v25  ;;  %v12874_v17 = vmul.u32.u64.high 2863311531, %v12737_v25, %v12873_v11  ;;  %v7326_v26 = vadd.f32 %v7325_v2, %v7279_v57 }
 0x2f4   : > { %14390 = vst [vmem:[#allocation58_spill] sm:$0xff] %v14389_v29  ;;  %vm14394_vm9 = vnez %v14393_v62  ;;  %v14398_v34 = vmov 0  ;;  %v766_v52 = vmul.u32 24, %v765_v56  ;;  %v12888_v53 = vadd.s32 352, %v11277_v44  ;;  %8052 = vst [vmem:[%s12191_s23 + $0x68] sm:$0xff] %v7988_v46   ;;  %v8653_v56 = vpop.f32.mrb[28].mxu1 }
 0x2f5   : > { %v14397_v42 = vsel %vm14394_vm9, %v14395_v49, %v14396_v27  ;;  %v7983_v2 = vpack.c.bf16 %v12870_v7, %v12836_v21  ;;  %v7280_v57 = vsel %vm12721_vm12, %v12870_v7, 0.0  ;;  %v743_v62 = vshrl.u32 %v12785_v37, 4 }
 0x2f6   : > { %vm12883_vm8 = vcmp.lt.s32.totalorder %v14397_v42, 16  ;;  %v7327_v49 = vadd.f32 %v7326_v26, %v7280_v57  ;;  %v14401_v27 = vsel %vm12417_vm11, %v12366_v63, %v12289_v16  ;;  %v14402_v42 = vmov 0  ;;  %v4001_v26 = vpop.f32.mrb[29].mxu1  ;;  %v6648_v57 = vpop.f32.mrb[29].mxu0 }
 0x2f7   : > { %v14399_v34 = vsel %vm12883_vm8, 4294967295, %v14398_v34  ;;  %vm12906_vm5 = vcmp.lt.s32.totalorder %v14401_v27, 16  ;;  %v12913_v11 = vadd.s32 24, %v12839_v14  ;;  %v7281_v37 = vsel %vm12766_vm13, %v12818_v24, 0.0  ;;  %8051 = vst [vmem:[%s12191_s23 + $0x60] sm:$0xff] %v7983_v2   ;;  %v8654_v27 = vpop.f32.mrb[30].mxu1 }
 0x2f8   : > { %14400 = vst [vmem:[#allocation57_spill] sm:$0xff] %v14399_v34  ;;  %v14403_v42 = vsel %vm12906_vm5, 4294967295, %v14402_v42  ;;  %vm862_vm11 = vcmp.ne.s32.totalorder %v12842_v15, 0  ;;  %vm910_vm2 = vcmp.lt.s32.totalorder %v12842_v15, 0  ;;  %v12922_v16 = vadd.s32 24, %v12842_v15  ;;  %v8910_v1 = vpop.f32.mrb[30].mxu0 }
 0x2f9   : > { %v7328_v63 = vadd.f32 %v7327_v49, %v7281_v37  ;;  %v12924_v46 = vadd.f32 %v8909_v0, %v8653_v56  ;;  %v14404_v38 = vsel %vm12598_vm15, %v12576_v50, %v12471_v54  ;;  %v14405_v2 = vmov 0  ;;  %v4004_v37 = vpop.f32.mrb[31].mxu1  ;;  %vm12973_vm9 = vmand %vm910_vm2, %vm862_vm11 }
 0x2fa   : > { %vm12931_vm12 = vcmp.lt.s32.totalorder %v14404_v38, 16  ;;  %v12936_v33 = vsub.s32 %v12569_v35, %v766_v52  ;;  %v12939_v32 = vadd.s32 376, %v11277_v44  ;;  %v7282_v49 = vsel %vm12793_vm6, %v12844_v20, 0.0  ;;  %v6651_v35 = vpop.f32.mrb[31].mxu0 }
 0x2fb   : > { %v14406_v2 = vsel %vm12931_vm12, 4294967295, %v14405_v2  ;;  %v12944_v56 = vadd.f32 %v6648_v57, %v4001_v26  ;;  %v744_v0 = vmul.u32 24, %v743_v62  ;;  %v12947_v38 = vadd.s32 360, %v11277_v44 }
 0x2fc   : > { %v7329_v54 = vadd.f32 %v7328_v63, %v7282_v49  ;;  %v12949_v50 = vadd.f32 %v8910_v1, %v8654_v27  ;;  %v14407_v52 = vsel %vm12749_vm14, %v12734_v48, %v12657_v8  ;;  %v14408_v10 = vmov 0 }
 0x2fd   : > { %vm12956_vm15 = vcmp.lt.s32.totalorder %v14407_v52, 16  ;;  %v12961_v26 = vmul.u32.u64.low 2863311531, %v12888_v53  ;;  %v12962_v62 = vmul.u32.u64.high 2863311531, %v12888_v53, %v12961_v26  ;;  %v7283_v44 = vsel %vm12825_vm4, %v12944_v56, 0.0 }
 0x2fe   : > { %v14409_v10 = vsel %vm12956_vm15, 4294967295, %v14408_v10  ;;  %v12967_v63 = vadd.f32 %v6651_v35, %v4004_v37  ;;  %v776_v48 = vshrl.u32 %v12865_v43, 4  ;;  %v754_v41 = vshrl.u32 %v12874_v17, 4 }
 0x2ff   : > { %v7330_v57 = vadd.f32 %v7329_v54, %v7283_v44  ;;  %v7998_v27 = vpack.c.bf16 %v12949_v50, %v12924_v46  ;;  %vm14412_vm14 = vnez %v14308_v22  ;;  %v14414_v1 = vmov 0 }
 0x300   : > { %v14413_v49 = vsel %vm14412_vm14, %v12524_v45, %v12400_v58  ;;  %v12991_v37 = vmul.u32.u64.low 2863311531, %v12806_v6  ;;  %v12992_v35 = vmul.u32.u64.high 2863311531, %v12806_v6, %v12991_v37  ;;  %v7993_v43 = vpack.c.bf16 %v12967_v63, %v12944_v56  ;;  %v8657_v45 = vpop.f32.mrb[32].mxu1 }
 0x301   : > { %vm12986_vm4 = vcmp.lt.s32.totalorder %v14413_v49, 16  ;;  %v7284_v17 = vsel %vm12851_vm0, %v12967_v63, 0.0  ;;  %v13000_v22 = vmul.u32.u64.low 2863311531, %v12947_v38  ;;  %v13001_v54 = vmul.u32.u64.high 2863311531, %v12947_v38, %v13000_v22  ;;  %8054 = vst [vmem:[%s12191_s23 + $0x78] sm:$0xff] %v7998_v27  }
 0x302   : > { %v14415_v1 = vsel %vm12986_vm4, 4294967295, %v14414_v1  ;;  %v7331_v58 = vadd.f32 %v7330_v57, %v7284_v17  ;;  %v14416_v52 = vsel %vm12729_vm1, %v12679_v28, %v12603_v30  ;;  %v14417_v26 = vmov 0  ;;  %8053 = vst [vmem:[%s12191_s23 + $0x70] sm:$0xff] %v7993_v43   ;;  %v8913_v57 = vpop.f32.mrb[32].mxu0  ;;  %v4017_v30 = vpop.f32.mrb[33].mxu1 }
 0x303   : > { %vm13009_vm2 = vcmp.lt.s32.totalorder %v14416_v52, 16  ;;  %v1054_v44 = vsel %vm12973_vm9, %v12922_v16, %v12842_v15  ;;  %vm867_vm11 = vcmp.ne.s32.totalorder %v12936_v33, 0  ;;  %vm915_vm14 = vcmp.lt.s32.totalorder %v12936_v33, 0  ;;  %v6664_v37 = vpop.f32.mrb[33].mxu0  ;;  %v8658_v43 = vpop.f32.mrb[34].mxu1 }
 0x304   : > { %v14418_v26 = vsel %vm13009_vm2, 4294967295, %v14417_v26  ;;  %v7285_v55 = vsel %vm12883_vm8, %v12924_v46, 0.0  ;;  %vm14420_vm1 = vcmp.ne.s32.totalorder %v12839_v14, 0  ;;  %vm14421_vm0 = vcmp.lt.s32.totalorder %v12839_v14, 0  ;;  %v8914_v29 = vpop.f32.mrb[34].mxu0  ;;  %v4020_v47 = vpop.f32.mrb[35].mxu1  ;;  %vm13058_vm9 = vmand %vm915_vm14, %vm867_vm11 }
 0x305   : > { %14419 = vst [vmem:[#allocation45_spill] sm:$0xff] %v14418_v26  ;;  %vm13027_vm6 = vmand %vm14421_vm0, %vm14420_vm1  ;;  %v13032_v15 = vadd.s32 24, %v12936_v33  ;;  %v777_v16 = vmul.u32 24, %v776_v48  ;;  %v755_v8 = vmul.u32 24, %v754_v41  ;;  %v7332_v27 = vadd.f32 %v7331_v58, %v7285_v55 }
 0x306   : > { %v13034_v49 = vadd.f32 %v8913_v57, %v8657_v45  ;;  %v13037_v17 = vmul.u32.u64.low 2863311531, %v12939_v32  ;;  %v13038_v22 = vmul.u32.u64.high 2863311531, %v12939_v32, %v13037_v17  ;;  %v7286_v52 = vsel %vm12906_vm5, %v12949_v50, 0.0  ;;  %v6667_v57 = vpop.f32.mrb[35].mxu0 }
 0x307   : > { %v13043_v34 = vadd.f32 %v6664_v37, %v4017_v30  ;;  %v14424_v48 = vsel %vm12859_vm3, %v12830_v12, %v12757_v36  ;;  %v13063_v45 = vsub.s32 %v12629_v18, %v744_v0  ;;  %v7333_v55 = vadd.f32 %v7332_v27, %v7286_v52 }
 0x308   : > { %vm13050_vm0 = vcmp.lt.s32.totalorder %v14424_v48, 16  ;;  %v13065_v51 = vadd.f32 %v8914_v29, %v8658_v43  ;;  %v1056_v36 = vsel %vm13027_vm6, %v12913_v11, %v12839_v14  ;;  %v787_v12 = vshrl.u32 %v12962_v62, 4 }
 0x309   : > { %v7287_v30 = vsel %vm12931_vm12, %v13043_v34, 0.0  ;;  %v13075_v37 = vadd.f32 %v6667_v57, %v4020_v47  ;;  %vm13077_vm3 = vcmp.lt.s32.totalorder %v1054_v44, 16  ;;  %v13082_v29 = vsub.s32 %v12642_v3, %v777_v16  ;;  %v8661_v44 = vpop.f32.mrb[36].mxu1 }
 0x30a   : > { %v7334_v0 = vadd.f32 %v7333_v55, %v7287_v30  ;;  %v8008_v28 = vpack.c.bf16 %v13065_v51, %v13034_v49  ;;  %v14431_v14 = vsel %vm12774_vm7, %v12754_v4, %v12666_v31  ;;  %v1059_v3 = vsel %vm13058_vm9, %v13032_v15, %v12936_v33  ;;  %v4033_v27 = vpop.f32.mrb[37].mxu1 }
 0x30b   : > { %vm13091_vm6 = vcmp.lt.s32.totalorder %v14431_v14, 16  ;;  %v13100_v11 = vsub.s32 %v12737_v25, %v755_v8  ;;  %v8003_v62 = vpack.c.bf16 %v13075_v37, %v13043_v34  ;;  %v7288_v31 = vsel %vm12956_vm15, %v13075_v37, 0.0  ;;  %v8917_v8 = vpop.f32.mrb[36].mxu0  ;;  %v8662_v48 = vpop.f32.mrb[38].mxu1 }
 0x30c   : > { %vm865_vm7 = vcmp.ne.s32.totalorder %v13063_v45, 0  ;;  %v798_v4 = vshrl.u32 %v13001_v54, 4  ;;  %8056 = vst [vmem:[%s12191_s23 + $0x88] sm:$0xff] %v8008_v28   ;;  %v7335_v23 = vadd.f32 %v7334_v0, %v7288_v31  ;;  %vm13110_vm11 = vcmp.lt.s32.totalorder %v1056_v36, 16  ;;  %v6680_v52 = vpop.f32.mrb[37].mxu0  ;;  %v4036_v36 = vpop.f32.mrb[39].mxu1 }
 0x30d   : > { %v809_v33 = vshrl.u32 %v12992_v35, 4  ;;  %v788_v25 = vmul.u32 24, %v787_v12  ;;  %v7289_v15 = vsel %vm12986_vm4, %v13034_v49, 0.0  ;;  %8055 = vst [vmem:[%s12191_s23 + $0x80] sm:$0xff] %v8003_v62   ;;  %v1009_v54 = vadd.s32 24, %v13063_v45  ;;  %v8918_v57 = vpop.f32.mrb[38].mxu0 }
 0x30e   : > { %v7336_v43 = vadd.f32 %v7335_v23, %v7289_v15  ;;  %v13123_v17 = vadd.f32 %v8917_v8, %v8661_v44  ;;  %v820_v35 = vshrl.u32 %v13038_v22, 4  ;;  %v7290_v58 = vsel %vm13009_vm2, %v13065_v51, 0.0  ;;  %v6683_v28 = vpop.f32.mrb[39].mxu0 }
 0x30f   : > { %v13130_v55 = vadd.f32 %v6680_v52, %v4033_v27  ;;  %vm14436_vm9 = vcmp.lt.s32.totalorder %v13063_v45, 0  ;;  %v799_v30 = vmul.u32 24, %v798_v4  ;;  %v13141_v0 = vadd.f32 %v8918_v57, %v8662_v48 }
 0x310   : > { %vm13136_vm1 = vmand %vm14436_vm9, %vm865_vm7  ;;  %v7337_v22 = vadd.f32 %v7336_v43, %v7290_v58  ;;  %v810_v14 = vmul.u32 24, %v809_v33  ;;  %v13144_v62 = vsub.s32 %v12888_v53, %v788_v25  ;;  %v13149_v23 = vadd.f32 %v6683_v28, %v4036_v36  ;;  %v8665_v58 = vpop.f32.mrb[40].mxu1 }
 0x311   : > { %v7291_v31 = vsel %vm13050_vm0, %v13130_v55, 0.0  ;;  %vm14439_vm7 = vcmp.ne.s32.totalorder %v13082_v29, 0  ;;  %vm14440_vm9 = vcmp.lt.s32.totalorder %v13082_v29, 0  ;;  %v1012_v44 = vadd.s32 24, %v13082_v29  ;;  %v4049_v36 = vpop.f32.mrb[41].mxu1 }
 0x312   : > { %vm13155_vm14 = vmand %vm14440_vm9, %vm14439_vm7  ;;  %v1010_v33 = vadd.s32 24, %v13100_v11  ;;  %v7338_v53 = vadd.f32 %v7337_v22, %v7291_v31  ;;  %v8018_v25 = vpack.c.bf16 %v13141_v0, %v13123_v17  ;;  %v1057_v15 = vsel %vm13136_vm1, %v1009_v54, %v13063_v45 }
 0x313   : > { %vm14443_vm2 = vcmp.ne.s32.totalorder %v13100_v11, 0  ;;  %vm14444_vm7 = vcmp.lt.s32.totalorder %v13100_v11, 0  ;;  %v821_v27 = vmul.u32 24, %v820_v35  ;;  %v8013_v43 = vpack.c.bf16 %v13149_v23, %v13130_v55  ;;  %v8921_v35 = vpop.f32.mrb[40].mxu0 }
 0x314   : > { %vm13170_vm9 = vmand %vm14444_vm7, %vm14443_vm2  ;;  %v7292_v52 = vsel %vm13077_vm3, %v13149_v23, 0.0  ;;  %vm13179_vm4 = vcmp.lt.s32.totalorder %v1059_v3, 16  ;;  %v13184_v45 = vsub.s32 %v12947_v38, %v799_v30  ;;  %8058 = vst [vmem:[%s12191_s23 + $0x98] sm:$0xff] %v8018_v25   ;;  %v13188_v57 = vsub.s32 %v12806_v6, %v810_v14  ;;  %v6696_v28 = vpop.f32.mrb[41].mxu0  ;;  %v8666_v14 = vpop.f32.mrb[42].mxu1 }
 0x315   : > { %v7339_v54 = vadd.f32 %v7338_v53, %v7292_v52  ;;  %vm869_vm2 = vcmp.ne.s32.totalorder %v13144_v62, 0  ;;  %vm917_vm1 = vcmp.lt.s32.totalorder %v13144_v62, 0  ;;  %v7293_v3 = vsel %vm13091_vm6, %v13123_v17, 0.0  ;;  %8057 = vst [vmem:[%s12191_s23 + $0x90] sm:$0xff] %v8013_v43   ;;  %v4052_v4 = vpop.f32.mrb[43].mxu1 }
 0x316   : > { %vm13196_vm7 = vcmp.lt.s32.totalorder %v1057_v15, 16  ;;  %v1060_v6 = vsel %vm13155_vm14, %v1012_v44, %v13082_v29  ;;  %v1058_v12 = vsel %vm13170_vm9, %v1010_v33, %v13100_v11  ;;  %v13206_v22 = vadd.f32 %v8921_v35, %v8665_v58  ;;  %v8922_v29 = vpop.f32.mrb[42].mxu0  ;;  %vm13219_vm14 = vmand %vm917_vm1, %vm869_vm2 }
 0x317   : > { %v7340_v30 = vadd.f32 %v7339_v54, %v7293_v3  ;;  %v1013_v31 = vadd.s32 24, %v13144_v62  ;;  %v822_v53 = vsub.s32 %v12939_v32, %v821_v27  ;;  %v7294_v25 = vsel %vm13110_vm11, %v13141_v0, 0.0  ;;  %v6699_v8 = vpop.f32.mrb[43].mxu0 }
 0x318   : > { %v13213_v15 = vadd.f32 %v6696_v28, %v4049_v36  ;;  %vm870_vm9 = vcmp.ne.s32.totalorder %v13184_v45, 0  ;;  %vm918_vm15 = vcmp.lt.s32.totalorder %v13184_v45, 0  ;;  %v13225_v44 = vadd.f32 %v8922_v29, %v8666_v14  ;;  %v8669_v14 = vpop.f32.mrb[44].mxu1 }
 0x319   : > { %v7341_v32 = vadd.f32 %v7340_v30, %v7294_v25  ;;  %vm13227_vm12 = vcmp.lt.s32.totalorder %v1058_v12, 16  ;;  %v13235_v43 = vadd.f32 %v6699_v8, %v4052_v4  ;;  %v1014_v52 = vadd.s32 24, %v13184_v45  ;;  %vm13247_vm1 = vmand %vm918_vm15, %vm870_vm9  ;;  %v4065_v29 = vpop.f32.mrb[45].mxu1 }
 0x31a   : > { %v7295_v27 = vsel %vm13196_vm7, %v13213_v15, 0.0  ;;  %v8028_v58 = vpack.c.bf16 %v13225_v44, %v13206_v22  ;;  %v1015_v3 = vadd.s32 24, %v13188_v57  ;;  %v1061_v35 = vsel %vm13219_vm14, %v1013_v31, %v13144_v62 }
 0x31b   : > { %v7342_v54 = vadd.f32 %v7341_v32, %v7295_v27  ;;  %v8023_v12 = vpack.c.bf16 %v13235_v43, %v13213_v15  ;;  %v7296_v30 = vsel %vm13227_vm12, %v13235_v43, 0.0  ;;  %vm872_vm2 = vcmp.ne.s32.totalorder %v822_v53, 0 }
 0x31c   : > { %vm13256_vm8 = vcmp.lt.s32.totalorder %v1060_v6, 16  ;;  %8060 = vst [vmem:[%s12191_s23 + $0xa8] sm:$0xff] %v8028_v58   ;;  %vm14459_vm15 = vcmp.ne.s32.totalorder %v13188_v57, 0  ;;  %vm14460_vm14 = vcmp.lt.s32.totalorder %v13188_v57, 0  ;;  %v7297_v25 = vsel %vm13179_vm4, %v13206_v22, 0.0  ;;  %v8925_v6 = vpop.f32.mrb[44].mxu0 }
 0x31d   : > { %v7343_v62 = vadd.f32 %v7342_v54, %v7296_v30  ;;  %vm13265_vm9 = vmand %vm14460_vm14, %vm14459_vm15  ;;  %8059 = vst [vmem:[%s12191_s23 + $0xa0] sm:$0xff] %v8023_v12   ;;  %v1016_v4 = vadd.s32 24, %v822_v53  ;;  %v1062_v11 = vsel %vm13247_vm1, %v1014_v52, %v13184_v45  ;;  %v13276_v8 = vadd.f32 %v8925_v6, %v8669_v14  ;;  %v6712_v54 = vpop.f32.mrb[45].mxu0  ;;  %v8670_v58 = vpop.f32.mrb[46].mxu1 }
 0x31e   : > { %vm13278_vm5 = vcmp.lt.s32.totalorder %v1061_v35, 16  ;;  %vm14465_vm15 = vcmp.lt.s32.totalorder %v822_v53, 0  ;;  %v7298_v36 = vsel %vm13256_vm8, %v13225_v44, 0.0  ;;  %v1063_v45 = vsel %vm13265_vm9, %v1015_v3, %v13188_v57  ;;  %v8926_v35 = vpop.f32.mrb[46].mxu0  ;;  %v4068_v30 = vpop.f32.mrb[47].mxu1 }
 0x31f   : > { %v7344_v32 = vadd.f32 %v7343_v62, %v7297_v25  ;;  %vm13284_vm14 = vmand %vm14465_vm15, %vm872_vm2  ;;  %v13294_v52 = vadd.f32 %v6712_v54, %v4065_v29  ;;  %v13296_v14 = vadd.f32 %v8926_v35, %v8670_v58  ;;  %vm13298_vm2 = vcmp.lt.s32.totalorder %v1062_v11, 16  ;;  %v6715_v6 = vpop.f32.mrb[47].mxu0 }
 0x320   : > { %v1064_v57 = vsel %vm13284_vm14, %v1016_v4, %v822_v53  ;;  %v13307_v3 = vadd.f32 %v6715_v6, %v4068_v30  ;;  %vm13309_vm1 = vcmp.lt.s32.totalorder %v1063_v45, 16 }
 0x321   : > { %v7345_v62 = vadd.f32 %v7344_v32, %v7298_v36  ;;  %v7299_v26 = vsel %vm13278_vm5, %v13294_v52, 0.0  ;;  %v8038_v11 = vpack.c.bf16 %v13296_v14, %v13276_v8  ;;  %vm13320_vm9 = vcmp.lt.s32.totalorder %v1064_v57, 16 }
 0x322   : > { %v8033_v32 = vpack.c.bf16 %v13307_v3, %v13294_v52  ;;  %v7300_v54 = vsel %vm13298_vm2, %v13307_v3, 0.0  ;;  %v7302_v12 = vsel %vm13320_vm9, %v13296_v14, 0.0 }
 0x323   : > { %v7346_v29 = vadd.f32 %v7345_v62, %v7299_v26  ;;  %8062 = vst [vmem:[%s12191_s23 + $0xb8] sm:$0xff] %v8038_v11   ;;  %v7301_v26 = vsel %vm13309_vm1, %v13276_v8, 0.0 }
 0x324   : > { %8061 = vst [vmem:[%s12191_s23 + $0xb0] sm:$0xff] %v8033_v32  }
 0x325   : > { %v7347_v4 = vadd.f32 %v7346_v29, %v7300_v54 }
 0x327   : > { %v7348_v58 = vadd.f32 %v7347_v4, %v7301_v26 }
 0x329   : > { %v7349_v36 = vadd.f32 %v7348_v58, %v7302_v12 }
 0x32b   : > { %v7350_v45 = vrot.slane %v7349_v36, 4 }
 0x32d   : > { %v7351_v35 = vadd.f32 %v7350_v45, %v7349_v36 }
 0x32f   : > { %v7352_v30 = vrot.slane %v7351_v35, 2 }
 0x331   : > { %v7353_v62 = vadd.f32 %v7352_v30, %v7351_v35 }
 0x333   : > { %v7354_v6 = vrot.slane %v7353_v62, 1 }
 0x335   : > { %v7355_v57 = vadd.f32 %v7354_v6, %v7353_v62 }
 0x337   : > { %7453 = vst [vmem:[%s240_s10] sm:$0x1] %v7355_v57  ;;  %v13333_v29 = vmul.f32 0.00390625, %v7355_v57 }
 0x339   : > { %v7385_v11 = vsub.f32 %v12944_v56, %v13333_v29  ;;  %v7386_v32 = vsub.f32 %v12967_v63, %v13333_v29  ;;  %v7387_v54 = vsub.f32 %v12924_v46, %v13333_v29  ;;  %v7388_v4 = vsub.f32 %v12949_v50, %v13333_v29 }
 0x33a   : > { %9655 = shalt.err (!%p9652_p7)
}
 0x33b   : > { %s9656_s26 = scalar_lea.hbm %s13342_s8, 16  ;;  %s9660_s25 = scalar_lea.hbm %s13716_s3, 32 }
 0x33c   : > { %p9657_p9 = scmp.ne.s32.totalorder %s13342_s8, %s9656_s26  ;;  %p9661_p5 = scmp.lt.u32.totalorder %s13342_s8, %s13716_s3 }
 0x33d   : > { %p9662_p11 = scmp.lt.u32.totalorder %s9660_s25, %s9656_s26  ;;  %p9664_p4 = scmp.lt.u32.totalorder %s9656_s26, %s13342_s8 }
 0x33e   : > { %p9658_p2 = pnand %p9657_p9, %p9904_p12 }
 0x33f   : > { %p9663_p1 = por %p9662_p11, %p9661_p5 }
 0x340   : > { %p9659_p0 = pneg %p9658_p2 }
 0x341   : > { %p9665_p6 = por %p9664_p4, %p9663_p1 }
 0x343   : > { %p9666_p8 = pnand %p9665_p6, %p9659_p0 }
 0x345   : > { %9669 = shalt.err (!%p9666_p8)
}
 0x346   : > { %9435 = dma.vmem_to_hbm [thread:$0]  (%p9904_p12), %s13352_s9, 16, %s13342_s8, %s13362_s28   ;;  %v7393_v45 = vsub.f32 %v13130_v55, %v13333_v29  ;;  %v7394_v35 = vsub.f32 %v13149_v23, %v13333_v29  ;;  %v7395_v30 = vsub.f32 %v13123_v17, %v13333_v29  ;;  %v7396_v62 = vsub.f32 %v13141_v0, %v13333_v29 }
 0x347   : > { %s9427_s12 = smul.u32 3072, %s9832_s19  ;;  %s7578_s13 = sshll.u32 %s12191_s23, 4  ;;  %v7397_v6 = vsub.f32 %v13213_v15, %v13333_v29  ;;  %v7398_v57 = vsub.f32 %v13235_v43, %v13333_v29  ;;  %v7399_v55 = vsub.f32 %v13206_v22, %v13333_v29  ;;  %v7400_v23 = vsub.f32 %v13225_v44, %v13333_v29  ;;  %s13404_s13 = int_to_ptr.vmem [resolvable:$true] %s7578_s13 }
 0x348   : > { %v7401_v17 = vsub.f32 %v13294_v52, %v13333_v29  ;;  %v7402_v0 = vsub.f32 %v13307_v3, %v13333_v29  ;;  %v7403_v15 = vsub.f32 %v13276_v8, %v13333_v29  ;;  %v7404_v22 = vsub.f32 %v13296_v14, %v13333_v29  ;;  %s7557_s24 = scalar_lea.sflag [#allocation6], %s9952_s14  ;;  %s9670_s7 = scalar_lea.vmem %s13404_s13, 3072 }
 0x349   : > { %s13417_s9 = scalar_lea.hbm %s13715_s2, %s9427_s12  ;;  %p9671_p10 = scmp.ne.s32.totalorder %s13404_s13, %s9670_s7 }
 0x34a   : > { %s9782_s26 = smov [#allocation9]  }
 0x34b   : > { %p9672_p13 = pnand %p9671_p10, %p9904_p12  ;;  %s9674_s21 = sshll.u32 %s9782_s26, 4  ;;  %s9675_s21 = int_to_ptr.vmem [resolvable:$false] %s9674_s21 }
 0x34c   : > { %s9676_s10 = scalar_lea.vmem %s9675_s21, 6144  ;;  %p9677_p7 = scmp.lt.s32.totalorder %s13404_s13, %s9675_s21 }
 0x34d   : > { %p9673_p3 = pneg %p9672_p13  ;;  %p9678_p9 = scmp.lt.s32.totalorder %s9676_s10, %s9670_s7 }
 0x34f   : > { %p9679_p2 = por %p9678_p9, %p9677_p7 }
 0x351   : > { %p9680_p0 = pnand %p9679_p2, %p9673_p3 }
 0x353   : > { %9683 = shalt.err (!%p9680_p0)
}
 0x354   : > { %s9684_s25 = scalar_lea.hbm %s13417_s9, 3072  ;;  %s9688_s12 = scalar_lea.hbm %s13715_s2, 6144 }
 0x355   : > { %p9685_p5 = scmp.ne.s32.totalorder %s13417_s9, %s9684_s25  ;;  %p9689_p4 = scmp.lt.u32.totalorder %s13417_s9, %s13715_s2 }
 0x356   : > { %p9690_p6 = scmp.lt.u32.totalorder %s9688_s12, %s9684_s25  ;;  %p9692_p10 = scmp.lt.u32.totalorder %s9684_s25, %s13417_s9 }
 0x357   : > { %p9686_p11 = pnand %p9685_p5, %p9904_p12 }
 0x358   : > { %p9691_p8 = por %p9690_p6, %p9689_p4 }
 0x359   : > { %p9687_p1 = pneg %p9686_p11 }
 0x35a   : > { %p9693_p13 = por %p9692_p10, %p9691_p8 }
 0x35c   : > { %p9694_p3 = pnand %p9693_p13, %p9687_p1 }
 0x35e   : > { %9697 = shalt.err (!%p9694_p3)
}
 0x35f   : > { %s9783_s7 = smov 64   ;;  %s9784_s26 = smov 4   ;;  %v13445_v44 = vsel %vm13050_vm0, %v7393_v45, 0.0  ;;  %v13449_v43 = vsel %vm13077_vm3, %v7394_v35, 0.0  ;;  %v13453_v8 = vsel %vm13091_vm6, %v7395_v30, 0.0  ;;  %v13457_v52 = vsel %vm13110_vm11, %v7396_v62, 0.0 }
 0x360   : > { %9434 = dma.vmem_to_hbm [thread:$0]  (%p9904_p12), %s13404_s13, 3072, %s13417_s9, %s7557_s24, %s9783_s7, %s9783_s7, %s9784_s26   ;;  %v13461_v14 = vsel %vm13196_vm7, %v7397_v6, 0.0  ;;  %v13465_v41 = vsel %vm13227_vm12, %v7398_v57, 0.0  ;;  %v13469_v18 = vsel %vm13179_vm4, %v7399_v55, 0.0  ;;  %v13473_v47 = vsel %vm13256_vm8, %v7400_v23, 0.0  ;;  %v14474_v28 = vld [vmem:[#allocation81_spill] sm:$0xff] }
 0x361   : > { %v13477_v16 = vsel %vm13278_vm5, %v7401_v17, 0.0  ;;  %v13481_v38 = vsel %vm13298_vm2, %v7402_v0, 0.0  ;;  %v13485_v33 = vsel %vm13309_vm1, %v7403_v15, 0.0  ;;  %v13489_v48 = vsel %vm13320_vm9, %v7404_v22, 0.0  ;;  %v14475_v45 = vld [vmem:[#allocation20_spill] sm:$0xff]  ;;  %v14476_v35 = vld [vmem:[#allocation79_spill] sm:$0xff]  ;;  %s13673_s10 = scalar_lea.hbm %s13717_s4, %s7868_s29 }
 0x362   : > { %v7357_v3 = vsub.f32 %v14474_v28, %v13333_v29  ;;  %v7358_v27 = vsub.f32 %v14475_v45, %v13333_v29  ;;  %v7359_v30 = vsub.f32 %v14476_v35, %v13333_v29  ;;  %v14477_v25 = vld [vmem:[#allocation70_spill] sm:$0xff]  ;;  %v14479_v6 = vld [vmem:[#allocation71_spill] sm:$0xff]  ;;  %v14483_v15 = vld [vmem:[#allocation73_spill] sm:$0xff]  ;;  %s246_s13 = scalar_lea.vmem [#allocation12], %s9952_s14  ;;  %s9785_s11 = smov [#allocation12]  }
 0x363   : > { %vm14478_vm12 = vnez %v14477_v25  ;;  %vm14480_vm4 = vnez %v14479_v6  ;;  %v14481_v57 = vld [vmem:[#allocation82_spill] sm:$0xff]  ;;  %vm14484_vm8 = vnez %v14483_v15  ;;  %v14485_v28 = vld [vmem:[#allocation33_spill] sm:$0xff]  ;;  %s7607_s9 = sshll.u32 %s246_s13, 4  ;;  %s9702_s6 = sshll.u32 %s9785_s11, 4  ;;  %s7608_s9 = int_to_ptr.vmem [resolvable:$true] %s7607_s9  ;;  %s9703_s6 = int_to_ptr.vmem [resolvable:$false] %s9702_s6 }
 0x364   : > { %v7405_v62 = vsel %vm14478_vm12, %v7357_v3, 0.0  ;;  %v7406_v31 = vsel %vm14480_vm4, %v7358_v27, 0.0  ;;  %v7360_v53 = vsub.f32 %v14481_v57, %v13333_v29  ;;  %v14482_v17 = vld [vmem:[#allocation18_spill] sm:$0xff]  ;;  %v7407_v22 = vsel %vm14484_vm8, %v7359_v30, 0.0  ;;  %v14486_v35 = vld [vmem:[#allocation77_spill] sm:$0xff]  ;;  %v14488_v27 = vld [vmem:[#allocation24_spill] sm:$0xff]  ;;  %p9705_p0 = scmp.lt.s32.totalorder %s7608_s9, %s9703_s6 }
 0x365   : > { %v7454_v55 = vmul.f32 %v7405_v62, %v7405_v62  ;;  %v7455_v23 = vmul.f32 %v7406_v31, %v7406_v31  ;;  %v7361_v0 = vsub.f32 %v14482_v17, %v13333_v29  ;;  %v7362_v45 = vsub.f32 %v14485_v28, %v13333_v29  ;;  %v14489_v57 = vld [vmem:[#allocation80_spill] sm:$0xff]  ;;  %v14491_v17 = vld [vmem:[#allocation30_spill] sm:$0xff]  ;;  %s9698_s25 = scalar_lea.vmem %s7608_s9, 16  ;;  %s9704_s14 = scalar_lea.vmem %s9703_s6, 32 }
 0x366   : > { %vm14487_vm5 = vnez %v14486_v35  ;;  %v7456_v25 = vmul.f32 %v7407_v22, %v7407_v22  ;;  %v7363_v36 = vsub.f32 %v14488_v27, %v13333_v29  ;;  %vm14490_vm0 = vnez %v14489_v57  ;;  %v14492_v30 = vld [vmem:[#allocation26_spill] sm:$0xff]  ;;  %p9699_p7 = scmp.ne.s32.totalorder %s7608_s9, %s9698_s25  ;;  %p9706_p5 = scmp.lt.s32.totalorder %s9704_s14, %s9698_s25 }
 0x367   : > { %v7408_v3 = vsel %vm14487_vm5, %v7360_v53, 0.0  ;;  %v7502_v6 = vadd.f32 %v7455_v23, %v7454_v55  ;;  %v7409_v62 = vsel %vm14490_vm0, %v7361_v0, 0.0  ;;  %v7364_v15 = vsub.f32 %v14491_v17, %v13333_v29  ;;  %v14494_v53 = vld [vmem:[#allocation44_spill] sm:$0xff]  ;;  %v14495_v55 = vld [vmem:[#allocation22_spill] sm:$0xff] }
 0x368   : > { %v7457_v31 = vmul.f32 %v7408_v3, %v7408_v3  ;;  %vm14493_vm3 = vnez %v14492_v30  ;;  %v7458_v28 = vmul.f32 %v7409_v62, %v7409_v62  ;;  %v7365_v22 = vsub.f32 %v14494_v53, %v13333_v29  ;;  %v14497_v0 = vld [vmem:[#allocation36_spill] sm:$0xff]  ;;  %p9700_p9 = pnand %p9699_p7, %p9904_p12  ;;  %p9707_p11 = por %p9706_p5, %p9705_p0 }
 0x369   : > { %v7503_v12 = vadd.f32 %v7502_v6, %v7456_v25  ;;  %v7410_v58 = vsel %vm14493_vm3, %v7362_v45, 0.0  ;;  %vm14496_vm6 = vnez %v14495_v55  ;;  %v7366_v3 = vsub.f32 %v14497_v0, %v13333_v29  ;;  %v14498_v25 = vld [vmem:[#allocation19_spill] sm:$0xff] }
 0x36a   : > { %v7411_v23 = vsel %vm14496_vm6, %v7363_v36, 0.0  ;;  %v7459_v35 = vmul.f32 %v7410_v58, %v7410_v58  ;;  %vm14499_vm11 = vnez %v14498_v25  ;;  %v7367_v45 = vsub.f32 %v12344_v60, %v13333_v29  ;;  %v14502_v36 = vld [vmem:[#allocation35_spill] sm:$0xff]  ;;  %p9701_p2 = pneg %p9700_p9 }
 0x36b   : > { %v7504_v26 = vadd.f32 %v7503_v12, %v7457_v31  ;;  %v7412_v6 = vsel %vm14499_vm11, %v7364_v15, 0.0  ;;  %v7460_v57 = vmul.f32 %v7411_v23, %v7411_v23  ;;  %v14500_v12 = vld [vmem:[#allocation25_spill] sm:$0xff]  ;;  %v7368_v58 = vsub.f32 %v14502_v36, %v13333_v29 }
 0x36c   : > { %vm14501_vm7 = vnez %v14500_v12  ;;  %v7461_v31 = vmul.f32 %v7412_v6, %v7412_v6  ;;  %v14505_v15 = vld [vmem:[#allocation37_spill] sm:$0xff]  ;;  %v14509_v6 = vld [vmem:[#allocation27_spill] sm:$0xff]  ;;  %vm14518_vm4 = vnez %v14277_v61  ;;  %vm14519_vm8 = vnez %v14282_v40  ;;  %v14526_v40 = vld [vmem:[#allocation46_spill] sm:$0xff]  ;;  %p9708_p1 = pnand %p9707_p11, %p9701_p2 }
 0x36d   : > { %v7505_v27 = vadd.f32 %v7504_v26, %v7458_v28  ;;  %v7413_v62 = vsel %vm14501_vm7, %v7365_v22, 0.0  ;;  %v14503_v26 = vld [vmem:[#allocation31_spill] sm:$0xff]  ;;  %v7369_v23 = vsub.f32 %v14505_v15, %v13333_v29  ;;  %v14508_v22 = vld [vmem:[#allocation40_spill] sm:$0xff]  ;;  %vm14510_vm2 = vnez %v14509_v6 }
 0x36e   : > { %vm14504_vm15 = vnez %v14503_v26  ;;  %v7462_v53 = vmul.f32 %v7413_v62, %v7413_v62  ;;  %v7370_v25 = vsub.f32 %v14508_v22, %v13333_v29  ;;  %v14523_v61 = vld [vmem:[#allocation51_spill] sm:$0xff]  ;;  %vm14535_vm7 = vnez %v14335_v59 }
 0x36f   : > { %v7506_v17 = vadd.f32 %v7505_v27, %v7459_v35  ;;  %v7414_v28 = vsel %vm14504_vm15, %v7366_v3, 0.0  ;;  %v14506_v35 = vld [vmem:[#allocation28_spill] sm:$0xff]  ;;  %v14511_v3 = vld [vmem:[#allocation50_spill] sm:$0xff] }
 0x370   : > { %vm14507_vm14 = vnez %v14506_v35  ;;  %v7463_v60 = vmul.f32 %v7414_v28, %v7414_v28  ;;  %v7371_v62 = vsub.f32 %v14511_v3, %v13333_v29  ;;  %v14514_v28 = vld [vmem:[#allocation29_spill] sm:$0xff] }
 0x371   : > { %v7507_v30 = vadd.f32 %v7506_v17, %v7460_v57  ;;  %v7415_v27 = vsel %vm14507_vm14, %v7367_v45, 0.0  ;;  %v7416_v57 = vsel %vm14510_vm2, %v7368_v58, 0.0  ;;  %v7372_v45 = vsub.f32 %v12502_v39, %v13333_v29  ;;  %v14516_v35 = vld [vmem:[#allocation49_spill] sm:$0xff] }
 0x372   : > { %v7464_v17 = vmul.f32 %v7415_v27, %v7415_v27  ;;  %v7465_v36 = vmul.f32 %v7416_v57, %v7416_v57  ;;  %vm14515_vm9 = vnez %v14514_v28  ;;  %v7373_v58 = vsub.f32 %v12609_v13, %v13333_v29 }
 0x373   : > { %v7508_v55 = vadd.f32 %v7507_v30, %v7461_v31  ;;  %v14512_v31 = vld [vmem:[#allocation21_spill] sm:$0xff]  ;;  %vm14517_vm12 = vnez %v14516_v35  ;;  %v7420_v22 = vsel %vm14518_vm4, %v7372_v45, 0.0  ;;  %vm14553_vm4 = vnez %v14409_v10 }
 0x374   : > { %vm14513_vm1 = vnez %v14512_v31  ;;  %v7419_v27 = vsel %vm14517_vm12, %v7371_v62, 0.0  ;;  %v7421_v57 = vsel %vm14519_vm8, %v7373_v58, 0.0  ;;  %v7469_v13 = vmul.f32 %v7420_v22, %v7420_v22  ;;  %v14521_v62 = vld [vmem:[#allocation38_spill] sm:$0xff] }
 0x375   : > { %v7509_v0 = vadd.f32 %v7508_v55, %v7462_v53  ;;  %v7417_v30 = vsel %vm14513_vm1, %v7369_v23, 0.0  ;;  %v7418_v53 = vsel %vm14515_vm9, %v7370_v25, 0.0  ;;  %v7374_v23 = vsub.f32 %v12635_v5, %v13333_v29 }
 0x376   : > { %v7466_v55 = vmul.f32 %v7417_v30, %v7417_v30  ;;  %v7468_v39 = vmul.f32 %v7419_v27, %v7419_v27  ;;  %v7375_v25 = vsub.f32 %v12583_v19, %v13333_v29  ;;  %vm14522_vm5 = vnez %v14521_v62  ;;  %v14529_v27 = vld [vmem:[#allocation34_spill] sm:$0xff] }
 0x377   : > { %v7510_v12 = vadd.f32 %v7509_v0, %v7463_v60  ;;  %v7467_v60 = vmul.f32 %v7418_v53, %v7418_v53  ;;  %v7422_v31 = vsel %vm14522_vm5, %v7374_v23, 0.0  ;;  %v7470_v5 = vmul.f32 %v7421_v57, %v7421_v57 }
 0x378   : > { %v7471_v19 = vmul.f32 %v7422_v31, %v7422_v31  ;;  %v7378_v53 = vsub.f32 %v14526_v40, %v13333_v29  ;;  %v7384_v40 = vsub.f32 %v12844_v20, %v13333_v29  ;;  %vm14549_vm9 = vnez %v14403_v42 }
 0x379   : > { %v7511_v26 = vadd.f32 %v7510_v12, %v7464_v17  ;;  %v14520_v12 = vld [vmem:[#allocation41_spill] sm:$0xff]  ;;  %vm14551_vm12 = vnez %v14406_v2  ;;  %v14554_v42 = vsub.f32 %v13034_v49, %v13333_v29  ;;  %vm14555_vm8 = vnez %v14415_v1 }
 0x37a   : > { %v7376_v3 = vsub.f32 %v14520_v12, %v13333_v29  ;;  %v7426_v57 = vsel %vm12623_vm10, %v7378_v53, 0.0  ;;  %v7381_v12 = vsub.f32 %v12836_v21, %v13333_v29  ;;  %v14538_v53 = vld [vmem:[#allocation39_spill] sm:$0xff]  ;;  %v14556_v2 = vsub.f32 %v13065_v51, %v13333_v29 }
 0x37b   : > { %v7512_v15 = vadd.f32 %v7511_v26, %v7465_v36  ;;  %v7377_v36 = vsub.f32 %v14523_v61, %v13333_v29  ;;  %v14524_v26 = vld [vmem:[#allocation56_spill] sm:$0xff]  ;;  %v7475_v31 = vmul.f32 %v7426_v57, %v7426_v57  ;;  %vm14539_vm15 = vnez %v14538_v53 }
 0x37c   : > { %vm14525_vm0 = vnez %v14524_v26  ;;  %v7383_v26 = vsub.f32 %v12818_v24, %v13333_v29  ;;  %v7491_v1 = vmul.f32 %v13449_v43, %v13449_v43  ;;  %v7492_v53 = vmul.f32 %v13453_v8, %v13453_v8 }
 0x37d   : > { %v7513_v0 = vadd.f32 %v7512_v15, %v7466_v55  ;;  %v7423_v45 = vsel %vm14525_vm0, %v7375_v25, 0.0  ;;  %v14527_v55 = vld [vmem:[#allocation54_spill] sm:$0xff]  ;;  %v7493_v51 = vmul.f32 %v13457_v52, %v13457_v52  ;;  %v7496_v43 = vmul.f32 %v13469_v18, %v13469_v18 }
 0x37e   : > { %vm14528_vm3 = vnez %v14527_v55  ;;  %v7472_v58 = vmul.f32 %v7423_v45, %v7423_v45  ;;  %v14536_v45 = vld [vmem:[#allocation53_spill] sm:$0xff]  ;;  %v14545_v25 = vld [vmem:[#allocation58_spill] sm:$0xff]  ;;  %v7497_v8 = vmul.f32 %v13473_v47, %v13473_v47  ;;  %v7498_v52 = vmul.f32 %v13477_v16, %v13477_v16 }
 0x37f   : > { %v7514_v6 = vadd.f32 %v7513_v0, %v7467_v60  ;;  %v7424_v15 = vsel %vm14528_vm3, %v7376_v3, 0.0  ;;  %v7379_v60 = vsub.f32 %v14529_v27, %v13333_v29  ;;  %v14530_v0 = vld [vmem:[#allocation43_spill] sm:$0xff]  ;;  %v14533_v3 = vld [vmem:[#allocation42_spill] sm:$0xff]  ;;  %vm14537_vm10 = vnez %v14536_v45 }
 0x380   : > { %vm14531_vm6 = vnez %v14530_v0  ;;  %v7473_v22 = vmul.f32 %v7424_v15, %v7424_v15  ;;  %vm14534_vm11 = vnez %v14533_v3  ;;  %v7501_v18 = vmul.f32 %v13489_v48, %v13489_v48 }
 0x381   : > { %v7515_v17 = vadd.f32 %v7514_v6, %v7468_v39  ;;  %v7425_v23 = vsel %vm14531_vm6, %v7377_v36, 0.0  ;;  %v7380_v6 = vsub.f32 %v12714_v9, %v13333_v29  ;;  %v7427_v62 = vsel %vm14534_vm11, %v7379_v60, 0.0  ;;  %v14541_v60 = vld [vmem:[#allocation52_spill] sm:$0xff] }
 0x382   : > { %v7476_v9 = vmul.f32 %v7427_v62, %v7427_v62  ;;  %vm14542_vm14 = vnez %v14541_v60 }
 0x383   : > { %v7516_v30 = vadd.f32 %v7515_v17, %v7469_v13  ;;  %v7474_v13 = vmul.f32 %v7425_v23, %v7425_v23  ;;  %v7428_v61 = vsel %vm14535_vm7, %v7380_v6, 0.0  ;;  %v7432_v24 = vsel %vm14542_vm14, %v7384_v40, 0.0 }
 0x384   : > { %v7477_v21 = vmul.f32 %v7428_v61, %v7428_v61 }
 0x385   : > { %v7517_v28 = vadd.f32 %v7516_v30, %v7470_v5  ;;  %v7382_v30 = vsub.f32 %v12870_v7, %v13333_v29 }
 0x387   : > { %v7518_v35 = vadd.f32 %v7517_v28, %v7471_v19  ;;  %v7429_v19 = vsel %vm14537_vm10, %v7381_v12, 0.0  ;;  %v7430_v55 = vsel %vm14539_vm15, %v7382_v30, 0.0  ;;  %v14547_v12 = vld [vmem:[#allocation57_spill] sm:$0xff] }
 0x388   : > { %v7478_v7 = vmul.f32 %v7429_v19, %v7429_v19  ;;  %vm14548_vm1 = vnez %v14547_v12 }
 0x389   : > { %v7519_v39 = vadd.f32 %v7518_v35, %v7472_v58  ;;  %v7431_v58 = vsel %vm12766_vm13, %v7383_v26, 0.0  ;;  %v7479_v35 = vmul.f32 %v7430_v55, %v7430_v55  ;;  %vm14546_vm13 = vnez %v14545_v25  ;;  %v14557_v26 = vld [vmem:[#allocation45_spill] sm:$0xff] }
 0x38a   : > { %v7480_v0 = vmul.f32 %v7431_v58, %v7431_v58  ;;  %v7434_v57 = vsel %vm14546_vm13, %v7386_v32, 0.0  ;;  %v7435_v3 = vsel %vm14548_vm1, %v7387_v54, 0.0  ;;  %v14550_v32 = vsub.f32 %v13043_v34, %v13333_v29 }
 0x38b   : > { %v7520_v17 = vadd.f32 %v7519_v39, %v7473_v22  ;;  %v14543_v22 = vld [vmem:[#allocation55_spill] sm:$0xff]  ;;  %v7481_v39 = vmul.f32 %v7432_v24, %v7432_v24  ;;  %v7483_v56 = vmul.f32 %v7434_v57, %v7434_v57  ;;  %v7484_v63 = vmul.f32 %v7435_v3, %v7435_v3 }
 0x38c   : > { %vm14544_vm2 = vnez %v14543_v22  ;;  %v14552_v54 = vsub.f32 %v13075_v37, %v13333_v29  ;;  %vm14558_vm5 = vnez %v14557_v26 }
 0x38d   : > { %v7521_v5 = vadd.f32 %v7520_v17, %v7474_v13  ;;  %v7433_v20 = vsel %vm14544_vm2, %v7385_v11, 0.0  ;;  %v7436_v11 = vsel %vm14549_vm9, %v7388_v4, 0.0  ;;  %v7439_v4 = vsel %vm14555_vm8, %v14554_v42, 0.0 }
 0x38e   : > { %v7482_v13 = vmul.f32 %v7433_v20, %v7433_v20  ;;  %v7485_v46 = vmul.f32 %v7436_v11, %v7436_v11  ;;  %v7438_v61 = vsel %vm14553_vm4, %v14552_v54, 0.0  ;;  %v7440_v45 = vsel %vm14558_vm5, %v14556_v2, 0.0 }
 0x38f   : > { %v7522_v36 = vadd.f32 %v7521_v5, %v7475_v31  ;;  %v7437_v5 = vsel %vm14551_vm12, %v14550_v32, 0.0  ;;  %v7487_v34 = vmul.f32 %v7438_v61, %v7438_v61  ;;  %v7488_v37 = vmul.f32 %v7439_v4, %v7439_v4 }
 0x390   : > { %v7486_v50 = vmul.f32 %v7437_v5, %v7437_v5  ;;  %v7489_v10 = vmul.f32 %v7440_v45, %v7440_v45 }
 0x391   : > { %v7523_v28 = vadd.f32 %v7522_v36, %v7476_v9 }
 0x393   : > { %v7524_v15 = vadd.f32 %v7523_v28, %v7477_v21  ;;  %v7490_v28 = vmul.f32 %v13445_v44, %v13445_v44  ;;  %v7495_v44 = vmul.f32 %v13465_v41, %v13465_v41  ;;  %v7500_v41 = vmul.f32 %v13485_v33, %v13485_v33 }
 0x395   : > { %v7525_v27 = vadd.f32 %v7524_v15, %v7478_v7  ;;  %v7494_v7 = vmul.f32 %v13461_v14, %v13461_v14  ;;  %v7499_v14 = vmul.f32 %v13481_v38, %v13481_v38 }
 0x397   : > { %v7526_v23 = vadd.f32 %v7525_v27, %v7479_v35 }
 0x399   : > { %v7527_v6 = vadd.f32 %v7526_v23, %v7480_v0 }
 0x39b   : > { %v7528_v17 = vadd.f32 %v7527_v6, %v7481_v39 }
 0x39d   : > { %v7529_v62 = vadd.f32 %v7528_v17, %v7482_v13 }
 0x39f   : > { %v7530_v31 = vadd.f32 %v7529_v62, %v7483_v56 }
 0x3a1   : > { %v7531_v30 = vadd.f32 %v7530_v31, %v7484_v63 }
 0x3a3   : > { %v7532_v9 = vadd.f32 %v7531_v30, %v7485_v46 }
 0x3a5   : > { %v7533_v36 = vadd.f32 %v7532_v9, %v7486_v50 }
 0x3a7   : > { %v7534_v19 = vadd.f32 %v7533_v36, %v7487_v34 }
 0x3a9   : > { %v7535_v21 = vadd.f32 %v7534_v19, %v7488_v37 }
 0x3ab   : > { %v7536_v40 = vadd.f32 %v7535_v21, %v7489_v10 }
 0x3ad   : > { %v7537_v49 = vadd.f32 %v7536_v40, %v7490_v28 }
 0x3af   : > { %v7538_v55 = vadd.f32 %v7537_v49, %v7491_v1 }
 0x3b1   : > { %v7539_v29 = vadd.f32 %v7538_v55, %v7492_v53 }
 0x3b3   : > { %v7540_v15 = vadd.f32 %v7539_v29, %v7493_v51 }
 0x3b5   : > { %v7541_v59 = vadd.f32 %v7540_v15, %v7494_v7 }
 0x3b7   : > { %v7542_v58 = vadd.f32 %v7541_v59, %v7495_v44 }
 0x3b9   : > { %v7543_v35 = vadd.f32 %v7542_v58, %v7496_v43 }
 0x3bb   : > { %v7544_v27 = vadd.f32 %v7543_v35, %v7497_v8 }
 0x3bd   : > { %v7545_v60 = vadd.f32 %v7544_v27, %v7498_v52 }
 0x3bf   : > { %v7546_v24 = vadd.f32 %v7545_v60, %v7499_v14 }
 0x3c1   : > { %v7547_v0 = vadd.f32 %v7546_v24, %v7500_v41 }
 0x3c3   : > { %v7548_v47 = vadd.f32 %v7547_v0, %v7501_v18 }
 0x3c5   : > { %v7549_v23 = vrot.slane %v7548_v47, 4 }
 0x3c7   : > { %v7550_v22 = vadd.f32 %v7549_v23, %v7548_v47 }
 0x3c9   : > { %v7551_v20 = vrot.slane %v7550_v22, 2 }
 0x3cb   : > { %v7552_v16 = vadd.f32 %v7551_v20, %v7550_v22 }
 0x3cd   : > { %v7553_v39 = vrot.slane %v7552_v16, 1 }
 0x3cf   : > { %v7554_v38 = vadd.f32 %v7553_v39, %v7552_v16 }
 0x3d1   : > { %7555 = vst [vmem:[%s246_s13] sm:$0x1] %v7554_v38 }
 0x3d2   : > { %9711 = shalt.err (!%p9708_p1)
}
 0x3d3   : > { %s9712_s19 = scalar_lea.hbm %s13673_s10, 16  ;;  %s9716_s23 = scalar_lea.hbm %s13717_s4, 32 }
 0x3d4   : > { %p9713_p4 = scmp.ne.s32.totalorder %s13673_s10, %s9712_s19  ;;  %p9717_p10 = scmp.lt.u32.totalorder %s13673_s10, %s13717_s4 }
 0x3d5   : > { %p9718_p13 = scmp.lt.u32.totalorder %s9716_s23, %s9712_s19  ;;  %p9720_p7 = scmp.lt.u32.totalorder %s9712_s19, %s13673_s10 }
 0x3d6   : > { %p9714_p6 = pnand %p9713_p4, %p9904_p12 }
 0x3d7   : > { %p9719_p3 = por %p9718_p13, %p9717_p10 }
 0x3d8   : > { %p9715_p8 = pneg %p9714_p6 }
 0x3d9   : > { %p9721_p9 = por %p9720_p7, %p9719_p3 }
 0x3db   : > { %p9722_p2 = pnand %p9721_p9, %p9715_p8 }
 0x3dd   : > { %9725 = shalt.err (!%p9722_p2)
}
 0x3de   : > { %9436 = dma.vmem_to_hbm [thread:$0]  (%p9904_p12), %s7608_s9, 16, %s13673_s10, %s13362_s28  }
 0x3df PF: > { %s7619_s26 = sand.u32 1, %s9760_s15   ;;  %p14559_p0 = scmp.ne.s32.totalorder %s13925_s22, 0 }
 0x3e0   : > { %p14560_p5 = scmp.ge.s32.totalorder %s9772_s18, 2  ;;  %s7620_s13 = scalar_lea.sflag [#allocation6], %s7619_s26 }
 0x3e2   : > { %p9449_p11 = pnand %p14560_p5, %p14559_p0 }
 0x3e4   : > { %9751 = dma.done.wait (!%p9449_p11), %s7620_s13, 3072  }
 0x3e5   : > { %9753 = vsyncadd (!%p9449_p11), %s7620_s13, 4294964224  ;;  %s7628_s24 = sand.u32 1, %s7740_s20  }
 0x3e6   : > { %s7629_s21 = scalar_lea.sflag [#allocation11], %s7628_s24 }
 0x3e7   : > { %9755 = dma.done.wait (!%p9449_p11), %s7629_s21, 32  }
 0x3e8   : > { %9757 = vsyncadd (!%p9449_p11), %s7629_s21, 4294967264  ;;  %p22_p12 = scmp.ge.s32.totalorder %s9869_s27, 4   ;;  %s14561_s15 = smov %s9764_s16 }
 0x3e9   : > { %s14562_s16 = smov %s9768_s17  ;;  %s14563_s17 = smov %s9900_s30 }
 0x3ea   : > { %s14564_s18 = smov %s9869_s27  ;;  %24 = sbr.rel (!%p22_p12) target bundleno = 8 (0x8), region = 109 }
 0x3f1   :  { %7641 = vsyncpa [#allocation5], 1 }
 0x3f2   :  { %7643 = vsyncpa [#allocation5 + $0x1], 1 }
 0x3f3   :  { %7644 = vsyncpa [#allocation8], 1 }
 0x3f4   :  { %7645 = vsyncpa [#allocation6], 1 }
 0x3f5   :  { %7647 = vsyncpa [#allocation6 + $0x1], 1 }
 0x3f6   :  { %7648 = vsyncpa [#allocation11], 1 }
 0x3f7   :  { %7650 = vsyncpa [#allocation11 + $0x1], 1 }

// kernel: double_conv_forward.4
= control target key start
LH: loop header
LB: loop body
LE: loop exit
PB: predicated region body
PF: predicated region fallthrough
CT: control target
= control target key end

     0   :  { %12 = vsyncpa [#allocation5], 0  ;;  %s13412_s0 = inlined_call_operand.hbm [shape: bf16[2,384,128], index: 0, kind: input, shape index: {}]   ;;  %s13413_s1 = inlined_call_operand.hbm [shape: f32[1,128], index: 1, kind: input, shape index: {}]   ;;  %s13414_s2 = inlined_call_operand.hbm [shape: f32[1,128], index: 2, kind: input, shape index: {}]   ;;  %s13415_s3 = inlined_call_operand.hbm [shape: bf16[1152,128], index: 3, kind: input, shape index: {}]   ;;  %s13416_s4 = inlined_call_operand.hbm [shape: bf16[2,384,128], index: 4, kind: output, shape index: {0}]   ;;  %s13417_s5 = inlined_call_operand.hbm [shape: f32[2,1,128], index: 5, kind: output, shape index: {1}]   ;;  %s13418_s6 = inlined_call_operand.hbm [shape: f32[2,1,128], index: 6, kind: output, shape index: {2}]  }
   0x1   :  { %14 = vsyncpa [#allocation5 + $0x1], 0 }
   0x2   :  { %15 = vsyncpa [#allocation8], 0 }
   0x3   :  { %16 = vsyncpa [#allocation11], 0 }
   0x4   :  { %17 = vsyncpa [#allocation6], 0 }
   0x5   :  { %19 = vsyncpa [#allocation6 + $0x1], 0 }
   0x6   :  { %20 = vsyncpa [#allocation14], 0 }
   0x7   :  { %22 = vsyncpa [#allocation14 + $0x1], 0  ;;  %s10418_s21 = smov 0   ;;  %s10420_s22 = smov 0  }
   0x8   :  { %s10422_s23 = smov 0   ;;  %s10424_s24 = smov 0  }
   0x9 LB: > { %s10439_s25 = sadd.s32 4294967295, %s10369_s24   ;;  %s13422_s26 = sadd.s32 4294967294, %s10369_s24   ;;  %s10369_s24 = sphi %s10424_s24, %s14196_s24   ;;  %s10365_s23 = sphi %s10422_s23, %s14195_s23   ;;  %s10361_s22 = sphi %s10420_s22, %s14194_s22   ;;  %s10357_s21 = sphi %s10418_s21, %s14193_s21  }
   0xa   : > { %p48_p0 = scmp.ne.s32.totalorder %s10361_s22, %s10357_s21  ;;  %p13419_p1 = scmp.eq.s32.totalorder %s10439_s25, 0 }
   0xb   : > { %p141_p3 = scmp.eq.s32.totalorder %s13422_s26, 1  ;;  %p8093_p5 = scmp.ge.s32.totalorder %s10369_s24, 1 }
   0xc   : > { %p10450_p4 = por %p13419_p1, %p48_p0  ;;  %p200_p7 = scmp.lt.s32.totalorder %s10369_s24, 3 }
   0xd   : > { %p10455_p6 = por %p141_p3, %p48_p0  ;;  %s10371_s30 = smov [#allocation7]  }
   0xe   : > { %s13677_s27 = scalar_select %p10450_p4, 1, 0 }
   0xf   : > { %s13678_s28 = scalar_select %p10455_p6, 1, 0 }
  0x10   : > { %p10460_p8 = pnand %p8093_p5, %p200_p7  ;;  %s213_s7 = sshll.u32 %s10371_s30, 4  ;;  %s214_s7 = int_to_ptr.vmem [resolvable:$true] %s213_s7 }
  0x11   : > { %s10372_s8 = smov [#allocation9]   ;;  %s10373_s11 = smov [#allocation10]  }
  0x12   : > { %s13679_s29 = scalar_select %p10460_p8, 1, 0 }
  0x13   : > { %p9924_p10 = pneg %p10460_p8  ;;  %s224_s9 = sshll.u32 %s10372_s8, 4  ;;  %s10473_s9 = int_to_ptr.vmem [resolvable:$true] %s224_s9 }
  0x14   : > { %s234_s12 = sshll.u32 %s10373_s11, 4  ;;  %s10121_s15 = scalar_lea.hbm %s13413_s1, 16  ;;  %s10475_s12 = int_to_ptr.vmem [resolvable:$true] %s234_s12 }
  0x15   : > { %p10469_p11 = pnand %p9924_p10, %p13419_p1  ;;  %p10122_p12 = scmp.ne.s32.totalorder %s13413_s1, %s10121_s15 }
  0x16   : > { %p10128_p5 = scmp.lt.u32.totalorder %s10121_s15, %s13413_s1 }
  0x17   : > { %p10485_p13 = pneg %p10469_p11 }
  0x19   : > { %p10124_p0 = pnand %p10485_p13, %p10122_p12 }
  0x1b   : > { %p10125_p3 = pneg %p10124_p0 }
  0x1d   : > { %p10130_p7 = pnand %p10128_p5, %p10125_p3 }
  0x1f   : > { %10133 = shalt.err (!%p10130_p7)
}
  0x20   : > { %s10134_s30 = scalar_lea.vmem %s214_s7, 16  ;;  %s10141_s8 = scalar_lea.vmem %s214_s7, 32 }
  0x21   : > { %p10135_p10 = scmp.ne.s32.totalorder %s214_s7, %s10134_s30  ;;  %p10142_p2 = scmp.lt.s32.totalorder %s214_s7, %s214_s7 }
  0x22   : > { %p10143_p6 = scmp.lt.s32.totalorder %s10141_s8, %s10134_s30 }
  0x23   : > { %p10137_p9 = pnand %p10135_p10, %p10485_p13 }
  0x24   : > { %p10144_p4 = por %p10143_p6, %p10142_p2 }
  0x25   : > { %p10138_p1 = pneg %p10137_p9 }
  0x27   : > { %p10145_p8 = pnand %p10144_p4, %p10138_p1 }
  0x29   : > { %10148 = shalt.err (!%p10145_p8)
}
  0x2a   : > { %9927 = dma.hbm_to_vmem [thread:$0]  (!%p10469_p11), %s13413_s1, 16, %s214_s7, [#allocation8]  }
  0x2b   : > { %s10149_s16 = scalar_lea.hbm %s13414_s2, 16 }
  0x2c   : > { %p10150_p9 = scmp.ne.s32.totalorder %s13414_s2, %s10149_s16  ;;  %p10156_p1 = scmp.lt.u32.totalorder %s10149_s16, %s13414_s2 }
  0x2e   : > { %p10152_p12 = pnand %p10150_p9, %p10485_p13 }
  0x30   : > { %p10153_p2 = pneg %p10152_p12 }
  0x32   : > { %p10158_p4 = pnand %p10156_p1, %p10153_p2 }
  0x34   : > { %10161 = shalt.err (!%p10158_p4)
}
  0x35   : > { %s10162_s7 = scalar_lea.vmem %s10473_s9, 16  ;;  %s10169_s8 = scalar_lea.vmem %s10473_s9, 32 }
  0x36   : > { %p10163_p6 = scmp.ne.s32.totalorder %s10473_s9, %s10162_s7  ;;  %p10170_p3 = scmp.lt.s32.totalorder %s10473_s9, %s10473_s9 }
  0x37   : > { %p10171_p5 = scmp.lt.s32.totalorder %s10169_s8, %s10162_s7 }
  0x38   : > { %p10165_p8 = pnand %p10163_p6, %p10485_p13 }
  0x39   : > { %p10172_p7 = por %p10171_p5, %p10170_p3 }
  0x3a   : > { %p10166_p0 = pneg %p10165_p8 }
  0x3c   : > { %p10173_p10 = pnand %p10172_p7, %p10166_p0 }
  0x3e   : > { %10176 = shalt.err (!%p10173_p10)
}
  0x3f   : > { %9930 = dma.hbm_to_vmem [thread:$0]  (!%p10469_p11), %s13414_s2, 16, %s10473_s9, [#allocation8]  }
  0x40   : > { %s10177_s16 = scalar_lea.hbm %s13415_s3, 9216 }
  0x41   : > { %p10178_p9 = scmp.ne.s32.totalorder %s13415_s3, %s10177_s16  ;;  %p10184_p1 = scmp.lt.u32.totalorder %s10177_s16, %s13415_s3 }
  0x43   : > { %p10180_p12 = pnand %p10178_p9, %p10485_p13 }
  0x45   : > { %p10181_p2 = pneg %p10180_p12 }
  0x47   : > { %p10186_p4 = pnand %p10184_p1, %p10181_p2 }
  0x49   : > { %10189 = shalt.err (!%p10186_p4)
}
  0x4a   : > { %s10190_s9 = scalar_lea.vmem %s10475_s12, 9216  ;;  %p10198_p3 = scmp.lt.s32.totalorder %s10475_s12, %s10475_s12 }
  0x4b   : > { %p10191_p6 = scmp.ne.s32.totalorder %s10475_s12, %s10190_s9  ;;  %p10199_p5 = scmp.lt.s32.totalorder %s10190_s9, %s10190_s9 }
  0x4d   : > { %p10193_p8 = pnand %p10191_p6, %p10485_p13  ;;  %p10200_p7 = por %p10199_p5, %p10198_p3 }
  0x4f   : > { %p10194_p0 = pneg %p10193_p8 }
  0x51   : > { %p10201_p10 = pnand %p10200_p7, %p10194_p0 }
  0x53   : > { %10204 = shalt.err (!%p10201_p10)
}
  0x54   : > { %s13423_s7 = smov 64   ;;  %s13424_s18 = smov 4  }
  0x55   : > { %9933 = dma.hbm_to_vmem [thread:$0]  (!%p10469_p11), %s13415_s3, 9216, %s10475_s12, [#allocation11], %s13423_s7, %s13423_s7, %s13424_s18  }
  0x56   : > { %s10552_s13 = sadd.s32 1, %s10369_s24   ;;  %s35_s15 = sadd.s32 1, %s10365_s23 }
  0x57   : > { %s32_s14 = ssub.s32 %s10369_s24, %s10552_s13  ;;  %p42_p9 = scmp.ne.s32.totalorder %s10365_s23, %s10361_s22 }
  0x58   : > { %p33_p13 = scmp.eq.s32.totalorder %s32_s14, 0  ;;  %p43_p12 = scmp.eq.s32.totalorder %s10369_s24, 0 }
  0x59   : > { %p9951_p2 = scmp.lt.s32.totalorder %s10369_s24, 2  ;;  %p13682_p4 = scmp.eq.s32.totalorder %s10439_s25, 1 }
  0x5a   : > { %s10562_s16 = scalar_select %p33_p13, %s10365_s23, %s35_s15  }
  0x5b   : > { %p44_p1 = por %p43_p12, %p42_p9  ;;  %p10566_p6 = por %p13682_p4, %p42_p9 }
  0x5c   : > { %s248_s17 = sand.u32 1, %s10365_s23   ;;  %s9805_s19 = smul.u32 3072, %s10369_s24 }
  0x5d   : > { %s9804_s12 = smul.u32 192, %s248_s17  ;;  %p10572_p11 = pnand %p9951_p2, %p44_p1 }
  0x5e   : > { %s10579_s8 = scalar_lea.hbm %s13412_s0, %s9805_s19  ;;  %s10583_s15 = scalar_lea.sflag [#allocation5], %s248_s17 }
  0x5f   : > { %s252_s11 = scalar_lea.vmem [#allocation4], %s9804_s12  ;;  %s10205_s26 = scalar_lea.hbm %s10579_s8, 3072 }
  0x60   : > { %s259_s14 = sshll.u32 %s252_s11, 4  ;;  %p10206_p8 = scmp.ne.s32.totalorder %s10579_s8, %s10205_s26  ;;  %s10581_s14 = int_to_ptr.vmem [resolvable:$true] %s259_s14 }
  0x61   : > { %p10207_p0 = pneg %p10572_p11  ;;  %s10210_s9 = scalar_lea.hbm %s13412_s0, 6144 }
  0x62   : > { %p10211_p7 = scmp.lt.u32.totalorder %s10579_s8, %s13412_s0  ;;  %p10212_p10 = scmp.lt.u32.totalorder %s10210_s9, %s10205_s26 }
  0x63   : > { %p10208_p3 = pnand %p10207_p0, %p10206_p8  ;;  %p10214_p9 = scmp.lt.u32.totalorder %s10205_s26, %s10579_s8 }
  0x64   : > { %p10213_p13 = por %p10212_p10, %p10211_p7 }
  0x65   : > { %p10209_p5 = pneg %p10208_p3 }
  0x66   : > { %p10215_p12 = por %p10214_p9, %p10213_p13 }
  0x68   : > { %p10216_p2 = pnand %p10215_p12, %p10209_p5 }
  0x6a   : > { %10219 = shalt.err (!%p10216_p2)
}
  0x6b   : > { %s10220_s17 = scalar_lea.vmem %s10581_s14, 3072  ;;  %s10376_s12 = smov [#allocation4]  }
  0x6c   : > { %p10221_p1 = scmp.ne.s32.totalorder %s10581_s14, %s10220_s17  ;;  %s10225_s11 = sshll.u32 %s10376_s12, 4  ;;  %s10226_s11 = int_to_ptr.vmem [resolvable:$false] %s10225_s11 }
  0x6d   : > { %s10227_s7 = scalar_lea.vmem %s10226_s11, 6144  ;;  %p10228_p3 = scmp.lt.s32.totalorder %s10581_s14, %s10226_s11 }
  0x6e   : > { %p10223_p4 = pnand %p10221_p1, %p10207_p0  ;;  %p10229_p7 = scmp.lt.s32.totalorder %s10227_s7, %s10220_s17 }
  0x70   : > { %p10224_p8 = pneg %p10223_p4  ;;  %p10230_p10 = por %p10229_p7, %p10228_p3 }
  0x72   : > { %p10231_p13 = pnand %p10230_p10, %p10224_p8 }
  0x74   : > { %10234 = shalt.err (!%p10231_p13)
}
  0x75   : > { %s13685_s26 = smov 4   ;;  %s13686_s18 = smov 64  }
  0x76   : > { %9937 = dma.hbm_to_vmem [thread:$0]  (!%p10572_p11), %s10579_s8, 3072, %s10581_s14, %s10583_s15, %s13686_s18, %s13686_s18, %s13685_s26  }
  0x77   : > { %p13687_p0 = scmp.ne.s32.totalorder %s13679_s29, 0 }
  0x79   : > { %271 = sbr.rel (%p13687_p0) target bundleno = 1170 (0x492), region = 36 }
  0x80   : > { %s10617_s19 = sand.u32 1, %s10361_s22   ;;  %p13688_p5 = scmp.ne.s32.totalorder %s13677_s27, 0 }
  0x81   : > { %s9806_s30 = smul.u32 192, %s10617_s19  ;;  %s274_s9 = scalar_lea.sflag [#allocation5], %s10617_s19 }
  0x83   : > { %s10623_s20 = scalar_lea.vmem [#allocation4], %s9806_s30 }
  0x84   : > { %10336 = dma.done.wait (%p13688_p5), %s274_s9, 3072  }
  0x85   : > { %10338 = vsyncadd (%p13688_p5), %s274_s9, 4294964224  ;;  %p13689_p11 = scmp.eq.s32.totalorder %s10439_s25, 0 }
  0x87   : > { %10340 = dma.done.wait (%p13689_p11), [#allocation8], 32   ;;  %p13690_p9 = pmov %p13689_p11 }
  0x89   : > { %10342 = vsyncadd (%p13690_p9), [#allocation8], 4294967264  ;;  %p13691_p12 = pmov %p13690_p9 }
  0x8a   : > { %p13692_p2 = pmov %p13690_p9 }
  0x8b   : > { %10344 = dma.done.wait (%p13691_p12), [#allocation11], 9216  }
  0x8c   : > { %10346 = vsyncadd (%p13692_p2), [#allocation11], 4294958080  ;;  %v327_v0 = vlaneseq  ;;  %v10377_v1 = vmov 0   ;;  %v9996_v11 = vld [vmem:[#allocation10] sm:$0xff]   ;;  %v9998_v14 = vld [vmem:[#allocation10 + $0x8] sm:$0xff]   ;;  %v13695_v61 = vmov 0 }
  0x8d   : > { %1614 = vst [vmem:[#allocation2] sm:$0xff] %v10377_v1  ;;  %1615 = vst [vmem:[#allocation2 + $0x8] sm:$0xff] %v10377_v1  ;;  %v9997_v12 = vld [vmem:[#allocation10 + $0x100] sm:$0xff]   ;;  %8828 = vmatprep.subr.bf16.mxu1 %v9996_v11  ;;  %v1695_v15 = vrot.slane %v10377_v1, 3  ;;  %v9999_v16 = vld [vmem:[#allocation10 + $0x108] sm:$0xff]   ;;  %v1698_v21 = vrot.slane %v10377_v1, 4 }
  0x8e   : > { %1640 = vst [vmem:[#allocation2 + $0xd0] sm:$0xff] %v10377_v1  ;;  %1641 = vst [vmem:[#allocation2 + $0xd8] sm:$0xff] %v10377_v1  ;;  %v10637_v2 = vshrl.u32 %v327_v0, 7  ;;  %9084 = vmatprep.subr.bf16.mxu0 %v9997_v12  ;;  %8829 = vmatpush3.bf16.msra.mxu1 %v9996_v11  ;;  %v10000_v18 = vld [vmem:[#allocation10 + $0x10] sm:$0xff]   ;;  %v10002_v27 = vld [vmem:[#allocation10 + $0x18] sm:$0xff]   ;;  %s12708_s27 = scalar_lea.vmem [#allocation12], %s9806_s30 }
  0x8f   : > { %9085 = vmatpush3.bf16.msra.mxu0 %v9997_v12  ;;  %8830 = vmatprep.subr.bf16.mxu1 %v9998_v14  ;;  %v10001_v20 = vld [vmem:[#allocation10 + $0x110] sm:$0xff]   ;;  %v10003_v29 = vld [vmem:[#allocation10 + $0x118] sm:$0xff]   ;;  %v10004_v33 = vld [vmem:[#allocation10 + $0x20] sm:$0xff]   ;;  %vm13433_vm2 = vsmask.f32 4352  ;;  %v10670_v40 = vor.u32 %v1698_v21, %v1695_v15  ;;  %v13700_v21 = vmov 0 }
  0x90   : > { %v329_v3 = vadd.s32 8, %v10637_v2  ;;  %v10641_v4 = vmul.u32.u64.low 2863311531, %v10637_v2  ;;  %v10642_v5 = vmul.u32.u64.high 2863311531, %v10637_v2, %v10641_v4  ;;  %v330_v6 = vadd.s32 16, %v10637_v2  ;;  %9086 = vmatprep.subr.bf16.mxu0 %v9999_v16  ;;  %v10005_v34 = vld [vmem:[#allocation10 + $0x120] sm:$0xff]   ;;  %v10006_v37 = vld [vmem:[#allocation10 + $0x28] sm:$0xff]  }
  0x91   : > { %v10655_v24 = vadd.s32 24, %v10637_v2  ;;  %v10658_v25 = vadd.s32 32, %v10637_v2  ;;  %v10661_v26 = vadd.s32 40, %v10637_v2  ;;  %v10664_v28 = vadd.s32 48, %v10637_v2  ;;  %v10007_v39 = vld [vmem:[#allocation10 + $0x128] sm:$0xff]   ;;  %v8279_v43 = vld [vmem:[%s10623_s20] sm:$0xff]  }
  0x92   : > { %v10645_v7 = vmul.u32.u64.low 2863311531, %v329_v3  ;;  %v10646_v8 = vmul.u32.u64.high 2863311531, %v329_v3, %v10645_v7  ;;  %v10648_v9 = vmul.u32.u64.low 2863311531, %v330_v6  ;;  %v10649_v10 = vmul.u32.u64.high 2863311531, %v330_v6, %v10648_v9  ;;  %8831 = vmatpush3.bf16.msra.mxu1 %v9998_v14  ;;  %v10687_v52 = vld [vmem:[#allocation7] ss:$0 sm:$0xff] }
  0x93   : > { %v382_v13 = vshrl.u32 %v10642_v5, 4  ;;  %9087 = vmatpush3.bf16.msra.mxu0 %v9999_v16  ;;  %8832 = vmatprep.subr.bf16.mxu1 %v10000_v18  ;;  %v10668_v32 = vadd.s32 56, %v10637_v2  ;;  %v10673_v41 = vadd.s32 64, %v10637_v2  ;;  %v10683_v47 = vadd.s32 72, %v10637_v2  ;;  %v10689_v53 = vld [vmem:[#allocation9] ss:$0 sm:$0xff] }
  0x94   : > { %v393_v19 = vshrl.u32 %v10646_v8, 4  ;;  %9088 = vmatprep.subr.bf16.mxu0 %v10001_v20  ;;  %v404_v31 = vshrl.u32 %v10649_v10, 4  ;;  %v1642_v42 = vld [vmem:[#allocation2] sm:$0xf8]  ;;  %v10679_v45 = vmul.u32.u64.low 2863311531, %v10655_v24  ;;  %v10680_v46 = vmul.u32.u64.high 2863311531, %v10655_v24, %v10679_v45 }
  0x95   : > { %v383_v17 = vmul.u32 24, %v382_v13  ;;  %v1685_v48 = vshrl.u32 %v1642_v42, 16  ;;  %v1688_v49 = vshll.u32 %v1642_v42, 16  ;;  %v8280_v51 = vunpack.c.l.bf16 %v8279_v43  ;;  %v10008_v54 = vld [vmem:[#allocation10 + $0x30] sm:$0xff]   ;;  %v8494_v63 = vld [vmem:[%s10623_s20 + $0x8] sm:$0xff]   ;;  %v10010_v9 = vld [vmem:[#allocation10 + $0x38] sm:$0xff]  }
  0x96   : > { %v394_v23 = vmul.u32 24, %v393_v19  ;;  %8833 = vmatpush3.bf16.msra.mxu1 %v10000_v18  ;;  %v405_v36 = vmul.u32 24, %v404_v31  ;;  %v8281_v57 = vunpack.c.h.bf16 %v8279_v43  ;;  %v10696_v58 = vadd.s32 80, %v10637_v2  ;;  %v10009_v0 = vld [vmem:[#allocation10 + $0x130] sm:$0xff]   ;;  %v10013_v43 = vld [vmem:[#allocation10 + $0x140] sm:$0xff]   ;;  %s319_s29 = scalar_lea.vmem [#allocation13], %s10617_s19 }
  0x97   : > { %v384_v22 = vsub.s32 %v10637_v2, %v383_v17  ;;  %9089 = vmatpush3.bf16.msra.mxu0 %v10001_v20  ;;  %8834 = vmatprep.subr.bf16.mxu1 %v10002_v27  ;;  %v1687_v59 = vrot.slane %v1685_v48, 3  ;;  %v1690_v60 = vrot.slane %v1688_v49, 4  ;;  %v1295_v62 = vmul.f32 %v8280_v51, %v10687_v52  ;;  %v8495_v18 = vld [vmem:[%s10623_s20 + $0x10] sm:$0xff]   ;;  %v10748_v48 = vld [vmem:[%s10623_s20 + $0x18] sm:$0xff]   ;;  %s7894_s8 = sand.u32 1, %s10439_s25   ;;  %s8226_s14 = sshll.u32 %s10439_s25, 4 }
  0x98   : > { %v395_v30 = vsub.s32 %v329_v3, %v394_v23  ;;  %9090 = vmatprep.subr.bf16.mxu0 %v10003_v29  ;;  %v406_v44 = vsub.s32 %v330_v6, %v405_v36  ;;  %v1296_v1 = vmul.f32 %v8281_v57, %v10687_v52  ;;  %v415_v3 = vshrl.u32 %v10680_v46, 4  ;;  %v10011_v23 = vld [vmem:[#allocation10 + $0x138] sm:$0xff]   ;;  %s13053_s12 = scalar_lea.hbm %s13417_s5, %s8226_s14  ;;  %s7927_s11 = sshll.u32 %s319_s29, 4  ;;  %s13063_s11 = int_to_ptr.vmem [resolvable:$true] %s7927_s11 }
  0x99   : > { %vm904_vm0 = vcmp.ne.s32.totalorder %v384_v22, 0  ;;  %vm952_vm1 = vcmp.lt.s32.totalorder %v384_v22, 0  ;;  %v1048_v35 = vadd.s32 24, %v384_v22  ;;  %v1691_v4 = vor.u32 %v1690_v60, %v1687_v59  ;;  %s13073_s7 = scalar_lea.sflag [#allocation14], %s7894_s8  ;;  %s10235_s26 = scalar_lea.vmem %s13063_s11, 16 }
  0x9a   : > { %vm905_vm3 = vcmp.ne.s32.totalorder %v395_v30, 0  ;;  %vm953_vm4 = vcmp.lt.s32.totalorder %v395_v30, 0  ;;  %v1049_v38 = vadd.s32 24, %v395_v30  ;;  %8835 = vmatpush3.bf16.msra.mxu1 %v10002_v27  ;;  %vm1000_vm5 = vmand %vm952_vm1, %vm904_vm0  ;;  %vm906_vm9 = vcmp.ne.s32.totalorder %v406_v44, 0  ;;  %p10236_p1 = scmp.ne.s32.totalorder %s13063_s11, %s10235_s26  ;;  %s10378_s18 = smov [#allocation13]  }
  0x9b   : > { %9091 = vmatpush3.bf16.msra.mxu0 %v10003_v29  ;;  %8836 = vmatprep.subr.bf16.mxu1 %v10004_v33  ;;  %vm1001_vm6 = vmand %vm953_vm4, %vm905_vm3  ;;  %v1096_v50 = vsel %vm1000_vm5, %v1048_v35, %v384_v22  ;;  %vm954_vm10 = vcmp.lt.s32.totalorder %v406_v44, 0  ;;  %v1350_v5 = vadd.f32 %v10689_v53, %v1295_v62  ;;  %v1050_v7 = vadd.s32 24, %v406_v44  ;;  %v10012_v35 = vld [vmem:[#allocation10 + $0x40] sm:$0xff]   ;;  %s10239_s30 = sshll.u32 %s10378_s18, 4  ;;  %s10240_s30 = int_to_ptr.vmem [resolvable:$false] %s10239_s30 }
  0x9c   : > { %9092 = vmatprep.subr.bf16.mxu0 %v10005_v34  ;;  %v1097_v55 = vsel %vm1001_vm6, %v1049_v38, %v395_v30  ;;  %vm10691_vm7 = vcmp.lt.s32.totalorder %v1096_v50, 16  ;;  %vm10707_vm11 = vmand %vm954_vm10, %vm906_vm9  ;;  %v8284_v8 = vunpack.c.l.bf16 %v8494_v63  ;;  %v1351_v10 = vadd.f32 %v10689_v53, %v1296_v1  ;;  %p10237_p4 = pnand %p10236_p1, %p10566_p6  ;;  %s10241_s9 = scalar_lea.vmem %s10240_s30, 32 }
  0x9d   : > { %vm10698_vm8 = vcmp.lt.s32.totalorder %v1097_v55, 16  ;;  %v416_v11 = vmul.u32 24, %v415_v3  ;;  %v8285_v12 = vunpack.c.h.bf16 %v8494_v63  ;;  %v10713_v13 = vadd.s32 88, %v10637_v2  ;;  %p10242_p3 = scmp.lt.s32.totalorder %s13063_s11, %s10240_s30  ;;  %p10243_p7 = scmp.lt.s32.totalorder %s10241_s9, %s10235_s26 }
  0x9e   : > { %8837 = vmatpush3.bf16.msra.mxu1 %v10004_v33  ;;  %v13696_v61 = vsel %vm10698_vm8, 4294967295, %v13695_v61  ;;  %v1700_v14 = vsel %vm13433_vm2, %v1691_v4, %v10670_v40  ;;  %v1398_v15 = vmax.f32 %v1350_v5, 0.0  ;;  %v1098_v16 = vsel %vm10707_vm11, %v1050_v7, %v406_v44  ;;  %vm10085_vm0 = vmpackc.low %vm10698_vm8, %vm10691_vm7  ;;  %p10238_p8 = pneg %p10237_p4 }
  0x9f   : > { %13697 = vst [vmem:[#allocation21_spill] sm:$0xff] %v13696_v61  ;;  %9093 = vmatpush3.bf16.msra.mxu0 %v10005_v34  ;;  %8838 = vmatprep.subr.bf16.mxu1 %v10006_v37  ;;  %v1297_v17 = vmul.f32 %v8284_v8, %v10687_v52  ;;  %v1399_v19 = vmax.f32 %v1351_v10, 0.0  ;;  %v417_v20 = vsub.s32 %v10655_v24, %v416_v11  ;;  %vm10722_vm12 = vcmp.lt.s32.totalorder %v1098_v16, 16  ;;  %v10014_v10 = vld [vmem:[#allocation10 + $0x148] sm:$0xff]   ;;  %p10244_p10 = por %p10243_p7, %p10242_p3 }
  0xa0   : > { %9094 = vmatprep.subr.bf16.mxu0 %v10007_v39  ;;  %v13701_v21 = vsel %vm10722_vm12, 4294967295, %v13700_v21  ;;  %v1298_v22 = vmul.f32 %v8285_v12, %v10687_v52  ;;  %8844 = vmatprep.mubr.bf16.mxu1 %v1700_v14  ;;  %v1542_v27 = vsel %vm10691_vm7, %v1398_v15, 0.0  ;;  %v8289_v46 = vunpack.c.h.bf16 %v8495_v18 }
  0xa1   : > { %13702 = vst [vmem:[#allocation22_spill] sm:$0xff] %v13701_v21  ;;  %v1352_v29 = vadd.f32 %v10689_v53, %v1297_v17  ;;  %v10731_v30 = vmul.u32.u64.low 2863311531, %v10658_v25  ;;  %v10732_v31 = vmul.u32.u64.high 2863311531, %v10658_v25, %v10731_v30  ;;  %v1543_v24 = vsel %vm10698_vm8, %v1399_v19, 0.0  ;;  %p10245_p13 = pnand %p10244_p10, %p10238_p8 }
  0xa2   : > { %8839 = vmatpush3.bf16.msra.mxu1 %v10006_v37  ;;  %vm907_vm13 = vcmp.ne.s32.totalorder %v417_v20, 0  ;;  %vm955_vm14 = vcmp.lt.s32.totalorder %v417_v20, 0  ;;  %v1051_v33 = vadd.s32 24, %v417_v20  ;;  %v1590_v34 = vpack.c.bf16 %v1543_v24, %v1542_v27 }
  0xa3   : > { %9095 = vmatpush3.bf16.msra.mxu0 %v10007_v39  ;;  %8840 = vmatprep.subr.bf16.mxu1 %v10008_v54  ;;  %vm10736_vm15 = vmand %vm955_vm14, %vm907_vm13  ;;  %v1353_v37 = vadd.f32 %v10689_v53, %v1298_v22  ;;  %v1400_v38 = vmax.f32 %v1352_v29, 0.0  ;;  %v8288_v39 = vunpack.c.l.bf16 %v8495_v18  ;;  %v10086_v49 = vpack.c.bf16 %v1399_v19, %v1398_v15  ;;  %v10015_v18 = vld [vmem:[#allocation10 + $0x48] sm:$0xff]  }
  0xa4   : > { %9096 = vmatprep.subr.bf16.mxu0 %v10009_v0  ;;  %v1099_v42 = vsel %vm10736_vm15, %v1051_v33, %v417_v20  ;;  %v10744_v44 = vmul.u32.u64.low 2863311531, %v10661_v26  ;;  %v10745_v45 = vmul.u32.u64.high 2863311531, %v10661_v26, %v10744_v44  ;;  %1616 = vst [vmem:[#allocation2 + $0x10] sm:$0xff] %v1590_v34  ;;  %v1702_v50 = vshrl.u32 %v1590_v34, 16  ;;  %v10016_v33 = vld [vmem:[#allocation10 + $0x150] sm:$0xff]  }
  0xa5   : > { %10087 = vmatprep.mubr.msk.bf16.mxu0 %vm10085_vm0, %v10086_v49  ;;  %v1705_v51 = vshll.u32 %v1590_v34, 16  ;;  %vm10754_vm1 = vcmp.lt.s32.totalorder %v1099_v42, 16  ;;  %v1401_v55 = vmax.f32 %v1353_v37, 0.0  ;;  %v1544_v57 = vsel %vm10722_vm12, %v1400_v38, 0.0 }
  0xa6   : > { %8841 = vmatpush3.bf16.msra.mxu1 %v10008_v54  ;;  %v13705_v54 = vmov 0  ;;  %v426_v59 = vshrl.u32 %v10732_v31, 4  ;;  %v1299_v60 = vmul.f32 %v8288_v39, %v10687_v52  ;;  %v1300_v62 = vmul.f32 %v8289_v46, %v10687_v52  ;;  %vm10088_vm3 = vmpackc.low %vm10754_vm1, %vm10722_vm12  ;;  %v10018_v39 = vld [vmem:[#allocation10 + $0x50] sm:$0xff]  }
  0xa7   : > { %9097 = vmatpush3.bf16.msra.mxu0 %v10009_v0  ;;  %8842 = vmatprep.subr.bf16.mxu1 %v10010_v9  ;;  %v13706_v54 = vsel %vm10754_vm1, 4294967295, %v13705_v54  ;;  %v1704_v63 = vrot.slane %v1702_v50, 3  ;;  %v1707_v0 = vrot.slane %v1705_v51, 4  ;;  %v1545_v1 = vsel %vm10754_vm1, %v1401_v55, 0.0  ;;  %v8497_v51 = vld [vmem:[%s10623_s20 + $0x20] sm:$0xff]  }
  0xa8   : > { %9098 = vmatprep.subr.bf16.mxu0 %v10011_v23  ;;  %13707 = vst [vmem:[#allocation23_spill] sm:$0xff] %v13706_v54  ;;  %v8292_v3 = vunpack.c.l.bf16 %v10748_v48  ;;  %v1591_v4 = vpack.c.bf16 %v1545_v1, %v1544_v57  ;;  %v427_v5 = vmul.u32 24, %v426_v59  ;;  %v437_v6 = vshrl.u32 %v10745_v45, 4 }
  0xa9   : > { %v10768_v7 = vadd.f32 %v10689_v53, %v1299_v60  ;;  %v1708_v8 = vor.u32 %v1707_v0, %v1704_v63  ;;  %v10774_v11 = vmul.u32.u64.low 2863311531, %v10664_v28  ;;  %v10775_v12 = vmul.u32.u64.high 2863311531, %v10664_v28, %v10774_v11  ;;  %v10021_v0 = vld [vmem:[#allocation10 + $0x58] sm:$0xff]  }
  0xaa   : > { %8843 = vmatpush3.bf16.msra.mxu1 %v10010_v9  ;;  %v10771_v9 = vadd.f32 %v10689_v53, %v1300_v62  ;;  %1617 = vst [vmem:[#allocation2 + $0x18] sm:$0xff] %v1591_v4  ;;  %v1711_v14 = vshrl.u32 %v1591_v4, 16  ;;  %v1714_v15 = vshll.u32 %v1591_v4, 16  ;;  %v428_v16 = vsub.s32 %v10658_v25, %v427_v5 }
  0xab   : > { %9099 = vmatpush3.bf16.msra.mxu0 %v10011_v23  ;;  %8892 = vmatprep.subr.bf16.mxu1 %v10012_v35  ;;  %v438_v17 = vmul.u32 24, %v437_v6  ;;  %v1709_v19 = vsel %vm13433_vm2, %v10670_v40, %v1708_v8  ;;  %v10089_v20 = vpack.c.bf16 %v1401_v55, %v1400_v38  ;;  %v1402_v22 = vmax.f32 %v10768_v7, 0.0  ;;  %v10017_v55 = vld [vmem:[#allocation10 + $0x158] sm:$0xff]  }
  0xac   : > { %9148 = vmatprep.subr.bf16.mxu0 %v10013_v43  ;;  %v1403_v23 = vmax.f32 %v10771_v9, 0.0  ;;  %v8293_v27 = vunpack.c.h.bf16 %v10748_v48  ;;  %v1713_v25 = vrot.slane %v1711_v14, 3  ;;  %v1716_v29 = vrot.slane %v1714_v15, 4 }
  0xad   : > { %8845 = vmatmul.mubr.bf16.vlgmr.msra.gmra.mrb[0].mxu1 %v1709_v19  ;;  %v439_v30 = vsub.s32 %v10661_v26, %v438_v17  ;;  %vm908_vm4 = vcmp.ne.s32.totalorder %v428_v16, 0  ;;  %vm956_vm5 = vcmp.lt.s32.totalorder %v428_v16, 0  ;;  %v1052_v40 = vadd.s32 24, %v428_v16 }
  0xae   : > { %10090 = vmatmul.mubr.msk.bf16.vlgmr.msra.gmra.mrb[0].mxu0 %vm10088_vm3, %v10089_v20  ;;  %8893 = vmatpush3.bf16.msra.mxu1 %v10012_v35  ;;  %v448_v31 = vshrl.u32 %v10775_v12, 4  ;;  %v1301_v24 = vmul.f32 %v8292_v3, %v10687_v52  ;;  %v10790_v34 = vor.u32 %v1716_v29, %v1713_v25  ;;  %vm1004_vm10 = vmand %vm956_vm5, %vm908_vm4  ;;  %v13708_v44 = vmov 0  ;;  %v10019_v12 = vld [vmem:[#allocation10 + $0x160] sm:$0xff]  }
  0xaf   : > { %9149 = vmatpush3.bf16.msra.mxu0 %v10013_v43  ;;  %vm909_vm6 = vcmp.ne.s32.totalorder %v439_v30, 0  ;;  %vm957_vm9 = vcmp.lt.s32.totalorder %v439_v30, 0  ;;  %v1053_v36 = vadd.s32 24, %v439_v30  ;;  %8894 = vmatprep.subr.bf16.mxu1 %v10015_v18  ;;  %v1100_v26 = vsel %vm1004_vm10, %v1052_v40, %v428_v16  ;;  %v10020_v40 = vld [vmem:[#allocation10 + $0x168] sm:$0xff]  }
  0xb0   : > { %9150 = vmatprep.subr.bf16.mxu0 %v10014_v10  ;;  %vm1005_vm11 = vmand %vm957_vm9, %vm909_vm6  ;;  %v449_v37 = vmul.u32 24, %v448_v31  ;;  %v10793_v35 = vmul.u32.u64.low 2863311531, %v10668_v32  ;;  %v10794_v38 = vmul.u32.u64.high 2863311531, %v10668_v32, %v10793_v35  ;;  %v1718_v42 = vsel %vm13433_vm2, %v1708_v8, %v10790_v34 }
  0xb1   : > { %v1101_v43 = vsel %vm1005_vm11, %v1053_v36, %v439_v30  ;;  %vm10798_vm13 = vcmp.lt.s32.totalorder %v1100_v26, 16  ;;  %v1302_v45 = vmul.f32 %v8293_v27, %v10687_v52  ;;  %8848 = vmatprep.mubr.bf16.mxu1 %v1718_v42  ;;  %v13711_v46 = vmov 0 }
  0xb2   : > { %v13709_v44 = vsel %vm10798_vm13, 4294967295, %v13708_v44  ;;  %vm10803_vm14 = vcmp.lt.s32.totalorder %v1101_v43, 16  ;;  %v1546_v48 = vsel %vm10798_vm13, %v1402_v22, 0.0  ;;  %v450_v49 = vsub.s32 %v10664_v28, %v449_v37  ;;  %8895 = vmatpush3.bf16.msra.mxu1 %v10015_v18 }
  0xb3   : > { %13710 = vst [vmem:[#allocation24_spill] sm:$0xff] %v13709_v44  ;;  %9151 = vmatpush3.bf16.msra.mxu0 %v10014_v10  ;;  %v13712_v46 = vsel %vm10803_vm14, 4294967295, %v13711_v46  ;;  %v10811_v50 = vadd.f32 %v10689_v53, %v1301_v24  ;;  %v1547_v57 = vsel %vm10803_vm14, %v1403_v23, 0.0  ;;  %v10817_v59 = vadd.f32 %v10689_v53, %v1302_v45  ;;  %8896 = vmatprep.subr.bf16.mxu1 %v10018_v39  ;;  %vm10091_vm4 = vmpackc.low %vm10803_vm14, %vm10798_vm13  ;;  %v10026_v24 = vld [vmem:[#allocation10 + $0x68] sm:$0xff]  }
  0xb4   : > { %13713 = vst [vmem:[#allocation25_spill] sm:$0xff] %v13712_v46  ;;  %9152 = vmatprep.subr.bf16.mxu0 %v10016_v33  ;;  %v10820_v60 = vmul.u32.u64.low 2863311531, %v10673_v41  ;;  %v10821_v62 = vmul.u32.u64.high 2863311531, %v10673_v41, %v10820_v60  ;;  %v1592_v63 = vpack.c.bf16 %v1547_v57, %v1546_v48  ;;  %v459_v28 = vshrl.u32 %v10794_v38, 4  ;;  %v8498_v45 = vld [vmem:[%s10623_s20 + $0x28] sm:$0xff]   ;;  %v10022_v48 = vld [vmem:[#allocation10 + $0x170] sm:$0xff]  }
  0xb5   : > { %vm910_vm15 = vcmp.ne.s32.totalorder %v450_v49, 0  ;;  %vm958_vm0 = vcmp.lt.s32.totalorder %v450_v49, 0  ;;  %v1054_v3 = vadd.s32 24, %v450_v49  ;;  %v1404_v4 = vmax.f32 %v10811_v50, 0.0 }
  0xb6   : > { %vm10824_vm3 = vmand %vm958_vm0, %vm910_vm15  ;;  %v1405_v5 = vmax.f32 %v10817_v59, 0.0  ;;  %v8296_v6 = vunpack.c.l.bf16 %v8497_v51  ;;  %1618 = vst [vmem:[#allocation2 + $0x20] sm:$0xff] %v1592_v63  ;;  %v10092_v7 = vpack.c.bf16 %v1403_v23, %v1402_v22  ;;  %v1720_v8 = vshrl.u32 %v1592_v63, 16  ;;  %8897 = vmatpush3.bf16.msra.mxu1 %v10018_v39  ;;  %v10024_v23 = vld [vmem:[#allocation10 + $0x60] sm:$0xff]   ;;  %v10023_v59 = vld [vmem:[#allocation10 + $0x178] sm:$0xff]  }
  0xb7   : > { %9153 = vmatpush3.bf16.msra.mxu0 %v10016_v33  ;;  %v1723_v10 = vshll.u32 %v1592_v63, 16  ;;  %v460_v9 = vmul.u32 24, %v459_v28  ;;  %v8297_v11 = vunpack.c.h.bf16 %v8497_v51  ;;  %v1102_v14 = vsel %vm10824_vm3, %v1054_v3, %v450_v49  ;;  %8898 = vmatprep.subr.bf16.mxu1 %v10021_v0 }
  0xb8   : > { %10093 = vmatprep.mubr.msk.bf16.mxu0 %vm10091_vm4, %v10092_v7  ;;  %9154 = vmatprep.subr.bf16.mxu0 %v10017_v55  ;;  %v470_v15 = vshrl.u32 %v10821_v62, 4  ;;  %v10838_v16 = vmul.u32.u64.low 2863311531, %v10683_v47  ;;  %v10839_v17 = vmul.u32.u64.high 2863311531, %v10683_v47, %v10838_v16  ;;  %v1722_v18 = vrot.slane %v1720_v8, 3 }
  0xb9   : > { %v1725_v19 = vrot.slane %v1723_v10, 4  ;;  %v461_v20 = vsub.s32 %v10668_v32, %v460_v9  ;;  %vm10842_vm5 = vcmp.lt.s32.totalorder %v1102_v14, 16  ;;  %v13716_v22 = vmov 0 }
  0xba   : > { %v13717_v22 = vsel %vm10842_vm5, 4294967295, %v13716_v22  ;;  %v1548_v27 = vsel %vm10842_vm5, %v1404_v4, 0.0  ;;  %v471_v25 = vmul.u32 24, %v470_v15  ;;  %v1303_v29 = vmul.f32 %v8296_v6, %v10687_v52  ;;  %8899 = vmatpush3.bf16.msra.mxu1 %v10021_v0 }
  0xbb   : > { %13718 = vst [vmem:[#allocation26_spill] sm:$0xff] %v13717_v22  ;;  %v1304_v30 = vmul.f32 %v8297_v11, %v10687_v52  ;;  %9155 = vmatpush3.bf16.msra.mxu0 %v10017_v55  ;;  %v10852_v31 = vor.u32 %v1725_v19, %v1722_v18  ;;  %vm911_vm6 = vcmp.ne.s32.totalorder %v461_v20, 0  ;;  %vm959_vm9 = vcmp.lt.s32.totalorder %v461_v20, 0  ;;  %8900 = vmatprep.subr.bf16.mxu1 %v10024_v23 }
  0xbc   : > { %v1055_v32 = vadd.s32 24, %v461_v20  ;;  %9156 = vmatprep.subr.bf16.mxu0 %v10019_v12  ;;  %vm1007_vm10 = vmand %vm959_vm9, %vm911_vm6  ;;  %v472_v33 = vsub.s32 %v10673_v41, %v471_v25  ;;  %v481_v36 = vshrl.u32 %v10839_v17, 4  ;;  %v10857_v26 = vadd.f32 %v10689_v53, %v1303_v29  ;;  %v8499_v29 = vld [vmem:[%s10623_s20 + $0x30] sm:$0xff]  }
  0xbd   : > { %v10860_v37 = vadd.f32 %v10689_v53, %v1304_v30  ;;  %v1727_v35 = vsel %vm13433_vm2, %v10790_v34, %v10852_v31  ;;  %v10866_v39 = vmul.u32.u64.low 2863311531, %v10696_v58  ;;  %v10867_v42 = vmul.u32.u64.high 2863311531, %v10696_v58, %v10866_v39 }
  0xbe   : > { %v1103_v38 = vsel %vm1007_vm10, %v1055_v32, %v461_v20  ;;  %8849 = vmatmul.mubr.bf16.gmra.mrb[4].mxu1 %v1727_v35  ;;  %v13719_v41 = vmov 0  ;;  %v482_v43 = vmul.u32 24, %v481_v36  ;;  %vm912_vm15 = vcmp.ne.s32.totalorder %v472_v33, 0 }
  0xbf   : > { %vm10869_vm11 = vcmp.lt.s32.totalorder %v1103_v38, 16  ;;  %vm960_vm0 = vcmp.lt.s32.totalorder %v472_v33, 0  ;;  %9157 = vmatpush3.bf16.msra.mxu0 %v10019_v12  ;;  %v1056_v51 = vadd.s32 24, %v472_v33  ;;  %v1406_v55 = vmax.f32 %v10857_v26, 0.0  ;;  %8901 = vmatpush3.bf16.msra.mxu1 %v10024_v23 }
  0xc0   : > { %v13720_v41 = vsel %vm10869_vm11, 4294967295, %v13719_v41  ;;  %v1549_v34 = vsel %vm10869_vm11, %v1405_v5, 0.0  ;;  %vm10878_vm3 = vmand %vm960_vm0, %vm912_vm15  ;;  %v1407_v57 = vmax.f32 %v10860_v37, 0.0  ;;  %9158 = vmatprep.subr.bf16.mxu0 %v10020_v40  ;;  %v483_v62 = vsub.s32 %v10683_v47, %v482_v43  ;;  %8902 = vmatprep.subr.bf16.mxu1 %v10026_v24 }
  0xc1   : > { %13721 = vst [vmem:[#allocation27_spill] sm:$0xff] %v13720_v41  ;;  %v1593_v60 = vpack.c.bf16 %v1549_v34, %v1548_v27  ;;  %v10886_v63 = vmul.u32.u64.low 2863311531, %v10713_v13  ;;  %v10887_v28 = vmul.u32.u64.high 2863311531, %v10713_v13, %v10886_v63  ;;  %v1104_v0 = vsel %vm10878_vm3, %v1056_v51, %v472_v33  ;;  %vm10094_vm4 = vmpackc.low %vm10869_vm11, %vm10842_vm5 }
  0xc2   : > { %v492_v1 = vshrl.u32 %v10867_v42, 4  ;;  %v8300_v3 = vunpack.c.l.bf16 %v8498_v45  ;;  %v8301_v6 = vunpack.c.h.bf16 %v8498_v45  ;;  %v10095_v47 = vpack.c.bf16 %v1405_v5, %v1404_v4 }
  0xc3   : > { %1619 = vst [vmem:[#allocation2 + $0x28] sm:$0xff] %v1593_v60  ;;  %v1729_v7 = vshrl.u32 %v1593_v60, 16  ;;  %v1732_v8 = vshll.u32 %v1593_v60, 16  ;;  %vm913_vm6 = vcmp.ne.s32.totalorder %v483_v62, 0  ;;  %vm961_vm9 = vcmp.lt.s32.totalorder %v483_v62, 0  ;;  %9159 = vmatpush3.bf16.msra.mxu0 %v10020_v40  ;;  %8903 = vmatpush3.bf16.msra.mxu1 %v10026_v24  ;;  %v10931_v40 = vld [vmem:[#allocation10 + $0x180] sm:$0xff]  }
  0xc4   : > { %10096 = vmatmul.mubr.msk.bf16.gmra.mrb[4].mxu0 %vm10094_vm4, %v10095_v47  ;;  %vm10900_vm10 = vmand %vm961_vm9, %vm913_vm6  ;;  %v1057_v9 = vadd.s32 24, %v483_v62  ;;  %vm10904_vm15 = vcmp.lt.s32.totalorder %v1104_v0, 16  ;;  %v13726_v11 = vmov 0  ;;  %v493_v12 = vmul.u32 24, %v492_v1  ;;  %9160 = vmatprep.subr.bf16.mxu0 %v10022_v48 }
  0xc5   : > { %v13727_v11 = vsel %vm10904_vm15, 4294967295, %v13726_v11  ;;  %v1305_v50 = vmul.f32 %v8300_v3, %v10687_v52  ;;  %v1731_v4 = vrot.slane %v1729_v7, 3  ;;  %v1734_v5 = vrot.slane %v1732_v8, 4 }
  0xc6   : > { %13728 = vst [vmem:[#allocation28_spill] sm:$0xff] %v13727_v11  ;;  %v1550_v14 = vsel %vm10904_vm15, %v1406_v55, 0.0  ;;  %v503_v15 = vshrl.u32 %v10887_v28, 4  ;;  %v1105_v16 = vsel %vm10900_vm10, %v1057_v9, %v483_v62  ;;  %v494_v17 = vsub.s32 %v10696_v58, %v493_v12  ;;  %v8500_v62 = vld [vmem:[%s10623_s20 + $0x38] sm:$0xff]  }
  0xc7   : > { %v1306_v18 = vmul.f32 %v8301_v6, %v10687_v52  ;;  %v10919_v19 = vadd.f32 %v10689_v53, %v1305_v50  ;;  %v1735_v20 = vor.u32 %v1734_v5, %v1731_v4  ;;  %vm10921_vm0 = vcmp.lt.s32.totalorder %v1105_v16, 16  ;;  %9161 = vmatpush3.bf16.msra.mxu0 %v10022_v48 }
  0xc8   : > { %v13729_v23 = vmov 0  ;;  %v504_v27 = vmul.u32 24, %v503_v15  ;;  %v10926_v25 = vadd.s32 96, %v10637_v2  ;;  %v1551_v30 = vsel %vm10921_vm0, %v1407_v57, 0.0  ;;  %9162 = vmatprep.subr.bf16.mxu0 %v10023_v59  ;;  %vm10097_vm9 = vmpackc.low %vm10921_vm0, %vm10904_vm15 }
  0xc9   : > { %v13730_v23 = vsel %vm10921_vm0, 4294967295, %v13729_v23  ;;  %vm914_vm3 = vcmp.ne.s32.totalorder %v494_v17, 0  ;;  %vm962_vm4 = vcmp.lt.s32.totalorder %v494_v17, 0  ;;  %v1058_v58 = vadd.s32 24, %v494_v17 }
  0xca   : > { %13731 = vst [vmem:[#allocation29_spill] sm:$0xff] %v13730_v23  ;;  %v1736_v32 = vsel %vm13433_vm2, %v10852_v31, %v1735_v20  ;;  %v1594_v24 = vpack.c.bf16 %v1551_v30, %v1550_v14  ;;  %v505_v33 = vsub.s32 %v10713_v13, %v504_v27  ;;  %vm10936_vm6 = vmand %vm962_vm4, %vm914_vm3  ;;  %v1361_v37 = vadd.f32 %v10689_v53, %v1306_v18  ;;  %v2810_v23 = vld [vmem:[#allocation2] sm:$0xf0] }
  0xcb   : > { %8852 = vmatprep.mubr.bf16.mxu1 %v1736_v32  ;;  %v1106_v35 = vsel %vm10936_vm6, %v1058_v58, %v494_v17  ;;  %v1408_v38 = vmax.f32 %v10919_v19, 0.0  ;;  %v10945_v39 = vadd.s32 104, %v10637_v2  ;;  %v8304_v31 = vunpack.c.l.bf16 %v8499_v29  ;;  %9163 = vmatpush3.bf16.msra.mxu0 %v10023_v59 }
  0xcc   : > { %1620 = vst [vmem:[#allocation2 + $0x30] sm:$0xff] %v1594_v24  ;;  %v10098_v13 = vpack.c.bf16 %v1407_v57, %v1406_v55  ;;  %v1738_v42 = vshrl.u32 %v1594_v24, 16  ;;  %v1741_v43 = vshll.u32 %v1594_v24, 16  ;;  %vm915_vm10 = vcmp.ne.s32.totalorder %v505_v33, 0  ;;  %9212 = vmatprep.subr.bf16.mxu0 %v10931_v40 }
  0xcd   : > { %vm963_vm3 = vcmp.lt.s32.totalorder %v505_v33, 0  ;;  %v1059_v48 = vadd.s32 24, %v505_v33  ;;  %vm10957_vm6 = vcmp.lt.s32.totalorder %v1106_v35, 16  ;;  %v13736_v34 = vmov 0 }
  0xce   : > { %10099 = vmatprep.mubr.msk.bf16.mxu0 %vm10097_vm9, %v10098_v13  ;;  %vm10953_vm4 = vmand %vm963_vm3, %vm915_vm10  ;;  %v13737_v34 = vsel %vm10957_vm6, 4294967295, %v13736_v34  ;;  %v1409_v49 = vmax.f32 %v1361_v37, 0.0  ;;  %v8305_v51 = vunpack.c.h.bf16 %v8499_v29  ;;  %v1740_v26 = vrot.slane %v1738_v42, 3 }
  0xcf   : > { %13738 = vst [vmem:[#allocation30_spill] sm:$0xff] %v13737_v34  ;;  %v1743_v55 = vrot.slane %v1741_v43, 4  ;;  %v1552_v57 = vsel %vm10957_vm6, %v1408_v38, 0.0  ;;  %v1307_v60 = vmul.f32 %v8304_v31, %v10687_v52  ;;  %v1107_v63 = vsel %vm10953_vm4, %v1059_v48, %v505_v33  ;;  %v8501_v43 = vld [vmem:[%s10623_s20 + $0x40] sm:$0xff]  }
  0xd0   : > { %v10969_v28 = vmul.u32.u64.low 2863311531, %v10926_v25  ;;  %v10970_v0 = vmul.u32.u64.high 2863311531, %v10926_v25, %v10969_v28  ;;  %v1308_v1 = vmul.f32 %v8305_v51, %v10687_v52  ;;  %vm10973_vm9 = vcmp.lt.s32.totalorder %v1107_v63, 16 }
  0xd1   : > { %v1744_v3 = vor.u32 %v1743_v55, %v1740_v26  ;;  %v13739_v6 = vmov 0  ;;  %v10978_v47 = vmul.u32.u64.low 2863311531, %v10945_v39  ;;  %v10979_v7 = vmul.u32.u64.high 2863311531, %v10945_v39, %v10978_v47  ;;  %vm10100_vm10 = vmpackc.low %vm10973_vm9, %vm10957_vm6 }
  0xd2   : > { %v13740_v6 = vsel %vm10973_vm9, 4294967295, %v13739_v6  ;;  %v1553_v8 = vsel %vm10973_vm9, %v1409_v49, 0.0  ;;  %v10984_v10 = vadd.f32 %v10689_v53, %v1307_v60  ;;  %v10987_v9 = vadd.f32 %v10689_v53, %v1308_v1 }
  0xd3   : > { %13741 = vst [vmem:[#allocation31_spill] sm:$0xff] %v13740_v6  ;;  %v342_v12 = vadd.s32 112, %v10637_v2  ;;  %v1745_v50 = vsel %vm13433_vm2, %v1735_v20, %v1744_v3  ;;  %v1595_v59 = vpack.c.bf16 %v1553_v8, %v1552_v57  ;;  %v343_v4 = vadd.s32 120, %v10637_v2 }
  0xd4   : > { %v8308_v5 = vunpack.c.l.bf16 %v8500_v62  ;;  %8853 = vmatmul.mubr.bf16.gmra.mrb[8].mxu1 %v1745_v50  ;;  %v514_v14 = vshrl.u32 %v10970_v0, 4  ;;  %v1410_v15 = vmax.f32 %v10984_v10, 0.0  ;;  %v1411_v16 = vmax.f32 %v10987_v9, 0.0 }
  0xd5   : > { %v8309_v17 = vunpack.c.h.bf16 %v8500_v62  ;;  %1621 = vst [vmem:[#allocation2 + $0x38] sm:$0xff] %v1595_v59  ;;  %v10101_v18 = vpack.c.bf16 %v1409_v49, %v1408_v38  ;;  %v1747_v19 = vshrl.u32 %v1595_v59, 16  ;;  %v1750_v20 = vshll.u32 %v1595_v59, 16 }
  0xd6   : > { %v525_v27 = vshrl.u32 %v10979_v7, 4  ;;  %v1309_v29 = vmul.f32 %v8308_v5, %v10687_v52  ;;  %v515_v30 = vmul.u32 24, %v514_v14  ;;  %v11021_v51 = vadd.s32 128, %v10637_v2 }
  0xd7   : > { %10102 = vmatmul.mubr.msk.bf16.gmra.mrb[8].mxu0 %vm10100_vm10, %v10101_v18  ;;  %v11001_v58 = vmul.u32.u64.low 2863311531, %v342_v12  ;;  %v11002_v32 = vmul.u32.u64.high 2863311531, %v342_v12, %v11001_v58  ;;  %v1310_v24 = vmul.f32 %v8309_v17, %v10687_v52  ;;  %v1749_v33 = vrot.slane %v1747_v19, 3 }
  0xd8   : > { %v1752_v36 = vrot.slane %v1750_v20, 4  ;;  %v526_v37 = vmul.u32 24, %v525_v27  ;;  %v11006_v35 = vadd.f32 %v10689_v53, %v1309_v29  ;;  %v516_v38 = vsub.s32 %v10926_v25, %v515_v30 }
  0xd9   : > { %v11009_v31 = vmul.u32.u64.low 2863311531, %v343_v4  ;;  %v11010_v13 = vmul.u32.u64.high 2863311531, %v343_v4, %v11009_v31  ;;  %v11013_v42 = vadd.f32 %v10689_v53, %v1310_v24  ;;  %v536_v25 = vshrl.u32 %v11002_v32, 4 }
  0xda   : > { %v11016_v45 = vor.u32 %v1752_v36, %v1749_v33  ;;  %v527_v48 = vsub.s32 %v10945_v39, %v526_v37  ;;  %v1412_v49 = vmax.f32 %v11006_v35, 0.0  ;;  %vm916_vm3 = vcmp.ne.s32.totalorder %v516_v38, 0 }
  0xdb   : > { %vm964_vm4 = vcmp.lt.s32.totalorder %v516_v38, 0  ;;  %v1060_v26 = vadd.s32 24, %v516_v38  ;;  %v537_v60 = vmul.u32 24, %v536_v25  ;;  %v547_v62 = vshrl.u32 %v11010_v13, 4 }
  0xdc   : > { %v1754_v55 = vsel %vm13433_vm2, %v1744_v3, %v11016_v45  ;;  %vm917_vm10 = vcmp.ne.s32.totalorder %v527_v48, 0  ;;  %vm965_vm9 = vcmp.lt.s32.totalorder %v527_v48, 0  ;;  %vm1012_vm6 = vmand %vm964_vm4, %vm916_vm3  ;;  %v1061_v57 = vadd.s32 24, %v527_v48 }
  0xdd   : > { %8856 = vmatprep.mubr.bf16.mxu1 %v1754_v55  ;;  %vm1013_vm0 = vmand %vm965_vm9, %vm917_vm10  ;;  %v1108_v39 = vsel %vm1012_vm6, %v1060_v26, %v516_v38  ;;  %v1413_v63 = vmax.f32 %v11013_v42, 0.0  ;;  %v13742_v0 = vmov 0  ;;  %v345_v1 = vadd.s32 136, %v10637_v2 }
  0xde   : > { %v1109_v28 = vsel %vm1013_vm0, %v1061_v57, %v527_v48  ;;  %vm11028_vm15 = vcmp.lt.s32.totalorder %v1108_v39, 16  ;;  %v8312_v3 = vunpack.c.l.bf16 %v8501_v43  ;;  %v13745_v47 = vmov 0  ;;  %v10028_v48 = vld [vmem:[#allocation10 + $0x70] sm:$0xff]  }
  0xdf   : > { %v13743_v0 = vsel %vm11028_vm15, 4294967295, %v13742_v0  ;;  %vm11033_vm2 = vcmp.lt.s32.totalorder %v1109_v28, 16  ;;  %v1554_v7 = vsel %vm11028_vm15, %v1410_v15, 0.0  ;;  %v538_v8 = vsub.s32 %v342_v12, %v537_v60  ;;  %8904 = vmatprep.subr.bf16.mxu1 %v10028_v48 }
  0xe0   : > { %13744 = vst [vmem:[#allocation32_spill] sm:$0xff] %v13743_v0  ;;  %v13746_v47 = vsel %vm11033_vm2, 4294967295, %v13745_v47  ;;  %v548_v50 = vmul.u32 24, %v547_v62  ;;  %v1555_v59 = vsel %vm11033_vm2, %v1411_v16, 0.0  ;;  %v8313_v17 = vunpack.c.h.bf16 %v8501_v43  ;;  %vm10103_vm3 = vmpackc.low %vm11033_vm2, %vm11028_vm15  ;;  %8905 = vmatpush3.bf16.msra.mxu1 %v10028_v48 }
  0xe1   : > { %13747 = vst [vmem:[#allocation33_spill] sm:$0xff] %v13746_v47  ;;  %v11046_v5 = vmul.u32.u64.low 2863311531, %v11021_v51  ;;  %v11047_v14 = vmul.u32.u64.high 2863311531, %v11021_v51, %v11046_v5  ;;  %v1596_v18 = vpack.c.bf16 %v1555_v59, %v1554_v7  ;;  %vm918_vm0 = vcmp.ne.s32.totalorder %v538_v8, 0 }
  0xe2   : > { %v549_v19 = vsub.s32 %v343_v4, %v548_v50  ;;  %vm966_vm6 = vcmp.lt.s32.totalorder %v538_v8, 0  ;;  %v1062_v12 = vadd.s32 24, %v538_v8  ;;  %v1311_v30 = vmul.f32 %v8312_v3, %v10687_v52  ;;  %v8502_v5 = vld [vmem:[%s10623_s20 + $0x48] sm:$0xff]  }
  0xe3   : > { %vm11049_vm9 = vmand %vm966_vm6, %vm918_vm0  ;;  %v11053_v27 = vmul.u32.u64.low 2863311531, %v345_v1  ;;  %v11054_v29 = vmul.u32.u64.high 2863311531, %v345_v1, %v11053_v27  ;;  %1622 = vst [vmem:[#allocation2 + $0x40] sm:$0xff] %v1596_v18  ;;  %v10104_v4 = vpack.c.bf16 %v1411_v16, %v1410_v15  ;;  %v1756_v58 = vshrl.u32 %v1596_v18, 16 }
  0xe4   : > { %v1759_v32 = vshll.u32 %v1596_v18, 16  ;;  %vm919_vm4 = vcmp.ne.s32.totalorder %v549_v19, 0  ;;  %vm967_vm10 = vcmp.lt.s32.totalorder %v549_v19, 0  ;;  %v1063_v33 = vadd.s32 24, %v549_v19 }
  0xe5   : > { %10105 = vmatprep.mubr.msk.bf16.mxu0 %vm10103_vm3, %v10104_v4  ;;  %vm11065_vm0 = vmand %vm967_vm10, %vm919_vm4  ;;  %v1110_v36 = vsel %vm11049_vm9, %v1062_v12, %v538_v8  ;;  %v558_v37 = vshrl.u32 %v11047_v14, 4  ;;  %v1312_v10 = vmul.f32 %v8313_v17, %v10687_v52  ;;  %v1758_v38 = vrot.slane %v1756_v58, 3 }
  0xe6   : > { %v1761_v9 = vrot.slane %v1759_v32, 4  ;;  %vm11073_vm6 = vcmp.lt.s32.totalorder %v1110_v36, 16  ;;  %v13752_v15 = vmov 0  ;;  %v11078_v16 = vadd.f32 %v10689_v53, %v1311_v30 }
  0xe7   : > { %v13753_v15 = vsel %vm11073_vm6, 4294967295, %v13752_v15  ;;  %v1111_v31 = vsel %vm11065_vm0, %v1063_v33, %v549_v19  ;;  %v1556_v13 = vsel %vm11073_vm6, %v1412_v49, 0.0  ;;  %v559_v43 = vmul.u32 24, %v558_v37  ;;  %v11133_v33 = vld [vmem:[#allocation7] ss:$0 sm:$0xff] }
  0xe8   : > { %13754 = vst [vmem:[#allocation34_spill] sm:$0xff] %v13753_v15  ;;  %v569_v52 = vshrl.u32 %v11054_v29, 4  ;;  %v1762_v26 = vor.u32 %v1761_v9, %v1758_v38  ;;  %vm11087_vm9 = vcmp.lt.s32.totalorder %v1111_v31, 16  ;;  %v13755_v25 = vmov 0 }
  0xe9   : > { %v13756_v25 = vsel %vm11087_vm9, 4294967295, %v13755_v25  ;;  %v1367_v55 = vadd.f32 %v10689_v53, %v1312_v10  ;;  %v1414_v57 = vmax.f32 %v11078_v16, 0.0  ;;  %v1557_v39 = vsel %vm11087_vm9, %v1413_v63, 0.0  ;;  %vm10106_vm0 = vmpackc.low %vm11087_vm9, %vm11073_vm6 }
  0xea   : > { %13757 = vst [vmem:[#allocation35_spill] sm:$0xff] %v13756_v25  ;;  %v560_v60 = vsub.s32 %v11021_v51, %v559_v43  ;;  %v570_v62 = vmul.u32 24, %v569_v52  ;;  %v346_v28 = vadd.s32 144, %v10637_v2  ;;  %vm13758_vm3 = vsmask.f32 4352 }
  0xeb   : > { %v1763_v3 = vsel %vm13758_vm3, %v11016_v45, %v1762_v26  ;;  %v1597_v7 = vpack.c.bf16 %v1557_v39, %v1556_v13  ;;  %v1415_v8 = vmax.f32 %v1367_v55, 0.0  ;;  %v11102_v53 = vadd.s32 152, %v10637_v2  ;;  %v11141_v43 = vld [vmem:[#allocation9] ss:$0 sm:$0xff]  ;;  %v8503_v39 = vld [vmem:[%s10623_s20 + $0x50] sm:$0xff]  }
  0xec   : > { %8857 = vmatmul.mubr.bf16.gmra.mrb[12].mxu1 %v1763_v3  ;;  %v571_v50 = vsub.s32 %v345_v1, %v570_v62  ;;  %vm920_vm4 = vcmp.ne.s32.totalorder %v560_v60, 0  ;;  %vm968_vm10 = vcmp.lt.s32.totalorder %v560_v60, 0  ;;  %v1064_v59 = vadd.s32 24, %v560_v60 }
  0xed   : > { %1623 = vst [vmem:[#allocation2 + $0x48] sm:$0xff] %v1597_v7  ;;  %v10107_v45 = vpack.c.bf16 %v1413_v63, %v1412_v49  ;;  %v1765_v51 = vshrl.u32 %v1597_v7, 16  ;;  %v1768_v14 = vshll.u32 %v1597_v7, 16  ;;  %vm1016_vm3 = vmand %vm968_vm10, %vm920_vm4  ;;  %v13759_v27 = vmov 0 }
  0xee   : > { %v11113_v1 = vmul.u32.u64.low 2863311531, %v346_v28  ;;  %v11114_v17 = vmul.u32.u64.high 2863311531, %v346_v28, %v11113_v1  ;;  %vm921_vm2 = vcmp.ne.s32.totalorder %v571_v50, 0  ;;  %vm969_vm15 = vcmp.lt.s32.totalorder %v571_v50, 0 }
  0xef   : > { %10108 = vmatmul.mubr.msk.bf16.gmra.mrb[12].mxu0 %vm10106_vm0, %v10107_v45  ;;  %v1065_v18 = vadd.s32 24, %v571_v50  ;;  %v1112_v19 = vsel %vm1016_vm3, %v1064_v59, %v560_v60  ;;  %v1767_v20 = vrot.slane %v1765_v51, 3  ;;  %v1770_v12 = vrot.slane %v1768_v14, 4  ;;  %vm1017_vm11 = vmand %vm969_vm15, %vm921_vm2 }
  0xf0   : > { %vm11116_vm9 = vcmp.lt.s32.totalorder %v1112_v19, 16  ;;  %v8316_v35 = vunpack.c.l.bf16 %v8502_v5  ;;  %v11123_v63 = vmul.u32.u64.low 2863311531, %v11102_v53  ;;  %v11124_v29 = vmul.u32.u64.high 2863311531, %v11102_v53, %v11123_v63 }
  0xf1   : > { %v13760_v27 = vsel %vm11116_vm9, 4294967295, %v13759_v27  ;;  %v1113_v42 = vsel %vm1017_vm11, %v1065_v18, %v571_v50  ;;  %v1558_v49 = vsel %vm11116_vm9, %v1414_v57, 0.0  ;;  %v1771_v30 = vor.u32 %v1770_v12, %v1767_v20 }
  0xf2   : > { %13761 = vst [vmem:[#allocation36_spill] sm:$0xff] %v13760_v27  ;;  %vm11126_vm4 = vcmp.lt.s32.totalorder %v1113_v42, 16  ;;  %v13762_v4 = vmov 0  ;;  %v580_v58 = vshrl.u32 %v11114_v17, 4  ;;  %v8317_v32 = vunpack.c.h.bf16 %v8502_v5 }
  0xf3   : > { %v13763_v4 = vsel %vm11126_vm4, 4294967295, %v13762_v4  ;;  %v1559_v24 = vsel %vm11126_vm4, %v1415_v8, 0.0  ;;  %v1313_v36 = vmul.f32 %v11133_v33, %v8316_v35  ;;  %v348_v37 = vadd.s32 160, %v10637_v2  ;;  %vm10109_vm11 = vmpackc.low %vm11126_vm4, %vm11116_vm9 }
  0xf4   : > { %13764 = vst [vmem:[#allocation37_spill] sm:$0xff] %v13763_v4  ;;  %v349_v10 = vadd.s32 168, %v10637_v2  ;;  %vm13765_vm2 = vsmask.f32 4352  ;;  %v1598_v9 = vpack.c.bf16 %v1559_v24, %v1558_v49  ;;  %v581_v16 = vmul.u32 24, %v580_v58  ;;  %v8504_v58 = vld [vmem:[%s10623_s20 + $0x58] sm:$0xff]  }
  0xf5   : > { %v1772_v38 = vsel %vm13765_vm2, %v1762_v26, %v1771_v30  ;;  %v1314_v31 = vmul.f32 %v11133_v33, %v8317_v32  ;;  %v591_v13 = vshrl.u32 %v11124_v29, 4  ;;  %v11144_v52 = vadd.f32 %v11141_v43, %v1313_v36 }
  0xf6   : > { %8860 = vmatprep.mubr.bf16.mxu1 %v1772_v38  ;;  %v11146_v48 = vmul.u32.u64.low 2863311531, %v348_v37  ;;  %v11147_v55 = vmul.u32.u64.high 2863311531, %v348_v37, %v11146_v48  ;;  %1624 = vst [vmem:[#allocation2 + $0x50] sm:$0xff] %v1598_v9  ;;  %v10110_v26 = vpack.c.bf16 %v1415_v8, %v1414_v57  ;;  %v1774_v60 = vshrl.u32 %v1598_v9, 16 }
  0xf7   : > { %v1777_v62 = vshll.u32 %v1598_v9, 16  ;;  %v582_v3 = vsub.s32 %v346_v28, %v581_v16  ;;  %v1369_v7 = vadd.f32 %v11141_v43, %v1314_v31  ;;  %v592_v50 = vmul.u32 24, %v591_v13  ;;  %v10030_v13 = vld [vmem:[#allocation10 + $0x78] sm:$0xff]  }
  0xf8   : > { %10111 = vmatprep.mubr.msk.bf16.mxu0 %vm10109_vm11, %v10110_v26  ;;  %v1416_v59 = vmax.f32 %v11144_v52, 0.0  ;;  %v11156_v5 = vmul.u32.u64.low 2863311531, %v349_v10  ;;  %v11157_v45 = vmul.u32.u64.high 2863311531, %v349_v10, %v11156_v5  ;;  %v1776_v51 = vrot.slane %v1774_v60, 3  ;;  %8906 = vmatprep.subr.bf16.mxu1 %v10030_v13 }
  0xf9   : > { %v1779_v14 = vrot.slane %v1777_v62, 4  ;;  %vm922_vm15 = vcmp.ne.s32.totalorder %v582_v3, 0  ;;  %vm970_vm10 = vcmp.lt.s32.totalorder %v582_v3, 0  ;;  %v593_v1 = vsub.s32 %v11102_v53, %v592_v50  ;;  %8907 = vmatpush3.bf16.msra.mxu1 %v10030_v13 }
  0xfa   : > { %vm11160_vm0 = vmand %vm970_vm10, %vm922_vm15  ;;  %v1066_v8 = vadd.s32 24, %v582_v3  ;;  %v1417_v28 = vmax.f32 %v1369_v7, 0.0  ;;  %v602_v17 = vshrl.u32 %v11147_v55, 4  ;;  %v8320_v19 = vunpack.c.l.bf16 %v8503_v39 }
  0xfb   : > { %v11165_v18 = vor.u32 %v1779_v14, %v1776_v51  ;;  %v8321_v20 = vunpack.c.h.bf16 %v8503_v39  ;;  %v11168_v12 = vadd.s32 176, %v10637_v2  ;;  %vm923_vm3 = vcmp.ne.s32.totalorder %v593_v1, 0 }
  0xfc   : > { %vm971_vm2 = vcmp.lt.s32.totalorder %v593_v1, 0  ;;  %v1067_v35 = vadd.s32 24, %v593_v1  ;;  %v1114_v53 = vsel %vm11160_vm0, %v1066_v8, %v582_v3  ;;  %vm13768_vm11 = vsmask.f32 4352 }
  0xfd   : > { %v1781_v42 = vsel %vm13768_vm11, %v1771_v30, %v11165_v18  ;;  %vm1019_vm15 = vmand %vm971_vm2, %vm923_vm3  ;;  %vm11174_vm10 = vcmp.lt.s32.totalorder %v1114_v53, 16  ;;  %v13769_v49 = vmov 0  ;;  %v603_v63 = vmul.u32 24, %v602_v17 }
  0xfe   : > { %v13770_v49 = vsel %vm11174_vm10, 4294967295, %v13769_v49  ;;  %v613_v29 = vshrl.u32 %v11157_v45, 4  ;;  %8861 = vmatmul.mubr.bf16.gmra.mrb[16].mxu1 %v1781_v42  ;;  %v1115_v32 = vsel %vm1019_vm15, %v1067_v35, %v593_v1  ;;  %v1560_v24 = vsel %vm11174_vm10, %v1416_v59, 0.0 }
  0xff   : > { %13771 = vst [vmem:[#allocation38_spill] sm:$0xff] %v13770_v49  ;;  %v1315_v36 = vmul.f32 %v11133_v33, %v8320_v19  ;;  %v1316_v38 = vmul.f32 %v11133_v33, %v8321_v20  ;;  %vm11184_vm0 = vcmp.lt.s32.totalorder %v1115_v32, 16  ;;  %v13772_v30 = vmov 0  ;;  %v4653_v32 = vld [vmem:[#allocation2 + $0x10] sm:$0xff] }
 0x100   : > { %v13773_v30 = vsel %vm11184_vm0, 4294967295, %v13772_v30  ;;  %v604_v9 = vsub.s32 %v348_v37, %v603_v63  ;;  %v614_v16 = vmul.u32 24, %v613_v29  ;;  %v11189_v31 = vadd.s32 184, %v10637_v2  ;;  %vm10112_vm15 = vmpackc.low %vm11184_vm0, %vm11174_vm10 }
 0x101   : > { %13774 = vst [vmem:[#allocation39_spill] sm:$0xff] %v13773_v30  ;;  %v1561_v52 = vsel %vm11184_vm0, %v1417_v28, 0.0  ;;  %v1370_v48 = vadd.f32 %v11141_v43, %v1315_v36  ;;  %v1371_v55 = vadd.f32 %v11141_v43, %v1316_v38  ;;  %v8324_v39 = vunpack.c.l.bf16 %v8504_v58 }
 0x102   : > { %v1599_v26 = vpack.c.bf16 %v1561_v52, %v1560_v24  ;;  %v615_v60 = vsub.s32 %v349_v10, %v614_v16  ;;  %vm924_vm3 = vcmp.ne.s32.totalorder %v604_v9, 0  ;;  %vm972_vm2 = vcmp.lt.s32.totalorder %v604_v9, 0  ;;  %v4654_v24 = vld [vmem:[#allocation2 + $0x18] sm:$0xff] }
 0x103   : > { %vm11195_vm11 = vmand %vm972_vm2, %vm924_vm3  ;;  %v1068_v62 = vadd.s32 24, %v604_v9  ;;  %v1418_v3 = vmax.f32 %v1370_v48, 0.0  ;;  %v1419_v7 = vmax.f32 %v1371_v55, 0.0  ;;  %v8325_v50 = vunpack.c.h.bf16 %v8504_v58 }
 0x104   : > { %1625 = vst [vmem:[#allocation2 + $0x58] sm:$0xff] %v1599_v26  ;;  %v10113_v5 = vpack.c.bf16 %v1417_v28, %v1416_v59  ;;  %v1783_v10 = vshrl.u32 %v1599_v26, 16  ;;  %v1786_v45 = vshll.u32 %v1599_v26, 16  ;;  %vm925_vm4 = vcmp.ne.s32.totalorder %v615_v60, 0 }
 0x105   : > { %vm973_vm3 = vcmp.lt.s32.totalorder %v615_v60, 0  ;;  %v1069_v51 = vadd.s32 24, %v615_v60  ;;  %v1116_v14 = vsel %vm11195_vm11, %v1068_v62, %v604_v9  ;;  %v13777_v19 = vmov 0 }
 0x106   : > { %10114 = vmatmul.mubr.msk.bf16.gmra.mrb[16].mxu0 %vm10112_vm15, %v10113_v5  ;;  %vm1021_vm2 = vmand %vm973_vm3, %vm925_vm4  ;;  %v11206_v1 = vmul.u32.u64.low 2863311531, %v11168_v12  ;;  %v11207_v57 = vmul.u32.u64.high 2863311531, %v11168_v12, %v11206_v1  ;;  %v1785_v8 = vrot.slane %v1783_v10, 3  ;;  %v1788_v17 = vrot.slane %v1786_v45, 4 }
 0x107   : > { %vm11209_vm9 = vcmp.lt.s32.totalorder %v1116_v14, 16  ;;  %v1317_v59 = vmul.f32 %v11133_v33, %v8324_v39  ;;  %v1117_v28 = vsel %vm1021_vm2, %v1069_v51, %v615_v60  ;;  %v13780_v63 = vmov 0  ;;  %v8505_v1 = vld [vmem:[%s10623_s20 + $0x60] sm:$0xff]  }
 0x108   : > { %v13778_v19 = vsel %vm11209_vm9, 4294967295, %v13777_v19  ;;  %v1562_v20 = vsel %vm11209_vm9, %v1418_v3, 0.0  ;;  %v11217_v35 = vmul.u32.u64.low 2863311531, %v11189_v31  ;;  %v11218_v53 = vmul.u32.u64.high 2863311531, %v11189_v31, %v11217_v35 }
 0x109   : > { %13779 = vst [vmem:[#allocation40_spill] sm:$0xff] %v13778_v19  ;;  %v1789_v42 = vor.u32 %v1788_v17, %v1785_v8  ;;  %vm11220_vm4 = vcmp.lt.s32.totalorder %v1117_v28, 16  ;;  %v1318_v29 = vmul.f32 %v11133_v33, %v8325_v50  ;;  %v11226_v58 = vadd.f32 %v11141_v43, %v1317_v59 }
 0x10a   : > { %v13781_v63 = vsel %vm11220_vm4, 4294967295, %v13780_v63  ;;  %v1563_v36 = vsel %vm11220_vm4, %v1419_v7, 0.0  ;;  %v624_v38 = vshrl.u32 %v11207_v57, 4  ;;  %v4696_v9 = vshrl.u32 %v4653_v32, 16  ;;  %vm10115_vm3 = vmpackc.low %vm11220_vm4, %vm11209_vm9 }
 0x10b   : > { %13782 = vst [vmem:[#allocation41_spill] sm:$0xff] %v13781_v63  ;;  %vm13783_vm15 = vsmask.f32 4352  ;;  %v1600_v13 = vpack.c.bf16 %v1563_v36, %v1562_v20  ;;  %v11234_v52 = vadd.f32 %v11141_v43, %v1318_v29  ;;  %v1420_v48 = vmax.f32 %v11226_v58, 0.0 }
 0x10c   : > { %v1790_v16 = vsel %vm13783_vm15, %v11165_v18, %v1789_v42  ;;  %v625_v55 = vmul.u32 24, %v624_v38  ;;  %v635_v39 = vshrl.u32 %v11218_v53, 4  ;;  %v4698_v26 = vshll.u32 %v4653_v32, 16  ;;  %v11259_v38 = vld [vmem:[#allocation2 + $0x20] sm:$0xff] }
 0x10d   : > { %8864 = vmatprep.mubr.bf16.mxu1 %v1790_v16  ;;  %v4703_v60 = vshll.u32 %v4654_v24, 16  ;;  %1626 = vst [vmem:[#allocation2 + $0x60] sm:$0xff] %v1600_v13  ;;  %v10116_v18 = vpack.c.bf16 %v1419_v7, %v1418_v3  ;;  %v1792_v37 = vshrl.u32 %v1600_v13, 16  ;;  %v1795_v62 = vshll.u32 %v1600_v13, 16 }
 0x10e   : > { %v1421_v50 = vmax.f32 %v11234_v52, 0.0  ;;  %v4707_v5 = vshrl.u32 %v4654_v24, 16  ;;  %v626_v10 = vsub.s32 %v11168_v12, %v625_v55  ;;  %v636_v45 = vmul.u32 24, %v635_v39 }
 0x10f   : > { %10117 = vmatprep.mubr.msk.bf16.mxu0 %vm10115_vm3, %v10116_v18  ;;  %v4700_v51 = vrot.slane %v4698_v26, 1  ;;  %v4705_v14 = vrot.slane %v4703_v60, 1  ;;  %v1794_v57 = vrot.slane %v1792_v37, 3  ;;  %v1797_v8 = vrot.slane %v1795_v62, 4 }
 0x110   : > { %v352_v17 = vadd.s32 192, %v10637_v2  ;;  %v11247_v59 = vadd.s32 200, %v10637_v2  ;;  %v637_v3 = vsub.s32 %v11189_v31, %v636_v45  ;;  %vm926_vm2 = vcmp.ne.s32.totalorder %v626_v10, 0 }
 0x111   : > { %vm974_vm15 = vcmp.lt.s32.totalorder %v626_v10, 0  ;;  %v1070_v7 = vadd.s32 24, %v626_v10  ;;  %v11250_v28 = vor.u32 %v1797_v8, %v1794_v57  ;;  %v4701_v12 = vor.u32 %v4700_v51, %v4696_v9 }
 0x112   : > { %vm1022_vm3 = vmand %vm974_vm15, %vm926_vm2  ;;  %v4709_v20 = vor.u32 %v4707_v5, %v4705_v14  ;;  %v8328_v35 = vunpack.c.l.bf16 %v8505_v1  ;;  %vm927_vm11 = vcmp.ne.s32.totalorder %v637_v3, 0  ;;  %vm975_vm4 = vcmp.lt.s32.totalorder %v637_v3, 0 }
 0x113   : > { %v1071_v53 = vadd.s32 24, %v637_v3  ;;  %v1118_v29 = vsel %vm1022_vm3, %v1070_v7, %v626_v10  ;;  %vm13784_vm9 = vsmask.f32 4352  ;;  %vm1023_vm0 = vmand %vm975_vm4, %vm927_vm11  ;;  %v13785_v31 = vmov 0 }
 0x114   : > { %v1799_v32 = vsel %vm13784_vm9, %v1789_v42, %v11250_v28  ;;  %vm11254_vm10 = vcmp.lt.s32.totalorder %v1118_v29, 16  ;;  %vm13788_vm6 = vsmask.f32 7424  ;;  %v8329_v36 = vunpack.c.h.bf16 %v8505_v1  ;;  %v8506_v42 = vld [vmem:[%s10623_s20 + $0x68] sm:$0xff]  }
 0x115   : > { %v13786_v31 = vsel %vm11254_vm10, 4294967295, %v13785_v31  ;;  %v4706_v24 = vsel %vm13788_vm6, %v4701_v12, %v4705_v14  ;;  %8865 = vmatmul.mubr.bf16.gmra.mrb[20].mxu1 %v1799_v32  ;;  %v1119_v9 = vsel %vm1023_vm0, %v1071_v53, %v637_v3  ;;  %v1564_v16 = vsel %vm11254_vm10, %v1420_v48, 0.0 }
 0x116   : > { %13787 = vst [vmem:[#allocation42_spill] sm:$0xff] %v13786_v31  ;;  %v11265_v13 = vmul.u32.u64.low 2863311531, %v352_v17  ;;  %v11266_v52 = vmul.u32.u64.high 2863311531, %v352_v17, %v11265_v13  ;;  %vm11269_vm9 = vcmp.lt.s32.totalorder %v1119_v9, 16  ;;  %v13789_v55 = vmov 0 }
 0x117   : > { %v13790_v55 = vsel %vm11269_vm9, 4294967295, %v13789_v55  ;;  %v11274_v39 = vmul.u32.u64.low 2863311531, %v11247_v59  ;;  %v11275_v26 = vmul.u32.u64.high 2863311531, %v11247_v59, %v11274_v39  ;;  %v1319_v60 = vmul.f32 %v11133_v33, %v8328_v35  ;;  %vm10118_vm6 = vmpackc.low %vm11269_vm9, %vm11254_vm10 }
 0x118   : > { %13791 = vst [vmem:[#allocation43_spill] sm:$0xff] %v13790_v55  ;;  %v1565_v18 = vsel %vm11269_vm9, %v1421_v50, 0.0  ;;  %v1320_v37 = vmul.f32 %v11133_v33, %v8329_v36  ;;  %v4711_v62 = vshll.u32 %v11259_v38, 16  ;;  %v11283_v5 = vadd.s32 208, %v10637_v2 }
 0x119   : > { %v1601_v10 = vpack.c.bf16 %v1565_v18, %v1564_v16  ;;  %v1374_v45 = vadd.f32 %v11141_v43, %v1319_v60  ;;  %v11287_v51 = vadd.s32 216, %v10637_v2  ;;  %v8332_v14 = vunpack.c.l.bf16 %v8506_v42 }
 0x11a   : > { %v646_v1 = vshrl.u32 %v11266_v52, 4  ;;  %v1375_v57 = vadd.f32 %v11141_v43, %v1320_v37  ;;  %v4713_v8 = vrot.slane %v4711_v62, 1  ;;  %v8333_v3 = vunpack.c.h.bf16 %v8506_v42 }
 0x11b   : > { %1627 = vst [vmem:[#allocation2 + $0x68] sm:$0xff] %v1601_v10  ;;  %v10119_v7 = vpack.c.bf16 %v1421_v50, %v1420_v48  ;;  %v1801_v12 = vshrl.u32 %v1601_v10, 16  ;;  %v1804_v35 = vshll.u32 %v1601_v10, 16  ;;  %v657_v53 = vshrl.u32 %v11275_v26, 4 }
 0x11c   : > { %v1422_v29 = vmax.f32 %v1374_v45, 0.0  ;;  %v647_v32 = vmul.u32 24, %v646_v1  ;;  %v1423_v36 = vmax.f32 %v1375_v57, 0.0  ;;  %vm13792_vm0 = vsmask.f32 7424  ;;  %v11321_v45 = vld [vmem:[#allocation2 + $0x28] sm:$0xff] }
 0x11d   : > { %10120 = vmatmul.mubr.msk.bf16.gmra.mrb[20].mxu0 %vm10118_vm6, %v10119_v7  ;;  %v4714_v9 = vsel %vm13792_vm0, %v4709_v20, %v4713_v8  ;;  %v1321_v16 = vmul.f32 %v11133_v33, %v8332_v14  ;;  %v1803_v13 = vrot.slane %v1801_v12, 3  ;;  %v1806_v52 = vrot.slane %v1804_v35, 4 }
 0x11e   : > { %9164 = vmatprep.mubr.bf16.mxu0 %v4706_v24  ;;  %v658_v42 = vmul.u32 24, %v657_v53  ;;  %v1322_v39 = vmul.f32 %v11133_v33, %v8333_v3  ;;  %v648_v58 = vsub.s32 %v352_v17, %v647_v32  ;;  %vm13793_vm2 = vsmask.f32 4352 }
 0x11f   : > { %v11302_v48 = vmul.u32.u64.low 2863311531, %v11283_v5  ;;  %v11303_v50 = vmul.u32.u64.high 2863311531, %v11283_v5, %v11302_v48  ;;  %v11306_v26 = vadd.f32 %v11141_v43, %v1321_v16  ;;  %v11308_v24 = vor.u32 %v1806_v52, %v1803_v13  ;;  %v8507_v52 = vld [vmem:[%s10623_s20 + $0x70] sm:$0xff]  }
 0x120   : > { %v659_v60 = vsub.s32 %v11247_v59, %v658_v42  ;;  %v11312_v20 = vmul.u32.u64.low 2863311531, %v11287_v51  ;;  %v11313_v18 = vmul.u32.u64.high 2863311531, %v11287_v51, %v11312_v20  ;;  %vm928_vm4 = vcmp.ne.s32.totalorder %v648_v58, 0  ;;  %v10027_v59 = vld [vmem:[#allocation10 + $0x188] sm:$0xff]  }
 0x121   : > { %vm976_vm11 = vcmp.lt.s32.totalorder %v648_v58, 0  ;;  %v1072_v37 = vadd.s32 24, %v648_v58  ;;  %v11316_v17 = vadd.f32 %v11141_v43, %v1322_v39  ;;  %v1808_v62 = vsel %vm13793_vm2, %v11250_v28, %v11308_v24 }
 0x122   : > { %vm929_vm15 = vcmp.ne.s32.totalorder %v659_v60, 0  ;;  %vm977_vm3 = vcmp.lt.s32.totalorder %v659_v60, 0  ;;  %vm1024_vm6 = vmand %vm976_vm11, %vm928_vm4  ;;  %v1073_v10 = vadd.s32 24, %v659_v60  ;;  %8868 = vmatprep.mubr.bf16.mxu1 %v1808_v62  ;;  %v668_v1 = vshrl.u32 %v11303_v50, 4 }
 0x123   : > { %vm1025_vm0 = vmand %vm977_vm3, %vm929_vm15  ;;  %v1120_v14 = vsel %vm1024_vm6, %v1072_v37, %v648_v58  ;;  %v1424_v57 = vmax.f32 %v11306_v26, 0.0  ;;  %v1425_v3 = vmax.f32 %v11316_v17, 0.0  ;;  %v13794_v28 = vmov 0  ;;  %v10029_v58 = vld [vmem:[#allocation10 + $0x190] sm:$0xff]  }
 0x124   : > { %v1121_v7 = vsel %vm1025_vm0, %v1073_v10, %v659_v60  ;;  %vm11326_vm9 = vcmp.lt.s32.totalorder %v1120_v14, 16  ;;  %v679_v12 = vshrl.u32 %v11313_v18, 4  ;;  %v4715_v35 = vshrl.u32 %v11259_v38, 16 }
 0x125   : > { %v13795_v28 = vsel %vm11326_vm9, 4294967295, %v13794_v28  ;;  %9165 = vmatmul.mubr.bf16.vlgmr.msra.gmra.mrb[0].mxu0 %v4714_v9  ;;  %vm11332_vm4 = vcmp.lt.s32.totalorder %v1121_v7, 16  ;;  %v13797_v53 = vmov 0  ;;  %v1566_v32 = vsel %vm11326_vm9, %v1422_v29, 0.0 }
 0x126   : > { %13796 = vst [vmem:[#allocation44_spill] sm:$0xff] %v13795_v28  ;;  %v13798_v53 = vsel %vm11332_vm4, 4294967295, %v13797_v53  ;;  %9213 = vmatpush3.bf16.msra.mxu0 %v10931_v40  ;;  %v669_v16 = vmul.u32 24, %v668_v1  ;;  %v4719_v13 = vshll.u32 %v11321_v45, 16  ;;  %v1567_v9 = vsel %vm11332_vm4, %v1423_v36, 0.0  ;;  %v8515_v28 = vld [vmem:[%s10623_s20 + $0xb0] sm:$0xff]  }
 0x127   : > { %13799 = vst [vmem:[#allocation45_spill] sm:$0xff] %v13798_v53  ;;  %v680_v42 = vmul.u32 24, %v679_v12  ;;  %v4717_v39 = vor.u32 %v4715_v35, %v4713_v8  ;;  %v356_v38 = vadd.s32 224, %v10637_v2  ;;  %9214 = vmatprep.subr.bf16.mxu0 %v10027_v59  ;;  %v1602_v48 = vpack.c.bf16 %v1567_v9, %v1566_v32  ;;  %v10032_v32 = vld [vmem:[#allocation10 + $0x80] sm:$0xff]  }
 0x128   : > { %v670_v50 = vsub.s32 %v11283_v5, %v669_v16  ;;  %v11345_v26 = vrot.slane %v4719_v13, 1  ;;  %v11348_v40 = vadd.s32 232, %v10637_v2  ;;  %v8336_v36 = vunpack.c.l.bf16 %v8507_v52  ;;  %8956 = vmatprep.subr.bf16.mxu1 %v10032_v32 }
 0x129   : > { %v681_v29 = vsub.s32 %v11287_v51, %v680_v42  ;;  %v11351_v60 = vmul.u32.u64.low 2863311531, %v356_v38  ;;  %v11352_v20 = vmul.u32.u64.high 2863311531, %v356_v38, %v11351_v60  ;;  %1628 = vst [vmem:[#allocation2 + $0x70] sm:$0xff] %v1602_v48  ;;  %v1810_v8 = vshrl.u32 %v1602_v48, 16  ;;  %v10031_v51 = vld [vmem:[#allocation10 + $0x198] sm:$0xff]  }
 0x12a   : > { %v1813_v18 = vshll.u32 %v1602_v48, 16  ;;  %vm930_vm11 = vcmp.ne.s32.totalorder %v670_v50, 0  ;;  %vm978_vm2 = vcmp.lt.s32.totalorder %v670_v50, 0  ;;  %9215 = vmatpush3.bf16.msra.mxu0 %v10027_v59  ;;  %v1074_v37 = vadd.s32 24, %v670_v50  ;;  %v10033_v60 = vld [vmem:[#allocation10 + $0x1a0] sm:$0xff]  }
 0x12b   : > { %vm931_vm15 = vcmp.ne.s32.totalorder %v681_v29, 0  ;;  %vm979_vm3 = vcmp.lt.s32.totalorder %v681_v29, 0  ;;  %vm11354_vm6 = vmand %vm978_vm2, %vm930_vm11  ;;  %v1075_v17 = vadd.s32 24, %v681_v29  ;;  %9216 = vmatprep.subr.bf16.mxu0 %v10029_v58  ;;  %v1812_v62 = vrot.slane %v1810_v8, 3 }
 0x12c   : > { %v1815_v10 = vrot.slane %v1813_v18, 4  ;;  %vm1027_vm0 = vmand %vm979_vm3, %vm931_vm15  ;;  %vm13802_vm4 = vsmask.f32 7424  ;;  %v8337_v1 = vunpack.c.h.bf16 %v8507_v52  ;;  %v1122_v59 = vsel %vm11354_vm6, %v1074_v37, %v670_v50 }
 0x12d   : > { %v4722_v14 = vsel %vm13802_vm4, %v4717_v39, %v11345_v26  ;;  %v1123_v7 = vsel %vm1027_vm0, %v1075_v17, %v681_v29  ;;  %v690_v12 = vshrl.u32 %v11352_v20, 4  ;;  %v1323_v35 = vmul.f32 %v11133_v33, %v8336_v36  ;;  %v11378_v29 = vld [vmem:[#allocation2 + $0x30] sm:$0xff] }
 0x12e   : > { %9168 = vmatprep.mubr.bf16.mxu0 %v4722_v14  ;;  %v1816_v16 = vor.u32 %v1815_v10, %v1812_v62  ;;  %vm11364_vm11 = vcmp.lt.s32.totalorder %v1122_v59, 16  ;;  %v13803_v13 = vmov 0  ;;  %vm11368_vm2 = vcmp.lt.s32.totalorder %v1123_v7, 16  ;;  %9217 = vmatpush3.bf16.msra.mxu0 %v10029_v58  ;;  %v8508_v10 = vld [vmem:[%s10623_s20 + $0x78] sm:$0xff]  }
 0x12f   : > { %v13804_v13 = vsel %vm11364_vm11, 4294967295, %v13803_v13  ;;  %v13806_v9 = vmov 0  ;;  %v1324_v52 = vmul.f32 %v11133_v33, %v8337_v1  ;;  %v1568_v42 = vsel %vm11364_vm11, %v1424_v57, 0.0  ;;  %9218 = vmatprep.subr.bf16.mxu0 %v10031_v51 }
 0x130   : > { %13805 = vst [vmem:[#allocation46_spill] sm:$0xff] %v13804_v13  ;;  %v13807_v9 = vsel %vm11368_vm2, 4294967295, %v13806_v9  ;;  %v1569_v39 = vsel %vm11368_vm2, %v1425_v3, 0.0  ;;  %v691_v48 = vmul.u32 24, %v690_v12  ;;  %v1378_v50 = vadd.f32 %v11141_v43, %v1323_v35 }
 0x131   : > { %13808 = vst [vmem:[#allocation47_spill] sm:$0xff] %v13807_v9  ;;  %vm13809_vm4 = vsmask.f32 4352  ;;  %v1603_v36 = vpack.c.bf16 %v1569_v39, %v1568_v42  ;;  %v11383_v58 = vmul.u32.u64.low 2863311531, %v11348_v40  ;;  %v11384_v8 = vmul.u32.u64.high 2863311531, %v11348_v40, %v11383_v58  ;;  %v10035_v42 = vld [vmem:[#allocation10 + $0x1a8] sm:$0xff]  }
 0x132   : > { %v1817_v20 = vsel %vm13809_vm4, %v11308_v24, %v1816_v16  ;;  %v692_v57 = vsub.s32 %v356_v38, %v691_v48  ;;  %v11387_v3 = vadd.f32 %v11141_v43, %v1324_v52  ;;  %v1426_v18 = vmax.f32 %v1378_v50, 0.0  ;;  %9219 = vmatpush3.bf16.msra.mxu0 %v10031_v51 }
 0x133   : > { %8869 = vmatmul.mubr.bf16.gmra.mrb[24].mxu1 %v1817_v20  ;;  %v4723_v5 = vshrl.u32 %v11321_v45, 16  ;;  %1629 = vst [vmem:[#allocation2 + $0x78] sm:$0xff] %v1603_v36  ;;  %v1819_v37 = vshrl.u32 %v1603_v36, 16  ;;  %v1822_v17 = vshll.u32 %v1603_v36, 16  ;;  %v4727_v62 = vshll.u32 %v11378_v29, 16  ;;  %9220 = vmatprep.subr.bf16.mxu0 %v10033_v60  ;;  %v11405_v20 = vld [vmem:[#allocation2 + $0x38] sm:$0xff] }
 0x134   : > { %v11392_v24 = vadd.s32 240, %v10637_v2  ;;  %vm932_vm15 = vcmp.ne.s32.totalorder %v692_v57, 0  ;;  %vm980_vm3 = vcmp.lt.s32.totalorder %v692_v57, 0  ;;  %v1076_v14 = vadd.s32 24, %v692_v57 }
 0x135   : > { %v1427_v38 = vmax.f32 %v11387_v3, 0.0  ;;  %v1821_v1 = vrot.slane %v1819_v37, 3  ;;  %v1824_v59 = vrot.slane %v1822_v17, 4  ;;  %v701_v45 = vshrl.u32 %v11384_v8, 4  ;;  %vm1028_vm6 = vmand %vm980_vm3, %vm932_vm15 }
 0x136   : > { %v4725_v7 = vor.u32 %v4723_v5, %v11345_v26  ;;  %v1124_v12 = vsel %vm1028_vm6, %v1076_v14, %v692_v57  ;;  %v4729_v35 = vrot.slane %v4727_v62, 1  ;;  %v359_v32 = vadd.s32 248, %v10637_v2  ;;  %9221 = vmatpush3.bf16.msra.mxu0 %v10033_v60 }
 0x137   : > { %v8340_v52 = vunpack.c.l.bf16 %v8508_v10  ;;  %v11399_v51 = vor.u32 %v1824_v59, %v1821_v1  ;;  %v702_v39 = vmul.u32 24, %v701_v45  ;;  %vm11401_vm0 = vcmp.lt.s32.totalorder %v1124_v12, 16  ;;  %9222 = vmatprep.subr.bf16.mxu0 %v10035_v42  ;;  %v8509_v45 = vld [vmem:[%s10623_s20 + $0x80] sm:$0xff]  }
 0x138   : > { %v13810_v48 = vmov 0  ;;  %v8341_v50 = vunpack.c.h.bf16 %v8508_v10  ;;  %v1570_v26 = vsel %vm11401_vm0, %v1426_v18, 0.0  ;;  %vm13813_vm4 = vsmask.f32 7424 }
 0x139   : > { %v13811_v48 = vsel %vm11401_vm0, 4294967295, %v13810_v48  ;;  %v4730_v36 = vsel %vm13813_vm4, %v4725_v7, %v4729_v35  ;;  %v11411_v58 = vmul.u32.u64.low 2863311531, %v11392_v24  ;;  %v11412_v8 = vmul.u32.u64.high 2863311531, %v11392_v24, %v11411_v58 }
 0x13a   : > { %13812 = vst [vmem:[#allocation48_spill] sm:$0xff] %v13811_v48  ;;  %vm13814_vm15 = vsmask.f32 4352  ;;  %v703_v3 = vsub.s32 %v11348_v40, %v702_v39  ;;  %9169 = vmatmul.mubr.bf16.gmra.mrb[4].mxu0 %v4730_v36  ;;  %v11417_v5 = vmul.u32.u64.low 2863311531, %v359_v32  ;;  %v11418_v37 = vmul.u32.u64.high 2863311531, %v359_v32, %v11417_v5 }
 0x13b   : > { %v1826_v57 = vsel %vm13814_vm15, %v1816_v16, %v11399_v51  ;;  %v1325_v60 = vmul.f32 %v11133_v33, %v8340_v52  ;;  %v1326_v18 = vmul.f32 %v11133_v33, %v8341_v50  ;;  %v4731_v17 = vshrl.u32 %v11378_v29, 16  ;;  %9223 = vmatpush3.bf16.msra.mxu0 %v10035_v42 }
 0x13c   : > { %8872 = vmatprep.mubr.bf16.mxu1 %v1826_v57  ;;  %v4735_v62 = vshll.u32 %v11405_v20, 16  ;;  %vm933_vm3 = vcmp.ne.s32.totalorder %v703_v3, 0  ;;  %vm981_vm6 = vcmp.lt.s32.totalorder %v703_v3, 0  ;;  %v1077_v10 = vadd.s32 24, %v703_v3 }
 0x13d   : > { %v360_v16 = vadd.s32 256, %v10637_v2  ;;  %vm1029_vm4 = vmand %vm981_vm6, %vm933_vm3  ;;  %v712_v40 = vshrl.u32 %v11412_v8, 4  ;;  %v1380_v14 = vadd.f32 %v11141_v43, %v1325_v60  ;;  %v1381_v1 = vadd.f32 %v11141_v43, %v1326_v18 }
 0x13e   : > { %v4733_v59 = vor.u32 %v4731_v17, %v4729_v35  ;;  %v1125_v7 = vsel %vm1029_vm4, %v1077_v10, %v703_v3  ;;  %v723_v29 = vshrl.u32 %v11418_v37, 4  ;;  %v11430_v12 = vrot.slane %v4735_v62, 1 }
 0x13f   : > { %v361_v52 = vadd.s32 264, %v10637_v2  ;;  %vm11433_vm15 = vcmp.lt.s32.totalorder %v1125_v7, 16  ;;  %v13815_v39 = vmov 0  ;;  %v713_v42 = vmul.u32 24, %v712_v40 }
 0x140   : > { %v13816_v39 = vsel %vm11433_vm15, 4294967295, %v13815_v39  ;;  %v1428_v50 = vmax.f32 %v1380_v14, 0.0  ;;  %v1429_v36 = vmax.f32 %v1381_v1, 0.0  ;;  %v1571_v58 = vsel %vm11433_vm15, %v1427_v38, 0.0 }
 0x141   : > { %13817 = vst [vmem:[#allocation49_spill] sm:$0xff] %v13816_v39  ;;  %v724_v8 = vmul.u32 24, %v723_v29  ;;  %vm13818_vm3 = vsmask.f32 7424  ;;  %v8344_v57 = vunpack.c.l.bf16 %v8509_v45  ;;  %v11441_v3 = vpack.c.bf16 %v1571_v58, %v1570_v26 }
 0x142   : > { %v4738_v35 = vsel %vm13818_vm3, %v4733_v59, %v11430_v12  ;;  %v714_v5 = vsub.s32 %v11392_v24, %v713_v42  ;;  %v11444_v37 = vmul.u32.u64.low 2863311531, %v360_v16  ;;  %v11445_v60 = vmul.u32.u64.high 2863311531, %v360_v16, %v11444_v37 }
 0x143   : > { %9172 = vmatprep.mubr.bf16.mxu0 %v4738_v35  ;;  %v725_v18 = vsub.s32 %v359_v32, %v724_v8  ;;  %v11447_v17 = vmul.u32.u64.low 2863311531, %v361_v52  ;;  %v11448_v62 = vmul.u32.u64.high 2863311531, %v361_v52, %v11447_v17  ;;  %v8345_v10 = vunpack.c.h.bf16 %v8509_v45  ;;  %1630 = vst [vmem:[#allocation2 + $0x80] sm:$0xff] %v11441_v3 }
 0x144   : > { %v13471_v38 = vshrl.u32 %v11441_v3, 16  ;;  %v13473_v40 = vshll.u32 %v11441_v3, 16  ;;  %vm934_vm6 = vcmp.ne.s32.totalorder %v714_v5, 0  ;;  %vm982_vm4 = vcmp.lt.s32.totalorder %v714_v5, 0  ;;  %v11469_v17 = vld [vmem:[#allocation2 + $0x40] sm:$0xff] }
 0x145   : > { %vm935_vm3 = vcmp.ne.s32.totalorder %v725_v18, 0  ;;  %vm983_vm15 = vcmp.lt.s32.totalorder %v725_v18, 0  ;;  %vm1030_vm0 = vmand %vm982_vm4, %vm934_vm6  ;;  %v1078_v24 = vadd.s32 24, %v714_v5  ;;  %v1079_v26 = vadd.s32 24, %v725_v18 }
 0x146   : > { %v1830_v32 = vrot.slane %v13471_v38, 3  ;;  %v1833_v14 = vrot.slane %v13473_v40, 4  ;;  %vm1031_vm2 = vmand %vm983_vm15, %vm935_vm3  ;;  %v734_v1 = vshrl.u32 %v11445_v60, 4  ;;  %v1327_v59 = vmul.f32 %v11133_v33, %v8344_v57  ;;  %v10037_v60 = vld [vmem:[#allocation10 + $0x1b0] sm:$0xff]  }
 0x147   : > { %v1126_v45 = vsel %vm1030_vm0, %v1078_v24, %v714_v5  ;;  %v1127_v7 = vsel %vm1031_vm2, %v1079_v26, %v725_v18  ;;  %v745_v29 = vshrl.u32 %v11448_v62, 4  ;;  %v1328_v42 = vmul.f32 %v11133_v33, %v8345_v10  ;;  %9224 = vmatprep.subr.bf16.mxu0 %v10037_v60 }
 0x148   : > { %v1834_v58 = vor.u32 %v1833_v14, %v1830_v32  ;;  %vm11461_vm6 = vcmp.lt.s32.totalorder %v1126_v45, 16  ;;  %v13819_v8 = vmov 0  ;;  %vm11465_vm4 = vcmp.lt.s32.totalorder %v1127_v7, 16  ;;  %9225 = vmatpush3.bf16.msra.mxu0 %v10037_v60 }
 0x149   : > { %v13820_v8 = vsel %vm11461_vm6, 4294967295, %v13819_v8  ;;  %v13822_v35 = vmov 0  ;;  %v735_v37 = vmul.u32 24, %v734_v1  ;;  %v1572_v57 = vsel %vm11461_vm6, %v1428_v50, 0.0 }
 0x14a   : > { %13821 = vst [vmem:[#allocation50_spill] sm:$0xff] %v13820_v8  ;;  %v13823_v35 = vsel %vm11465_vm4, 4294967295, %v13822_v35  ;;  %v1573_v5 = vsel %vm11465_vm4, %v1429_v36, 0.0  ;;  %v746_v18 = vmul.u32 24, %v745_v29  ;;  %v1382_v62 = vadd.f32 %v11141_v43, %v1327_v59 }
 0x14b   : > { %13824 = vst [vmem:[#allocation51_spill] sm:$0xff] %v13823_v35  ;;  %vm13825_vm2 = vsmask.f32 4352  ;;  %v11478_v24 = vpack.c.bf16 %v1573_v5, %v1572_v57  ;;  %v736_v26 = vsub.s32 %v360_v16, %v735_v37  ;;  %v1383_v32 = vadd.f32 %v11141_v43, %v1328_v42  ;;  %v8510_v42 = vld [vmem:[%s10623_s20 + $0x88] sm:$0xff]  }
 0x14c   : > { %v1835_v10 = vsel %vm13825_vm2, %v11399_v51, %v1834_v58  ;;  %v747_v14 = vsub.s32 %v361_v52, %v746_v18  ;;  %v1430_v1 = vmax.f32 %v1382_v62, 0.0  ;;  %v4739_v50 = vshrl.u32 %v11405_v20, 16 }
 0x14d   : > { %8873 = vmatmul.mubr.bf16.gmra.mrb[28].mxu1 %v1835_v10  ;;  %v4743_v45 = vshll.u32 %v11469_v17, 16  ;;  %1631 = vst [vmem:[#allocation2 + $0x88] sm:$0xff] %v11478_v24  ;;  %v13470_v36 = vshrl.u32 %v11478_v24, 16  ;;  %v13472_v51 = vshll.u32 %v11478_v24, 16  ;;  %vm936_vm0 = vcmp.ne.s32.totalorder %v736_v26, 0 }
 0x14e   : > { %vm984_vm15 = vcmp.lt.s32.totalorder %v736_v26, 0  ;;  %vm937_vm3 = vcmp.ne.s32.totalorder %v747_v14, 0  ;;  %vm985_vm2 = vcmp.lt.s32.totalorder %v747_v14, 0  ;;  %v1080_v16 = vadd.s32 24, %v736_v26 }
 0x14f   : > { %vm1032_vm4 = vmand %vm984_vm15, %vm936_vm0  ;;  %v1081_v52 = vadd.s32 24, %v747_v14  ;;  %v1839_v20 = vrot.slane %v13470_v36, 3  ;;  %v1842_v59 = vrot.slane %v13472_v51, 4  ;;  %v1431_v7 = vmax.f32 %v1383_v32, 0.0  ;;  %v10039_v32 = vld [vmem:[#allocation10 + $0x1b8] sm:$0xff]  }
 0x150   : > { %vm1033_vm6 = vmand %vm985_vm2, %vm937_vm3  ;;  %v4741_v29 = vor.u32 %v4739_v50, %v11430_v12  ;;  %v1128_v37 = vsel %vm1032_vm4, %v1080_v16, %v736_v26  ;;  %v4745_v57 = vrot.slane %v4743_v45, 1  ;;  %v362_v5 = vadd.s32 272, %v10637_v2  ;;  %v11507_v45 = vld [vmem:[#allocation2 + $0x48] sm:$0xff]  ;;  %9226 = vmatprep.subr.bf16.mxu0 %v10039_v32 }
 0x151   : > { %v1129_v60 = vsel %vm1033_vm6, %v1081_v52, %v747_v14  ;;  %v1843_v18 = vor.u32 %v1842_v59, %v1839_v20  ;;  %vm11493_vm0 = vcmp.lt.s32.totalorder %v1128_v37, 16  ;;  %v13826_v62 = vmov 0  ;;  %9227 = vmatpush3.bf16.msra.mxu0 %v10039_v32 }
 0x152   : > { %v13827_v62 = vsel %vm11493_vm0, 4294967295, %v13826_v62  ;;  %vm11497_vm15 = vcmp.lt.s32.totalorder %v1129_v60, 16  ;;  %v13829_v10 = vmov 0  ;;  %v363_v36 = vadd.s32 280, %v10637_v2 }
 0x153   : > { %13828 = vst [vmem:[#allocation52_spill] sm:$0xff] %v13827_v62  ;;  %v13830_v10 = vsel %vm11497_vm15, 4294967295, %v13829_v10  ;;  %v1574_v12 = vsel %vm11493_vm0, %v1430_v1, 0.0  ;;  %v1575_v26 = vsel %vm11497_vm15, %v1431_v7, 0.0  ;;  %vm13832_vm6 = vsmask.f32 7424 }
 0x154   : > { %13831 = vst [vmem:[#allocation53_spill] sm:$0xff] %v13830_v10  ;;  %v4746_v14 = vsel %vm13832_vm6, %v4741_v29, %v4745_v57  ;;  %v8348_v50 = vunpack.c.l.bf16 %v8510_v42  ;;  %vm13833_vm4 = vsmask.f32 4352  ;;  %v11510_v52 = vpack.c.bf16 %v1575_v26, %v1574_v12  ;;  %vm13834_vm3 = vmmov %vm13832_vm6 }
 0x155   : > { %v1844_v16 = vsel %vm13833_vm4, %v1834_v58, %v1843_v18  ;;  %9173 = vmatmul.mubr.bf16.gmra.mrb[8].mxu0 %v4746_v14  ;;  %v11512_v20 = vmul.u32.u64.low 2863311531, %v362_v5  ;;  %v11513_v59 = vmul.u32.u64.high 2863311531, %v362_v5, %v11512_v20  ;;  %v8349_v60 = vunpack.c.h.bf16 %v8510_v42  ;;  %vm13835_vm2 = vmmov %vm13833_vm4 }
 0x156   : > { %8876 = vmatprep.mubr.bf16.mxu1 %v1844_v16  ;;  %v11515_v37 = vmul.u32.u64.low 2863311531, %v363_v36  ;;  %v11516_v1 = vmul.u32.u64.high 2863311531, %v363_v36, %v11515_v37  ;;  %v1329_v7 = vmul.f32 %v11133_v33, %v8348_v50  ;;  %1632 = vst [vmem:[#allocation2 + $0x90] sm:$0xff] %v11510_v52  ;;  %v13482_v58 = vshrl.u32 %v11510_v52, 16 }
 0x157   : > { %v13485_v29 = vshll.u32 %v11510_v52, 16  ;;  %v4747_v12 = vshrl.u32 %v11469_v17, 16  ;;  %v4751_v26 = vshll.u32 %v11507_v45, 16  ;;  %v1330_v14 = vmul.f32 %v11133_v33, %v8349_v60  ;;  %v8511_v17 = vld [vmem:[%s10623_s20 + $0x90] sm:$0xff]  }
 0x158   : > { %v1384_v16 = vadd.f32 %v11141_v43, %v1329_v7  ;;  %v364_v42 = vadd.s32 288, %v10637_v2  ;;  %v365_v20 = vadd.s32 296, %v10637_v2  ;;  %v1848_v32 = vrot.slane %v13482_v58, 3 }
 0x159   : > { %v1851_v50 = vrot.slane %v13485_v29, 4  ;;  %v756_v37 = vshrl.u32 %v11513_v59, 4  ;;  %v4749_v38 = vor.u32 %v4747_v12, %v4745_v57  ;;  %v767_v51 = vshrl.u32 %v11516_v1, 4 }
 0x15a   : > { %v1385_v60 = vadd.f32 %v11141_v43, %v1330_v14  ;;  %v1432_v40 = vmax.f32 %v1384_v16, 0.0  ;;  %v4753_v7 = vrot.slane %v4751_v26, 1  ;;  %v8352_v48 = vunpack.c.l.bf16 %v8511_v17 }
 0x15b   : > { %v11536_v10 = vor.u32 %v1851_v50, %v1848_v32  ;;  %v757_v62 = vmul.u32 24, %v756_v37  ;;  %v11538_v35 = vmul.u32.u64.low 2863311531, %v364_v42  ;;  %v11539_v8 = vmul.u32.u64.high 2863311531, %v364_v42, %v11538_v35 }
 0x15c   : > { %v768_v58 = vmul.u32 24, %v767_v51  ;;  %v1433_v39 = vmax.f32 %v1385_v60, 0.0  ;;  %v4754_v29 = vsel %vm13834_vm3, %v4749_v38, %v4753_v7  ;;  %v8353_v14 = vunpack.c.h.bf16 %v8511_v17 }
 0x15d   : > { %v1853_v57 = vsel %vm13835_vm2, %v1843_v18, %v11536_v10  ;;  %v758_v59 = vsub.s32 %v362_v5, %v757_v62  ;;  %9176 = vmatprep.mubr.bf16.mxu0 %v4754_v29  ;;  %v11544_v1 = vmul.u32.u64.low 2863311531, %v365_v20  ;;  %v11545_v12 = vmul.u32.u64.high 2863311531, %v365_v20, %v11544_v1 }
 0x15e   : > { %8877 = vmatmul.mubr.bf16.gmra.mrb[32].mxu1 %v1853_v57  ;;  %v769_v26 = vsub.s32 %v363_v36, %v768_v58  ;;  %v1331_v16 = vmul.f32 %v11133_v33, %v8352_v48  ;;  %v4755_v35 = vshrl.u32 %v11507_v45, 16  ;;  %v778_v38 = vshrl.u32 %v11539_v8, 4  ;;  %v11553_v58 = vld [vmem:[#allocation2 + $0x50] sm:$0xff] }
 0x15f   : > { %vm938_vm6 = vcmp.ne.s32.totalorder %v758_v59, 0  ;;  %vm986_vm4 = vcmp.lt.s32.totalorder %v758_v59, 0  ;;  %v1082_v51 = vadd.s32 24, %v758_v59  ;;  %v1332_v18 = vmul.f32 %v11133_v33, %v8353_v14 }
 0x160   : > { %vm939_vm3 = vcmp.ne.s32.totalorder %v769_v26, 0  ;;  %vm987_vm15 = vcmp.lt.s32.totalorder %v769_v26, 0  ;;  %vm1034_vm2 = vmand %vm986_vm4, %vm938_vm6  ;;  %v1083_v5 = vadd.s32 24, %v769_v26  ;;  %v779_v29 = vmul.u32 24, %v778_v38 }
 0x161   : > { %vm1035_vm0 = vmand %vm987_vm15, %vm939_vm3  ;;  %v1130_v62 = vsel %vm1034_vm2, %v1082_v51, %v758_v59  ;;  %v789_v36 = vshrl.u32 %v11545_v12, 4  ;;  %v1386_v48 = vadd.f32 %v11141_v43, %v1331_v16  ;;  %v13836_v50 = vmov 0  ;;  %v11566_v59 = vld [vmem:[#allocation10 + $0x1c0] sm:$0xff]   ;;  %v8512_v16 = vld [vmem:[%s10623_s20 + $0x98] sm:$0xff]  }
 0x162   : > { %v1131_v32 = vsel %vm1035_vm0, %v1083_v5, %v769_v26  ;;  %vm11555_vm11 = vcmp.lt.s32.totalorder %v1130_v62, 16  ;;  %v1387_v8 = vadd.f32 %v11141_v43, %v1332_v18  ;;  %v4757_v37 = vor.u32 %v4755_v35, %v4753_v7  ;;  %9276 = vmatprep.subr.bf16.mxu0 %v11566_v59 }
 0x163   : > { %v13837_v50 = vsel %vm11555_vm11, 4294967295, %v13836_v50  ;;  %vm11560_vm6 = vcmp.lt.s32.totalorder %v1131_v32, 16  ;;  %v13839_v33 = vmov 0  ;;  %v1576_v17 = vsel %vm11555_vm11, %v1432_v40, 0.0 }
 0x164   : > { %13838 = vst [vmem:[#allocation54_spill] sm:$0xff] %v13837_v50  ;;  %v13840_v33 = vsel %vm11560_vm6, 4294967295, %v13839_v33  ;;  %v780_v60 = vsub.s32 %v364_v42, %v779_v29  ;;  %v790_v57 = vmul.u32 24, %v789_v36  ;;  %v1577_v1 = vsel %vm11560_vm6, %v1433_v39, 0.0 }
 0x165   : > { %13841 = vst [vmem:[#allocation55_spill] sm:$0xff] %v13840_v33  ;;  %v1434_v12 = vmax.f32 %v1386_v48, 0.0  ;;  %v1435_v26 = vmax.f32 %v1387_v8, 0.0  ;;  %v4759_v14 = vshll.u32 %v11553_v58, 16  ;;  %v11571_v43 = vpack.c.bf16 %v1577_v1, %v1576_v17 }
 0x166   : > { %v791_v7 = vsub.s32 %v365_v20, %v790_v57  ;;  %vm940_vm0 = vcmp.ne.s32.totalorder %v780_v60, 0  ;;  %vm988_vm15 = vcmp.lt.s32.totalorder %v780_v60, 0  ;;  %v1084_v42 = vadd.s32 24, %v780_v60 }
 0x167   : > { %vm11575_vm4 = vmand %vm988_vm15, %vm940_vm0  ;;  %v4761_v35 = vrot.slane %v4759_v14, 1  ;;  %v366_v39 = vadd.s32 304, %v10637_v2  ;;  %v367_v51 = vadd.s32 312, %v10637_v2  ;;  %1633 = vst [vmem:[#allocation2 + $0x98] sm:$0xff] %v11571_v43  ;;  %v13496_v38 = vshrl.u32 %v11571_v43, 16 }
 0x168   : > { %v13497_v20 = vshll.u32 %v11571_v43, 16  ;;  %vm941_vm3 = vcmp.ne.s32.totalorder %v791_v7, 0  ;;  %vm989_vm2 = vcmp.lt.s32.totalorder %v791_v7, 0  ;;  %v1085_v5 = vadd.s32 24, %v791_v7 }
 0x169   : > { %vm1037_vm6 = vmand %vm989_vm2, %vm941_vm3  ;;  %v1132_v18 = vsel %vm11575_vm4, %v1084_v42, %v780_v60  ;;  %vm13844_vm0 = vsmask.f32 7424  ;;  %v8356_v29 = vunpack.c.l.bf16 %v8512_v16  ;;  %v1857_v36 = vrot.slane %v13496_v38, 3 }
 0x16a   : > { %v4762_v62 = vsel %vm13844_vm0, %v4757_v37, %v4761_v35  ;;  %v1860_v48 = vrot.slane %v13497_v20, 4  ;;  %vm11591_vm15 = vcmp.lt.s32.totalorder %v1132_v18, 16  ;;  %v13845_v32 = vmov 0  ;;  %v11600_v37 = vld [vmem:[#allocation2 + $0x58] sm:$0xff]  ;;  %v8513_v20 = vld [vmem:[%s10623_s20 + $0xa0] sm:$0xff]   ;;  %vm13852_vm3 = vmmov %vm13844_vm0 }
 0x16b   : > { %v13846_v32 = vsel %vm11591_vm15, 4294967295, %v13845_v32  ;;  %9177 = vmatmul.mubr.bf16.gmra.mrb[12].mxu0 %v4762_v62  ;;  %v8357_v8 = vunpack.c.h.bf16 %v8512_v16  ;;  %v1133_v17 = vsel %vm1037_vm6, %v1085_v5, %v791_v7  ;;  %v1578_v57 = vsel %vm11591_vm15, %v1434_v12, 0.0  ;;  %v11611_v7 = vld [vmem:[#allocation7] ss:$0 sm:$0xff] }
 0x16c   : > { %13847 = vst [vmem:[#allocation56_spill] sm:$0xff] %v13846_v32  ;;  %v11597_v60 = vmul.u32.u64.low 2863311531, %v366_v39  ;;  %v11598_v1 = vmul.u32.u64.high 2863311531, %v366_v39, %v11597_v60  ;;  %v1861_v14 = vor.u32 %v1860_v48, %v1857_v36  ;;  %vm11602_vm4 = vcmp.lt.s32.totalorder %v1133_v17, 16 }
 0x16d   : > { %v13848_v40 = vmov 0  ;;  %v11606_v42 = vmul.u32.u64.low 2863311531, %v367_v51  ;;  %v11607_v18 = vmul.u32.u64.high 2863311531, %v367_v51, %v11606_v42  ;;  %v1579_v16 = vsel %vm11602_vm4, %v1435_v26, 0.0 }
 0x16e   : > { %v13849_v40 = vsel %vm11602_vm4, 4294967295, %v13848_v40  ;;  %v1333_v12 = vmul.f32 %v11611_v7, %v8356_v29  ;;  %v1334_v5 = vmul.f32 %v11611_v7, %v8357_v8  ;;  %v4763_v62 = vshrl.u32 %v11553_v58, 16  ;;  %v11623_v42 = vld [vmem:[#allocation9] ss:$0 sm:$0xff] }
 0x16f   : > { %13850 = vst [vmem:[#allocation57_spill] sm:$0xff] %v13849_v40  ;;  %vm13851_vm6 = vsmask.f32 4352  ;;  %v11618_v48 = vpack.c.bf16 %v1579_v16, %v1578_v57  ;;  %v13508_v17 = vshll.u32 %v11600_v37, 16  ;;  %v368_v60 = vadd.s32 320, %v10637_v2 }
 0x170   : > { %v1862_v36 = vsel %vm13851_vm6, %v11536_v10, %v1861_v14  ;;  %v800_v26 = vshrl.u32 %v11598_v1, 4  ;;  %v1388_v29 = vadd.f32 %v11623_v42, %v1333_v12  ;;  %v1389_v8 = vadd.f32 %v11623_v42, %v1334_v5 }
 0x171   : > { %8880 = vmatprep.mubr.bf16.mxu1 %v1862_v36  ;;  %v4765_v38 = vor.u32 %v4763_v62, %v4761_v35  ;;  %1634 = vst [vmem:[#allocation2 + $0xa0] sm:$0xff] %v11618_v48  ;;  %v13511_v10 = vshrl.u32 %v11618_v48, 16  ;;  %v13522_v57 = vshll.u32 %v11618_v48, 16  ;;  %v811_v16 = vshrl.u32 %v11607_v18, 4 }
 0x172   : > { %v4769_v36 = vrot.slane %v13508_v17, 1  ;;  %v801_v1 = vmul.u32 24, %v800_v26  ;;  %v1436_v40 = vmax.f32 %v1388_v29, 0.0  ;;  %v1437_v32 = vmax.f32 %v1389_v8, 0.0 }
 0x173   : > { %v369_v12 = vadd.s32 328, %v10637_v2  ;;  %v1866_v35 = vrot.slane %v13511_v10, 3  ;;  %v1869_v5 = vrot.slane %v13522_v57, 4  ;;  %v812_v62 = vmul.u32 24, %v811_v16  ;;  %v8514_v57 = vld [vmem:[%s10623_s20 + $0xa8] sm:$0xff]  }
 0x174   : > { %v4770_v33 = vsel %vm13852_vm3, %v4765_v38, %v4769_v36  ;;  %v802_v50 = vsub.s32 %v366_v39, %v801_v1  ;;  %v11640_v18 = vmul.u32.u64.low 2863311531, %v368_v60  ;;  %v11641_v9 = vmul.u32.u64.high 2863311531, %v368_v60, %v11640_v18 }
 0x175   : > { %9180 = vmatprep.mubr.bf16.mxu0 %v4770_v33  ;;  %v8360_v17 = vunpack.c.l.bf16 %v8513_v20  ;;  %v11643_v26 = vor.u32 %v1869_v5, %v1866_v35  ;;  %v813_v29 = vsub.s32 %v367_v51, %v812_v62  ;;  %v8361_v53 = vunpack.c.h.bf16 %v8513_v20 }
 0x176   : > { %v11645_v8 = vmul.u32.u64.low 2863311531, %v369_v12  ;;  %v11646_v13 = vmul.u32.u64.high 2863311531, %v369_v12, %v11645_v8  ;;  %vm942_vm2 = vcmp.ne.s32.totalorder %v802_v50, 0  ;;  %vm990_vm0 = vcmp.lt.s32.totalorder %v802_v50, 0 }
 0x177   : > { %v1086_v10 = vadd.s32 24, %v802_v50  ;;  %v1871_v16 = vsel %vm13851_vm6, %v1861_v14, %v11643_v26  ;;  %vm943_vm3 = vcmp.ne.s32.totalorder %v813_v29, 0  ;;  %vm991_vm4 = vcmp.lt.s32.totalorder %v813_v29, 0  ;;  %vm1038_vm15 = vmand %vm990_vm0, %vm942_vm2  ;;  %v11658_v14 = vld [vmem:[#allocation2 + $0x60] sm:$0xff] }
 0x178   : > { %v1087_v33 = vadd.s32 24, %v813_v29  ;;  %8881 = vmatmul.mubr.bf16.gmra.mrb[36].mxu1 %v1871_v16  ;;  %vm1039_vm11 = vmand %vm991_vm4, %vm943_vm3  ;;  %v822_v38 = vshrl.u32 %v11641_v9, 4  ;;  %v1335_v51 = vmul.f32 %v11611_v7, %v8360_v17  ;;  %v1336_v1 = vmul.f32 %v11611_v7, %v8361_v53 }
 0x179   : > { %v1134_v39 = vsel %vm1038_vm15, %v1086_v10, %v802_v50  ;;  %v13853_v5 = vmov 0  ;;  %v833_v20 = vshrl.u32 %v11646_v13, 4  ;;  %v13523_v62 = vshrl.u32 %v11600_v37, 16 }
 0x17a   : > { %v1135_v35 = vsel %vm1039_vm11, %v1087_v33, %v813_v29  ;;  %vm11653_vm9 = vcmp.lt.s32.totalorder %v1134_v39, 16  ;;  %v13856_v18 = vmov 0  ;;  %v823_v53 = vmul.u32 24, %v822_v38 }
 0x17b   : > { %v13854_v5 = vsel %vm11653_vm9, 4294967295, %v13853_v5  ;;  %vm11661_vm2 = vcmp.lt.s32.totalorder %v1135_v35, 16  ;;  %v1580_v9 = vsel %vm11653_vm9, %v1436_v40, 0.0  ;;  %v1390_v50 = vadd.f32 %v11623_v42, %v1335_v51 }
 0x17c   : > { %13855 = vst [vmem:[#allocation58_spill] sm:$0xff] %v13854_v5  ;;  %v13857_v18 = vsel %vm11661_vm2, 4294967295, %v13856_v18  ;;  %v1581_v17 = vsel %vm11661_vm2, %v1437_v32, 0.0  ;;  %v834_v10 = vmul.u32 24, %v833_v20  ;;  %v1391_v13 = vadd.f32 %v11623_v42, %v1336_v1  ;;  %v11700_v5 = vld [vmem:[#allocation2 + $0x68] sm:$0xff] }
 0x17d   : > { %13858 = vst [vmem:[#allocation59_spill] sm:$0xff] %v13857_v18  ;;  %v4773_v29 = vor.u32 %v13523_v62, %v4769_v36  ;;  %v11673_v8 = vpack.c.bf16 %v1581_v17, %v1580_v9  ;;  %v824_v16 = vsub.s32 %v368_v60, %v823_v53  ;;  %v1438_v33 = vmax.f32 %v1390_v50, 0.0 }
 0x17e   : > { %v13532_v39 = vshll.u32 %v11658_v14, 16  ;;  %v835_v35 = vsub.s32 %v369_v12, %v834_v10  ;;  %v1439_v40 = vmax.f32 %v1391_v13, 0.0  ;;  %v370_v38 = vadd.s32 336, %v10637_v2 }
 0x17f   : > { %v371_v51 = vadd.s32 344, %v10637_v2  ;;  %1635 = vst [vmem:[#allocation2 + $0xa8] sm:$0xff] %v11673_v8  ;;  %v13526_v32 = vshrl.u32 %v11673_v8, 16  ;;  %v13529_v1 = vshll.u32 %v11673_v8, 16  ;;  %vm944_vm11 = vcmp.ne.s32.totalorder %v824_v16, 0 }
 0x180   : > { %vm992_vm15 = vcmp.lt.s32.totalorder %v824_v16, 0  ;;  %vm945_vm4 = vcmp.ne.s32.totalorder %v835_v35, 0  ;;  %vm993_vm0 = vcmp.lt.s32.totalorder %v835_v35, 0  ;;  %v1088_v60 = vadd.s32 24, %v824_v16 }
 0x181   : > { %vm1040_vm6 = vmand %vm992_vm15, %vm944_vm11  ;;  %v1089_v36 = vadd.s32 24, %v835_v35  ;;  %v1875_v12 = vrot.slane %v13526_v32, 3  ;;  %v1878_v20 = vrot.slane %v13529_v1, 4  ;;  %v4777_v9 = vrot.slane %v13532_v39, 1 }
 0x182   : > { %vm1041_vm3 = vmand %vm993_vm0, %vm945_vm4  ;;  %v8364_v53 = vunpack.c.l.bf16 %v8514_v57  ;;  %v1136_v50 = vsel %vm1040_vm6, %v1088_v60, %v824_v16  ;;  %v11688_v10 = vmul.u32.u64.low 2863311531, %v370_v38  ;;  %v11689_v13 = vmul.u32.u64.high 2863311531, %v370_v38, %v11688_v10 }
 0x183   : > { %v1137_v17 = vsel %vm1041_vm3, %v1089_v36, %v835_v35  ;;  %v1879_v62 = vor.u32 %v1878_v20, %v1875_v12  ;;  %vm11691_vm11 = vcmp.lt.s32.totalorder %v1136_v50, 16  ;;  %v13859_v18 = vmov 0 }
 0x184   : > { %v13860_v18 = vsel %vm11691_vm11, 4294967295, %v13859_v18  ;;  %vm11695_vm15 = vcmp.lt.s32.totalorder %v1137_v17, 16  ;;  %v13862_v32 = vmov 0  ;;  %vm13865_vm2 = vsmask.f32 7424 }
 0x185   : > { %13861 = vst [vmem:[#allocation60_spill] sm:$0xff] %v13860_v18  ;;  %v13863_v32 = vsel %vm11695_vm15, 4294967295, %v13862_v32  ;;  %v4778_v1 = vsel %vm13865_vm2, %v4773_v29, %v4777_v9  ;;  %v1582_v16 = vsel %vm11691_vm11, %v1438_v33, 0.0  ;;  %v1583_v35 = vsel %vm11695_vm15, %v1439_v40, 0.0 }
 0x186   : > { %13864 = vst [vmem:[#allocation61_spill] sm:$0xff] %v13863_v32  ;;  %9181 = vmatmul.mubr.bf16.gmra.mrb[16].mxu0 %v4778_v1  ;;  %v11706_v60 = vmul.u32.u64.low 2863311531, %v371_v51  ;;  %v11707_v36 = vmul.u32.u64.high 2863311531, %v371_v51, %v11706_v60  ;;  %vm13866_vm4 = vsmask.f32 4352  ;;  %v11711_v20 = vpack.c.bf16 %v1583_v35, %v1582_v16 }
 0x187   : > { %v1880_v12 = vsel %vm13866_vm4, %v11643_v26, %v1879_v62  ;;  %v8365_v50 = vunpack.c.h.bf16 %v8514_v57  ;;  %v1337_v29 = vmul.f32 %v11611_v7, %v8364_v53  ;;  %v844_v17 = vshrl.u32 %v11689_v13, 4  ;;  %vm13867_vm3 = vmmov %vm13866_vm4 }
 0x188   : > { %8884 = vmatprep.mubr.bf16.mxu1 %v1880_v12  ;;  %v13539_v33 = vshrl.u32 %v11658_v14, 16  ;;  %v13540_v10 = vshll.u32 %v11700_v5, 16  ;;  %v372_v40 = vadd.s32 352, %v10637_v2  ;;  %1636 = vst [vmem:[#allocation2 + $0xb0] sm:$0xff] %v11711_v20  ;;  %v13543_v1 = vshrl.u32 %v11711_v20, 16 }
 0x189   : > { %v13544_v26 = vshll.u32 %v11711_v20, 16  ;;  %v1338_v57 = vmul.f32 %v11611_v7, %v8365_v50  ;;  %v1392_v53 = vadd.f32 %v11623_v42, %v1337_v29  ;;  %v845_v16 = vmul.u32 24, %v844_v17 }
 0x18a   : > { %v855_v13 = vshrl.u32 %v11707_v36, 4  ;;  %v4781_v35 = vor.u32 %v13539_v33, %v4777_v9  ;;  %v4785_v60 = vrot.slane %v13540_v10, 1  ;;  %v1884_v12 = vrot.slane %v13543_v1, 3 }
 0x18b   : > { %v1887_v39 = vrot.slane %v13544_v26, 4  ;;  %v1393_v32 = vadd.f32 %v11623_v42, %v1338_v57  ;;  %v1440_v50 = vmax.f32 %v1392_v53, 0.0  ;;  %v846_v18 = vsub.s32 %v370_v38, %v845_v16 }
 0x18c   : > { %v856_v29 = vmul.u32 24, %v855_v13  ;;  %v4786_v17 = vsel %vm13865_vm2, %v4781_v35, %v4785_v60  ;;  %v373_v36 = vadd.s32 360, %v10637_v2  ;;  %v8368_v16 = vunpack.c.l.bf16 %v8515_v28  ;;  %v11746_v13 = vld [vmem:[#allocation2 + $0x70] sm:$0xff] }
 0x18d   : > { %v11736_v9 = vor.u32 %v1887_v39, %v1884_v12  ;;  %v1441_v33 = vmax.f32 %v1393_v32, 0.0  ;;  %9184 = vmatprep.mubr.bf16.mxu0 %v4786_v17  ;;  %v11738_v10 = vmul.u32.u64.low 2863311531, %v372_v40  ;;  %v11739_v55 = vmul.u32.u64.high 2863311531, %v372_v40, %v11738_v10 }
 0x18e   : > { %v857_v1 = vsub.s32 %v371_v51, %v856_v29  ;;  %vm946_vm0 = vcmp.ne.s32.totalorder %v846_v18, 0  ;;  %vm994_vm6 = vcmp.lt.s32.totalorder %v846_v18, 0  ;;  %v1090_v26 = vadd.s32 24, %v846_v18 }
 0x18f   : > { %v1889_v38 = vsel %vm13867_vm3, %v1879_v62, %v11736_v9  ;;  %vm1042_vm4 = vmand %vm994_vm6, %vm946_vm0  ;;  %v11743_v57 = vmul.u32.u64.low 2863311531, %v373_v36  ;;  %v11744_v53 = vmul.u32.u64.high 2863311531, %v373_v36, %v11743_v57  ;;  %v13868_v51 = vmov 0 }
 0x190   : > { %8885 = vmatmul.mubr.bf16.gmra.mrb[40].mxu1 %v1889_v38  ;;  %vm947_vm2 = vcmp.ne.s32.totalorder %v857_v1, 0  ;;  %vm995_vm15 = vcmp.lt.s32.totalorder %v857_v1, 0  ;;  %v1091_v39 = vadd.s32 24, %v857_v1  ;;  %v1138_v32 = vsel %vm1042_vm4, %v1090_v26, %v846_v18 }
 0x191   : > { %vm1043_vm11 = vmand %vm995_vm15, %vm947_vm2  ;;  %vm11748_vm9 = vcmp.lt.s32.totalorder %v1138_v32, 16  ;;  %v866_v10 = vshrl.u32 %v11739_v55, 4  ;;  %v8369_v62 = vunpack.c.h.bf16 %v8515_v28  ;;  %v1339_v35 = vmul.f32 %v11611_v7, %v8368_v16 }
 0x192   : > { %v13869_v51 = vsel %vm11748_vm9, 4294967295, %v13868_v51  ;;  %v1139_v12 = vsel %vm1043_vm11, %v1091_v39, %v857_v1  ;;  %v1584_v29 = vsel %vm11748_vm9, %v1440_v50, 0.0  ;;  %v13554_v17 = vshrl.u32 %v11700_v5, 16 }
 0x193   : > { %13870 = vst [vmem:[#allocation62_spill] sm:$0xff] %v13869_v51  ;;  %v13551_v38 = vshll.u32 %v11746_v13, 16  ;;  %vm11758_vm0 = vcmp.lt.s32.totalorder %v1139_v12, 16  ;;  %v13871_v18 = vmov 0  ;;  %v867_v26 = vmul.u32 24, %v866_v10 }
 0x194   : > { %v13872_v18 = vsel %vm11758_vm0, 4294967295, %v13871_v18  ;;  %v877_v57 = vshrl.u32 %v11744_v53, 4  ;;  %v1340_v55 = vmul.f32 %v11611_v7, %v8369_v62  ;;  %v1585_v28 = vsel %vm11758_vm0, %v1441_v33, 0.0 }
 0x195   : > { %13873 = vst [vmem:[#allocation63_spill] sm:$0xff] %v13872_v18  ;;  %v1394_v1 = vadd.f32 %v11623_v42, %v1339_v35  ;;  %v4789_v50 = vor.u32 %v13554_v17, %v4785_v60  ;;  %v4793_v16 = vrot.slane %v13551_v38, 1  ;;  %v11771_v39 = vpack.c.bf16 %v1585_v28, %v1584_v29  ;;  %v11778_v29 = vld [vmem:[#allocation2 + $0x78] sm:$0xff] }
 0x196   : > { %v868_v32 = vsub.s32 %v372_v40, %v867_v26  ;;  %v878_v12 = vmul.u32 24, %v877_v57  ;;  %v1395_v10 = vadd.f32 %v11623_v42, %v1340_v55  ;;  %vm13874_vm11 = vsmask.f32 7424  ;;  %v11852_v18 = vld [vmem:[#allocation2 + $0x18] sm:$0xff] }
 0x197   : > { %v4794_v53 = vsel %vm13874_vm11, %v4789_v50, %v4793_v16  ;;  %1637 = vst [vmem:[#allocation2 + $0xb8] sm:$0xff] %v11771_v39  ;;  %v13555_v33 = vshrl.u32 %v11771_v39, 16  ;;  %v13559_v62 = vshll.u32 %v11771_v39, 16  ;;  %v1442_v38 = vmax.f32 %v1394_v1, 0.0 }
 0x198   : > { %v879_v35 = vsub.s32 %v373_v36, %v878_v12  ;;  %vm948_vm15 = vcmp.ne.s32.totalorder %v868_v32, 0  ;;  %9185 = vmatmul.mubr.bf16.gmra.mrb[20].mxu0 %v4794_v53  ;;  %vm996_vm6 = vcmp.lt.s32.totalorder %v868_v32, 0  ;;  %v1092_v60 = vadd.s32 24, %v868_v32 }
 0x199   : > { %v1893_v40 = vrot.slane %v13555_v33, 3  ;;  %v1896_v26 = vrot.slane %v13559_v62, 4  ;;  %vm1044_vm2 = vmand %vm996_vm6, %vm948_vm15  ;;  %v1443_v36 = vmax.f32 %v1395_v10, 0.0  ;;  %v13557_v28 = vshrl.u32 %v11746_v13, 16  ;;  %v11841_v62 = vld [vmem:[#allocation2 + $0x10] sm:$0xff] }
 0x19a   : > { %vm949_vm3 = vcmp.ne.s32.totalorder %v879_v35, 0  ;;  %vm997_vm4 = vcmp.lt.s32.totalorder %v879_v35, 0  ;;  %v1093_v57 = vadd.s32 24, %v879_v35  ;;  %v1140_v55 = vsel %vm1044_vm2, %v1092_v60, %v868_v32 }
 0x19b   : > { %vm1045_vm11 = vmand %vm997_vm4, %vm949_vm3  ;;  %v11785_v50 = vor.u32 %v1896_v26, %v1893_v40  ;;  %vm11787_vm0 = vcmp.lt.s32.totalorder %v1140_v55, 16  ;;  %v13875_v1 = vmov 0  ;;  %v13556_v12 = vshll.u32 %v11778_v29, 16 }
 0x19c   : > { %v13876_v1 = vsel %vm11787_vm0, 4294967295, %v13875_v1  ;;  %v1141_v53 = vsel %vm1045_vm11, %v1093_v57, %v879_v35  ;;  %v1586_v17 = vsel %vm11787_vm0, %v1442_v38, 0.0  ;;  %v4797_v33 = vor.u32 %v13557_v28, %v4793_v16  ;;  %v2253_v28 = vld [vmem:[#allocation2] sm:$0xf0] }
 0x19d   : > { %13877 = vst [vmem:[#allocation64_spill] sm:$0xff] %v13876_v1  ;;  %v13558_v32 = vshrl.u32 %v11778_v29, 16  ;;  %vm13878_vm15 = vsmask.f32 4352  ;;  %vm11800_vm6 = vcmp.lt.s32.totalorder %v1141_v53, 16  ;;  %v13879_v60 = vmov 0 }
 0x19e   : > { %v1898_v10 = vsel %vm13878_vm15, %v11736_v9, %v11785_v50  ;;  %v13880_v60 = vsel %vm11800_vm6, 4294967295, %v13879_v60  ;;  %v4801_v40 = vrot.slane %v13556_v12, 1  ;;  %v1587_v38 = vsel %vm11800_vm6, %v1443_v36, 0.0 }
 0x19f   : > { %13881 = vst [vmem:[#allocation65_spill] sm:$0xff] %v13880_v60  ;;  %8888 = vmatprep.mubr.bf16.mxu1 %v1898_v10  ;;  %v13882_v35 = vshll.u32 %v11441_v3, 16  ;;  %v13883_v26 = vshll.u32 %v11478_v24, 16  ;;  %v11812_v55 = vpack.c.bf16 %v1587_v38, %v1586_v17  ;;  %vm13884_vm3 = vsmask.f32 7424 }
 0x1a0   : > { %v4802_v9 = vsel %vm13884_vm3, %v4797_v33, %v4801_v40  ;;  %v4805_v53 = vor.u32 %v13558_v32, %v4801_v40  ;;  %v13885_v12 = vshrl.u32 %v11441_v3, 16  ;;  %vm13886_vm4 = vmmov %vm13884_vm3  ;;  %v13888_v17 = vshll.u32 %v11510_v52, 16 }
 0x1a1   : > { %v4809_v16 = vrot.slane %v13882_v35, 1  ;;  %v4817_v57 = vrot.slane %v13883_v26, 1  ;;  %9188 = vmatprep.mubr.bf16.mxu0 %v4802_v9  ;;  %1638 = vst [vmem:[#allocation2 + $0xc0] sm:$0xff] %v11812_v55  ;;  %vm13887_vm2 = vmmov %vm13884_vm3  ;;  %v13889_v33 = vshrl.u32 %v11478_v24, 16  ;;  %v13890_v26 = vshrl.u32 %v11510_v52, 16  ;;  %v8516_v52 = vld [vmem:[%s10623_s20 + $0xb8] sm:$0xff]  }
 0x1a2   : > { %v4825_v38 = vrot.slane %v13888_v17, 1  ;;  %v2320_v32 = vrot.slane %v2253_v28, 4  ;;  %vm2319_vm11 = vcmask 1043456   ;;  %vm13892_vm15 = vmmov %vm13887_vm2  ;;  %v13570_v24 = vrot.slane %v11553_v58, 4 }
 0x1a3   : > { %v4813_v10 = vor.u32 %v4809_v16, %v13885_v12  ;;  %v4810_v36 = vsel %vm13886_vm4, %v4805_v53, %v4809_v16  ;;  %v4821_v40 = vor.u32 %v4817_v57, %v13889_v33  ;;  %v13891_v12 = vshll.u32 %v11571_v43, 16  ;;  %v11830_v16 = vld [vmem:[#allocation2] sm:$0xff]  ;;  %vm13893_vm3 = vmmov %vm13887_vm2 }
 0x1a4   : > { %9189 = vmatmul.mubr.bf16.gmra.mrb[24].mxu0 %v4810_v36  ;;  %v4829_v3 = vor.u32 %v4825_v38, %v13890_v26  ;;  %v2321_v53 = vrot.slane %v11830_v16, 4  ;;  %v13894_v28 = vshrl.u32 %v11571_v43, 16  ;;  %v374_v60 = vadd.s32 368, %v10637_v2  ;;  %vm13898_vm4 = vmmov %vm13887_vm2 }
 0x1a5   : > { %v4818_v35 = vsel %vm13887_vm2, %v4813_v10, %v4817_v57  ;;  %v4833_v9 = vrot.slane %v13891_v12, 1  ;;  %v4826_v10 = vsel %vm13892_vm15, %v4821_v40, %v4825_v38  ;;  %v2341_v57 = vrot.slane %v11600_v37, 4  ;;  %vm13901_vm15 = vmmov %vm13893_vm3 }
 0x1a6   : > { %9192 = vmatprep.mubr.bf16.mxu0 %v4818_v35  ;;  %v2322_v26 = vsel %vm2319_vm11, %v2320_v32, %v2321_v53  ;;  %v13895_v38 = vshll.u32 %v11618_v48, 16  ;;  %v8372_v43 = vunpack.c.l.bf16 %v8516_v52  ;;  %v2323_v19 = vrot.slane %v11841_v62, 4 }
 0x1a7   : > { %v4834_v35 = vsel %vm13893_vm3, %v4829_v3, %v4833_v9  ;;  %v4837_v12 = vor.u32 %v4833_v9, %v13894_v28  ;;  %v11848_v3 = vsel %vm2319_vm11, %v13570_v24, %v2341_v57  ;;  %v8373_v9 = vunpack.c.h.bf16 %v8516_v52 }
 0x1a8   : > { %v1666_v36 = vld [vmem:[#allocation2 + $0xc0] sm:$0xf]  ;;  %v4841_v40 = vrot.slane %v13895_v38, 1  ;;  %v13897_v38 = vshll.u32 %v11673_v8, 16  ;;  %v11858_v31 = vmul.u32.u64.low 2863311531, %v374_v60  ;;  %v11859_v24 = vmul.u32.u64.high 2863311531, %v374_v60, %v11858_v31 }
 0x1a9   : > { %v1900_v17 = vshrl.u32 %v1666_v36, 16  ;;  %v1903_v33 = vshll.u32 %v1666_v36, 16  ;;  %v375_v36 = vadd.s32 376, %v10637_v2  ;;  %v1341_v52 = vmul.f32 %v11611_v7, %v8372_v43 }
 0x1aa   : > { %v4849_v51 = vrot.slane %v13897_v38, 1  ;;  %vm13899_vm2 = vsmask.f32 4352  ;;  %v13900_v38 = vshll.u32 %v11711_v20, 16  ;;  %v888_v43 = vshrl.u32 %v11859_v24, 4 }
 0x1ab   : > { %v1902_v1 = vrot.slane %v1900_v17, 3  ;;  %v1905_v32 = vrot.slane %v1903_v33, 4  ;;  %v11862_v2 = vmul.u32.u64.low 2863311531, %v375_v36  ;;  %v11863_v17 = vmul.u32.u64.high 2863311531, %v375_v36, %v11862_v2 }
 0x1ac   : > { %9193 = vmatmul.mubr.bf16.gmra.mrb[28].mxu0 %v4826_v10  ;;  %v13896_v10 = vshrl.u32 %v11618_v48, 16  ;;  %v2343_v48 = vrot.slane %v11658_v14, 4  ;;  %v4857_v31 = vrot.slane %v13900_v38, 1  ;;  %v11875_v2 = vld [vmem:[#allocation2 + $0x20] sm:$0xff]  ;;  %v1396_v24 = vadd.f32 %v11623_v42, %v1341_v52 }
 0x1ad   : > { %9196 = vmatprep.mubr.bf16.mxu0 %v4834_v35  ;;  %v1906_v63 = vor.u32 %v1905_v32, %v1902_v1  ;;  %v4842_v35 = vsel %vm13898_vm4, %v4837_v12, %v4841_v40  ;;  %v1342_v1 = vmul.f32 %v11611_v7, %v8373_v9  ;;  %v2345_v32 = vrot.slane %v11700_v5, 4  ;;  %vm13906_vm4 = vmmov %vm13893_vm3 }
 0x1ae   : > { %v4845_v28 = vor.u32 %v4841_v40, %v13896_v10  ;;  %v13902_v12 = vshrl.u32 %v11673_v8, 16  ;;  %v11882_v30 = vsel %vm2319_vm11, %v2341_v57, %v2343_v48  ;;  %v13903_v7 = vshrl.u32 %v11711_v20, 16 }
 0x1af   : > { %v1907_v10 = vsel %vm13899_vm2, %v11785_v50, %v1906_v63  ;;  %v11884_v63 = vld [vmem:[#allocation2 + $0x28] sm:$0xff]  ;;  %v13904_v9 = vshll.u32 %v11771_v39, 16  ;;  %v899_v38 = vshrl.u32 %v11863_v17, 4  ;;  %v2324_v8 = vsel %vm2319_vm11, %v2321_v53, %v2323_v19 }
 0x1b0   : > { %8889 = vmatmul.mubr.bf16.gmra.mrb[44].mxu1 %v1907_v10  ;;  %v4850_v33 = vsel %vm13901_vm15, %v4845_v28, %v4849_v51  ;;  %v4853_v40 = vor.u32 %v4849_v51, %v13902_v12  ;;  %v4861_v50 = vor.u32 %v4857_v31, %v13903_v7  ;;  %v11892_v28 = vsel %vm2319_vm11, %v2343_v48, %v2345_v32 }
 0x1b1   : > { %8908 = vmatprep.mubr.bf16.mxu1 %v2322_v26  ;;  %v4865_v10 = vrot.slane %v13904_v9, 1  ;;  %v889_v51 = vmul.u32 24, %v888_v43  ;;  %v2327_v57 = vrot.slane %v11875_v2, 4  ;;  %v900_v26 = vmul.u32 24, %v899_v38 }
 0x1b2   : > { %v1397_v12 = vadd.f32 %v11623_v42, %v1342_v1  ;;  %v2347_v7 = vrot.slane %v11746_v13, 4  ;;  %v13905_v9 = vrot.slane %v11852_v18, 4  ;;  %v13592_v48 = vrot.slane %v11884_v63, 4  ;;  %v10034_v42 = vld [vmem:[#allocation10 + $0x88] sm:$0xff]  }
 0x1b3   : > { %v4871_v53 = vshll.u32 %v11812_v55, 16  ;;  %v4858_v43 = vsel %vm13893_vm3, %v4853_v40, %v4857_v31  ;;  %v4866_v52 = vsel %vm13906_vm4, %v4861_v50, %v4865_v10  ;;  %v901_v49 = vsub.s32 %v375_v36, %v900_v26 }
 0x1b4   : > { %9197 = vmatmul.mubr.bf16.gmra.mrb[32].mxu0 %v4842_v35  ;;  %v2326_v17 = vsel %vm2319_vm11, %v2323_v19, %v13905_v9  ;;  %v890_v35 = vsub.s32 %v374_v60, %v889_v51  ;;  %v11907_v38 = vsel %vm2319_vm11, %v2345_v32, %v2347_v7  ;;  %v1444_v4 = vmax.f32 %v1396_v24, 0.0  ;;  %v10073_v32 = vld [vmem:[#allocation10 + $0x80] sm:$0xff]  }
 0x1b5   : > { %9200 = vmatprep.mubr.bf16.mxu0 %v4850_v33  ;;  %v5332_v33 = vld [vmem:[#allocation2 + $0x18] sm:$0xf8]  ;;  %vm951_vm6 = vcmp.ne.s32.totalorder %v901_v49, 0  ;;  %vm999_vm0 = vcmp.lt.s32.totalorder %v901_v49, 0  ;;  %v1095_v19 = vadd.s32 24, %v901_v49  ;;  %v1445_v9 = vmax.f32 %v1397_v12, 0.0 }
 0x1b6   : > { %vm950_vm2 = vcmp.ne.s32.totalorder %v890_v35, 0  ;;  %vm998_vm15 = vcmp.lt.s32.totalorder %v890_v35, 0  ;;  %v1094_v1 = vadd.s32 24, %v890_v35  ;;  %vm1047_vm10 = vmand %vm999_vm0, %vm951_vm6  ;;  %v4875_v31 = vshrl.u32 %v11812_v55, 16 }
 0x1b7   : > { %vm1046_vm9 = vmand %vm998_vm15, %vm950_vm2  ;;  %v5374_v36 = vshrl.u32 %v5332_v33, 16  ;;  %v13589_v40 = vrot.slane %v11778_v29, 4  ;;  %v1143_v50 = vsel %vm1047_vm10, %v1095_v19, %v901_v49  ;;  %v13907_v51 = vmov 0 }
 0x1b8   : > { %8909 = vmatmul.mubr.bf16.vlgmr.msra.gmra.mrb[0].mxu1 %v2324_v8  ;;  %v1142_v60 = vsel %vm1046_vm9, %v1094_v1, %v890_v35  ;;  %v5377_v24 = vshll.u32 %v5332_v33, 16  ;;  %v13590_v26 = vshrl.u32 %v11875_v2, 16  ;;  %v10036_v8 = vld [vmem:[#allocation10 + $0x90] sm:$0xff]   ;;  %vm11916_vm9 = vcmp.lt.s32.totalorder %v1143_v50, 16  ;;  %vm13915_vm10 = vmmov %vm13906_vm4 }
 0x1b9   : > { %8957 = vmatpush3.bf16.msra.mxu1 %v10073_v32  ;;  %8912 = vmatprep.mubr.bf16.mxu1 %v2326_v17  ;;  %vm11911_vm3 = vcmp.lt.s32.totalorder %v1142_v60, 16  ;;  %v13910_v12 = vmov 0  ;;  %v13591_v17 = vshll.u32 %v11875_v2, 16  ;;  %v11926_v49 = vsel %vm2319_vm11, %v2347_v7, %v13589_v40  ;;  %v4677_v60 = vld [vmem:[#allocation2 + $0xd0] sm:$0x1]  ;;  %vm13916_vm0 = vmmov %vm13906_vm4 }
 0x1ba   : > { %v13908_v51 = vsel %vm11911_vm3, 4294967295, %v13907_v51  ;;  %8958 = vmatprep.subr.bf16.mxu1 %v10034_v42  ;;  %v13911_v12 = vsel %vm11916_vm9, 4294967295, %v13910_v12  ;;  %v1588_v55 = vsel %vm11911_vm3, %v1444_v4, 0.0  ;;  %v13913_v35 = vshrl.u32 %v11771_v39, 16  ;;  %v11940_v40 = vld [vmem:[#allocation2 + $0x30] sm:$0xff]  ;;  %vm13920_vm4 = vmmov %vm13916_vm0 }
 0x1bb   : > { %13909 = vst [vmem:[#allocation66_spill] sm:$0xff] %v13908_v51  ;;  %13912 = vst [vmem:[#allocation67_spill] sm:$0xff] %v13911_v12  ;;  %v4873_v1 = vrot.slane %v4871_v53, 1  ;;  %v13914_v4 = vrot.slane %v11852_v18, 4  ;;  %v2330_v7 = vsel %vm2319_vm11, %v2327_v57, %v13592_v48  ;;  %v5376_v50 = vrot.slane %v5374_v36, 3  ;;  %v10040_v48 = vld [vmem:[#allocation10 + $0xa0] sm:$0xff]  }
 0x1bc   : > { %9201 = vmatmul.mubr.bf16.gmra.mrb[36].mxu0 %v4858_v43  ;;  %v4869_v33 = vor.u32 %v4865_v10, %v13913_v35  ;;  %v1589_v43 = vsel %vm11916_vm9, %v1445_v9, 0.0  ;;  %v10038_v10 = vld [vmem:[#allocation10 + $0x98] sm:$0xff]   ;;  %v5379_v9 = vrot.slane %v5377_v24, 4  ;;  %vm13918_vm6 = vsmask.f32 4352 }
 0x1bd   : > { %9204 = vmatprep.mubr.bf16.mxu0 %v4866_v52  ;;  %v11932_v19 = vpack.c.bf16 %v1589_v43, %v1588_v55  ;;  %v2328_v32 = vsel %vm2319_vm11, %v13914_v4, %v2327_v57  ;;  %8959 = vmatpush3.bf16.msra.mxu1 %v10034_v42  ;;  %v4877_v52 = vor.u32 %v4875_v31, %v4873_v1  ;;  %v5384_v55 = vrot.slane %v13590_v26, 3  ;;  %v10074_v4 = vld [vmem:[#allocation2 + $0x38] sm:$0xff]  ;;  %v11982_v51 = vld [vmem:[#allocation2 + $0x40] sm:$0xff]  ;;  %vm13927_vm2 = vmmov %vm13918_vm6 }
 0x1be   : > { %8960 = vmatprep.subr.bf16.mxu1 %v10036_v8  ;;  %v5387_v42 = vrot.slane %v13591_v17, 4  ;;  %v4874_v35 = vsel %vm13915_vm10, %v4869_v33, %v4873_v1  ;;  %v4887_v31 = vshll.u32 %v4677_v60, 16  ;;  %v2331_v43 = vrot.slane %v11940_v40, 4  ;;  %vm13931_vm15 = vmmov %vm13927_vm2 }
 0x1bf   : > { %1639 = vst [vmem:[#allocation2 + $0xc8] sm:$0xff] %v11932_v19  ;;  %v13593_v53 = vshll.u32 %v11932_v19, 16  ;;  %v13594_v57 = vshrl.u32 %v11932_v19, 16  ;;  %v2333_v24 = vrot.slane %v10074_v4, 4  ;;  %v13597_v26 = vshrl.u32 %v11884_v63, 16  ;;  %vm13932_vm10 = vmmov %vm13927_vm2 }
 0x1c0   : > { %8913 = vmatmul.mubr.bf16.gmra.mrb[4].mxu1 %v2328_v32  ;;  %v5380_v33 = vor.u32 %v5379_v9, %v5376_v50  ;;  %v5388_v1 = vor.u32 %v5387_v42, %v5384_v55  ;;  %v13598_v60 = vshll.u32 %v11884_v63, 16  ;;  %v13917_v4 = vrot.slane %v11884_v63, 4  ;;  %v10075_v50 = vld [vmem:[#allocation2 + $0x40] sm:$0xff]  ;;  %v11964_v55 = vld [vmem:[#allocation2 + $0x38] sm:$0xff] }
 0x1c1   : > { %v4881_v36 = vrot.slane %v13593_v53, 1  ;;  %8916 = vmatprep.mubr.bf16.mxu1 %v2330_v7  ;;  %8961 = vmatpush3.bf16.msra.mxu1 %v10036_v8  ;;  %v4889_v7 = vrot.slane %v4887_v31, 1  ;;  %v13603_v53 = vshrl.u32 %v11940_v40, 16  ;;  %v13604_v8 = vshll.u32 %v11940_v40, 16 }
 0x1c2   : > { %8962 = vmatprep.subr.bf16.mxu1 %v10038_v10  ;;  %v2335_v9 = vrot.slane %v10075_v50, 4  ;;  %v5393_v42 = vrot.slane %v13597_v26, 3  ;;  %v5396_v31 = vrot.slane %v13598_v60, 4  ;;  %v2337_v60 = vrot.slane %v11507_v45, 4 }
 0x1c3   : > { %v4882_v17 = vsel %vm13916_vm0, %v4877_v52, %v4881_v36  ;;  %v4885_v32 = vor.u32 %v13594_v57, %v4881_v36  ;;  %v2334_v52 = vsel %vm2319_vm11, %v2331_v43, %v2333_v24  ;;  %v10042_v36 = vld [vmem:[#allocation10 + $0xa8] sm:$0xff]   ;;  %v13919_v57 = vshrl.u32 %v11658_v14, 16  ;;  %vm13933_vm0 = vmmov %vm13927_vm2 }
 0x1c4   : > { %9205 = vmatmul.mubr.bf16.gmra.mrb[40].mxu0 %v4874_v35  ;;  %v2332_v35 = vsel %vm2319_vm11, %v13917_v4, %v2331_v43  ;;  %v5405_v50 = vrot.slane %v13604_v8, 4  ;;  %v5397_v26 = vor.u32 %v5396_v31, %v5393_v42  ;;  %v13926_v45 = vshrl.u32 %v11778_v29, 16 }
 0x1c5   : > { %9208 = vmatprep.mubr.bf16.mxu0 %v4882_v17  ;;  %8963 = vmatpush3.bf16.msra.mxu1 %v10038_v10  ;;  %v5389_v17 = vsel %vm13918_vm6, %v5380_v33, %v5388_v1  ;;  %v5456_v4 = vrot.slane %v13919_v57, 3  ;;  %v4890_v43 = vsel %vm13920_vm4, %v4885_v32, %v4889_v7  ;;  %v5402_v10 = vrot.slane %v13603_v53, 3  ;;  %vm13934_vm6 = vmmov %vm13933_vm0 }
 0x1c6   : > { %8964 = vmatprep.subr.bf16.mxu1 %v10040_v48  ;;  %v13921_v33 = vshll.u32 %v11658_v14, 16  ;;  %v13922_v57 = vshrl.u32 %v11700_v5, 16  ;;  %v13923_v32 = vshll.u32 %v11700_v5, 16  ;;  %v13608_v14 = vrot.slane %v11711_v20, 4  ;;  %vm13936_vm4 = vmmov %vm13933_vm0 }
 0x1c7   : > { %v13925_v5 = vshll.u32 %v11746_v13, 16  ;;  %v5483_v42 = vrot.slane %v13926_v45, 3  ;;  %v5406_v31 = vor.u32 %v5405_v50, %v5402_v10  ;;  %v2338_v45 = vsel %vm2319_vm11, %v2335_v9, %v2337_v60  ;;  %v10046_v10 = vld [vmem:[#allocation10 + $0xb8] sm:$0xff]  }
 0x1c8   : > { %v5459_v12 = vrot.slane %v13921_v33, 4  ;;  %8917 = vmatmul.mubr.bf16.gmra.mrb[8].mxu1 %v2332_v35  ;;  %v5465_v27 = vrot.slane %v13922_v57, 3  ;;  %v5468_v7 = vrot.slane %v13923_v32, 4  ;;  %v13607_v35 = vrot.slane %v11771_v39, 4  ;;  %v10044_v57 = vld [vmem:[#allocation10 + $0xb0] sm:$0xff]  }
 0x1c9   : > { %8920 = vmatprep.mubr.bf16.mxu1 %v2334_v52  ;;  %8965 = vmatpush3.bf16.msra.mxu1 %v10040_v48  ;;  %v13924_v33 = vshrl.u32 %v11746_v13, 16  ;;  %v5477_v52 = vrot.slane %v13925_v5, 4  ;;  %v13610_v48 = vshrl.u32 %v11982_v51, 16  ;;  %v2336_v32 = vsel %vm2319_vm11, %v2333_v24, %v2335_v9 }
 0x1ca   : > { %v11988_v53 = vor.u32 %v5459_v12, %v5456_v4  ;;  %8966 = vmatprep.subr.bf16.mxu1 %v10042_v36  ;;  %v5469_v25 = vor.u32 %v5468_v7, %v5465_v27  ;;  %v13609_v12 = vshll.u32 %v11982_v51, 16  ;;  %v12004_v4 = vsel %vm2319_vm11, %v13608_v14, %v13607_v35 }
 0x1cb   : > { %v5474_v8 = vrot.slane %v13924_v33, 3  ;;  %v13929_v7 = vshrl.u32 %v11964_v55, 16  ;;  %v13930_v5 = vshll.u32 %v11964_v55, 16  ;;  %v5420_v24 = vrot.slane %v13610_v48, 3 }
 0x1cc   : > { %9209 = vmatmul.mubr.bf16.gmra.mrb[44].mxu0 %v4890_v43  ;;  %v12010_v27 = vsel %vm13927_vm2, %v11988_v53, %v5469_v25  ;;  %v5407_v9 = vsel %vm13933_vm0, %v5397_v26, %v5406_v31  ;;  %vm13941_vm2 = vmmov %vm13933_vm0  ;;  %v6113_v34 = vrot.slane %v11982_v51, 4  ;;  %v2853_v44 = vshrl.u32 %v2810_v23, 16 }
 0x1cd   : > { %9228 = vmatprep.mubr.bf16.mxu0 %v5389_v17  ;;  %v5478_v13 = vor.u32 %v5477_v52, %v5474_v8  ;;  %v13928_v17 = vshll.u32 %v11778_v29, 16  ;;  %v5411_v33 = vrot.slane %v13929_v7, 3  ;;  %v5414_v35 = vrot.slane %v13930_v5, 4  ;;  %8967 = vmatpush3.bf16.msra.mxu1 %v10042_v36  ;;  %v12030_v7 = vld [vmem:[#allocation2 + $0x48] sm:$0xff]  ;;  %v12032_v36 = vld [vmem:[#allocation2 + $0x50] sm:$0xff] }
 0x1ce   : > { %8968 = vmatprep.subr.bf16.mxu1 %v10044_v57  ;;  %v5398_v52 = vsel %vm13932_vm10, %v5388_v1, %v5397_v26  ;;  %v10043_v5 = vld [vmem:[#allocation10 + $0x1c8] sm:$0xff]   ;;  %v2870_v1 = vshrl.u32 %v11841_v62, 16  ;;  %v12044_v26 = vld [vmem:[#allocation10 + $0xc0] sm:$0xff]   ;;  %vm13951_vm10 = vmmov %vm13933_vm0 }
 0x1cf   : > { %v5486_v43 = vrot.slane %v13928_v17, 4  ;;  %v12021_v50 = vsel %vm13931_vm15, %v5469_v25, %v5478_v13  ;;  %v5423_v17 = vrot.slane %v13609_v12, 4  ;;  %vm2851_vm15 = vsmask.f32 3328 }
 0x1d0   : > { %8921 = vmatmul.mubr.bf16.gmra.mrb[12].mxu1 %v2336_v32  ;;  %v13935_v32 = vrot.slane %v11553_v58, 4 }
 0x1d1   : > { %v12023_v8 = vor.u32 %v5486_v43, %v5483_v42  ;;  %8924 = vmatprep.mubr.bf16.mxu1 %v2338_v45  ;;  %v5415_v42 = vor.u32 %v5414_v35, %v5411_v33  ;;  %8969 = vmatpush3.bf16.msra.mxu1 %v10044_v57  ;;  %v2873_v43 = vshll.u32 %v11841_v62, 16  ;;  %v5424_v45 = vor.u32 %v5423_v17, %v5420_v24 }
 0x1d2   : > { %8970 = vmatprep.subr.bf16.mxu1 %v10046_v10  ;;  %v2872_v35 = vrot.slane %v2870_v1, 4  ;;  %v2882_v62 = vshll.u32 %v11852_v18, 16  ;;  %v5439_v33 = vshll.u32 %v12032_v36, 16  ;;  %v2340_v12 = vsel %vm2319_vm11, %v2337_v60, %v13935_v32 }
 0x1d3   : > { %v12037_v25 = vsel %vm13934_vm6, %v5478_v13, %v12023_v8  ;;  %v2879_v13 = vshrl.u32 %v11852_v18, 16  ;;  %v2875_v57 = vrot.slane %v2873_v43, 5  ;;  %v5416_v14 = vsel %vm13936_vm4, %v5406_v31, %v5415_v42  ;;  %vm13957_vm6 = vmmov %vm13933_vm0 }
 0x1d4   : > { %9229 = vmatmul.mubr.bf16.vlgmr.msra.gmra.mrb[0].mxu0 %v5398_v52  ;;  %v10045_v52 = vld [vmem:[#allocation10 + $0x1d0] sm:$0xff]   ;;  %v2884_v15 = vrot.slane %v2882_v62, 5  ;;  %v13938_v17 = vshll.u32 %v12030_v7, 16  ;;  %v13939_v18 = vshrl.u32 %v11875_v2, 16  ;;  %v13940_v43 = vshll.u32 %v11875_v2, 16  ;;  %vm13960_vm4 = vmmov %vm13933_vm0 }
 0x1d5   : > { %9277 = vmatpush3.bf16.msra.mxu0 %v11566_v59  ;;  %9232 = vmatprep.mubr.bf16.mxu0 %v5407_v9  ;;  %v2881_v48 = vrot.slane %v2879_v13, 4  ;;  %v13937_v59 = vshrl.u32 %v12030_v7, 16  ;;  %v5425_v60 = vsel %vm13941_vm2, %v5415_v42, %v5424_v45  ;;  %v13942_v31 = vshrl.u32 %v12032_v36, 16  ;;  %vm13962_vm2 = vmmov %vm13933_vm0 }
 0x1d6   : > { %9278 = vmatprep.subr.bf16.mxu0 %v10043_v5  ;;  %8971 = vmatpush3.bf16.msra.mxu1 %v10046_v10  ;;  %v5432_v9 = vrot.slane %v13938_v17, 4  ;;  %v2890_v1 = vrot.slane %v13939_v18, 4  ;;  %v2893_v58 = vrot.slane %v13940_v43, 5  ;;  %v12066_v32 = vor.u32 %v2875_v57, %v2872_v35 }
 0x1d7   : > { %v5429_v24 = vrot.slane %v13937_v59, 3  ;;  %9020 = vmatprep.subr.bf16.mxu1 %v12044_v26  ;;  %v5438_v10 = vrot.slane %v13942_v31, 3  ;;  %v2885_v13 = vor.u32 %v2884_v15, %v2881_v48  ;;  %v5441_v62 = vrot.slane %v5439_v33, 4  ;;  %v10047_v59 = vld [vmem:[#allocation10 + $0x1d8] sm:$0xff]   ;;  %v10049_v31 = vld [vmem:[#allocation10 + $0x1e0] sm:$0xff]  }
 0x1d8   : > { %8925 = vmatmul.mubr.bf16.gmra.mrb[16].mxu1 %v2340_v12  ;;  %v2894_v17 = vor.u32 %v2893_v58, %v2890_v1  ;;  %v13943_v2 = vshrl.u32 %v11884_v63, 16  ;;  %v13944_v42 = vshll.u32 %v11884_v63, 16  ;;  %v13945_v57 = vshrl.u32 %v11940_v40, 16 }
 0x1d9   : > { %9279 = vmatpush3.bf16.msra.mxu0 %v10043_v5  ;;  %8928 = vmatprep.mubr.bf16.mxu1 %v11848_v3  ;;  %v12075_v5 = vsel %vm2851_vm15, %v12066_v32, %v2885_v13  ;;  %v5433_v12 = vor.u32 %v5432_v9, %v5429_v24  ;;  %v13946_v3 = vshll.u32 %v11940_v40, 16  ;;  %v5442_v58 = vor.u32 %v5441_v62, %v5438_v10 }
 0x1da   : > { %9280 = vmatprep.subr.bf16.mxu0 %v10045_v52  ;;  %v2899_v18 = vrot.slane %v13943_v2, 4  ;;  %v2902_v15 = vrot.slane %v13944_v42, 5  ;;  %v12080_v48 = vsel %vm2851_vm15, %v2885_v13, %v2894_v17  ;;  %v2908_v1 = vrot.slane %v13945_v57, 4  ;;  %v10051_v42 = vld [vmem:[#allocation10 + $0x1e8] sm:$0xff]  }
 0x1db   : > { %v2911_v43 = vrot.slane %v13946_v3, 5  ;;  %v13947_v13 = vshrl.u32 %v11964_v55, 16  ;;  %v13948_v24 = vshrl.u32 %v11600_v37, 16  ;;  %v13949_v9 = vshll.u32 %v11600_v37, 16 }
 0x1dc   : > { %9233 = vmatmul.mubr.bf16.gmra.mrb[4].mxu0 %v5416_v14  ;;  %v2903_v35 = vor.u32 %v2902_v15, %v2899_v18  ;;  %v13950_v18 = vshll.u32 %v11964_v55, 16  ;;  %v5434_v10 = vsel %vm13951_vm10, %v5424_v45, %v5433_v12  ;;  %v13952_v57 = vshrl.u32 %v11982_v51, 16  ;;  %vm13963_vm10 = vmmov %vm13933_vm0 }
 0x1dd   : > { %9236 = vmatprep.mubr.bf16.mxu0 %v5425_v60  ;;  %9281 = vmatpush3.bf16.msra.mxu0 %v10045_v52  ;;  %v2912_v14 = vor.u32 %v2911_v43, %v2908_v1  ;;  %v2917_v2 = vrot.slane %v13947_v13, 4  ;;  %v5447_v52 = vrot.slane %v13948_v24, 3  ;;  %v5450_v60 = vrot.slane %v13949_v9, 4  ;;  %v10053_v24 = vld [vmem:[#allocation10 + $0x1f0] sm:$0xff]  }
 0x1de   : > { %9282 = vmatprep.subr.bf16.mxu0 %v10047_v59  ;;  %v12087_v63 = vsel %vm2851_vm15, %v2894_v17, %v2903_v35  ;;  %v2920_v40 = vrot.slane %v13950_v18, 5  ;;  %v5443_v17 = vsel %vm13933_vm0, %v5433_v12, %v5442_v58  ;;  %v2926_v37 = vrot.slane %v13952_v57, 4  ;;  %v12122_v18 = vld [vmem:[#allocation2 + $0x88] sm:$0xff] }
 0x1df   : > { %v12099_v62 = vsel %vm2851_vm15, %v2903_v35, %v2912_v14  ;;  %v13953_v1 = vshll.u32 %v11982_v51, 16  ;;  %v5451_v45 = vor.u32 %v5450_v60, %v5447_v52  ;;  %v13955_v43 = vshll.u32 %v12030_v7, 16 }
 0x1e0   : > { %8929 = vmatmul.mubr.bf16.gmra.mrb[20].mxu1 %v11882_v30  ;;  %v2921_v15 = vor.u32 %v2920_v40, %v2917_v2  ;;  %v13954_v30 = vshrl.u32 %v12030_v7, 16  ;;  %v13956_v52 = vshrl.u32 %v12032_v36, 16  ;;  %v2947_v60 = vrot.slane %v5439_v33, 5 }
 0x1e1   : > { %9283 = vmatpush3.bf16.msra.mxu0 %v10047_v59  ;;  %v2929_v3 = vrot.slane %v13953_v1, 5  ;;  %8932 = vmatprep.mubr.bf16.mxu1 %v11892_v28  ;;  %v2938_v13 = vrot.slane %v13955_v43, 5  ;;  %v2269_v28 = vld [vmem:[#allocation2 + $0x80] sm:$0xff]  ;;  %v13959_v1 = vshll.u32 %v11932_v19, 16  ;;  %v5461_v33 = vsel %vm13960_vm4, %v5451_v45, %v11988_v53  ;;  %v12145_v43 = vld [vmem:[#allocation2 + $0x98] sm:$0xff]  ;;  %v12149_v53 = vld [vmem:[#allocation2 + $0xa8] sm:$0xff] }
 0x1e2   : > { %9284 = vmatprep.subr.bf16.mxu0 %v10049_v31  ;;  %v12109_v59 = vsel %vm2851_vm15, %v2912_v14, %v2921_v15  ;;  %v2935_v12 = vrot.slane %v13954_v30, 4  ;;  %v2944_v14 = vrot.slane %v13956_v52, 4  ;;  %v5490_v40 = vshrl.u32 %v2269_v28, 16  ;;  %vm13968_vm4 = vmmov %vm13933_vm0 }
 0x1e3   : > { %v2930_v35 = vor.u32 %v2929_v3, %v2926_v37  ;;  %v5493_v57 = vshll.u32 %v2269_v28, 16  ;;  %v5576_v3 = vrot.slane %v13959_v1, 4  ;;  %v2351_v30 = vrot.slane %v2269_v28, 4 }
 0x1e4   : > { %9237 = vmatmul.mubr.bf16.gmra.mrb[8].mxu0 %v5434_v10  ;;  %v2939_v9 = vor.u32 %v2938_v13, %v2935_v12  ;;  %v13958_v10 = vshrl.u32 %v11932_v19, 16  ;;  %v12130_v37 = vor.u32 %v2947_v60, %v2944_v14  ;;  %v2271_v19 = vld [vmem:[#allocation2 + $0x90] sm:$0xff]  ;;  %v5499_v13 = vshrl.u32 %v12122_v18, 16  ;;  %v12153_v14 = vld [vmem:[#allocation10 + $0x200] sm:$0xff]  }
 0x1e5   : > { %9240 = vmatprep.mubr.bf16.mxu0 %v5443_v17  ;;  %9285 = vmatpush3.bf16.msra.mxu0 %v10049_v31  ;;  %v12116_v2 = vsel %vm2851_vm15, %v2921_v15, %v2930_v35  ;;  %v5452_v31 = vsel %vm13957_vm6, %v5442_v58, %v5451_v45  ;;  %v10055_v58 = vld [vmem:[#allocation10 + $0x1f8] sm:$0xff]   ;;  %v5492_v45 = vrot.slane %v5490_v40, 3  ;;  %v5502_v28 = vshll.u32 %v12122_v18, 16  ;;  %vm13966_vm6 = vmmov %vm13933_vm0 }
 0x1e6   : > { %9286 = vmatprep.subr.bf16.mxu0 %v10051_v42  ;;  %v5573_v17 = vrot.slane %v13958_v10, 3  ;;  %v12128_v15 = vsel %vm2851_vm15, %v2930_v35, %v2939_v9  ;;  %v12141_v35 = vsel %vm2851_vm15, %v2939_v9, %v12130_v37  ;;  %v5508_v9 = vshrl.u32 %v2271_v19, 16 }
 0x1e7   : > { %v5511_v52 = vshll.u32 %v2271_v19, 16  ;;  %v13961_v60 = vrot.slane %v11778_v29, 4  ;;  %v2357_v1 = vrot.slane %v12145_v43, 4  ;;  %v5504_v47 = vrot.slane %v5502_v28, 4 }
 0x1e8   : > { %8933 = vmatmul.mubr.bf16.gmra.mrb[24].mxu1 %v11907_v38  ;;  %v12143_v12 = vor.u32 %v5576_v3, %v5573_v17  ;;  %v12147_v38 = vld [vmem:[#allocation2 + $0xa0] sm:$0xff]  ;;  %v2355_v17 = vrot.slane %v2271_v19, 4  ;;  %v5510_v0 = vrot.slane %v5508_v9, 3 }
 0x1e9   : > { %9287 = vmatpush3.bf16.msra.mxu0 %v10051_v42  ;;  %8936 = vmatprep.mubr.bf16.mxu1 %v11926_v49  ;;  %v2353_v42 = vrot.slane %v12122_v18, 4  ;;  %v5495_v49 = vrot.slane %v5493_v57, 4  ;;  %v2359_v3 = vrot.slane %v12147_v38, 4  ;;  %v5513_v6 = vrot.slane %v5511_v52, 4 }
 0x1ea   : > { %9288 = vmatprep.subr.bf16.mxu0 %v10053_v24 }
 0x1eb   : > { %v2354_v10 = vsel %vm2319_vm11, %v2351_v30, %v2353_v42  ;;  %v12162_v18 = vor.u32 %v5495_v49, %v5492_v45  ;;  %v2356_v29 = vsel %vm2319_vm11, %v2353_v42, %v2355_v17  ;;  %v12168_v19 = vsel %vm2319_vm11, %v2357_v1, %v2359_v3 }
 0x1ec   : > { %9241 = vmatmul.mubr.bf16.gmra.mrb[12].mxu0 %v5452_v31  ;;  %v2352_v31 = vsel %vm2319_vm11, %v13961_v60, %v2351_v30  ;;  %v2358_v30 = vsel %vm2319_vm11, %v2355_v17, %v2357_v1  ;;  %v2998_v42 = vrot.slane %v5490_v40, 4  ;;  %v3001_v60 = vrot.slane %v5493_v57, 5 }
 0x1ed   : > { %9244 = vmatprep.mubr.bf16.mxu0 %v5461_v33  ;;  %9289 = vmatpush3.bf16.msra.mxu0 %v10053_v24  ;;  %v13619_v33 = vrot.slane %v12149_v53, 4  ;;  %v5501_v24 = vrot.slane %v5499_v13, 3  ;;  %v5520_v17 = vshll.u32 %v12145_v43, 16  ;;  %v3007_v1 = vrot.slane %v5499_v13, 4 }
 0x1ee   : > { %9290 = vmatprep.subr.bf16.mxu0 %v10055_v58  ;;  %v6115_v13 = vrot.slane %v12030_v7, 4  ;;  %v13633_v7 = vrot.slane %v12032_v36, 4 }
 0x1ef   : > { %v12173_v45 = vsel %vm2319_vm11, %v2359_v3, %v13619_v33  ;;  %v5505_v49 = vor.u32 %v5504_v47, %v5501_v24  ;;  %v12184_v3 = vld [vmem:[#allocation2 + $0xb0] sm:$0xff]  ;;  %v12186_v33 = vor.u32 %v3001_v60, %v2998_v42  ;;  %v5526_v47 = vshrl.u32 %v12147_v38, 16 }
 0x1f0   : > { %8937 = vmatmul.mubr.bf16.gmra.mrb[28].mxu1 %v2352_v31  ;;  %v12180_v31 = vor.u32 %v5513_v6, %v5510_v0  ;;  %v13634_v6 = vshrl.u32 %v12149_v53, 16  ;;  %v3016_v0 = vrot.slane %v5508_v9, 4  ;;  %v5544_v51 = vshrl.u32 %v12184_v3, 16 }
 0x1f1   : > { %9291 = vmatpush3.bf16.msra.mxu0 %v10055_v58  ;;  %8940 = vmatprep.mubr.bf16.mxu1 %v2354_v10  ;;  %v5497_v58 = vsel %vm13962_vm2, %v12023_v8, %v12162_v18  ;;  %v5517_v10 = vshrl.u32 %v12145_v43, 16  ;;  %v5529_v8 = vshll.u32 %v12147_v38, 16  ;;  %v3019_v43 = vrot.slane %v5511_v52, 5  ;;  %v12201_v38 = vld [vmem:[#allocation2 + $0xb8] sm:$0xff] }
 0x1f2   : > { %9340 = vmatprep.subr.bf16.mxu0 %v12153_v14  ;;  %v3028_v42 = vrot.slane %v5520_v17, 5  ;;  %v5547_v52 = vshll.u32 %v12184_v3, 16  ;;  %v3052_v41 = vrot.slane %v5544_v51, 4  ;;  %v5522_v46 = vrot.slane %v5520_v17, 4 }
 0x1f3   : > { %v3025_v24 = vrot.slane %v5517_v10, 4  ;;  %v3020_v60 = vor.u32 %v3019_v43, %v3016_v0  ;;  %v12219_v0 = vsel %vm2319_vm11, %v6115_v13, %v13633_v7  ;;  %v5515_v17 = vsel %vm13933_vm0, %v5505_v49, %v12180_v31 }
 0x1f4   : > { %9245 = vmatmul.mubr.bf16.gmra.mrb[16].mxu0 %v12010_v27  ;;  %v13622_v27 = vrot.slane %v11964_v55, 4  ;;  %v3055_v22 = vrot.slane %v5547_v52, 5  ;;  %vm3558_vm2 = vsmask.f32 256 }
 0x1f5   : > { %9248 = vmatprep.mubr.bf16.mxu0 %v12021_v50  ;;  %v3010_v50 = vrot.slane %v5502_v28, 5  ;;  %v5538_v28 = vshll.u32 %v12149_v53, 16 }
 0x1f6   : > { %v12196_v57 = vsel %vm2319_vm11, %v13622_v27, %v6113_v34  ;;  %v3037_v27 = vrot.slane %v5529_v8, 5 }
 0x1f7   : > { %v3011_v40 = vor.u32 %v3010_v50, %v3007_v1  ;;  %v12208_v1 = vsel %vm2319_vm11, %v6113_v34, %v6115_v13  ;;  %v3034_v50 = vrot.slane %v5526_v47, 4  ;;  %v3043_v34 = vrot.slane %v13634_v6, 4 }
 0x1f8   : > { %8941 = vmatmul.mubr.bf16.gmra.mrb[32].mxu1 %v2356_v29  ;;  %v3029_v29 = vor.u32 %v3028_v42, %v3025_v24  ;;  %v3046_v43 = vrot.slane %v5538_v28, 5  ;;  %v13637_v24 = vshll.u32 %v12201_v38, 16 }
 0x1f9   : > { %8944 = vmatprep.mubr.bf16.mxu1 %v2358_v30  ;;  %v12205_v9 = vsel %vm2851_vm15, %v12186_v33, %v3011_v40  ;;  %v12214_v30 = vsel %vm2851_vm15, %v3011_v40, %v3020_v60  ;;  %v5519_v40 = vrot.slane %v5517_v10, 3  ;;  %v3056_v10 = vor.u32 %v3055_v22, %v3052_v41 }
 0x1fa   : > { %v12226_v42 = vsel %vm2851_vm15, %v3020_v60, %v3029_v29  ;;  %v3047_v11 = vor.u32 %v3046_v43, %v3043_v34  ;;  %v3064_v6 = vrot.slane %v13637_v24, 5  ;;  %v5506_v60 = vsel %vm13963_vm10, %v12162_v18, %v5505_v49  ;;  %vm13970_vm10 = vmmov %vm13933_vm0 }
 0x1fb   : > { %v2856_v43 = vshll.u32 %v2810_v23, 16  ;;  %v13639_v24 = vshrl.u32 %v11830_v16, 16  ;;  %v13638_v18 = vshll.u32 %v11830_v16, 16  ;;  %v5523_v22 = vor.u32 %v5522_v46, %v5519_v40 }
 0x1fc   : > { %9249 = vmatmul.mubr.bf16.gmra.mrb[20].mxu0 %v12037_v25  ;;  %v13640_v25 = vshrl.u32 %v12201_v38, 16  ;;  %v13965_v49 = vrot.slane %v12149_v53, 4  ;;  %v13967_v40 = vshrl.u32 %v12149_v53, 16 }
 0x1fd   : > { %9252 = vmatprep.mubr.bf16.mxu0 %v5497_v58  ;;  %v3038_v58 = vor.u32 %v3037_v27, %v3034_v50  ;;  %v5531_v50 = vrot.slane %v5529_v8, 4  ;;  %v2855_v8 = vrot.slane %v2853_v44, 4  ;;  %v2866_v46 = vrot.slane %v13638_v18, 5 }
 0x1fe   : > { %v3061_v7 = vrot.slane %v13640_v25, 4  ;;  %v5549_v44 = vrot.slane %v5547_v52, 4 }
 0x1ff   : > { %v12229_v13 = vsel %vm2851_vm15, %v3029_v29, %v3038_v58  ;;  %v12238_v27 = vsel %vm2851_vm15, %v3038_v58, %v3047_v11  ;;  %v5528_v29 = vrot.slane %v5526_v47, 3  ;;  %v12249_v58 = vsel %vm2851_vm15, %v3047_v11, %v3056_v10  ;;  %v2277_v47 = vld [vmem:[#allocation2 + $0xc0] sm:$0xf] }
 0x200   : > { %8945 = vmatmul.mubr.bf16.gmra.mrb[36].mxu1 %v12168_v19  ;;  %v12243_v34 = vor.u32 %v3064_v6, %v3061_v7  ;;  %v13964_v19 = vrot.slane %v11711_v20, 4  ;;  %v2858_v6 = vrot.slane %v2856_v43, 5  ;;  %v2863_v11 = vrot.slane %v13639_v24, 4 }
 0x201   : > { %8948 = vmatprep.mubr.bf16.mxu1 %v12173_v45  ;;  %v5532_v45 = vor.u32 %v5531_v50, %v5528_v29  ;;  %v5524_v7 = vsel %vm13966_vm6, %v12180_v31, %v5523_v22  ;;  %v5537_v20 = vrot.slane %v13967_v40, 3  ;;  %v12270_v29 = vld [vmem:[#allocation2 + $0x28] sm:$0xff]  ;;  %v12272_v50 = vld [vmem:[#allocation2 + $0x30] sm:$0xff]  ;;  %vm13973_vm6 = vmmov %vm13933_vm0 }
 0x202   : > { %v12253_v41 = vsel %vm2851_vm15, %v3056_v10, %v12243_v34  ;;  %v2364_v23 = vsel %vm2319_vm11, %v13965_v49, %v13964_v19  ;;  %v5546_v10 = vrot.slane %v5544_v51, 3  ;;  %v13641_v19 = vshrl.u32 %v12270_v29, 16  ;;  %v12280_v51 = vld [vmem:[#allocation2 + $0xc0] sm:$0xff] }
 0x203   : > { %v13644_v49 = vshll.u32 %v12270_v29, 16  ;;  %v5533_v31 = vsel %vm13968_vm4, %v5523_v22, %v5532_v45  ;;  %v13642_v53 = vshrl.u32 %v12272_v50, 16  ;;  %v13643_v40 = vshll.u32 %v12272_v50, 16  ;;  %vm13975_vm4 = vmmov %vm13933_vm0 }
 0x204   : > { %9253 = vmatmul.mubr.bf16.gmra.mrb[24].mxu0 %v5506_v60  ;;  %v5540_v60 = vrot.slane %v5538_v28, 4  ;;  %v2367_v28 = vrot.slane %v2277_v47, 4  ;;  %v3590_v52 = vrot.slane %v13641_v19, 7  ;;  %v2859_v18 = vor.u32 %v2858_v6, %v2855_v8  ;;  %v12297_v6 = vld [vmem:[#allocation2 + $0x58] sm:$0xff] }
 0x205   : > { %9256 = vmatprep.mubr.bf16.mxu0 %v5515_v17  ;;  %v12268_v17 = vld [vmem:[#allocation2 + $0x20] sm:$0xff]  ;;  %v2867_v24 = vor.u32 %v2866_v46, %v2863_v11  ;;  %v5550_v22 = vor.u32 %v5549_v44, %v5546_v10  ;;  %v5562_v19 = vshrl.u32 %v12280_v51, 16  ;;  %v5565_v8 = vshll.u32 %v12280_v51, 16 }
 0x206   : > { %v13645_v43 = vshrl.u32 %v12268_v17, 16  ;;  %v5541_v25 = vor.u32 %v5540_v60, %v5537_v20  ;;  %v3593_v47 = vor.u32 %v13644_v49, %v3590_v52  ;;  %v13969_v46 = vrot.slane %v11771_v39, 4 }
 0x207   : > { %v13646_v60 = vrot.slane %v12184_v3, 4  ;;  %v2868_v10 = vsel %vm2851_vm15, %v2859_v18, %v2867_v24  ;;  %v13972_v39 = vshll.u32 %v12201_v38, 16  ;;  %v5567_v18 = vrot.slane %v5565_v8, 4 }
 0x208   : > { %8949 = vmatmul.mubr.bf16.gmra.mrb[40].mxu1 %v2364_v23  ;;  %v12287_v23 = vrot.slane %v13642_v53, 7  ;;  %v5542_v44 = vsel %vm13970_vm10, %v5532_v45, %v5541_v25  ;;  %v13971_v53 = vshrl.u32 %v12201_v38, 16  ;;  %v13648_v45 = vshll.u32 %v12297_v6, 16  ;;  %vm13977_vm10 = vmmov %vm13933_vm0 }
 0x209   : > { %8952 = vmatprep.mubr.bf16.mxu1 %v12004_v4  ;;  %v12291_v4 = vrot.slane %v13645_v43, 7  ;;  %v5558_v49 = vrot.slane %v13972_v39, 4  ;;  %v5564_v43 = vrot.slane %v5562_v19, 3  ;;  %v2877_v39 = vsel %vm2851_vm15, %v2867_v24, %v12066_v32 }
 0x20a   : > { %v3601_v11 = vor.u32 %v13643_v40, %v12287_v23  ;;  %v5555_v40 = vrot.slane %v13971_v53, 3  ;;  %v13647_v53 = vrot.slane %v12280_v51, 4 }
 0x20b   : > { %v12307_v20 = vsel %vm3558_vm2, %v12291_v4, %v3593_v47  ;;  %v6143_v47 = vrot.slane %v12201_v38, 4  ;;  %v5568_v8 = vor.u32 %v5567_v18, %v5564_v43  ;;  %v13976_v43 = vshll.u32 %v11830_v16, 16 }
 0x20c   : > { %9257 = vmatmul.mubr.bf16.gmra.mrb[28].mxu0 %v5524_v7  ;;  %v2368_v7 = vsel %vm2319_vm11, %v13969_v46, %v2367_v28  ;;  %v13649_v28 = vshrl.u32 %v12297_v6, 16  ;;  %v5551_v46 = vsel %vm13933_vm0, %v5541_v25, %v5550_v22  ;;  %v5559_v38 = vor.u32 %v5558_v49, %v5555_v40 }
 0x20d   : > { %9260 = vmatprep.mubr.bf16.mxu0 %v5533_v31  ;;  %v12313_v31 = vsel %vm3558_vm2, %v3590_v52, %v3601_v11  ;;  %v12326_v52 = vsel %vm2319_vm11, %v13646_v60, %v6143_v47  ;;  %v12336_v25 = vsel %vm2319_vm11, %v6143_v47, %v13647_v53  ;;  %v5356_v47 = vld [vmem:[#allocation2 + $0xd8] sm:$0xf]  ;;  %v5585_v18 = vrot.slane %v13976_v43, 4  ;;  %v12364_v43 = vld [vmem:[#allocation2 + $0x70] sm:$0xff] }
 0x20e   : > { %v3638_v11 = vrot.slane %v13649_v28, 7  ;;  %v5560_v40 = vsel %vm13973_vm6, %v5550_v22, %v5559_v38  ;;  %v5578_v21 = vsel %vm13977_vm10, %v5568_v8, %v12143_v12  ;;  %vm13981_vm6 = vmmov %vm13933_vm0 }
 0x210   : > { %8953 = vmatmul.mubr.bf16.gmra.mrb[44].mxu1 %v2368_v7  ;;  %v12331_v7 = vld [vmem:[#allocation2 + $0x60] sm:$0xff]  ;;  %v12340_v19 = vor.u32 %v3638_v11, %v13648_v45  ;;  %v5569_v45 = vsel %vm13975_vm4, %v5559_v38, %v5568_v8  ;;  %v5589_v38 = vshrl.u32 %v5356_v47, 16 }
 0x211   : > { %8972 = vmatprep.mubr.bf16.mxu1 %v2868_v10  ;;  %v12342_v10 = vld [vmem:[#allocation2 + $0x68] sm:$0xff]  ;;  %v13650_v49 = vshrl.u32 %v12331_v7, 16  ;;  %v13654_v28 = vshll.u32 %v12331_v7, 16 }
 0x212   : > { %v13653_v53 = vshrl.u32 %v12342_v10, 16  ;;  %v13659_v24 = vshll.u32 %v12342_v10, 16 }
 0x213   : > { %v3646_v32 = vrot.slane %v13650_v49, 7  ;;  %v12368_v49 = vld [vmem:[#allocation2 + $0x78] sm:$0xff] }
 0x214   : > { %9261 = vmatmul.mubr.bf16.gmra.mrb[32].mxu0 %v5542_v44  ;;  %v10050_v44 = vld [vmem:[#allocation10 + $0xc8] sm:$0xff]   ;;  %v3654_v22 = vrot.slane %v13653_v53, 7  ;;  %v5591_v53 = vrot.slane %v5589_v38, 3  ;;  %v6038_v38 = vld [vmem:[#allocation2 + $0x18] sm:$0xf0]  ;;  %v13663_v8 = vshll.u32 %v12368_v49, 16 }
 0x215   : > { %9264 = vmatprep.mubr.bf16.mxu0 %v5551_v46  ;;  %v13974_v46 = vshrl.u32 %v11830_v16, 16  ;;  %v5592_v16 = vshll.u32 %v5356_v47, 16  ;;  %v10054_v47 = vld [vmem:[#allocation10 + $0xd8] sm:$0xff]  }
 0x217   : > { %v5582_v60 = vrot.slane %v13974_v46, 3  ;;  %v3649_v46 = vor.u32 %v3646_v32, %v13654_v28  ;;  %v5594_v28 = vrot.slane %v5592_v16, 4  ;;  %v13978_v16 = vshrl.u32 %v12268_v17, 16 }
 0x218   : > { %8973 = vmatmul.mubr.bf16.vlgmr.msra.gmra.mrb[0].mxu1 %v2877_v39  ;;  %v10052_v39 = vld [vmem:[#allocation10 + $0xd0] sm:$0xff]  }
 0x219   : > { %9021 = vmatpush3.bf16.msra.mxu1 %v12044_v26  ;;  %8976 = vmatprep.mubr.bf16.mxu1 %v12075_v5  ;;  %v3657_v26 = vor.u32 %v3654_v22, %v13659_v24  ;;  %v5586_v5 = vor.u32 %v5585_v18, %v5582_v60  ;;  %v12371_v54 = vsel %vm3558_vm2, %v3638_v11, %v3649_v46  ;;  %v13660_v60 = vshrl.u32 %v12368_v49, 16 }
 0x21a   : > { %9022 = vmatprep.subr.bf16.mxu1 %v10050_v44  ;;  %v13658_v18 = vshll.u32 %v12268_v17, 16  ;;  %v6646_v46 = vrot.slane %v13978_v16, 4 }
 0x21b   : > { %v5587_v11 = vsel %vm13933_vm0, %v12143_v12, %v5586_v5  ;;  %v12395_v12 = vrot.slane %v13660_v60, 7  ;;  %v13980_v60 = vshll.u32 %v12270_v29, 16 }
 0x21c   : > { %9265 = vmatmul.mubr.bf16.gmra.mrb[36].mxu0 %v5560_v40  ;;  %v12374_v40 = vsel %vm3558_vm2, %v3646_v32, %v3657_v26  ;;  %v5595_v26 = vor.u32 %v5594_v28, %v5591_v53  ;;  %v6105_v28 = vrot.slane %v12268_v17, 4 }
 0x21d   : > { %9268 = vmatprep.mubr.bf16.mxu0 %v5569_v45  ;;  %9023 = vmatpush3.bf16.msra.mxu1 %v10050_v44  ;;  %v13657_v45 = vshrl.u32 %v12364_v43, 16  ;;  %v2981_v44 = vshll.u32 %v12364_v43, 16  ;;  %v3673_v16 = vor.u32 %v12395_v12, %v13663_v8  ;;  %v6658_v61 = vrot.slane %v13980_v60, 5 }
 0x21e   : > { %9024 = vmatprep.subr.bf16.mxu1 %v10052_v39  ;;  %v5596_v8 = vsel %vm13981_vm6, %v5586_v5, %v5595_v26  ;;  %v10060_v5 = vld [vmem:[#allocation10 + $0xf0] sm:$0xff]  }
 0x21f   : > { %v3662_v32 = vrot.slane %v13657_v45, 7  ;;  %v10056_v45 = vld [vmem:[#allocation10 + $0xe0] sm:$0xff]  }
 0x220   : > { %8977 = vmatmul.mubr.bf16.gmra.mrb[4].mxu1 %v12080_v48  ;;  %v6649_v48 = vrot.slane %v13658_v18, 5  ;;  %v13979_v18 = vshrl.u32 %v12270_v29, 16 }
 0x221   : > { %8980 = vmatprep.mubr.bf16.mxu1 %v12087_v63  ;;  %9025 = vmatpush3.bf16.msra.mxu1 %v10052_v39  ;;  %v3665_v63 = vor.u32 %v3662_v32, %v2981_v44 }
 0x222   : > { %9026 = vmatprep.subr.bf16.mxu1 %v10054_v47  ;;  %v12399_v39 = vor.u32 %v6649_v48, %v6646_v46  ;;  %v6655_v24 = vrot.slane %v13979_v18, 4  ;;  %v10058_v48 = vld [vmem:[#allocation10 + $0xe8] sm:$0xff]  }
 0x223   : > { %v12410_v53 = vsel %vm3558_vm2, %v3654_v22, %v3665_v63  ;;  %v13982_v22 = vshrl.u32 %v12272_v50, 16  ;;  %v13985_v63 = vshll.u32 %v12297_v6, 16 }
 0x224   : > { %9269 = vmatmul.mubr.bf16.gmra.mrb[40].mxu0 %v5578_v21  ;;  %v6104_v21 = vrot.slane %v6038_v38, 4  ;;  %v6659_v46 = vor.u32 %v6658_v61, %v6655_v24  ;;  %v13983_v61 = vshll.u32 %v12272_v50, 16 }
 0x225   : > { %9272 = vmatprep.mubr.bf16.mxu0 %v5587_v11  ;;  %9027 = vmatpush3.bf16.msra.mxu1 %v10054_v47  ;;  %v12413_v11 = vsel %vm3558_vm2, %v3662_v32, %v3673_v16  ;;  %v6664_v47 = vrot.slane %v13982_v22, 4  ;;  %v6107_v32 = vrot.slane %v12270_v29, 4  ;;  %v10062_v16 = vld [vmem:[#allocation10 + $0xf8] sm:$0xff]  }
 0x226   : > { %9028 = vmatprep.subr.bf16.mxu1 %v10056_v45  ;;  %v12418_v18 = vsel %vm2851_vm15, %v12399_v39, %v6659_v46  ;;  %v6106_v60 = vsel %vm2319_vm11, %v6104_v21, %v6105_v28  ;;  %v6667_v24 = vrot.slane %v13983_v61, 5 }
 0x227   : > { %v6108_v21 = vsel %vm2319_vm11, %v6105_v28, %v6107_v32 }
 0x228   : > { %8981 = vmatmul.mubr.bf16.gmra.mrb[8].mxu1 %v12099_v62  ;;  %v12428_v38 = vor.u32 %v6667_v24, %v6664_v47  ;;  %v6109_v62 = vrot.slane %v12272_v50, 4  ;;  %v10059_v50 = vld [vmem:[#allocation10 + $0x208] sm:$0xff]   ;;  %v13988_v47 = vshrl.u32 %v12342_v10, 16  ;;  %v13989_v24 = vshll.u32 %v12342_v10, 16 }
 0x229   : > { %8984 = vmatprep.mubr.bf16.mxu1 %v12109_v59  ;;  %9029 = vmatpush3.bf16.msra.mxu1 %v10056_v45  ;;  %v13984_v45 = vshrl.u32 %v12297_v6, 16 }
 0x22a   : > { %9030 = vmatprep.subr.bf16.mxu1 %v10058_v48  ;;  %v12433_v59 = vsel %vm2851_vm15, %v6659_v46, %v12428_v38  ;;  %v6110_v29 = vsel %vm2319_vm11, %v6107_v32, %v6109_v62  ;;  %v2971_v61 = vrot.slane %v13988_v47, 4  ;;  %v13990_v32 = vrot.slane %v11964_v55, 4 }
 0x22b   : > { %v2953_v26 = vrot.slane %v13984_v45, 4  ;;  %v13991_v55 = vshrl.u32 %v12364_v43, 16 }
 0x22c   : > { %9273 = vmatmul.mubr.bf16.gmra.mrb[44].mxu0 %v5596_v8  ;;  %v2956_v8 = vrot.slane %v13985_v63, 5  ;;  %v6112_v45 = vsel %vm2319_vm11, %v6109_v62, %v13990_v32 }
 0x22d   : > { %9292 = vmatprep.mubr.bf16.mxu0 %v6106_v60  ;;  %9031 = vmatpush3.bf16.msra.mxu1 %v10058_v48  ;;  %v10061_v48 = vld [vmem:[#allocation10 + $0x210] sm:$0xff]   ;;  %v13986_v60 = vshrl.u32 %v12331_v7, 16  ;;  %v2980_v62 = vrot.slane %v13991_v55, 4  ;;  %v2834_v55 = vld [vmem:[#allocation2 + $0xc0] sm:$0x1f] }
 0x22e   : > { %9032 = vmatprep.subr.bf16.mxu1 %v10060_v5  ;;  %v12443_v46 = vor.u32 %v2956_v8, %v2953_v26  ;;  %v10063_v26 = vld [vmem:[#allocation10 + $0x218] sm:$0xff]   ;;  %v10064_v8 = vld [vmem:[#allocation10 + $0x220] sm:$0xff]  }
 0x22f   : > { %v2962_v28 = vrot.slane %v13986_v60, 4  ;;  %v10065_v60 = vld [vmem:[#allocation10 + $0x228] sm:$0xff]  }
 0x230   : > { %8985 = vmatmul.mubr.bf16.gmra.mrb[12].mxu1 %v12116_v2  ;;  %v13987_v2 = vshll.u32 %v12331_v7, 16 }
 0x231   : > { %8988 = vmatprep.mubr.bf16.mxu1 %v12128_v15  ;;  %9033 = vmatpush3.bf16.msra.mxu1 %v10060_v5  ;;  %v2958_v15 = vsel %vm2851_vm15, %v12130_v37, %v12443_v46  ;;  %v12457_v5 = vld [vmem:[#allocation10 + $0x100] sm:$0xff]  }
 0x232   : > { %9034 = vmatprep.subr.bf16.mxu1 %v10062_v16  ;;  %v2965_v22 = vrot.slane %v13987_v2, 5 }
 0x234   : > { %9293 = vmatmul.mubr.bf16.vlgmr.msra.gmra.mrb[0].mxu0 %v6108_v21  ;;  %v2966_v37 = vor.u32 %v2965_v22, %v2962_v28  ;;  %v6121_v22 = vrot.slane %v12331_v7, 4  ;;  %v6123_v7 = vrot.slane %v12342_v10, 4  ;;  %v6127_v10 = vrot.slane %v12368_v49, 4 }
 0x235   : > { %9341 = vmatpush3.bf16.msra.mxu0 %v12153_v14  ;;  %9296 = vmatprep.mubr.bf16.mxu0 %v6110_v29  ;;  %v2974_v14 = vrot.slane %v13989_v24, 5  ;;  %v13992_v29 = vshrl.u32 %v12368_v49, 16  ;;  %v13994_v24 = vrot.slane %v12032_v36, 4 }
 0x236   : > { %9342 = vmatprep.subr.bf16.mxu0 %v10059_v50  ;;  %9035 = vmatpush3.bf16.msra.mxu1 %v10062_v16  ;;  %v12467_v16 = vsel %vm2851_vm15, %v12443_v46, %v2966_v37  ;;  %v6124_v32 = vsel %vm2319_vm11, %v6121_v22, %v6123_v7 }
 0x237   : > { %9404 = vmatprep.subr.bf16.mxu1 %v12457_v5  ;;  %v2975_v63 = vor.u32 %v2974_v14, %v2971_v61  ;;  %v6125_v14 = vrot.slane %v12364_v43, 4 }
 0x238   : > { %8989 = vmatmul.mubr.bf16.gmra.mrb[16].mxu1 %v12141_v35  ;;  %v2983_v35 = vrot.slane %v2981_v44, 5  ;;  %v6119_v44 = vrot.slane %v12297_v6, 4  ;;  %v10067_v6 = vld [vmem:[#allocation10 + $0x238] sm:$0xff]  }
 0x239   : > { %9343 = vmatpush3.bf16.msra.mxu0 %v10059_v50  ;;  %8992 = vmatprep.mubr.bf16.mxu1 %v2958_v15  ;;  %v12474_v21 = vsel %vm2851_vm15, %v2966_v37, %v2975_v63  ;;  %v2989_v50 = vrot.slane %v13992_v29, 4  ;;  %v10066_v15 = vld [vmem:[#allocation10 + $0x230] sm:$0xff]   ;;  %v6128_v37 = vsel %vm2319_vm11, %v6125_v14, %v6127_v10 }
 0x23a   : > { %9344 = vmatprep.subr.bf16.mxu0 %v10061_v48  ;;  %v2984_v28 = vor.u32 %v2983_v35, %v2980_v62  ;;  %v3518_v62 = vld [vmem:[#allocation2 + $0x10] sm:$0xff]  ;;  %v12526_v29 = vld [vmem:[#allocation2 + $0x98] sm:$0xff] }
 0x23c   : > { %9297 = vmatmul.mubr.bf16.gmra.mrb[4].mxu0 %v6112_v45  ;;  %v12489_v47 = vsel %vm2851_vm15, %v2975_v63, %v2984_v28  ;;  %v6126_v45 = vsel %vm2319_vm11, %v6123_v7, %v6125_v14  ;;  %v12516_v63 = vld [vmem:[#allocation2 + $0x88] sm:$0xff] }
 0x23d   : > { %9300 = vmatprep.mubr.bf16.mxu0 %v12196_v57  ;;  %9345 = vmatpush3.bf16.msra.mxu0 %v10061_v48  ;;  %v13993_v57 = vshll.u32 %v12368_v49, 16  ;;  %v12536_v7 = vld [vmem:[#allocation2 + $0xa8] sm:$0xff] }
 0x23e   : > { %9346 = vmatprep.subr.bf16.mxu0 %v10063_v26 }
 0x23f   : > { %v2992_v48 = vrot.slane %v13993_v57, 5  ;;  %v12529_v57 = vld [vmem:[#allocation2 + $0xa0] sm:$0xff] }
 0x240   : > { %8993 = vmatmul.mubr.bf16.gmra.mrb[20].mxu1 %v12467_v16 }
 0x241   : > { %9347 = vmatpush3.bf16.msra.mxu0 %v10063_v26  ;;  %8996 = vmatprep.mubr.bf16.mxu1 %v12474_v21  ;;  %v12482_v2 = vor.u32 %v2992_v48, %v2989_v50  ;;  %v12509_v26 = vld [vmem:[#allocation2 + $0x80] sm:$0xff]  ;;  %v3071_v50 = vshll.u32 %v2834_v55, 16  ;;  %v3564_v48 = vshrl.u32 %v3518_v62, 16 }
 0x242   : > { %9348 = vmatprep.subr.bf16.mxu0 %v10064_v8  ;;  %v6129_v43 = vrot.slane %v12509_v26, 4 }
 0x243   : > { %v12493_v61 = vsel %vm2851_vm15, %v2984_v28, %v12482_v2  ;;  %v3003_v36 = vsel %vm2851_vm15, %v12482_v2, %v12186_v33  ;;  %v6135_v28 = vrot.slane %v12526_v29, 4 }
 0x244   : > { %9301 = vmatmul.mubr.bf16.gmra.mrb[8].mxu0 %v12208_v1  ;;  %v6120_v1 = vsel %vm2319_vm11, %v13994_v24, %v6119_v44  ;;  %v6130_v33 = vsel %vm2319_vm11, %v6127_v10, %v6129_v43  ;;  %v3566_v24 = vrot.slane %v3564_v48, 7  ;;  %v6139_v10 = vrot.slane %v12536_v7, 4 }
 0x245   : > { %9304 = vmatprep.mubr.bf16.mxu0 %v12219_v0  ;;  %9349 = vmatpush3.bf16.msra.mxu0 %v10064_v8  ;;  %v6122_v0 = vsel %vm2319_vm11, %v6119_v44, %v6121_v22  ;;  %v12519_v8 = vld [vmem:[#allocation2 + $0x90] sm:$0xff]  ;;  %v6137_v44 = vrot.slane %v12529_v57, 4 }
 0x246   : > { %9350 = vmatprep.subr.bf16.mxu0 %v10065_v60  ;;  %v6133_v49 = vrot.slane %v12519_v8, 4 }
 0x248   : > { %8997 = vmatmul.mubr.bf16.gmra.mrb[24].mxu1 %v12489_v47 }
 0x249   : > { %9351 = vmatpush3.bf16.msra.mxu0 %v10065_v60  ;;  %9000 = vmatprep.mubr.bf16.mxu1 %v12493_v61  ;;  %v3517_v60 = vld [vmem:[#allocation2 + $0x8] sm:$0x80] }
 0x24a   : > { %9352 = vmatprep.subr.bf16.mxu0 %v10066_v15 }
 0x24c   : > { %9305 = vmatmul.mubr.bf16.gmra.mrb[12].mxu0 %v6120_v1  ;;  %v3567_v1 = vshll.u32 %v3518_v62, 16  ;;  %v13996_v62 = vshll.u32 %v12268_v17, 16  ;;  %v6594_v17 = vld [vmem:[#allocation2 + $0x18] sm:$0xf0] }
 0x24d   : > { %9308 = vmatprep.mubr.bf16.mxu0 %v6122_v0  ;;  %9353 = vmatpush3.bf16.msra.mxu0 %v10066_v15  ;;  %v3560_v15 = vshrl.u32 %v3517_v60, 16  ;;  %v3519_v0 = vld [vmem:[#allocation2 + $0x18] sm:$0xff] }
 0x24e   : > { %9354 = vmatprep.subr.bf16.mxu0 %v10067_v6 }
 0x250   : > { %9001 = vmatmul.mubr.bf16.gmra.mrb[28].mxu1 %v3003_v36  ;;  %v3572_v36 = vshrl.u32 %v3519_v0, 16 }
 0x251   : > { %9355 = vmatpush3.bf16.msra.mxu0 %v10067_v6  ;;  %9004 = vmatprep.mubr.bf16.mxu1 %v12205_v9  ;;  %v6131_v9 = vrot.slane %v12516_v63, 4  ;;  %v6138_v6 = vsel %vm2319_vm11, %v6135_v28, %v6137_v44 }
 0x253   : > { %v6132_v35 = vsel %vm2319_vm11, %v6129_v43, %v6131_v9 }
 0x254   : > { %9309 = vmatmul.mubr.bf16.gmra.mrb[16].mxu0 %v6124_v32  ;;  %v3562_v32 = vrot.slane %v3560_v15, 7 }
 0x255   : > { %9312 = vmatprep.mubr.bf16.mxu0 %v6126_v45  ;;  %v3569_v45 = vor.u32 %v3567_v1, %v3566_v24 }
 0x258   : > { %9005 = vmatmul.mubr.bf16.gmra.mrb[32].mxu1 %v12214_v30  ;;  %v6134_v30 = vsel %vm2319_vm11, %v6131_v9, %v6133_v49  ;;  %v6140_v9 = vsel %vm2319_vm11, %v6137_v44, %v6139_v10  ;;  %v12564_v44 = vld [vmem:[#allocation2] sm:$0xff] }
 0x259   : > { %9008 = vmatprep.mubr.bf16.mxu1 %v12226_v42  ;;  %v3068_v42 = vshrl.u32 %v2834_v55, 16 }
 0x25b   : > { %v3070_v22 = vrot.slane %v3068_v42, 4  ;;  %v12552_v42 = vld [vmem:[#allocation2 + $0x38] sm:$0xff] }
 0x25c   : > { %9313 = vmatmul.mubr.bf16.gmra.mrb[20].mxu0 %v6128_v37  ;;  %v3574_v37 = vrot.slane %v3572_v36, 7  ;;  %v3604_v48 = vshrl.u32 %v12552_v42, 16 }
 0x25d   : > { %9316 = vmatprep.mubr.bf16.mxu0 %v6130_v33  ;;  %v3575_v33 = vshll.u32 %v3519_v0, 16 }
 0x25e   : > { %v3606_v15 = vrot.slane %v3604_v48, 7 }
 0x25f   : > { %v3577_v55 = vor.u32 %v3575_v33, %v3574_v37 }
 0x260   : > { %9009 = vmatmul.mubr.bf16.gmra.mrb[36].mxu1 %v12229_v13  ;;  %v3073_v13 = vrot.slane %v3071_v50, 5  ;;  %v12554_v50 = vld [vmem:[#allocation2 + $0x40] sm:$0xff] }
 0x261   : > { %9012 = vmatprep.mubr.bf16.mxu1 %v12238_v27  ;;  %v6136_v27 = vsel %vm2319_vm11, %v6133_v49, %v6135_v28  ;;  %v3612_v60 = vshrl.u32 %v12554_v50, 16  ;;  %v3615_v0 = vshll.u32 %v12554_v50, 16 }
 0x262   : > { %v3074_v14 = vor.u32 %v3073_v13, %v3070_v22  ;;  %v6149_v22 = vrot.slane %v12564_v44, 4  ;;  %v6636_v13 = vshrl.u32 %v6594_v17, 16 }
 0x263   : > { %v3614_v1 = vrot.slane %v3612_v60, 7 }
 0x264   : > { %9317 = vmatmul.mubr.bf16.gmra.mrb[24].mxu0 %v6132_v35  ;;  %v3075_v43 = vsel %vm2851_vm15, %v12243_v34, %v3074_v14  ;;  %v3585_v35 = vor.u32 %v13996_v62, %v12291_v4  ;;  %v3578_v34 = vsel %vm3558_vm2, %v3566_v24, %v3577_v55  ;;  %v10077_v4 = vld [vmem:[#allocation10 + $0x108] sm:$0xff]   ;;  %v3607_v24 = vshll.u32 %v12552_v42, 16 }
 0x265   : > { %9320 = vmatprep.mubr.bf16.mxu0 %v6134_v30  ;;  %v3617_v33 = vor.u32 %v3615_v0, %v3614_v1 }
 0x266   : > { %v3586_v30 = vsel %vm3558_vm2, %v3574_v37, %v3585_v35 }
 0x268   : > { %9013 = vmatmul.mubr.bf16.gmra.mrb[40].mxu1 %v12249_v58  ;;  %v3570_v58 = vsel %vm3558_vm2, %v3562_v32, %v3569_v45  ;;  %v6062_v32 = vld [vmem:[#allocation2 + $0xd8] sm:$0xf]  ;;  %v6638_v45 = vrot.slane %v6636_v13, 4 }
 0x269   : > { %9016 = vmatprep.mubr.bf16.mxu1 %v12253_v41  ;;  %v13995_v41 = vrot.slane %v12184_v3, 4  ;;  %v12556_v3 = vld [vmem:[#allocation2 + $0xc8] sm:$0xff] }
 0x26a   : > { %v6147_v28 = vrot.slane %v12556_v3, 4 }
 0x26b   : > { %v6142_v49 = vsel %vm2319_vm11, %v6139_v10, %v13995_v41 }
 0x26c   : > { %9321 = vmatmul.mubr.bf16.gmra.mrb[28].mxu0 %v6136_v27  ;;  %v12573_v27 = vld [vmem:[#allocation2 + $0x50] sm:$0xff]  ;;  %v6150_v36 = vsel %vm2319_vm11, %v6147_v28, %v6149_v22 }
 0x26d   : > { %9324 = vmatprep.mubr.bf16.mxu0 %v6138_v6  ;;  %v13997_v6 = vrot.slane %v12280_v51, 4  ;;  %v10080_v51 = vld [vmem:[#allocation10 + $0x118] sm:$0xff]   ;;  %v3631_v35 = vshll.u32 %v12573_v27, 16 }
 0x26f   : > { %v6148_v14 = vsel %vm2319_vm11, %v13997_v6, %v6147_v28 }
 0x270   : > { %9017 = vmatmul.mubr.bf16.gmra.mrb[44].mxu1 %v3075_v43  ;;  %v3609_v43 = vor.u32 %v3607_v24, %v3606_v15 }
 0x271   : > { %9036 = vmatprep.mubr.bf16.mxu1 %v3570_v58  ;;  %v3628_v58 = vshrl.u32 %v12573_v27, 16 }
 0x272   : > { %v3610_v41 = vsel %vm3558_vm2, %v12287_v23, %v3609_v43  ;;  %v3692_v43 = vshrl.u32 %v12519_v8, 16 }
 0x273   : > { %v3630_v62 = vrot.slane %v3628_v58, 7 }
 0x274   : > { %9325 = vmatmul.mubr.bf16.gmra.mrb[32].mxu0 %v6140_v9  ;;  %v6151_v9 = vrot.slane %v6062_v32, 4  ;;  %v3679_v32 = vshll.u32 %v12509_v26, 16 }
 0x275   : > { %9328 = vmatprep.mubr.bf16.mxu0 %v6142_v49  ;;  %v3633_v23 = vor.u32 %v3631_v35, %v3630_v62  ;;  %v3642_v6 = vsel %vm3558_vm2, %v3630_v62, %v12340_v19 }
 0x278   : > { %9037 = vmatmul.mubr.bf16.vlgmr.msra.gmra.mrb[0].mxu1 %v3578_v34  ;;  %v10081_v34 = vld [vmem:[#allocation10 + $0x120] sm:$0xff]  }
 0x279   : > { %9412 = vmatpush3.bf16.msra.mxu1 %v12457_v5  ;;  %9040 = vmatprep.mubr.bf16.mxu1 %v3586_v30  ;;  %v6639_v5 = vshll.u32 %v6594_v17, 16  ;;  %v6152_v30 = vsel %vm2319_vm11, %v6149_v22, %v6151_v9  ;;  %v6673_v22 = vrot.slane %v3604_v48, 4 }
 0x27a   : > { %9405 = vmatprep.subr.bf16.mxu1 %v10077_v4 }
 0x27b   : > { %v6641_v10 = vrot.slane %v6639_v5, 5  ;;  %v10083_v5 = vld [vmem:[#allocation10 + $0x130] sm:$0xff]  }
 0x27c   : > { %9329 = vmatmul.mubr.bf16.gmra.mrb[36].mxu0 %v12326_v52  ;;  %v12571_v52 = vld [vmem:[#allocation2 + $0x48] sm:$0xff] }
 0x27d   : > { %9332 = vmatprep.mubr.bf16.mxu0 %v12336_v25  ;;  %9413 = vmatpush3.bf16.msra.mxu1 %v10077_v4  ;;  %v10079_v25 = vld [vmem:[#allocation10 + $0x110] sm:$0xff]   ;;  %v3620_v37 = vshrl.u32 %v12571_v52, 16  ;;  %v3623_v55 = vshll.u32 %v12571_v52, 16  ;;  %v10082_v4 = vld [vmem:[#allocation10 + $0x128] sm:$0xff]   ;;  %v6685_v52 = vrot.slane %v3615_v0, 5  ;;  %v6700_v0 = vrot.slane %v3628_v58, 4 }
 0x27e   : > { %9406 = vmatprep.subr.bf16.mxu1 %v10079_v25 }
 0x27f   : > { %v3622_v49 = vrot.slane %v3620_v37, 7  ;;  %v6691_v48 = vrot.slane %v3620_v37, 4 }
 0x280   : > { %9041 = vmatmul.mubr.bf16.gmra.mrb[4].mxu1 %v12307_v20  ;;  %v6642_v20 = vor.u32 %v6641_v10, %v6638_v45  ;;  %v3684_v10 = vshrl.u32 %v12516_v63, 16 }
 0x281   : > { %9044 = vmatprep.mubr.bf16.mxu1 %v12313_v31  ;;  %9414 = vmatpush3.bf16.msra.mxu1 %v10079_v25  ;;  %v3618_v31 = vsel %vm3558_vm2, %v3606_v15, %v3617_v33  ;;  %v3625_v17 = vor.u32 %v3623_v55, %v3622_v49  ;;  %v3634_v13 = vsel %vm3558_vm2, %v3622_v49, %v3633_v23  ;;  %v6676_v15 = vrot.slane %v3607_v24, 5  ;;  %v10084_v25 = vld [vmem:[#allocation10 + $0x138] sm:$0xff]  }
 0x282   : > { %9407 = vmatprep.subr.bf16.mxu1 %v10080_v51  ;;  %v6651_v50 = vsel %vm2851_vm15, %v6642_v20, %v12399_v39  ;;  %v6682_v39 = vrot.slane %v3612_v60, 4  ;;  %v6694_v60 = vrot.slane %v3623_v55, 5  ;;  %v3686_v37 = vrot.slane %v3684_v10, 7 }
 0x283   : > { %v3626_v28 = vsel %vm3558_vm2, %v3614_v1, %v3625_v17  ;;  %v6677_v1 = vor.u32 %v6676_v15, %v6673_v22  ;;  %v3687_v33 = vshll.u32 %v12516_v63, 16  ;;  %v3700_v20 = vshrl.u32 %v12526_v29, 16 }
 0x284   : > { %9333 = vmatmul.mubr.bf16.gmra.mrb[40].mxu0 %v6148_v14  ;;  %v6686_v27 = vor.u32 %v6685_v52, %v6682_v39  ;;  %v6695_v14 = vor.u32 %v6694_v60, %v6691_v48  ;;  %v3708_v49 = vshrl.u32 %v12529_v57, 16  ;;  %v3716_v17 = vshrl.u32 %v12536_v7, 16  ;;  %v12635_v52 = vld [vmem:[#allocation2 + $0xb8] sm:$0xff] }
 0x285   : > { %9336 = vmatprep.mubr.bf16.mxu0 %v6150_v36  ;;  %9415 = vmatpush3.bf16.msra.mxu1 %v10080_v51  ;;  %v6678_v42 = vsel %vm2851_vm15, %v12428_v38, %v6677_v1  ;;  %v3694_v51 = vrot.slane %v3692_v43, 7  ;;  %v3702_v55 = vrot.slane %v3700_v20, 7  ;;  %v3732_v48 = vshrl.u32 %v12635_v52, 16 }
 0x286   : > { %9408 = vmatprep.subr.bf16.mxu1 %v10081_v34  ;;  %v6687_v24 = vsel %vm2851_vm15, %v6677_v1, %v6686_v27  ;;  %v6696_v38 = vsel %vm2851_vm15, %v6686_v27, %v6695_v14  ;;  %v6763_v1 = vrot.slane %v3684_v10, 4  ;;  %v6766_v27 = vrot.slane %v3687_v33, 5 }
 0x288   : > { %9045 = vmatmul.mubr.bf16.gmra.mrb[8].mxu1 %v3610_v41 }
 0x289   : > { %9048 = vmatprep.mubr.bf16.mxu1 %v3618_v31  ;;  %9416 = vmatpush3.bf16.msra.mxu1 %v10081_v34  ;;  %v3703_v31 = vshll.u32 %v12526_v29, 16 }
 0x28a   : > { %9409 = vmatprep.subr.bf16.mxu1 %v10082_v4 }
 0x28b   : > { %v6784_v10 = vrot.slane %v3703_v31, 5 }
 0x28c   : > { %9337 = vmatmul.mubr.bf16.gmra.mrb[44].mxu0 %v6152_v30  ;;  %v6757_v30 = vrot.slane %v3679_v32, 5 }
 0x28d   : > { %9356 = vmatprep.mubr.bf16.mxu0 %v6651_v50  ;;  %9417 = vmatpush3.bf16.msra.mxu1 %v10082_v4  ;;  %v3705_v50 = vor.u32 %v3703_v31, %v3702_v55 }
 0x28e   : > { %9410 = vmatprep.subr.bf16.mxu1 %v10083_v5 }
 0x290   : > { %9049 = vmatmul.mubr.bf16.gmra.mrb[12].mxu1 %v3626_v28  ;;  %v3706_v28 = vsel %vm3558_vm2, %v3694_v51, %v3705_v50 }
 0x291   : > { %9052 = vmatprep.mubr.bf16.mxu1 %v3634_v13  ;;  %9418 = vmatpush3.bf16.msra.mxu1 %v10083_v5  ;;  %v3718_v13 = vrot.slane %v3716_v17, 7  ;;  %v3719_v5 = vshll.u32 %v12536_v7, 16 }
 0x292   : > { %9411 = vmatprep.subr.bf16.mxu1 %v10084_v25 }
 0x294   : > { %9357 = vmatmul.mubr.bf16.vlgmr.msra.gmra.mrb[0].mxu0 %v12418_v18  ;;  %v6703_v18 = vrot.slane %v3631_v35, 5  ;;  %v12625_v35 = vld [vmem:[#allocation2 + $0xb0] sm:$0xff] }
 0x295   : > { %9360 = vmatprep.mubr.bf16.mxu0 %v12433_v59  ;;  %9419 = vmatpush3.bf16.msra.mxu1 %v10084_v25  ;;  %v3676_v59 = vshrl.u32 %v12509_v26, 16  ;;  %v3724_v23 = vshrl.u32 %v12625_v35, 16  ;;  %v3727_v39 = vshll.u32 %v12625_v35, 16  ;;  %v12637_v25 = vld [vmem:[#allocation2 + $0xc0] sm:$0xff] }
 0x296   : > { %v6704_v36 = vor.u32 %v6703_v18, %v6700_v0  ;;  %v6767_v0 = vor.u32 %v6766_v27, %v6763_v1  ;;  %v6845_v1 = vshll.u32 %v12564_v44, 16  ;;  %v4209_v27 = vld [vmem:[#allocation2 + $0x78] sm:$0xff] }
 0x297   : > { %v3678_v19 = vrot.slane %v3676_v59, 7  ;;  %v6754_v34 = vrot.slane %v3676_v59, 4  ;;  %v3726_v15 = vrot.slane %v3724_v23, 7 }
 0x298   : > { %9053 = vmatmul.mubr.bf16.gmra.mrb[16].mxu1 %v3642_v6  ;;  %v6705_v45 = vsel %vm2851_vm15, %v6695_v14, %v6704_v36  ;;  %v6714_v9 = vsel %vm2851_vm15, %v6704_v36, %v12443_v46  ;;  %v3710_v46 = vrot.slane %v3708_v49, 7  ;;  %v3734_v14 = vrot.slane %v3732_v48, 7 }
 0x299   : > { %9056 = vmatprep.mubr.bf16.mxu1 %v12371_v54  ;;  %v3681_v54 = vor.u32 %v3679_v32, %v3678_v19  ;;  %v6758_v4 = vor.u32 %v6757_v30, %v6754_v34  ;;  %v3729_v60 = vor.u32 %v3727_v39, %v3726_v15  ;;  %v3735_v36 = vshll.u32 %v12635_v52, 16 }
 0x29a   : > { %v3743_v32 = vshll.u32 %v12637_v25, 16 }
 0x29b   : > { %v3682_v58 = vsel %vm3558_vm2, %v12395_v12, %v3681_v54  ;;  %v6790_v54 = vrot.slane %v3708_v49, 4  ;;  %v6799_v49 = vrot.slane %v3716_v17, 4 }
 0x29c   : > { %9361 = vmatmul.mubr.bf16.gmra.mrb[4].mxu0 %v6678_v42  ;;  %v3721_v42 = vor.u32 %v3719_v5, %v3718_v13 }
 0x29d   : > { %9364 = vmatprep.mubr.bf16.mxu0 %v6687_v24  ;;  %v3740_v24 = vshrl.u32 %v12637_v25, 16 }
 0x29e   : > { %v3722_v59 = vsel %vm3558_vm2, %v3710_v46, %v3721_v42 }
 0x2a0   : > { %9057 = vmatmul.mubr.bf16.gmra.mrb[20].mxu1 %v12374_v40  ;;  %v3695_v40 = vshll.u32 %v12519_v8, 16 }
 0x2a1   : > { %9060 = vmatprep.mubr.bf16.mxu1 %v12410_v53  ;;  %v3689_v53 = vor.u32 %v3687_v33, %v3686_v37  ;;  %v3748_v33 = vshrl.u32 %v12556_v3, 16 }
 0x2a2   : > { %v3697_v41 = vor.u32 %v3695_v40, %v3694_v51  ;;  %v6775_v6 = vrot.slane %v3695_v40, 5 }
 0x2a3   : > { %v3690_v12 = vsel %vm3558_vm2, %v3678_v19, %v3689_v53  ;;  %v3742_v19 = vrot.slane %v3740_v24, 7  ;;  %v3750_v53 = vrot.slane %v3748_v33, 7 }
 0x2a4   : > { %9365 = vmatmul.mubr.bf16.gmra.mrb[8].mxu0 %v6696_v38  ;;  %v3698_v62 = vsel %vm3558_vm2, %v3686_v37, %v3697_v41  ;;  %v6768_v38 = vsel %vm2851_vm15, %v6758_v4, %v6767_v0  ;;  %v3737_v37 = vor.u32 %v3735_v36, %v3734_v14 }
 0x2a5   : > { %9368 = vmatprep.mubr.bf16.mxu0 %v6705_v45  ;;  %v6781_v45 = vrot.slane %v3700_v20, 4  ;;  %v3751_v20 = vshll.u32 %v12556_v3, 16 }
 0x2a7   : > { %v6785_v51 = vor.u32 %v6784_v10, %v6781_v45 }
 0x2a8   : > { %9061 = vmatmul.mubr.bf16.gmra.mrb[24].mxu1 %v12413_v11  ;;  %v3711_v11 = vshll.u32 %v12529_v57, 16 }
 0x2a9   : > { %9064 = vmatprep.mubr.bf16.mxu1 %v3682_v58  ;;  %v3745_v58 = vor.u32 %v3743_v32, %v3742_v19 }
 0x2ab   : > { %v3746_v41 = vsel %vm3558_vm2, %v3734_v14, %v3745_v58 }
 0x2ac   : > { %9369 = vmatmul.mubr.bf16.gmra.mrb[12].mxu0 %v6714_v9  ;;  %v3738_v9 = vsel %vm3558_vm2, %v3726_v15, %v3737_v37 }
 0x2ad   : > { %9372 = vmatprep.mubr.bf16.mxu0 %v12467_v16  ;;  %v3713_v16 = vor.u32 %v3711_v11, %v3710_v46  ;;  %v6811_v46 = vrot.slane %v3727_v39, 5  ;;  %v6842_v39 = vshrl.u32 %v12564_v44, 16 }
 0x2af   : > { %v3714_v22 = vsel %vm3558_vm2, %v3702_v55, %v3713_v16  ;;  %v6802_v55 = vrot.slane %v3719_v5, 5  ;;  %v4208_v16 = vld [vmem:[#allocation2 + $0x70] sm:$0xff]  ;;  %v6826_v5 = vrot.slane %v3740_v24, 4  ;;  %v6618_v24 = vld [vmem:[#allocation2 + $0xd8] sm:$0x1f] }
 0x2b0   : > { %9065 = vmatmul.mubr.bf16.gmra.mrb[28].mxu1 %v3690_v12 }
 0x2b1   : > { %9068 = vmatprep.mubr.bf16.mxu1 %v3698_v62  ;;  %v6808_v62 = vrot.slane %v3724_v23, 4  ;;  %v6803_v34 = vor.u32 %v6802_v55, %v6799_v49 }
 0x2b3   : > { %v6812_v30 = vor.u32 %v6811_v46, %v6808_v62 }
 0x2b4   : > { %9373 = vmatmul.mubr.bf16.gmra.mrb[16].mxu0 %v12474_v21  ;;  %v6759_v21 = vsel %vm2851_vm15, %v12482_v2, %v6758_v4  ;;  %v3730_v2 = vsel %vm3558_vm2, %v3718_v13, %v3729_v60  ;;  %v6820_v13 = vrot.slane %v3735_v36, 5  ;;  %v6847_v60 = vrot.slane %v6845_v1, 5 }
 0x2b5   : > { %9376 = vmatprep.mubr.bf16.mxu0 %v12489_v47  ;;  %v6772_v47 = vrot.slane %v3692_v43, 4  ;;  %v6793_v43 = vrot.slane %v3711_v11, 5  ;;  %v3753_v11 = vor.u32 %v3751_v20, %v3750_v53  ;;  %v6813_v17 = vsel %vm2851_vm15, %v6803_v34, %v6812_v30 }
 0x2b7   : > { %v6776_v18 = vor.u32 %v6775_v6, %v6772_v47  ;;  %v6794_v40 = vor.u32 %v6793_v43, %v6790_v54  ;;  %v3754_v50 = vsel %vm3558_vm2, %v3742_v19, %v3753_v11  ;;  %v6835_v47 = vrot.slane %v3748_v33, 4 }
 0x2b8   : > { %9069 = vmatmul.mubr.bf16.gmra.mrb[32].mxu1 %v3706_v28  ;;  %v6817_v28 = vrot.slane %v3732_v48, 4  ;;  %v6838_v6 = vrot.slane %v3751_v20, 5  ;;  %v6844_v48 = vrot.slane %v6842_v39, 4 }
 0x2b9   : > { %9072 = vmatprep.mubr.bf16.mxu1 %v3714_v22  ;;  %v6786_v12 = vsel %vm2851_vm15, %v6776_v18, %v6785_v51  ;;  %v6795_v31 = vsel %vm2851_vm15, %v6785_v51, %v6794_v40  ;;  %v6804_v4 = vsel %vm2851_vm15, %v6794_v40, %v6803_v34  ;;  %v6829_v22 = vrot.slane %v3743_v32, 5 }
 0x2ba   : > { %v6821_v23 = vor.u32 %v6820_v13, %v6817_v28  ;;  %v6848_v14 = vor.u32 %v6847_v60, %v6844_v48 }
 0x2bb   : > { %v6830_v15 = vor.u32 %v6829_v22, %v6826_v5 }
 0x2bc   : > { %9377 = vmatmul.mubr.bf16.gmra.mrb[20].mxu0 %v12493_v61  ;;  %v6777_v61 = vsel %vm2851_vm15, %v6767_v0, %v6776_v18  ;;  %v6839_v0 = vor.u32 %v6838_v6, %v6835_v47  ;;  %v6851_v18 = vshrl.u32 %v6618_v24, 16 }
 0x2bd   : > { %9380 = vmatprep.mubr.bf16.mxu0 %v6759_v21  ;;  %v6822_v21 = vsel %vm2851_vm15, %v6812_v30, %v6821_v23  ;;  %v6831_v42 = vsel %vm2851_vm15, %v6821_v23, %v6830_v15 }
 0x2be   : > { %v6840_v44 = vsel %vm2851_vm15, %v6830_v15, %v6839_v0  ;;  %v6853_v36 = vrot.slane %v6851_v18, 4  ;;  %v6849_v19 = vsel %vm2851_vm15, %v6839_v0, %v6848_v14 }
 0x2c0   : > { %9073 = vmatmul.mubr.bf16.gmra.mrb[36].mxu1 %v3722_v59  ;;  %v6854_v59 = vshll.u32 %v6618_v24, 16 }
 0x2c1   : > { %9076 = vmatprep.mubr.bf16.mxu1 %v3730_v2 }
 0x2c2   : > { %v6856_v2 = vrot.slane %v6854_v59, 5 }
 0x2c4   : > { %9381 = vmatmul.mubr.bf16.gmra.mrb[24].mxu0 %v6768_v38  ;;  %v6857_v32 = vor.u32 %v6856_v2, %v6853_v36 }
 0x2c5   : > { %9384 = vmatprep.mubr.bf16.mxu0 %v6777_v61 }
 0x2c8   : > { %9077 = vmatmul.mubr.bf16.gmra.mrb[40].mxu1 %v3738_v9 }
 0x2c9   : > { %9080 = vmatprep.mubr.bf16.mxu1 %v3746_v41 }
 0x2cc   : > { %9385 = vmatmul.mubr.bf16.gmra.mrb[28].mxu0 %v6786_v12 }
 0x2cd   : > { %9388 = vmatprep.mubr.bf16.mxu0 %v6795_v31 }
 0x2d0   : > { %9081 = vmatmul.mubr.bf16.gmra.mrb[44].mxu1 %v3754_v50 }
 0x2d1   : > { %9124 = vmatprep.mubr.bf16.mxu1 %v4208_v16 }
 0x2d4   : > { %9389 = vmatmul.mubr.bf16.gmra.mrb[32].mxu0 %v6804_v4 }
 0x2d5   : > { %9392 = vmatprep.mubr.bf16.mxu0 %v6813_v17 }
 0x2d8   : > { %9125 = vmatmul.mubr.bf16.vlgmr.msra.gmra.mrb[24].mxu1 %v4209_v27 }
 0x2d9   : > { %9128 = vmatprep.mubr.bf16.mxu1 %v12509_v26  ;;  %v6858_v26 = vsel %vm2851_vm15, %v6848_v14, %v6857_v32 }
 0x2dc   : > { %9393 = vmatmul.mubr.bf16.gmra.mrb[36].mxu0 %v6822_v21 }
 0x2dd   : > { %9396 = vmatprep.mubr.bf16.mxu0 %v6831_v42 }
 0x2e0   : > { %9129 = vmatmul.mubr.bf16.gmra.mrb[28].mxu1 %v12516_v63 }
 0x2e1   : > { %9132 = vmatprep.mubr.bf16.mxu1 %v12519_v8 }
 0x2e4   : > { %9397 = vmatmul.mubr.bf16.gmra.mrb[40].mxu0 %v6840_v44 }
 0x2e5   : > { %9400 = vmatprep.mubr.bf16.mxu0 %v6849_v19 }
 0x2e8   : > { %9133 = vmatmul.mubr.bf16.gmra.mrb[32].mxu1 %v12526_v29 }
 0x2e9   : > { %9136 = vmatprep.mubr.bf16.mxu1 %v12529_v57 }
 0x2ec   : > { %9401 = vmatmul.mubr.bf16.gmra.mrb[44].mxu0 %v6858_v26 }
 0x2f0   : > { %9137 = vmatmul.mubr.bf16.gmra.mrb[36].mxu1 %v12536_v7 }
 0x2f1   : > { %9140 = vmatprep.mubr.bf16.mxu1 %v12625_v35 }
 0x2f8   : > { %9141 = vmatmul.mubr.bf16.gmra.mrb[40].mxu1 %v12635_v52 }
 0x2f9   : > { %9144 = vmatprep.mubr.bf16.mxu1 %v12637_v25 }
 0x300   : > { %9145 = vmatmul.mubr.bf16.gmra.mrb[44].mxu1 %v12556_v3 }
 0x34b   : > { %v9038_v63 = vpop.f32.mrb[0].mxu1 }
 0x34c   : > { %v3861_v8 = vpop.f32.mrb[1].mxu1 }
 0x34d   : > { %v9039_v38 = vpop.f32.mrb[2].mxu1 }
 0x34e   : > { %v3864_v45 = vpop.f32.mrb[3].mxu1 }
 0x353   : > { %v9042_v10 = vpop.f32.mrb[4].mxu1 }
 0x354   : > { %v3877_v61 = vpop.f32.mrb[5].mxu1 }
 0x355   : > { %v9043_v29 = vpop.f32.mrb[6].mxu1 }
 0x356   : > { %v3880_v54 = vpop.f32.mrb[7].mxu1 }
 0x35b   : > { %v9046_v57 = vpop.f32.mrb[8].mxu1 }
 0x35c   : > { %v3893_v43 = vpop.f32.mrb[9].mxu1 }
 0x35d   : > { %v9047_v37 = vpop.f32.mrb[10].mxu1 }
 0x35e   : > { %v3896_v7 = vpop.f32.mrb[11].mxu1 }
 0x363   : > { %v12676_v33 = vpop.f32.mrb[12].mxu1 }
 0x364   : > { %v12678_v35 = vpop.f32.mrb[13].mxu1 }
 0x365   : > { %v12680_v52 = vpop.f32.mrb[14].mxu1 }
 0x366   : > { %v12682_v25 = vpop.f32.mrb[15].mxu1 }
 0x367   : > { %v9358_v3 = vpop.f32.mrb[0].mxu0 }
 0x368   : > { %v12684_v58 = vadd.f32 %v9358_v3, %v9038_v63  ;;  %v6965_v51 = vpop.f32.mrb[1].mxu0 }
 0x369   : > { %v12686_v40 = vadd.f32 %v6965_v51, %v3861_v8  ;;  %v9359_v9 = vpop.f32.mrb[2].mxu0 }
 0x36a   : > { %v12688_v53 = vadd.f32 %v9359_v9, %v9039_v38  ;;  %v6968_v20 = vpop.f32.mrb[3].mxu0  ;;  %v7590_v16 = vsel %vm10722_vm12, %v12684_v58, 0.0  ;;  %v14006_v9 = vld [vmem:[#allocation28_spill] sm:$0xff] }
 0x36b   : > { %v12690_v41 = vadd.f32 %v6968_v20, %v3864_v45  ;;  %v12694_v49 = vpop.f32.mrb[16].mxu1  ;;  %v7588_v55 = vsel %vm10691_vm7, %v12686_v40, 0.0  ;;  %v14004_v45 = vld [vmem:[#allocation27_spill] sm:$0xff]  ;;  %vm14007_vm15 = vnez %v14006_v9 }
 0x36c   : > { %v8382_v12 = vpack.c.bf16 %v12688_v53, %v12684_v58  ;;  %v12704_v11 = vpop.f32.mrb[17].mxu1  ;;  %v7591_v23 = vsel %vm10754_vm1, %v12688_v53, 0.0  ;;  %vm14005_vm11 = vnez %v14004_v45 }
 0x36d   : > { %v8377_v31 = vpack.c.bf16 %v12690_v41, %v12686_v40  ;;  %v7589_v46 = vsel %vm10698_vm8, %v12690_v41, 0.0  ;;  %v12711_v30 = vpop.f32.mrb[18].mxu1 }
 0x36e   : > { %8517 = vst [vmem:[%s12708_s27 + $0x8] sm:$0xff] %v8382_v12   ;;  %v7636_v34 = vadd.f32 %v7589_v46, %v7588_v55  ;;  %v12717_v28 = vpop.f32.mrb[19].mxu1 }
 0x36f   : > { %8378 = vst [vmem:[%s12708_s27] sm:$0xff] %v8377_v31   ;;  %v9362_v4 = vpop.f32.mrb[4].mxu0 }
 0x370   : > { %v7637_v13 = vadd.f32 %v7636_v34, %v7590_v16  ;;  %v12719_v17 = vadd.f32 %v9362_v4, %v9042_v10  ;;  %v6981_v5 = vpop.f32.mrb[5].mxu0  ;;  %v14010_v34 = vld [vmem:[#allocation30_spill] sm:$0xff] }
 0x371   : > { %v12724_v15 = vadd.f32 %v6981_v5, %v3877_v61  ;;  %v9363_v39 = vpop.f32.mrb[6].mxu0  ;;  %vm14011_vm4 = vnez %v14010_v34 }
 0x372   : > { %v7638_v1 = vadd.f32 %v7637_v13, %v7591_v23  ;;  %v12726_v27 = vadd.f32 %v9363_v39, %v9043_v29  ;;  %v6984_v21 = vpop.f32.mrb[7].mxu0  ;;  %v7594_v19 = vsel %vm10842_vm5, %v12719_v17, 0.0  ;;  %v14012_v23 = vld [vmem:[#allocation31_spill] sm:$0xff] }
 0x373   : > { %v7592_v6 = vsel %vm10798_vm13, %v12724_v15, 0.0  ;;  %v12731_v42 = vadd.f32 %v6984_v21, %v3880_v54  ;;  %v12735_v24 = vpop.f32.mrb[20].mxu1  ;;  %vm14013_vm10 = vnez %v14012_v23 }
 0x374   : > { %v7639_v48 = vadd.f32 %v7638_v1, %v7592_v6  ;;  %v8392_v60 = vpack.c.bf16 %v12726_v27, %v12719_v17  ;;  %v12742_v14 = vpop.f32.mrb[21].mxu1  ;;  %v7595_v10 = vsel %vm14005_vm11, %v12726_v27, 0.0 }
 0x375   : > { %v8387_v0 = vpack.c.bf16 %v12731_v42, %v12724_v15  ;;  %v7593_v59 = vsel %vm10803_vm14, %v12731_v42, 0.0  ;;  %v12745_v36 = vpop.f32.mrb[22].mxu1 }
 0x376   : > { %8519 = vst [vmem:[%s12708_s27 + $0x18] sm:$0xff] %v8392_v60   ;;  %v7640_v44 = vadd.f32 %v7639_v48, %v7593_v59  ;;  %v12751_v26 = vpop.f32.mrb[23].mxu1 }
 0x377   : > { %8518 = vst [vmem:[%s12708_s27 + $0x10] sm:$0xff] %v8387_v0   ;;  %v9366_v32 = vpop.f32.mrb[8].mxu0  ;;  %v14015_v0 = vld [vmem:[#allocation32_spill] sm:$0xff] }
 0x378   : > { %v7641_v63 = vadd.f32 %v7640_v44, %v7594_v19  ;;  %v12753_v8 = vadd.f32 %v9366_v32, %v9046_v57  ;;  %v6997_v38 = vpop.f32.mrb[9].mxu0  ;;  %vm14016_vm0 = vnez %v14015_v0  ;;  %v14017_v32 = vld [vmem:[#allocation33_spill] sm:$0xff] }
 0x379   : > { %v12758_v61 = vadd.f32 %v6997_v38, %v3893_v43  ;;  %v9367_v29 = vpop.f32.mrb[10].mxu0  ;;  %v14008_v43 = vld [vmem:[#allocation29_spill] sm:$0xff]  ;;  %vm14018_vm6 = vnez %v14017_v32 }
 0x37a   : > { %v7642_v54 = vadd.f32 %v7641_v63, %v7595_v10  ;;  %v12760_v3 = vadd.f32 %v9367_v29, %v9047_v37  ;;  %v7000_v51 = vpop.f32.mrb[11].mxu0  ;;  %vm14009_vm2 = vnez %v14008_v43  ;;  %v7598_v16 = vsel %vm14011_vm4, %v12753_v8, 0.0  ;;  %v14020_v29 = vld [vmem:[#allocation34_spill] sm:$0xff] }
 0x37b   : > { %v7596_v20 = vsel %vm14007_vm15, %v12758_v61, 0.0  ;;  %v12765_v12 = vadd.f32 %v7000_v51, %v3896_v7 }
 0x37c   : > { %v7643_v57 = vadd.f32 %v7642_v54, %v7596_v20  ;;  %v8402_v55 = vpack.c.bf16 %v12760_v3, %v12753_v8  ;;  %v7599_v39 = vsel %vm14013_vm10, %v12760_v3, 0.0 }
 0x37d   : > { %v8397_v31 = vpack.c.bf16 %v12765_v12, %v12758_v61  ;;  %v7597_v46 = vsel %vm14009_vm2, %v12765_v12, 0.0 }
 0x37e   : > { %8521 = vst [vmem:[%s12708_s27 + $0x28] sm:$0xff] %v8402_v55   ;;  %v7644_v37 = vadd.f32 %v7643_v57, %v7597_v46 }
 0x37f   : > { %8520 = vst [vmem:[%s12708_s27 + $0x20] sm:$0xff] %v8397_v31   ;;  %v9370_v7 = vpop.f32.mrb[12].mxu0 }
 0x380   : > { %v7645_v4 = vadd.f32 %v7644_v37, %v7598_v16  ;;  %v12780_v13 = vadd.f32 %v9370_v7, %v12676_v33  ;;  %v7013_v5 = vpop.f32.mrb[13].mxu0  ;;  %v14025_v37 = vld [vmem:[#allocation35_spill] sm:$0xff] }
 0x381   : > { %v12786_v1 = vadd.f32 %v7013_v5, %v12678_v35  ;;  %v9371_v21 = vpop.f32.mrb[14].mxu0 }
 0x382   : > { %v7646_v6 = vadd.f32 %v7645_v4, %v7599_v39  ;;  %v12789_v48 = vadd.f32 %v9371_v21, %v12680_v52  ;;  %v7016_v60 = vpop.f32.mrb[15].mxu0  ;;  %v14027_v4 = vld [vmem:[#allocation36_spill] sm:$0xff] }
 0x383   : > { %v7600_v33 = vsel %vm14016_vm0, %v12786_v1, 0.0  ;;  %v12795_v59 = vadd.f32 %v7016_v60, %v12682_v25  ;;  %vm14021_vm0 = vnez %v14020_v29  ;;  %v14073_v29 = vld [vmem:[#allocation55_spill] sm:$0xff] }
 0x384   : > { %14014 = vst [vmem:[#allocation21_spill] sm:$0xff] %v12789_v48  ;;  %v7647_v44 = vadd.f32 %v7646_v6, %v7600_v33  ;;  %v8412_v19 = vpack.c.bf16 %v12789_v48, %v12780_v13  ;;  %v7602_v54 = vsel %vm14021_vm0, %v12780_v13, 0.0  ;;  %vm14028_vm0 = vnez %v14027_v4  ;;  %v14057_v4 = vld [vmem:[#allocation47_spill] sm:$0xff] }
 0x385   : > { %v8407_v35 = vpack.c.bf16 %v12795_v59, %v12786_v1  ;;  %v7601_v52 = vsel %vm14018_vm6, %v12795_v59, 0.0  ;;  %vm14026_vm6 = vnez %v14025_v37 }
 0x386   : > { %8523 = vst [vmem:[%s12708_s27 + $0x38] sm:$0xff] %v8412_v19   ;;  %v7648_v63 = vadd.f32 %v7647_v44, %v7601_v52  ;;  %v7603_v16 = vsel %vm14026_vm6, %v12789_v48, 0.0  ;;  %v14032_v19 = vld [vmem:[#allocation37_spill] sm:$0xff] }
 0x387   : > { %8522 = vst [vmem:[%s12708_s27 + $0x30] sm:$0xff] %v8407_v35   ;;  %v9374_v38 = vpop.f32.mrb[16].mxu0  ;;  %vm14033_vm6 = vnez %v14032_v19 }
 0x388   : > { %v12807_v25 = vadd.f32 %v9374_v38, %v12694_v49  ;;  %v7029_v10 = vpop.f32.mrb[17].mxu0  ;;  %v7649_v57 = vadd.f32 %v7648_v63, %v7602_v54 }
 0x389   : > { %v12813_v51 = vadd.f32 %v7029_v10, %v12704_v11  ;;  %v9375_v20 = vpop.f32.mrb[18].mxu0  ;;  %v14035_v10 = vld [vmem:[#allocation38_spill] sm:$0xff] }
 0x38a   : > { %14019 = vst [vmem:[#allocation22_spill] sm:$0xff] %v12807_v25  ;;  %v12816_v55 = vadd.f32 %v9375_v20, %v12711_v30  ;;  %v7032_v31 = vpop.f32.mrb[19].mxu0  ;;  %v7650_v7 = vadd.f32 %v7649_v57, %v7603_v16 }
 0x38b   : > { %14022 = vst [vmem:[#allocation23_spill] sm:$0xff] %v12813_v51  ;;  %v12819_v46 = vadd.f32 %v7032_v31, %v12717_v28  ;;  %v7604_v30 = vsel %vm14028_vm0, %v12813_v51, 0.0  ;;  %vm14036_vm0 = vnez %v14035_v10  ;;  %v14045_v10 = vld [vmem:[#allocation43_spill] sm:$0xff] }
 0x38c   : > { %14023 = vst [vmem:[#allocation24_spill] sm:$0xff] %v12816_v55  ;;  %v8422_v49 = vpack.c.bf16 %v12816_v55, %v12807_v25  ;;  %v7651_v60 = vadd.f32 %v7650_v7, %v7604_v30  ;;  %v7606_v54 = vsel %vm14036_vm0, %v12807_v25, 0.0 }
 0x38d   : > { %14024 = vst [vmem:[#allocation25_spill] sm:$0xff] %v12819_v46  ;;  %v8417_v11 = vpack.c.bf16 %v12819_v46, %v12813_v51  ;;  %v7605_v35 = vsel %vm14033_vm6, %v12819_v46, 0.0 }
 0x38e   : > { %8525 = vst [vmem:[%s12708_s27 + $0x48] sm:$0xff] %v8422_v49   ;;  %v7652_v63 = vadd.f32 %v7651_v60, %v7605_v35 }
 0x38f   : > { %8524 = vst [vmem:[%s12708_s27 + $0x40] sm:$0xff] %v8417_v11   ;;  %v9378_v28 = vpop.f32.mrb[20].mxu0  ;;  %v14039_v11 = vld [vmem:[#allocation40_spill] sm:$0xff] }
 0x390   : > { %v12834_v5 = vadd.f32 %v9378_v28, %v12735_v24  ;;  %v7045_v39 = vpop.f32.mrb[21].mxu0  ;;  %v7653_v57 = vadd.f32 %v7652_v63, %v7606_v54  ;;  %vm14040_vm10 = vnez %v14039_v11  ;;  %v14043_v54 = vld [vmem:[#allocation42_spill] sm:$0xff] }
 0x391   : > { %v12837_v21 = vadd.f32 %v7045_v39, %v12742_v14  ;;  %v9379_v6 = vpop.f32.mrb[22].mxu0 }
 0x392   : > { %14029 = vst [vmem:[#allocation26_spill] sm:$0xff] %v12834_v5  ;;  %v12840_v33 = vadd.f32 %v9379_v6, %v12745_v36  ;;  %v7048_v44 = vpop.f32.mrb[23].mxu0 }
 0x393   : > { %14030 = vst [vmem:[#allocation27_spill] sm:$0xff] %v12837_v21  ;;  %v12846_v52 = vadd.f32 %v7048_v44, %v12751_v26  ;;  %v14037_v26 = vld [vmem:[#allocation39_spill] sm:$0xff]  ;;  %v7608_v7 = vsel %vm14040_vm10, %v12837_v21, 0.0  ;;  %v14041_v44 = vld [vmem:[#allocation41_spill] sm:$0xff]  ;;  %vm14046_vm10 = vnez %v14045_v10  ;;  %v14050_v10 = vld [vmem:[#allocation44_spill] sm:$0xff] }
 0x394   : > { %14031 = vst [vmem:[#allocation28_spill] sm:$0xff] %v12840_v33  ;;  %v8432_v24 = vpack.c.bf16 %v12840_v33, %v12834_v5  ;;  %vm14038_vm6 = vnez %v14037_v26  ;;  %vm14042_vm0 = vnez %v14041_v44 }
 0x395   : > { %14034 = vst [vmem:[#allocation29_spill] sm:$0xff] %v12846_v52  ;;  %v8427_v14 = vpack.c.bf16 %v12846_v52, %v12837_v21  ;;  %v7607_v49 = vsel %vm14038_vm6, %v12816_v55, 0.0  ;;  %v7609_v35 = vsel %vm14042_vm0, %v12846_v52, 0.0  ;;  %vm14044_vm6 = vnez %v14043_v54 }
 0x396   : > { %8527 = vst [vmem:[%s12708_s27 + $0x58] sm:$0xff] %v8432_v24   ;;  %v7654_v16 = vadd.f32 %v7653_v57, %v7607_v49  ;;  %v7610_v57 = vsel %vm14044_vm6, %v12834_v5, 0.0  ;;  %v7611_v21 = vsel %vm14046_vm10, %v12840_v33, 0.0  ;;  %vm14051_vm10 = vnez %v14050_v10 }
 0x397   : > { %8526 = vst [vmem:[%s12708_s27 + $0x50] sm:$0xff] %v8427_v14   ;;  %v9382_v38 = vpop.f32.mrb[24].mxu0  ;;  %vm14058_vm0 = vnez %v14057_v4 }
 0x398   : > { %v7061_v36 = vpop.f32.mrb[25].mxu0  ;;  %v7655_v6 = vadd.f32 %v7654_v16, %v7608_v7 }
 0x399   : > { %v9383_v20 = vpop.f32.mrb[26].mxu0 }
 0x39a   : > { %v7064_v31 = vpop.f32.mrb[27].mxu0  ;;  %v7656_v24 = vadd.f32 %v7655_v6, %v7609_v35 }
 0x39c   : > { %v7657_v26 = vadd.f32 %v7656_v24, %v7610_v57 }
 0x39e   : > { %v7658_v44 = vadd.f32 %v7657_v26, %v7611_v21  ;;  %v14053_v26 = vld [vmem:[#allocation45_spill] sm:$0xff] }
 0x39f   : > { %v9386_v30 = vpop.f32.mrb[28].mxu0  ;;  %vm14054_vm6 = vnez %v14053_v26 }
 0x3a0   : > { %v7077_v28 = vpop.f32.mrb[29].mxu0 }
 0x3a1   : > { %v9387_v39 = vpop.f32.mrb[30].mxu0 }
 0x3a2   : > { %v7080_v60 = vpop.f32.mrb[31].mxu0 }
 0x3a7   : > { %v9390_v14 = vpop.f32.mrb[32].mxu0 }
 0x3a8   : > { %v7093_v63 = vpop.f32.mrb[33].mxu0 }
 0x3a9   : > { %v9391_v49 = vpop.f32.mrb[34].mxu0 }
 0x3aa   : > { %v7096_v11 = vpop.f32.mrb[35].mxu0 }
 0x3ab   : > { %v9126_v16 = vpop.f32.mrb[24].mxu1 }
 0x3ac   : > { %v12872_v7 = vadd.f32 %v9382_v38, %v9126_v16  ;;  %v4414_v19 = vpop.f32.mrb[25].mxu1 }
 0x3ad   : > { %v12874_v6 = vadd.f32 %v7061_v36, %v4414_v19  ;;  %v9127_v35 = vpop.f32.mrb[26].mxu1 }
 0x3ae   : > { %14047 = vst [vmem:[#allocation30_spill] sm:$0xff] %v12872_v7  ;;  %v12878_v54 = vadd.f32 %v9383_v20, %v9127_v35  ;;  %v4417_v24 = vpop.f32.mrb[27].mxu1 }
 0x3af   : > { %14048 = vst [vmem:[#allocation31_spill] sm:$0xff] %v12874_v6  ;;  %v12876_v52 = vpop.f32.mrb[36].mxu0  ;;  %v7612_v33 = vsel %vm14051_vm10, %v12874_v6, 0.0  ;;  %v12885_v38 = vadd.f32 %v7064_v31, %v4417_v24  ;;  %v14055_v31 = vld [vmem:[#allocation46_spill] sm:$0xff] }
 0x3b0   : > { %14049 = vst [vmem:[#allocation32_spill] sm:$0xff] %v12878_v54  ;;  %v12880_v57 = vpop.f32.mrb[37].mxu0  ;;  %v7659_v21 = vadd.f32 %v7658_v44, %v7612_v33  ;;  %v8442_v19 = vpack.c.bf16 %v12878_v54, %v12872_v7  ;;  %vm14056_vm10 = vnez %v14055_v31 }
 0x3b1   : > { %14052 = vst [vmem:[#allocation68_spill] sm:$0xff] %v12885_v38  ;;  %v12887_v16 = vpop.f32.mrb[38].mxu0  ;;  %v8437_v20 = vpack.c.bf16 %v12885_v38, %v12874_v6  ;;  %v7613_v35 = vsel %vm14054_vm6, %v12885_v38, 0.0  ;;  %v7614_v24 = vsel %vm14056_vm10, %v12872_v7, 0.0  ;;  %v7615_v6 = vsel %vm14058_vm0, %v12878_v54, 0.0  ;;  %v14065_v7 = vld [vmem:[#allocation51_spill] sm:$0xff] }
 0x3b2   : > { %v12891_v36 = vpop.f32.mrb[39].mxu0  ;;  %8529 = vst [vmem:[%s12708_s27 + $0x68] sm:$0xff] %v8442_v19   ;;  %v7660_v10 = vadd.f32 %v7659_v21, %v7613_v35  ;;  %vm14066_vm6 = vnez %v14065_v7 }
 0x3b3   : > { %8528 = vst [vmem:[%s12708_s27 + $0x60] sm:$0xff] %v8437_v20   ;;  %v9130_v33 = vpop.f32.mrb[28].mxu1 }
 0x3b4   : > { %v7661_v44 = vadd.f32 %v7660_v10, %v7614_v24  ;;  %v12903_v5 = vadd.f32 %v9386_v30, %v9130_v33  ;;  %v4430_v55 = vpop.f32.mrb[29].mxu1  ;;  %v14059_v10 = vld [vmem:[#allocation48_spill] sm:$0xff] }
 0x3b5   : > { %v12908_v25 = vadd.f32 %v7077_v28, %v4430_v55  ;;  %v9131_v26 = vpop.f32.mrb[30].mxu1  ;;  %vm14060_vm10 = vnez %v14059_v10 }
 0x3b6   : > { %v7662_v21 = vadd.f32 %v7661_v44, %v7615_v6  ;;  %v12912_v35 = vadd.f32 %v9387_v39, %v9131_v26  ;;  %v4433_v20 = vpop.f32.mrb[31].mxu1  ;;  %v14061_v39 = vld [vmem:[#allocation49_spill] sm:$0xff]  ;;  %v14063_v44 = vld [vmem:[#allocation50_spill] sm:$0xff] }
 0x3b7   : > { %v12910_v19 = vpop.f32.mrb[40].mxu0  ;;  %v7616_v30 = vsel %vm14060_vm10, %v12908_v25, 0.0  ;;  %v12917_v24 = vadd.f32 %v7080_v60, %v4433_v20  ;;  %vm14062_vm0 = vnez %v14061_v39  ;;  %vm14064_vm10 = vnez %v14063_v44 }
 0x3b8   : > { %v7125_v31 = vpop.f32.mrb[41].mxu0  ;;  %v7663_v4 = vadd.f32 %v7662_v21, %v7616_v30  ;;  %v8452_v55 = vpack.c.bf16 %v12912_v35, %v12903_v5  ;;  %v7618_v60 = vsel %vm14064_vm10, %v12903_v5, 0.0  ;;  %v7619_v38 = vsel %vm14066_vm6, %v12912_v35, 0.0 }
 0x3b9   : > { %v9399_v33 = vpop.f32.mrb[42].mxu0  ;;  %v8447_v54 = vpack.c.bf16 %v12917_v24, %v12908_v25  ;;  %v7617_v6 = vsel %vm14062_vm0, %v12917_v24, 0.0  ;;  %vm14074_vm0 = vnez %v14073_v29 }
 0x3ba   : > { %v7128_v28 = vpop.f32.mrb[43].mxu0  ;;  %8531 = vst [vmem:[%s12708_s27 + $0x78] sm:$0xff] %v8452_v55   ;;  %v7664_v26 = vadd.f32 %v7663_v4, %v7617_v6 }
 0x3bb   : > { %8530 = vst [vmem:[%s12708_s27 + $0x70] sm:$0xff] %v8447_v54   ;;  %v9134_v20 = vpop.f32.mrb[32].mxu1 }
 0x3bc   : > { %v7665_v21 = vadd.f32 %v7664_v26, %v7618_v60  ;;  %v12931_v30 = vadd.f32 %v9390_v14, %v9134_v20  ;;  %v4446_v10 = vpop.f32.mrb[33].mxu1  ;;  %v14067_v26 = vld [vmem:[#allocation52_spill] sm:$0xff] }
 0x3bd   : > { %v12936_v37 = vadd.f32 %v7093_v63, %v4446_v10  ;;  %v9135_v39 = vpop.f32.mrb[34].mxu1  ;;  %vm14068_vm10 = vnez %v14067_v26 }
 0x3be   : > { %v7666_v4 = vadd.f32 %v7665_v21, %v7619_v38  ;;  %v12938_v6 = vadd.f32 %v9391_v49, %v9135_v39  ;;  %v4449_v44 = vpop.f32.mrb[35].mxu1  ;;  %v14069_v49 = vld [vmem:[#allocation53_spill] sm:$0xff]  ;;  %v14071_v21 = vld [vmem:[#allocation54_spill] sm:$0xff] }
 0x3bf   : > { %v9402_v55 = vpop.f32.mrb[44].mxu0  ;;  %v7620_v14 = vsel %vm14068_vm10, %v12936_v37, 0.0  ;;  %v12943_v60 = vadd.f32 %v7096_v11, %v4449_v44  ;;  %vm14070_vm6 = vnez %v14069_v49  ;;  %vm14072_vm10 = vnez %v14071_v21 }
 0x3c0   : > { %v7141_v54 = vpop.f32.mrb[45].mxu0  ;;  %v7667_v7 = vadd.f32 %v7666_v4, %v7620_v14  ;;  %v8462_v63 = vpack.c.bf16 %v12938_v6, %v12931_v30  ;;  %v7622_v11 = vsel %vm14072_vm10, %v12931_v30, 0.0  ;;  %v7623_v49 = vsel %vm14074_vm0, %v12938_v6, 0.0 }
 0x3c1   : > { %v9403_v20 = vpop.f32.mrb[46].mxu0  ;;  %v8457_v46 = vpack.c.bf16 %v12943_v60, %v12936_v37  ;;  %v7621_v38 = vsel %vm14070_vm6, %v12943_v60, 0.0 }
 0x3c2   : > { %v7144_v10 = vpop.f32.mrb[47].mxu0  ;;  %8533 = vst [vmem:[%s12708_s27 + $0x88] sm:$0xff] %v8462_v63   ;;  %v7668_v39 = vadd.f32 %v7667_v7, %v7621_v38 }
 0x3c3   : > { %8532 = vst [vmem:[%s12708_s27 + $0x80] sm:$0xff] %v8457_v46   ;;  %v9138_v44 = vpop.f32.mrb[36].mxu1 }
 0x3c4   : > { %v7669_v4 = vadd.f32 %v7668_v39, %v7622_v11  ;;  %v12958_v14 = vadd.f32 %v12876_v52, %v9138_v44  ;;  %v4462_v26 = vpop.f32.mrb[37].mxu1  ;;  %v14075_v39 = vld [vmem:[#allocation56_spill] sm:$0xff] }
 0x3c5   : > { %v12964_v63 = vadd.f32 %v12880_v57, %v4462_v26  ;;  %v9139_v7 = vpop.f32.mrb[38].mxu1  ;;  %vm14076_vm10 = vnez %v14075_v39  ;;  %v14077_v26 = vld [vmem:[#allocation57_spill] sm:$0xff]  ;;  %v14081_v39 = vld [vmem:[#allocation59_spill] sm:$0xff] }
 0x3c6   : > { %v7670_v38 = vadd.f32 %v7669_v4, %v7623_v49  ;;  %v12967_v21 = vadd.f32 %v12887_v16, %v9139_v7  ;;  %v4465_v46 = vpop.f32.mrb[39].mxu1  ;;  %vm14078_vm0 = vnez %v14077_v26  ;;  %v14079_v4 = vld [vmem:[#allocation58_spill] sm:$0xff] }
 0x3c7   : > { %v7624_v52 = vsel %vm14076_vm10, %v12964_v63, 0.0  ;;  %v12973_v11 = vadd.f32 %v12891_v36, %v4465_v46  ;;  %vm14080_vm6 = vnez %v14079_v4  ;;  %vm14082_vm10 = vnez %v14081_v39 }
 0x3c8   : > { %v7671_v44 = vadd.f32 %v7670_v38, %v7624_v52  ;;  %v8472_v29 = vpack.c.bf16 %v12967_v21, %v12958_v14  ;;  %v7626_v7 = vsel %vm14080_vm6, %v12958_v14, 0.0  ;;  %v7627_v26 = vsel %vm14082_vm10, %v12967_v21, 0.0 }
 0x3c9   : > { %v8467_v57 = vpack.c.bf16 %v12973_v11, %v12964_v63  ;;  %v7625_v16 = vsel %vm14078_vm0, %v12973_v11, 0.0 }
 0x3ca   : > { %8535 = vst [vmem:[%s12708_s27 + $0x98] sm:$0xff] %v8472_v29   ;;  %v7672_v49 = vadd.f32 %v7671_v44, %v7625_v16 }
 0x3cb   : > { %8534 = vst [vmem:[%s12708_s27 + $0x90] sm:$0xff] %v8467_v57   ;;  %v9142_v36 = vpop.f32.mrb[40].mxu1  ;;  %v14083_v57 = vld [vmem:[#allocation60_spill] sm:$0xff] }
 0x3cc   : > { %v7673_v38 = vadd.f32 %v7672_v49, %v7626_v7  ;;  %v12988_v46 = vadd.f32 %v12910_v19, %v9142_v36  ;;  %v4478_v52 = vpop.f32.mrb[41].mxu1  ;;  %vm14084_vm6 = vnez %v14083_v57 }
 0x3cd   : > { %v12993_v51 = vadd.f32 %v7125_v31, %v4478_v52  ;;  %v9143_v29 = vpop.f32.mrb[42].mxu1  ;;  %v14085_v31 = vld [vmem:[#allocation61_spill] sm:$0xff] }
 0x3ce   : > { %v7674_v44 = vadd.f32 %v7673_v38, %v7627_v26  ;;  %v12995_v16 = vadd.f32 %v9399_v33, %v9143_v29  ;;  %v4481_v4 = vpop.f32.mrb[43].mxu1  ;;  %vm14086_vm10 = vnez %v14085_v31  ;;  %v14087_v38 = vld [vmem:[#allocation62_spill] sm:$0xff] }
 0x3cf   : > { %v7628_v49 = vsel %vm14084_vm6, %v12993_v51, 0.0  ;;  %v13000_v7 = vadd.f32 %v7128_v28, %v4481_v4  ;;  %vm14088_vm0 = vnez %v14087_v38 }
 0x3d0   : > { %v7675_v19 = vadd.f32 %v7674_v44, %v7628_v49  ;;  %v8482_v36 = vpack.c.bf16 %v12995_v16, %v12988_v46  ;;  %v7630_v52 = vsel %vm14088_vm0, %v12988_v46, 0.0  ;;  %v14089_v49 = vld [vmem:[#allocation63_spill] sm:$0xff] }
 0x3d1   : > { %v8477_v39 = vpack.c.bf16 %v13000_v7, %v12993_v51  ;;  %v7629_v26 = vsel %vm14086_vm10, %v13000_v7, 0.0  ;;  %vm14090_vm6 = vnez %v14089_v49 }
 0x3d2   : > { %8537 = vst [vmem:[%s12708_s27 + $0xa8] sm:$0xff] %v8482_v36   ;;  %v7676_v33 = vadd.f32 %v7675_v19, %v7629_v26  ;;  %v7631_v57 = vsel %vm14090_vm6, %v12995_v16, 0.0 }
 0x3d3   : > { %8536 = vst [vmem:[%s12708_s27 + $0xa0] sm:$0xff] %v8477_v39   ;;  %v9146_v28 = vpop.f32.mrb[44].mxu1  ;;  %v14091_v39 = vld [vmem:[#allocation64_spill] sm:$0xff] }
 0x3d4   : > { %v7677_v4 = vadd.f32 %v7676_v33, %v7630_v52  ;;  %v13014_v29 = vadd.f32 %v9402_v55, %v9146_v28  ;;  %v4494_v44 = vpop.f32.mrb[45].mxu1  ;;  %vm14092_vm0 = vnez %v14091_v39  ;;  %v14093_v28 = vld [vmem:[#allocation65_spill] sm:$0xff] }
 0x3d5   : > { %v13019_v31 = vadd.f32 %v7141_v54, %v4494_v44  ;;  %v9147_v36 = vpop.f32.mrb[46].mxu1  ;;  %vm14094_vm6 = vnez %v14093_v28 }
 0x3d6   : > { %v7678_v19 = vadd.f32 %v7677_v4, %v7631_v57  ;;  %v13021_v26 = vadd.f32 %v9403_v20, %v9147_v36  ;;  %v4497_v38 = vpop.f32.mrb[47].mxu1 }
 0x3d7   : > { %v7632_v32 = vsel %vm14092_vm0, %v13019_v31, 0.0  ;;  %v13026_v33 = vadd.f32 %v7144_v10, %v4497_v38  ;;  %v7634_v10 = vsel %vm11911_vm3, %v13014_v29, 0.0 }
 0x3d8   : > { %v7679_v55 = vadd.f32 %v7678_v19, %v7632_v32  ;;  %v8492_v52 = vpack.c.bf16 %v13021_v26, %v13014_v29  ;;  %v7635_v44 = vsel %vm11916_vm9, %v13021_v26, 0.0 }
 0x3d9   : > { %v8487_v54 = vpack.c.bf16 %v13026_v33, %v13019_v31  ;;  %v7633_v20 = vsel %vm14094_vm6, %v13026_v33, 0.0 }
 0x3da   : > { %8539 = vst [vmem:[%s12708_s27 + $0xb8] sm:$0xff] %v8492_v52   ;;  %v7680_v57 = vadd.f32 %v7679_v55, %v7633_v20 }
 0x3db   : > { %8538 = vst [vmem:[%s12708_s27 + $0xb0] sm:$0xff] %v8487_v54  }
 0x3dc   : > { %v7681_v32 = vadd.f32 %v7680_v57, %v7634_v10 }
 0x3de   : > { %v7682_v36 = vadd.f32 %v7681_v32, %v7635_v44 }
 0x3e0   : > { %v7683_v19 = vrot.slane %v7682_v36, 4 }
 0x3e2   : > { %v7684_v39 = vadd.f32 %v7683_v19, %v7682_v36 }
 0x3e4   : > { %v7685_v28 = vrot.slane %v7684_v39, 2 }
 0x3e6   : > { %v7686_v49 = vadd.f32 %v7685_v28, %v7684_v39 }
 0x3e8   : > { %v7687_v52 = vrot.slane %v7686_v49, 1 }
 0x3ea   : > { %v7688_v48 = vadd.f32 %v7687_v52, %v7686_v49 }
 0x3ec   : > { %7786 = vst [vmem:[%s319_s29] sm:$0x1] %v7688_v48  ;;  %v13044_v55 = vmul.f32 0.00390625, %v7688_v48 }
 0x3ee   : > { %v7718_v54 = vsub.f32 %v12908_v25, %v13044_v55  ;;  %v7719_v49 = vsub.f32 %v12917_v24, %v13044_v55  ;;  %v7720_v48 = vsub.f32 %v12903_v5, %v13044_v55  ;;  %v7721_v39 = vsub.f32 %v12912_v35, %v13044_v55 }
 0x3ef   : > { %v7722_v28 = vsub.f32 %v12936_v37, %v13044_v55 }
 0x3f0   : > { %10248 = shalt.err (!%p10245_p13)
}
 0x3f1   : > { %s10249_s20 = scalar_lea.hbm %s13053_s12, 16  ;;  %s10253_s15 = scalar_lea.hbm %s13417_s5, 32 }
 0x3f2   : > { %p10250_p0 = scmp.ne.s32.totalorder %s13053_s12, %s10249_s20  ;;  %p10254_p9 = scmp.lt.u32.totalorder %s13053_s12, %s13417_s5 }
 0x3f3   : > { %p10255_p12 = scmp.lt.u32.totalorder %s10253_s15, %s10249_s20  ;;  %p10257_p1 = scmp.lt.u32.totalorder %s10249_s20, %s13053_s12 }
 0x3f4   : > { %p10251_p5 = pnand %p10250_p0, %p10566_p6 }
 0x3f5   : > { %p10256_p2 = por %p10255_p12, %p10254_p9 }
 0x3f6   : > { %p10252_p11 = pneg %p10251_p5 }
 0x3f7   : > { %p10258_p4 = por %p10257_p1, %p10256_p2 }
 0x3f9   : > { %p10259_p8 = pnand %p10258_p4, %p10252_p11 }
 0x3fb   : > { %10262 = shalt.err (!%p10259_p8)
}
 0x3fc   : > { %9919 = dma.vmem_to_hbm [thread:$0]  (%p10566_p6), %s13063_s11, 16, %s13053_s12, %s13073_s7  }
 0x3fd   : > { %s9903_s26 = smul.u32 3072, %s10439_s25  ;;  %s7911_s30 = sshll.u32 %s12708_s27, 4  ;;  %s13115_s30 = int_to_ptr.vmem [resolvable:$true] %s7911_s30 }
 0x3fe   : > { %s7890_s9 = scalar_lea.sflag [#allocation6], %s10617_s19  ;;  %s10263_s20 = scalar_lea.vmem %s13115_s30, 3072 }
 0x3ff   : > { %s13128_s11 = scalar_lea.hbm %s13416_s4, %s9903_s26  ;;  %p10264_p3 = scmp.ne.s32.totalorder %s13115_s30, %s10263_s20 }
 0x400   : > { %s10379_s29 = smov [#allocation12]  }
 0x401   : > { %p10265_p7 = pnand %p10264_p3, %p10566_p6  ;;  %s10267_s8 = sshll.u32 %s10379_s29, 4  ;;  %s10268_s8 = int_to_ptr.vmem [resolvable:$false] %s10267_s8 }
 0x402   : > { %s10269_s15 = scalar_lea.vmem %s10268_s8, 6144  ;;  %p10270_p13 = scmp.lt.s32.totalorder %s13115_s30, %s10268_s8 }
 0x403   : > { %p10266_p10 = pneg %p10265_p7  ;;  %p10271_p0 = scmp.lt.s32.totalorder %s10269_s15, %s10263_s20 }
 0x405   : > { %p10272_p5 = por %p10271_p0, %p10270_p13 }
 0x407   : > { %p10273_p11 = pnand %p10272_p5, %p10266_p10 }
 0x409   : > { %10276 = shalt.err (!%p10273_p11)
}
 0x40a   : > { %s10277_s17 = scalar_lea.hbm %s13128_s11, 3072  ;;  %s10281_s27 = scalar_lea.hbm %s13416_s4, 6144 }
 0x40b   : > { %p10278_p9 = scmp.ne.s32.totalorder %s13128_s11, %s10277_s17  ;;  %p10282_p1 = scmp.lt.u32.totalorder %s13128_s11, %s13416_s4 }
 0x40c   : > { %p10283_p4 = scmp.lt.u32.totalorder %s10281_s27, %s10277_s17  ;;  %p10285_p3 = scmp.lt.u32.totalorder %s10277_s17, %s13128_s11 }
 0x40d   : > { %p10279_p12 = pnand %p10278_p9, %p10566_p6 }
 0x40e   : > { %p10284_p8 = por %p10283_p4, %p10282_p1 }
 0x40f   : > { %p10280_p2 = pneg %p10279_p12 }
 0x410   : > { %p10286_p7 = por %p10285_p3, %p10284_p8 }
 0x412   : > { %p10287_p10 = pnand %p10286_p7, %p10280_p2 }
 0x414   : > { %10290 = shalt.err (!%p10287_p10)
}
 0x415   : > { %s10380_s20 = smov 64   ;;  %s10381_s8 = smov 4   ;;  %v7690_v32 = vsub.f32 %v12686_v40, %v13044_v55  ;;  %v7691_v10 = vsub.f32 %v12690_v41, %v13044_v55  ;;  %v7692_v52 = vsub.f32 %v12684_v58, %v13044_v55  ;;  %v7693_v36 = vsub.f32 %v12688_v53, %v13044_v55  ;;  %v14099_v34 = vld [vmem:[#allocation21_spill] sm:$0xff] }
 0x416   : > { %9918 = dma.vmem_to_hbm [thread:$0]  (%p10566_p6), %s13115_s30, 3072, %s13128_s11, %s7890_s9, %s10380_s20, %s10380_s20, %s10381_s8   ;;  %v7694_v40 = vsub.f32 %v12724_v15, %v13044_v55  ;;  %v7695_v58 = vsub.f32 %v12731_v42, %v13044_v55  ;;  %v7697_v50 = vsub.f32 %v12726_v27, %v13044_v55  ;;  %v7698_v22 = vsub.f32 %v12758_v61, %v13044_v55 }
 0x417   : > { %v7738_v19 = vsel %vm10691_vm7, %v7690_v32, 0.0  ;;  %v7739_v44 = vsel %vm10698_vm8, %v7691_v10, 0.0  ;;  %v7740_v41 = vsel %vm10722_vm12, %v7692_v52, 0.0  ;;  %v7741_v56 = vsel %vm10754_vm1, %v7693_v36, 0.0  ;;  %s325_s30 = scalar_lea.vmem [#allocation15], %s10617_s19  ;;  %s13372_s17 = scalar_lea.hbm %s13418_s6, %s8226_s14 }
 0x418   : > { %v7787_v57 = vmul.f32 %v7738_v19, %v7738_v19  ;;  %v7788_v20 = vmul.f32 %v7739_v44, %v7739_v44  ;;  %v7789_v32 = vmul.f32 %v7740_v41, %v7740_v41  ;;  %v7696_v10 = vsub.f32 %v12719_v17, %v13044_v55  ;;  %s7940_s11 = sshll.u32 %s325_s30, 4  ;;  %s10382_s26 = smov [#allocation15]   ;;  %s7941_s11 = int_to_ptr.vmem [resolvable:$true] %s7940_s11 }
 0x419   : > { %v7742_v53 = vsel %vm10798_vm13, %v7694_v40, 0.0  ;;  %v7790_v44 = vmul.f32 %v7741_v56, %v7741_v56  ;;  %v7743_v15 = vsel %vm10803_vm14, %v7695_v58, 0.0  ;;  %v7699_v47 = vsub.f32 %v12765_v12, %v13044_v55  ;;  %s10291_s18 = scalar_lea.vmem %s7941_s11, 16  ;;  %s10295_s27 = sshll.u32 %s10382_s26, 4  ;;  %s10296_s27 = int_to_ptr.vmem [resolvable:$false] %s10295_s27 }
 0x41a   : > { %v7835_v62 = vadd.f32 %v7788_v20, %v7787_v57  ;;  %v7791_v42 = vmul.f32 %v7742_v53, %v7742_v53  ;;  %v7744_v20 = vsel %vm10842_vm5, %v7696_v10, 0.0  ;;  %v7792_v17 = vmul.f32 %v7743_v15, %v7743_v15  ;;  %p10292_p13 = scmp.ne.s32.totalorder %s7941_s11, %s10291_s18  ;;  %s10297_s19 = scalar_lea.vmem %s10296_s27, 32 }
 0x41b   : > { %v7745_v36 = vsel %vm14005_vm11, %v7697_v50, 0.0  ;;  %v7793_v27 = vmul.f32 %v7744_v20, %v7744_v20  ;;  %v7700_v18 = vsub.f32 %v12753_v8, %v13044_v55  ;;  %v7746_v41 = vsel %vm14007_vm15, %v7698_v22, 0.0  ;;  %p10298_p11 = scmp.lt.s32.totalorder %s7941_s11, %s10296_s27  ;;  %p10299_p9 = scmp.lt.s32.totalorder %s10297_s19, %s10291_s18 }
 0x41c   : > { %v7836_v19 = vadd.f32 %v7835_v62, %v7789_v32  ;;  %v7794_v61 = vmul.f32 %v7745_v36, %v7745_v36  ;;  %v7701_v2 = vsub.f32 %v12760_v3, %v13044_v55  ;;  %v7747_v56 = vsel %vm14009_vm2, %v7699_v47, 0.0  ;;  %p10293_p0 = pnand %p10292_p13, %p10566_p6 }
 0x41d   : > { %v7795_v12 = vmul.f32 %v7746_v41, %v7746_v41  ;;  %v7702_v45 = vsub.f32 %v12786_v1, %v13044_v55  ;;  %v7748_v62 = vsel %vm14011_vm4, %v7700_v18, 0.0  ;;  %v7796_v8 = vmul.f32 %v7747_v56, %v7747_v56  ;;  %p10300_p12 = por %p10299_p9, %p10298_p11 }
 0x41e   : > { %v7837_v52 = vadd.f32 %v7836_v19, %v7790_v44  ;;  %v7703_v9 = vsub.f32 %v12795_v59, %v13044_v55  ;;  %vm14097_vm7 = vnez %v14012_v23  ;;  %v7797_v3 = vmul.f32 %v7748_v62, %v7748_v62  ;;  %v14102_v23 = vld [vmem:[#allocation23_spill] sm:$0xff]  ;;  %p10294_p5 = pneg %p10293_p0 }
 0x41f   : > { %v7749_v53 = vsel %vm14097_vm7, %v7701_v2, 0.0  ;;  %v7704_v43 = vsub.f32 %v12780_v13, %v13044_v55  ;;  %vm14098_vm8 = vnez %v14015_v0  ;;  %v7705_v15 = vsub.f32 %v14099_v34, %v13044_v55  ;;  %v14105_v0 = vld [vmem:[#allocation25_spill] sm:$0xff]  ;;  %v14109_v2 = vld [vmem:[#allocation36_spill] sm:$0xff] }
 0x420   : > { %v7838_v57 = vadd.f32 %v7837_v52, %v7791_v42  ;;  %v7750_v19 = vsel %vm14098_vm8, %v7702_v45, 0.0  ;;  %v7798_v1 = vmul.f32 %v7749_v53, %v7749_v53  ;;  %v14100_v42 = vld [vmem:[#allocation33_spill] sm:$0xff]  ;;  %v7706_v20 = vsub.f32 %v14102_v23, %v13044_v55  ;;  %v14111_v45 = vld [vmem:[#allocation24_spill] sm:$0xff]  ;;  %v14120_v23 = vld [vmem:[#allocation26_spill] sm:$0xff]  ;;  %p10301_p2 = pnand %p10300_p12, %p10294_p5 }
 0x421   : > { %vm14101_vm12 = vnez %v14100_v42  ;;  %v7799_v59 = vmul.f32 %v7750_v19, %v7750_v19  ;;  %v7707_v36 = vsub.f32 %v14105_v0, %v13044_v55  ;;  %vm14110_vm14 = vnez %v14109_v2  ;;  %v14117_v34 = vld [vmem:[#allocation29_spill] sm:$0xff]  ;;  %v14118_v42 = vld [vmem:[#allocation39_spill] sm:$0xff]  ;;  %v14123_v0 = vld [vmem:[#allocation28_spill] sm:$0xff] }
 0x422   : > { %v7839_v40 = vadd.f32 %v7838_v57, %v7792_v17  ;;  %v7751_v52 = vsel %vm14101_vm12, %v7703_v9, 0.0  ;;  %v14103_v17 = vld [vmem:[#allocation34_spill] sm:$0xff]  ;;  %v7754_v56 = vsel %vm14110_vm14, %v7706_v20, 0.0  ;;  %v7709_v62 = vsub.f32 %v14111_v45, %v13044_v55  ;;  %v14129_v45 = vld [vmem:[#allocation68_spill] sm:$0xff] }
 0x423   : > { %vm14104_vm1 = vnez %v14103_v17  ;;  %v7800_v13 = vmul.f32 %v7751_v52, %v7751_v52  ;;  %v7803_v9 = vmul.f32 %v7754_v56, %v7754_v56  ;;  %vm14119_vm15 = vnez %v14118_v42  ;;  %v14121_v17 = vld [vmem:[#allocation40_spill] sm:$0xff]  ;;  %v14127_v2 = vld [vmem:[#allocation42_spill] sm:$0xff]  ;;  %v14136_v42 = vld [vmem:[#allocation45_spill] sm:$0xff] }
 0x424   : > { %v7840_v58 = vadd.f32 %v7839_v40, %v7793_v27  ;;  %v7752_v57 = vsel %vm14104_vm1, %v7704_v43, 0.0  ;;  %v14106_v27 = vld [vmem:[#allocation35_spill] sm:$0xff]  ;;  %v14115_v43 = vld [vmem:[#allocation38_spill] sm:$0xff]  ;;  %v7757_v52 = vsel %vm14119_vm15, %v7709_v62, 0.0  ;;  %v7712_v20 = vsub.f32 %v14120_v23, %v13044_v55 }
 0x425   : > { %vm14107_vm13 = vnez %v14106_v27  ;;  %v7801_v18 = vmul.f32 %v7752_v57, %v7752_v57  ;;  %vm14116_vm11 = vnez %v14115_v43  ;;  %vm14122_vm2 = vnez %v14121_v17  ;;  %v14124_v27 = vld [vmem:[#allocation41_spill] sm:$0xff]  ;;  %v14133_v43 = vld [vmem:[#allocation44_spill] sm:$0xff]  ;;  %v14138_v23 = vld [vmem:[#allocation46_spill] sm:$0xff] }
 0x426   : > { %v7841_v32 = vadd.f32 %v7840_v58, %v7794_v61  ;;  %v7753_v40 = vsel %vm14107_vm13, %v7705_v15, 0.0  ;;  %v14108_v61 = vld [vmem:[#allocation22_spill] sm:$0xff]  ;;  %v7711_v15 = vsub.f32 %v14117_v34, %v13044_v55  ;;  %vm14125_vm4 = vnez %v14124_v27  ;;  %v14135_v34 = vld [vmem:[#allocation32_spill] sm:$0xff] }
 0x427   : > { %v7708_v58 = vsub.f32 %v14108_v61, %v13044_v55  ;;  %v14126_v61 = vld [vmem:[#allocation31_spill] sm:$0xff]  ;;  %vm14128_vm7 = vnez %v14127_v2  ;;  %v7715_v62 = vsub.f32 %v14129_v45, %v13044_v55  ;;  %vm14134_vm12 = vnez %v14133_v43  ;;  %v14142_v27 = vld [vmem:[#allocation48_spill] sm:$0xff]  ;;  %v14156_v43 = vld [vmem:[#allocation54_spill] sm:$0xff] }
 0x428   : > { %v7842_v10 = vadd.f32 %v7841_v32, %v7795_v12  ;;  %v7802_v12 = vmul.f32 %v7753_v40, %v7753_v40  ;;  %v7759_v40 = vsel %vm14125_vm4, %v7711_v15, 0.0  ;;  %v7760_v56 = vsel %vm14128_vm7, %v7712_v20, 0.0 }
 0x429   : > { %v7756_v19 = vsel %vm14116_vm11, %v7708_v58, 0.0  ;;  %v7714_v58 = vsub.f32 %v14126_v61, %v13044_v55  ;;  %v7717_v15 = vsub.f32 %v14135_v34, %v13044_v55  ;;  %vm14137_vm1 = vnez %v14136_v42  ;;  %v14144_v61 = vld [vmem:[#allocation49_spill] sm:$0xff] }
 0x42a   : > { %v7843_v44 = vadd.f32 %v7842_v10, %v7796_v8  ;;  %v14112_v8 = vld [vmem:[#allocation37_spill] sm:$0xff]  ;;  %vm14139_vm13 = vnez %v14138_v23  ;;  %vm14145_vm11 = vnez %v14144_v61  ;;  %v14161_v42 = vsub.f32 %v12964_v63, %v13044_v55 }
 0x42b   : > { %vm14113_vm5 = vnez %v14112_v8  ;;  %v14130_v8 = vld [vmem:[#allocation43_spill] sm:$0xff]  ;;  %v14164_v23 = vsub.f32 %v12973_v11, %v13044_v55  ;;  %v14173_v61 = vsub.f32 %v12993_v51, %v13044_v55 }
 0x42c   : > { %v7844_v50 = vadd.f32 %v7843_v44, %v7797_v3  ;;  %v7755_v10 = vsel %vm14113_vm5, %v7707_v36, 0.0  ;;  %v14114_v3 = vld [vmem:[#allocation27_spill] sm:$0xff]  ;;  %v7713_v36 = vsub.f32 %v14123_v0, %v13044_v55  ;;  %vm14131_vm8 = vnez %v14130_v8 }
 0x42d   : > { %v7710_v44 = vsub.f32 %v14114_v3, %v13044_v55  ;;  %v14132_v3 = vld [vmem:[#allocation30_spill] sm:$0xff]  ;;  %vm14143_vm5 = vnez %v14142_v27  ;;  %v14170_v27 = vsub.f32 %v12967_v21, %v13044_v55 }
 0x42e   : > { %v7845_v22 = vadd.f32 %v7844_v50, %v7798_v1  ;;  %v7804_v1 = vmul.f32 %v7755_v10, %v7755_v10  ;;  %v7761_v10 = vsel %vm14131_vm8, %v7713_v36, 0.0  ;;  %vm14157_vm8 = vnez %v14156_v43 }
 0x42f   : > { %v7758_v57 = vsel %vm14122_vm2, %v7710_v44, 0.0  ;;  %v7716_v44 = vsub.f32 %v14132_v3, %v13044_v55 }
 0x430   : > { %v7846_v47 = vadd.f32 %v7845_v22, %v7799_v59  ;;  %v7805_v59 = vmul.f32 %v7756_v19, %v7756_v19  ;;  %v7762_v19 = vsel %vm14134_vm12, %v7714_v58, 0.0  ;;  %v7767_v58 = vsel %vm14145_vm11, %v7719_v49, 0.0  ;;  %v14150_v49 = vld [vmem:[#allocation52_spill] sm:$0xff] }
 0x431   : > { %v7764_v20 = vsel %vm14139_vm13, %v7716_v44, 0.0  ;;  %v7816_v25 = vmul.f32 %v7767_v58, %v7767_v58  ;;  %vm14151_vm4 = vnez %v14150_v49  ;;  %v14174_v58 = vld [vmem:[#allocation60_spill] sm:$0xff]  ;;  %v14181_v49 = vsub.f32 %v12995_v16, %v13044_v55 }
 0x432   : > { %v7847_v41 = vadd.f32 %v7846_v47, %v7800_v13  ;;  %v7806_v13 = vmul.f32 %v7757_v52, %v7757_v52  ;;  %v7763_v52 = vsel %vm14137_vm1, %v7715_v62, 0.0  ;;  %v7813_v0 = vmul.f32 %v7764_v20, %v7764_v20  ;;  %v14165_v20 = vld [vmem:[#allocation57_spill] sm:$0xff] }
 0x433   : > { %v7812_v17 = vmul.f32 %v7763_v52, %v7763_v52  ;;  %v14162_v52 = vld [vmem:[#allocation56_spill] sm:$0xff]  ;;  %vm14166_vm13 = vnez %v14165_v20  ;;  %vm14175_vm11 = vnez %v14174_v58 }
 0x434   : > { %v7848_v32 = vadd.f32 %v7847_v41, %v7801_v18  ;;  %v7807_v18 = vmul.f32 %v7758_v57, %v7758_v57  ;;  %vm14163_vm1 = vnez %v14162_v52 }
 0x436   : > { %v7849_v53 = vadd.f32 %v7848_v32, %v7802_v12  ;;  %v7808_v12 = vmul.f32 %v7759_v40, %v7759_v40  ;;  %v7766_v40 = vsel %vm14143_vm5, %v7718_v54, 0.0  ;;  %v14148_v54 = vld [vmem:[#allocation51_spill] sm:$0xff] }
 0x437   : > { %v7815_v2 = vmul.f32 %v7766_v40, %v7766_v40  ;;  %vm14149_vm2 = vnez %v14148_v54  ;;  %v14171_v40 = vld [vmem:[#allocation59_spill] sm:$0xff]  ;;  %v14178_v54 = vsub.f32 %v12988_v46, %v13044_v55 }
 0x438   : > { %v7850_v50 = vadd.f32 %v7849_v53, %v7803_v9  ;;  %v7809_v9 = vmul.f32 %v7760_v56, %v7760_v56  ;;  %v7769_v62 = vsel %vm14149_vm2, %v7721_v39, 0.0  ;;  %v14155_v39 = vsub.f32 %v12931_v30, %v13044_v55 }
 0x439   : > { %v7818_v5 = vmul.f32 %v7769_v62, %v7769_v62  ;;  %vm14172_vm5 = vnez %v14171_v40  ;;  %v14179_v62 = vld [vmem:[#allocation62_spill] sm:$0xff] }
 0x43a   : > { %v7851_v22 = vadd.f32 %v7850_v50, %v7804_v1  ;;  %v7810_v1 = vmul.f32 %v7761_v10, %v7761_v10  ;;  %v7770_v10 = vsel %vm14151_vm4, %v7722_v28, 0.0  ;;  %v14158_v28 = vsub.f32 %v12938_v6, %v13044_v55 }
 0x43b   : > { %v7819_v35 = vmul.f32 %v7770_v10, %v7770_v10  ;;  %v14182_v10 = vld [vmem:[#allocation63_spill] sm:$0xff] }
 0x43c   : > { %v7852_v47 = vadd.f32 %v7851_v22, %v7805_v59  ;;  %v7811_v59 = vmul.f32 %v7762_v19, %v7762_v19  ;;  %v7772_v19 = vsel %vm14157_vm8, %v14155_v39, 0.0  ;;  %vm14183_vm2 = vnez %v14182_v10 }
 0x43e   : > { %v7853_v41 = vadd.f32 %v7852_v47, %v7806_v13  ;;  %v14140_v13 = vld [vmem:[#allocation47_spill] sm:$0xff] }
 0x43f   : > { %vm14141_vm14 = vnez %v14140_v13  ;;  %v14167_v13 = vsub.f32 %v12958_v14, %v13044_v55 }
 0x440   : > { %v7854_v32 = vadd.f32 %v7853_v41, %v7807_v18  ;;  %v7765_v47 = vsel %vm14141_vm14, %v7717_v15, 0.0 }
 0x441   : > { %v7814_v18 = vmul.f32 %v7765_v47, %v7765_v47  ;;  %v14168_v47 = vld [vmem:[#allocation58_spill] sm:$0xff] }
 0x442   : > { %v7855_v53 = vadd.f32 %v7854_v32, %v7808_v12  ;;  %v14146_v12 = vld [vmem:[#allocation50_spill] sm:$0xff]  ;;  %vm14169_vm14 = vnez %v14168_v47 }
 0x443   : > { %vm14147_vm15 = vnez %v14146_v12  ;;  %v14176_v12 = vsub.f32 %v13000_v7, %v13044_v55 }
 0x444   : > { %v7856_v50 = vadd.f32 %v7855_v53, %v7809_v9  ;;  %v7768_v32 = vsel %vm14147_vm15, %v7720_v48, 0.0  ;;  %v14152_v48 = vsub.f32 %v12943_v60, %v13044_v55  ;;  %v14153_v53 = vld [vmem:[#allocation53_spill] sm:$0xff]  ;;  %v7821_v60 = vmul.f32 %v7772_v19, %v7772_v19 }
 0x445   : > { %v7817_v24 = vmul.f32 %v7768_v32, %v7768_v32  ;;  %vm14154_vm7 = vnez %v14153_v53  ;;  %vm14180_vm15 = vnez %v14179_v62 }
 0x446   : > { %v7857_v22 = vadd.f32 %v7856_v50, %v7810_v1  ;;  %v7771_v3 = vsel %vm14154_vm7, %v14152_v48, 0.0  ;;  %v14159_v50 = vld [vmem:[#allocation55_spill] sm:$0xff]  ;;  %v14184_v48 = vsub.f32 %v13019_v31, %v13044_v55 }
 0x447   : > { %v7820_v37 = vmul.f32 %v7771_v3, %v7771_v3  ;;  %vm14160_vm12 = vnez %v14159_v50  ;;  %v14189_v50 = vsub.f32 %v13021_v26, %v13044_v55 }
 0x448   : > { %v7858_v57 = vadd.f32 %v7857_v22, %v7811_v59  ;;  %v7773_v34 = vsel %vm14160_vm12, %v14158_v28, 0.0  ;;  %v7774_v59 = vsel %vm14163_vm1, %v14161_v42, 0.0  ;;  %v7782_v3 = vsel %vm14092_vm0, %v14184_v48, 0.0 }
 0x449   : > { %v7822_v30 = vmul.f32 %v7773_v34, %v7773_v34  ;;  %v7823_v6 = vmul.f32 %v7774_v59, %v7774_v59  ;;  %v7831_v16 = vmul.f32 %v7782_v3, %v7782_v3 }
 0x44a   : > { %v7859_v36 = vadd.f32 %v7858_v57, %v7812_v17  ;;  %v7775_v17 = vsel %vm14166_vm13, %v14164_v23, 0.0 }
 0x44b   : > { %v7824_v63 = vmul.f32 %v7775_v17, %v7775_v17 }
 0x44c   : > { %v7860_v41 = vadd.f32 %v7859_v36, %v7813_v0  ;;  %v7776_v0 = vsel %vm14169_vm14, %v14167_v13, 0.0 }
 0x44d   : > { %v7825_v11 = vmul.f32 %v7776_v0, %v7776_v0 }
 0x44e   : > { %v7861_v56 = vadd.f32 %v7860_v41, %v7814_v18  ;;  %v7777_v18 = vsel %vm14172_vm5, %v14170_v27, 0.0 }
 0x44f   : > { %v7826_v14 = vmul.f32 %v7777_v18, %v7777_v18 }
 0x450   : > { %v7862_v45 = vadd.f32 %v7861_v56, %v7815_v2  ;;  %v7778_v2 = vsel %vm14175_vm11, %v14173_v61, 0.0 }
 0x451   : > { %v7827_v21 = vmul.f32 %v7778_v2, %v7778_v2 }
 0x452   : > { %v7863_v8 = vadd.f32 %v7862_v45, %v7816_v25  ;;  %v7779_v25 = vsel %vm14086_vm10, %v14176_v12, 0.0 }
 0x453   : > { %v7828_v51 = vmul.f32 %v7779_v25, %v7779_v25 }
 0x454   : > { %v7864_v9 = vadd.f32 %v7863_v8, %v7817_v24  ;;  %v7780_v24 = vsel %vm14180_vm15, %v14178_v54, 0.0 }
 0x455   : > { %v7829_v7 = vmul.f32 %v7780_v24, %v7780_v24 }
 0x456   : > { %v7865_v44 = vadd.f32 %v7864_v9, %v7818_v5  ;;  %v7781_v5 = vsel %vm14183_vm2, %v14181_v49, 0.0 }
 0x457   : > { %v7830_v46 = vmul.f32 %v7781_v5, %v7781_v5 }
 0x458   : > { %v7866_v1 = vadd.f32 %v7865_v44, %v7819_v35  ;;  %v14186_v44 = vsub.f32 %v13026_v33, %v13044_v55  ;;  %v7785_v33 = vsel %vm11916_vm9, %v14189_v50, 0.0 }
 0x45a   : > { %v7867_v15 = vadd.f32 %v7866_v1, %v7820_v37  ;;  %v7783_v43 = vsel %vm14094_vm6, %v14186_v44, 0.0  ;;  %v14188_v37 = vsub.f32 %v13014_v29, %v13044_v55 }
 0x45b   : > { %v7832_v1 = vmul.f32 %v7783_v43, %v7783_v43 }
 0x45c   : > { %v7868_v22 = vadd.f32 %v7867_v15, %v7821_v60  ;;  %v7784_v31 = vsel %vm11911_vm3, %v14188_v37, 0.0  ;;  %v7834_v15 = vmul.f32 %v7785_v33, %v7785_v33 }
 0x45d   : > { %v7833_v34 = vmul.f32 %v7784_v31, %v7784_v31 }
 0x45e   : > { %v7869_v57 = vadd.f32 %v7868_v22, %v7822_v30 }
 0x460   : > { %v7870_v36 = vadd.f32 %v7869_v57, %v7823_v6 }
 0x462   : > { %v7871_v41 = vadd.f32 %v7870_v36, %v7824_v63 }
 0x464   : > { %v7872_v56 = vadd.f32 %v7871_v41, %v7825_v11 }
 0x466   : > { %v7873_v45 = vadd.f32 %v7872_v56, %v7826_v14 }
 0x468   : > { %v7874_v8 = vadd.f32 %v7873_v45, %v7827_v21 }
 0x46a   : > { %v7875_v9 = vadd.f32 %v7874_v8, %v7828_v51 }
 0x46c   : > { %v7876_v35 = vadd.f32 %v7875_v9, %v7829_v7 }
 0x46e   : > { %v7877_v19 = vadd.f32 %v7876_v35, %v7830_v46 }
 0x470   : > { %v7878_v28 = vadd.f32 %v7877_v19, %v7831_v16 }
 0x472   : > { %v7879_v60 = vadd.f32 %v7878_v28, %v7832_v1 }
 0x474   : > { %v7880_v42 = vadd.f32 %v7879_v60, %v7833_v34 }
 0x476   : > { %v7881_v52 = vadd.f32 %v7880_v42, %v7834_v15 }
 0x478   : > { %v7882_v59 = vrot.slane %v7881_v52, 4 }
 0x47a   : > { %v7883_v29 = vadd.f32 %v7882_v59, %v7881_v52 }
 0x47c   : > { %v7884_v30 = vrot.slane %v7883_v29, 2 }
 0x47e   : > { %v7885_v4 = vadd.f32 %v7884_v30, %v7883_v29 }
 0x480   : > { %v7886_v22 = vrot.slane %v7885_v4, 1 }
 0x482   : > { %v7887_v26 = vadd.f32 %v7886_v22, %v7885_v4 }
 0x484   : > { %7888 = vst [vmem:[%s325_s30] sm:$0x1] %v7887_v26 }
 0x485   : > { %10304 = shalt.err (!%p10301_p2)
}
 0x486   : > { %s10305_s25 = scalar_lea.hbm %s13372_s17, 16  ;;  %s10309_s29 = scalar_lea.hbm %s13418_s6, 32 }
 0x487   : > { %p10306_p1 = scmp.ne.s32.totalorder %s13372_s17, %s10305_s25  ;;  %p10310_p3 = scmp.lt.u32.totalorder %s13372_s17, %s13418_s6 }
 0x488   : > { %p10311_p7 = scmp.lt.u32.totalorder %s10309_s29, %s10305_s25  ;;  %p10313_p13 = scmp.lt.u32.totalorder %s10305_s25, %s13372_s17 }
 0x489   : > { %p10307_p4 = pnand %p10306_p1, %p10566_p6 }
 0x48a   : > { %p10312_p10 = por %p10311_p7, %p10310_p3 }
 0x48b   : > { %p10308_p8 = pneg %p10307_p4 }
 0x48c   : > { %p10314_p0 = por %p10313_p13, %p10312_p10 }
 0x48e   : > { %p10315_p5 = pnand %p10314_p0, %p10308_p8 }
 0x490   : > { %10318 = shalt.err (!%p10315_p5)
}
 0x491   : > { %9920 = dma.vmem_to_hbm [thread:$0]  (%p10566_p6), %s7941_s11, 16, %s13372_s17, %s13073_s7  }
 0x492 PF: > { %s7952_s30 = sand.u32 1, %s10357_s21   ;;  %p14190_p11 = scmp.ne.s32.totalorder %s13678_s28, 0 }
 0x493   : > { %p14191_p9 = scmp.ge.s32.totalorder %s10369_s24, 2  ;;  %s7953_s9 = scalar_lea.sflag [#allocation6], %s7952_s30 }
 0x495   : > { %p9939_p12 = pnand %p14191_p9, %p14190_p11 }
 0x497   : > { %10348 = dma.done.wait (!%p9939_p12), %s7953_s9, 3072  }
 0x498   : > { %10350 = vsyncadd (!%p9939_p12), %s7953_s9, 4294964224  ;;  %s14192_s15 = sadd.s32 4294967294, %s10369_s24  }
 0x499   : > { %s7961_s18 = sand.u32 1, %s14192_s15  }
 0x49a   : > { %s7962_s26 = scalar_lea.sflag [#allocation14], %s7961_s18 }
 0x49b   : > { %10352 = dma.done.wait (!%p9939_p12), %s7962_s26, 32  }
 0x49c   : > { %10354 = vsyncadd (!%p9939_p12), %s7962_s26, 4294967264  ;;  %p25_p6 = scmp.ge.s32.totalorder %s10552_s13, 4   ;;  %s14193_s21 = smov %s10361_s22 }
 0x49d   : > { %s14194_s22 = smov %s10365_s23  ;;  %s14195_s23 = smov %s10562_s16 }
 0x49e   : > { %s14196_s24 = smov %s10552_s13  ;;  %27 = sbr.rel (!%p25_p6) target bundleno = 9 (0x9), region = 125 }
 0x4a5   :  { %7974 = vsyncpa [#allocation5], 1 }
 0x4a6   :  { %7976 = vsyncpa [#allocation5 + $0x1], 1 }
 0x4a7   :  { %7977 = vsyncpa [#allocation8], 1 }
 0x4a8   :  { %7978 = vsyncpa [#allocation11], 1 }
 0x4a9   :  { %7979 = vsyncpa [#allocation6], 1 }
 0x4aa   :  { %7981 = vsyncpa [#allocation6 + $0x1], 1 }
 0x4ab   :  { %7982 = vsyncpa [#allocation14], 1 }
 0x4ac   :  { %7984 = vsyncpa [#allocation14 + $0x1], 1 }

</bundles_post_ra>
